<compile_context>
chip_gen: v5e
topology: v5e:2x2
jax: 0.10.0
libtpu: 0.0.40
codegen_flags: <defaults>
</compile_context>

<pallas_src>
import functools

import jax
import jax.numpy as jnp
from jax.experimental import pallas as pl
from jax.experimental.pallas import tpu as pltpu


# ---------------------------------------------------------------------------
# helpers
# ---------------------------------------------------------------------------

def _round_up(v, m):
    return ((v + m - 1) // m) * m


def _pad_c(c):
    return _round_up(c, 128)


def _choose_tm(mp):
    for tm in (256, 128, 64, 32, 16, 8):
        if mp % tm == 0:
            return tm
    return mp


_COMPILER_PARAMS = pltpu.CompilerParams(
    dimension_semantics=("parallel",),
    vmem_limit_bytes=32 * 1024 * 1024,
)


# ---------------------------------------------------------------------------
# Pallas kernels
# ---------------------------------------------------------------------------

def _matmul_bias_kernel(x_ref, w_ref, b_ref, o_ref, *, relu):
    # x: (TM, K) bf16, w: (K, N) bf16, b: (1, N) f32
    acc = jnp.dot(x_ref[...], w_ref[...], preferred_element_type=jnp.float32)
    y = acc + b_ref[...]
    if relu:
        y = jnp.maximum(y, 0.0)
    o_ref[...] = y.astype(o_ref.dtype)


def _matmul_bias_res_kernel(x_ref, w_ref, b_ref, r_ref, o_ref, *, relu):
    # Residual add done in f32 (r is stored bf16).
    acc = jnp.dot(x_ref[...], w_ref[...], preferred_element_type=jnp.float32)
    y = acc + b_ref[...] + r_ref[...].astype(jnp.float32)
    if relu:
        y = jnp.maximum(y, 0.0)
    o_ref[...] = y.astype(o_ref.dtype)


def _maxpool_kernel(p_ref, o_ref, *, ntaps, c):
    # p: (TM, ntaps*c); unrolled VPU max over lane-aligned static tap slices.
    m = p_ref[:, 0:c]
    for t in range(1, ntaps):
        m = jnp.maximum(m, p_ref[:, t * c:(t + 1) * c])
    o_ref[...] = m


# ---------------------------------------------------------------------------
# Pallas wrappers
# ---------------------------------------------------------------------------

def fused_matmul(a, w, bias, relu, res=None):
    """out[M,N] = relu?( (a @ w) + bias (+ res) ); a/w bf16, bias f32, out bf16."""
    M, K0 = a.shape
    Kw, Np = w.shape
    if K0 != Kw:                      # conv1: K=147 -> padded weight rows (256)
        a = jnp.pad(a, ((0, 0), (0, Kw - K0)))
    Mp = _round_up(M, 8)
    if Mp != M:
        a = jnp.pad(a, ((0, Mp - M), (0, 0)))
        if res is not None:
            res = jnp.pad(res, ((0, Mp - M), (0, 0)))
    TM = _choose_tm(Mp)
    b2 = bias.reshape(1, Np)

    if res is None:
        kernel = functools.partial(_matmul_bias_kernel, relu=relu)
    else:
        kernel = functools.partial(_matmul_bias_res_kernel, relu=relu)

    in_specs = [
        pl.BlockSpec((TM, Kw), lambda i: (i, 0)),
        pl.BlockSpec((Kw, Np), lambda i: (0, 0)),
        pl.BlockSpec((1, Np), lambda i: (0, 0)),
    ]
    args = [a, w, b2]
    if res is not None:
        in_specs.append(pl.BlockSpec((TM, Np), lambda i: (i, 0)))
        args.append(res)

    out = pl.pallas_call(
        kernel,
        out_shape=jax.ShapeDtypeStruct((Mp, Np), jnp.bfloat16),
        grid_spec=pltpu.PrefetchScalarGridSpec(
            num_scalar_prefetch=0,
            grid=(Mp // TM,),
            in_specs=in_specs,
            out_specs=pl.BlockSpec((TM, Np), lambda i: (i, 0)),
        ),
        compiler_params=_COMPILER_PARAMS,
    )(*args)
    if Mp != M:
        out = out[:M]
    return out


def _shifted_taps(x, k, stride, pad, Ho, Wo):
    """NHWC shifted-window slices for each of the k*k taps (lane axis intact)."""
    if pad:
        x = jnp.pad(x, ((0, 0), (pad, pad), (pad, pad), (0, 0)))
    taps = []
    for i in range(k):
        for j in range(k):
            taps.append(x[:, i:i + stride * Ho:stride, j:j + stride * Wo:stride, :])
    return taps


def conv_bn(x, w_mat, bias, k, stride, pad, relu, residual=None):
    """Conv (no bias) + folded-BN bias + optional residual + optional ReLU.

    x: (B, H, W, Cp) NHWC bf16, channel-padded; w_mat: (k*k*Cp (rounded to 128),
    Np) bf16 with BN scale folded; bias: (Np,) f32.
    """
    B, H, W, Cp = x.shape
    Ho = (H + 2 * pad - k) // stride + 1
    Wo = (W + 2 * pad - k) // stride + 1
    M = B * Ho * Wo
    if k == 1 and stride == 1 and pad == 0:
        a = x.reshape(M, Cp)
    else:
        taps = _shifted_taps(x, k, stride, pad, Ho, Wo)
        # Lane-contiguous concat (NHWC im2col, no transposes).
        # TODO(synk): extract taps inside the kernel to avoid k*k HBM blow-up.
        a = jnp.concatenate(taps, axis=-1).reshape(M, k * k * Cp)
    res2d = None
    if residual is not None:
        res2d = residual.reshape(M, -1)
    out = fused_matmul(a, w_mat, bias, relu, res2d)   # (M, Np) bf16
    return out.reshape(B, Ho, Wo, -1)


def maxpool2d(x, k=3, stride=2, pad=1):
    """MaxPool2d(3, stride=2, padding=1). Input is post-ReLU (>=0) and the
    padded channels are exactly zero, so zero padding == -inf padding."""
    B, H, W, Cp = x.shape
    Ho = (H + 2 * pad - k) // stride + 1
    Wo = (W + 2 * pad - k) // stride + 1
    M = B * Ho * Wo
    taps = _shifted_taps(x, k, stride, pad, Ho, Wo)
    a = jnp.concatenate(taps, axis=-1).reshape(M, k * k * Cp)
    Mp = _round_up(M, 8)
    if Mp != M:
        a = jnp.pad(a, ((0, Mp - M), (0, 0)))
    TM = _choose_tm(Mp)

    out = pl.pallas_call(
        functools.partial(_maxpool_kernel, ntaps=k * k, c=Cp),
        out_shape=jax.ShapeDtypeStruct((Mp, Cp), x.dtype),
        grid_spec=pltpu.PrefetchScalarGridSpec(
            num_scalar_prefetch=0,
            grid=(Mp // TM,),
            in_specs=[pl.BlockSpec((TM, k * k * Cp), lambda i: (i, 0))],
            out_specs=pl.BlockSpec((TM, Cp), lambda i: (i, 0)),
        ),
        compiler_params=_COMPILER_PARAMS,
    )(a)
    if Mp != M:
        out = out[:M]
    return out.reshape(B, Ho, Wo, Cp)


# ---------------------------------------------------------------------------
# Deterministic parameter construction (shapes from torchvision resnet18)
# ---------------------------------------------------------------------------

def make_params(key):
    keys = iter(jax.random.split(key, 128))

    def _nrm(*shape):
        return jax.random.normal(next(keys), shape, jnp.float32)

    def _uni(*shape):
        return jax.random.uniform(next(keys), shape, dtype=jnp.float32)

    def bn_affine(c):
        eps = 1e-5
        gamma = 1.0 + 0.05 * _nrm(c)
        beta = 0.05 * _nrm(c)
        mean = 0.05 * _nrm(c)
        var = 1.0 + 0.1 * _uni(c)
        scale = gamma / jnp.sqrt(var + eps)
        return scale, beta - mean * scale

    def conv_bn_params(cin, cout, k, cin_store, cout_store):
        fan = cin * k * k
        w = _nrm(cout, cin, k, k) * jnp.sqrt(2.0 / fan)     # He init (OIHW)
        scale, bias = bn_affine(cout)
        w = w * scale[:, None, None, None]                  # fold BN scale
        w_hwio = jnp.transpose(w, (2, 3, 1, 0))             # (k, k, cin, cout)
        w_full = jnp.zeros((k, k, cin_store, cout_store), jnp.float32)
        w_full = w_full.at[:, :, :cin, :cout].set(w_hwio)
        K0 = k * k * cin_store
        Kp = _round_up(K0, 128)
        w_flat = w_full.reshape(K0, cout_store)
        if Kp != K0:
            w_flat = jnp.pad(w_flat, ((0, Kp - K0), (0, 0)))
        b_full = jnp.zeros((cout_store,), jnp.float32).at[:cout].set(bias)
        return w_flat.astype(jnp.bfloat16), b_full

    def basic_block(cin, cout, stride, cin_store):
        cout_store = _pad_c(cout)
        blk = {
            "conv1": conv_bn_params(cin, cout, 3, cin_store, cout_store),
            "conv2": conv_bn_params(cout, cout, 3, cout_store, cout_store),
        }
        if stride != 1 or cin != cout:
            blk["down"] = conv_bn_params(cin, cout, 1, cin_store, cout_store)
        return blk, cout_store

    params = {}
    params["conv1"] = conv_bn_params(3, 64, 7, 3, _pad_c(64))
    cs = _pad_c(64)

    layer1 = []
    for _ in range(2):
        blk, cs = basic_block(64, 64, 1, cs)
        layer1.append(blk)
    params["layer1"] = layer1

    blk0, cs = basic_block(64, 128, 2, cs)
    blk1, cs = basic_block(128, 128, 1, cs)
    params["layer2"] = [blk0, blk1]

    blk0, cs = basic_block(128, 256, 2, cs)
    blk1, cs = basic_block(256, 256, 1, cs)
    params["layer3"] = [blk0, blk1]
    return params


# ---------------------------------------------------------------------------
# Forward pass
# ---------------------------------------------------------------------------

def run_basic_block(x, blk):
    stride = 2 if "down" in blk else 1      # resnet18: downsample <=> stride 2
    identity = x
    w1, b1 = blk["conv1"]
    out = conv_bn(x, w1, b1, k=3, stride=stride, pad=1, relu=True)
    if "down" in blk:
        wd, bd = blk["down"]
        identity = conv_bn(x, wd, bd, k=1, stride=stride, pad=0, relu=False)
    w2, b2 = blk["conv2"]
    # residual added before the final ReLU (matches PyTorch BasicBlock)
    out = conv_bn(out, w2, b2, k=3, stride=1, pad=1, relu=True,
                  residual=identity)
    return out


def backbone_forward(x_nchw, params):
    # x: (B, 3, H, W) NCHW f32 -> NHWC bf16 once.
    x = jnp.transpose(x_nchw, (0, 2, 3, 1)).astype(jnp.bfloat16)
    w, b = params["conv1"]
    x = conv_bn(x, w, b, k=7, stride=2, pad=3, relu=True)
    x = maxpool2d(x, k=3, stride=2, pad=1)
    for blk in params["layer1"]:
        x = run_basic_block(x, blk)
    for blk in params["layer2"]:
        x = run_basic_block(x, blk)
    for blk in params["layer3"]:
        x = run_basic_block(x, blk)
    B, H, W, C = x.shape                     # C == 256 (no channel padding)
    # match PyTorch x.reshape(B, C, H*W): single transpose at the very end.
    return jnp.transpose(x.reshape(B, H * W, C), (0, 2, 1)).astype(jnp.float32)


# ---------------------------------------------------------------------------
# Main
# ---------------------------------------------------------------------------

if __name__ == "__main__":
    key = jax.random.PRNGKey(0)
    k_params, k_x = jax.random.split(key)
    params = make_params(k_params)

    # Small input: B=2, 3 channels (resnet18 conv1 expects 3), 32x32 spatial.
    x = jax.random.normal(k_x, (2, 3, 32, 32), jnp.float32)

    fwd = jax.jit(backbone_forward)
    out = jax.block_until_ready(fwd(x, params))

    assert out.shape == (2, 256, 4), out.shape
    assert bool(jnp.all(jnp.isfinite(out)))
    print("KERNEL_OK")
</pallas_src>

<mosaic_0001>
module attributes {stable_mosaic.version = 11 : i64} {
  func.func @_matmul_bias_kernel(%arg0: i32, %arg1: memref<256x256xbf16, #tpu.memory_space<vmem>>, %arg2: memref<256x128xbf16, #tpu.memory_space<vmem>>, %arg3: memref<1x128xf32, #tpu.memory_space<vmem>>, %arg4: memref<256x128xbf16, #tpu.memory_space<vmem>>) attributes {dimension_semantics = [#tpu.dimension_semantics<parallel>], iteration_bounds = array<i64: 2>, scalar_prefetch = 0 : i64, scratch_operands = 0 : i64, tpu.core_type = #tpu.core_type<tc>, window_params = [{transform_indices = @transform_0, window_bounds = array<i64: 256, 256>}, {pipeline_mode = #tpu.pipeline_mode<synchronous>, transform_indices = @transform_1, window_bounds = array<i64: 256, 128>}, {pipeline_mode = #tpu.pipeline_mode<synchronous>, transform_indices = @transform_2, window_bounds = array<i64: 1, 128>}, {transform_indices = @transform_3, window_bounds = array<i64: 256, 128>}]} {
    %c0 = arith.constant 0 : index
    %c0_0 = arith.constant 0 : index
    %0 = vector.load %arg1[%c0, %c0_0] : memref<256x256xbf16, #tpu.memory_space<vmem>>, vector<256x256xbf16>
    %c0_1 = arith.constant 0 : index
    %c0_2 = arith.constant 0 : index
    %1 = vector.load %arg2[%c0_1, %c0_2] : memref<256x128xbf16, #tpu.memory_space<vmem>>, vector<256x128xbf16>
    %cst = arith.constant dense<0.000000e+00> : vector<256x128xf32>
    %2 = tpu.matmul %0, %1, %cst {dimension_numbers = #tpu.dot_dimension_numbers<[1], [0], [0], [1], [0, 0, 1, 1], [], []>} : vector<256x256xbf16>, vector<256x128xbf16>, vector<256x128xf32> -> vector<256x128xf32>
    %c0_3 = arith.constant 0 : index
    %c0_4 = arith.constant 0 : index
    %3 = vector.load %arg3[%c0_3, %c0_4] : memref<1x128xf32, #tpu.memory_space<vmem>>, vector<1x128xf32>
    %4 = vector.broadcast %3 : vector<1x128xf32> to vector<256x128xf32>
    %5 = arith.addf %2, %4 : vector<256x128xf32>
    %cst_5 = arith.constant 0.000000e+00 : f32
    %6 = vector.broadcast %cst_5 : f32 to vector<256x128xf32>
    %7 = arith.maximumf %5, %6 : vector<256x128xf32>
    %8 = arith.truncf %7 : vector<256x128xf32> to vector<256x128xbf16>
    %c0_6 = arith.constant 0 : index
    %c0_7 = arith.constant 0 : index
    %9 = vector.load %arg4[%c0_6, %c0_7] : memref<256x128xbf16, #tpu.memory_space<vmem>>, vector<256x128xbf16>
    tpu.vector_store %arg4[%c0_6, %c0_7], %8 {strides = array<i32>} : memref<256x128xbf16, #tpu.memory_space<vmem>>, vector<256x128xbf16>,
    return
  }
  func.func @transform_0(%arg0: i32) -> (i32, i32) {
    %c0_i32 = arith.constant 0 : i32
    %c0_i32_0 = arith.constant 0 : i32
    return %arg0, %c0_i32 : i32, i32
  }
  func.func @transform_1(%arg0: i32) -> (i32, i32) {
    %c0_i32 = arith.constant 0 : i32
    %c0_i32_0 = arith.constant 0 : i32
    %c0_i32_1 = arith.constant 0 : i32
    return %c0_i32, %c0_i32_0 : i32, i32
  }
  func.func @transform_2(%arg0: i32) -> (i32, i32) {
    %c0_i32 = arith.constant 0 : i32
    %c0_i32_0 = arith.constant 0 : i32
    %c0_i32_1 = arith.constant 0 : i32
    return %c0_i32, %c0_i32_0 : i32, i32
  }
  func.func @transform_3(%arg0: i32) -> (i32, i32) {
    %c0_i32 = arith.constant 0 : i32
    %c0_i32_0 = arith.constant 0 : i32
    return %arg0, %c0_i32 : i32, i32
  }
}

module attributes {stable_mosaic.version = 11 : i64} {
  func.func @_maxpool_kernel(%arg0: i32, %arg1: memref<128x1152xbf16, #tpu.memory_space<vmem>>, %arg2: memref<128x128xbf16, #tpu.memory_space<vmem>>) attributes {dimension_semantics = [#tpu.dimension_semantics<parallel>], iteration_bounds = array<i64: 1>, scalar_prefetch = 0 : i64, scratch_operands = 0 : i64, tpu.core_type = #tpu.core_type<tc>, window_params = [{transform_indices = @transform_0, window_bounds = array<i64: 128, 1152>}, {transform_indices = @transform_1, window_bounds = array<i64: 128, 128>}]} {
    %c0 = arith.constant 0 : index
    %c0_0 = arith.constant 0 : index
    %0 = vector.load %arg1[%c0, %c0_0] : memref<128x1152xbf16, #tpu.memory_space<vmem>>, vector<128x128xbf16>
    %c0_1 = arith.constant 0 : index
    %c128 = arith.constant 128 : index
    %1 = vector.load %arg1[%c0_1, %c128] : memref<128x1152xbf16, #tpu.memory_space<vmem>>, vector<128x128xbf16>
    %2 = arith.maximumf %0, %1 : vector<128x128xbf16>
    %c0_2 = arith.constant 0 : index
    %c256 = arith.constant 256 : index
    %3 = vector.load %arg1[%c0_2, %c256] : memref<128x1152xbf16, #tpu.memory_space<vmem>>, vector<128x128xbf16>
    %4 = arith.maximumf %2, %3 : vector<128x128xbf16>
    %c0_3 = arith.constant 0 : index
    %c384 = arith.constant 384 : index
    %5 = vector.load %arg1[%c0_3, %c384] : memref<128x1152xbf16, #tpu.memory_space<vmem>>, vector<128x128xbf16>
    %6 = arith.maximumf %4, %5 : vector<128x128xbf16>
    %c0_4 = arith.constant 0 : index
    %c512 = arith.constant 512 : index
    %7 = vector.load %arg1[%c0_4, %c512] : memref<128x1152xbf16, #tpu.memory_space<vmem>>, vector<128x128xbf16>
    %8 = arith.maximumf %6, %7 : vector<128x128xbf16>
    %c0_5 = arith.constant 0 : index
    %c640 = arith.constant 640 : index
    %9 = vector.load %arg1[%c0_5, %c640] : memref<128x1152xbf16, #tpu.memory_space<vmem>>, vector<128x128xbf16>
    %10 = arith.maximumf %8, %9 : vector<128x128xbf16>
    %c0_6 = arith.constant 0 : index
    %c768 = arith.constant 768 : index
    %11 = vector.load %arg1[%c0_6, %c768] : memref<128x1152xbf16, #tpu.memory_space<vmem>>, vector<128x128xbf16>
    %12 = arith.maximumf %10, %11 : vector<128x128xbf16>
    %c0_7 = arith.constant 0 : index
    %c896 = arith.constant 896 : index
    %13 = vector.load %arg1[%c0_7, %c896] : memref<128x1152xbf16, #tpu.memory_space<vmem>>, vector<128x128xbf16>
    %14 = arith.maximumf %12, %13 : vector<128x128xbf16>
    %c0_8 = arith.constant 0 : index
    %c1024 = arith.constant 1024 : index
    %15 = vector.load %arg1[%c0_8, %c1024] : memref<128x1152xbf16, #tpu.memory_space<vmem>>, vector<128x128xbf16>
    %16 = arith.maximumf %14, %15 : vector<128x128xbf16>
    %c0_9 = arith.constant 0 : index
    %c0_10 = arith.constant 0 : index
    %17 = vector.load %arg2[%c0_9, %c0_10] : memref<128x128xbf16, #tpu.memory_space<vmem>>, vector<128x128xbf16>
    tpu.vector_store %arg2[%c0_9, %c0_10], %16 {strides = array<i32>} : memref<128x128xbf16, #tpu.memory_space<vmem>>, vector<128x128xbf16>,
    return
  }
  func.func @transform_0(%arg0: i32) -> (i32, i32) {
    %c0_i32 = arith.constant 0 : i32
    %c0_i32_0 = arith.constant 0 : i32
    return %arg0, %c0_i32 : i32, i32
  }
  func.func @transform_1(%arg0: i32) -> (i32, i32) {
    %c0_i32 = arith.constant 0 : i32
    %c0_i32_0 = arith.constant 0 : i32
    return %arg0, %c0_i32 : i32, i32
  }
}

module attributes {stable_mosaic.version = 11 : i64} {
  func.func @_matmul_bias_res_kernel(%arg0: i32, %arg1: memref<128x1152xbf16, #tpu.memory_space<vmem>>, %arg2: memref<1152x128xbf16, #tpu.memory_space<vmem>>, %arg3: memref<1x128xf32, #tpu.memory_space<vmem>>, %arg4: memref<128x128xbf16, #tpu.memory_space<vmem>>, %arg5: memref<128x128xbf16, #tpu.memory_space<vmem>>) attributes {dimension_semantics = [#tpu.dimension_semantics<parallel>], iteration_bounds = array<i64: 1>, scalar_prefetch = 0 : i64, scratch_operands = 0 : i64, tpu.core_type = #tpu.core_type<tc>, window_params = [{transform_indices = @transform_0, window_bounds = array<i64: 128, 1152>}, {pipeline_mode = #tpu.pipeline_mode<synchronous>, transform_indices = @transform_1, window_bounds = array<i64: 1152, 128>}, {pipeline_mode = #tpu.pipeline_mode<synchronous>, transform_indices = @transform_2, window_bounds = array<i64: 1, 128>}, {transform_indices = @transform_3, window_bounds = array<i64: 128, 128>}, {transform_indices = @transform_4, window_bounds = array<i64: 128, 128>}]} {
    %c0 = arith.constant 0 : index
    %c0_0 = arith.constant 0 : index
    %0 = vector.load %arg1[%c0, %c0_0] : memref<128x1152xbf16, #tpu.memory_space<vmem>>, vector<128x1152xbf16>
    %c0_1 = arith.constant 0 : index
    %c0_2 = arith.constant 0 : index
    %1 = vector.load %arg2[%c0_1, %c0_2] : memref<1152x128xbf16, #tpu.memory_space<vmem>>, vector<1152x128xbf16>
    %cst = arith.constant dense<0.000000e+00> : vector<128x128xf32>
    %2 = tpu.matmul %0, %1, %cst {dimension_numbers = #tpu.dot_dimension_numbers<[1], [0], [0], [1], [0, 0, 1, 1], [], []>} : vector<128x1152xbf16>, vector<1152x128xbf16>, vector<128x128xf32> -> vector<128x128xf32>
    %c0_3 = arith.constant 0 : index
    %c0_4 = arith.constant 0 : index
    %3 = vector.load %arg3[%c0_3, %c0_4] : memref<1x128xf32, #tpu.memory_space<vmem>>, vector<1x128xf32>
    %4 = vector.broadcast %3 : vector<1x128xf32> to vector<128x128xf32>
    %5 = arith.addf %2, %4 : vector<128x128xf32>
    %c0_5 = arith.constant 0 : index
    %c0_6 = arith.constant 0 : index
    %6 = vector.load %arg4[%c0_5, %c0_6] : memref<128x128xbf16, #tpu.memory_space<vmem>>, vector<128x128xbf16>
    %7 = arith.extf %6 : vector<128x128xbf16> to vector<128x128xf32>
    %8 = arith.addf %5, %7 : vector<128x128xf32>
    %cst_7 = arith.constant 0.000000e+00 : f32
    %9 = vector.broadcast %cst_7 : f32 to vector<128x128xf32>
    %10 = arith.maximumf %8, %9 : vector<128x128xf32>
    %11 = arith.truncf %10 : vector<128x128xf32> to vector<128x128xbf16>
    %c0_8 = arith.constant 0 : index
    %c0_9 = arith.constant 0 : index
    %12 = vector.load %arg5[%c0_8, %c0_9] : memref<128x128xbf16, #tpu.memory_space<vmem>>, vector<128x128xbf16>
    tpu.vector_store %arg5[%c0_8, %c0_9], %11 {strides = array<i32>} : memref<128x128xbf16, #tpu.memory_space<vmem>>, vector<128x128xbf16>,
    return
  }
  func.func @transform_0(%arg0: i32) -> (i32, i32) {
    %c0_i32 = arith.constant 0 : i32
    %c0_i32_0 = arith.constant 0 : i32
    return %arg0, %c0_i32 : i32, i32
  }
  func.func @transform_1(%arg0: i32) -> (i32, i32) {
    %c0_i32 = arith.constant 0 : i32
    %c0_i32_0 = arith.constant 0 : i32
    %c0_i32_1 = arith.constant 0 : i32
    return %c0_i32, %c0_i32_0 : i32, i32
  }
  func.func @transform_2(%arg0: i32) -> (i32, i32) {
    %c0_i32 = arith.constant 0 : i32
    %c0_i32_0 = arith.constant 0 : i32
    %c0_i32_1 = arith.constant 0 : i32
    return %c0_i32, %c0_i32_0 : i32, i32
  }
  func.func @transform_3(%arg0: i32) -> (i32, i32) {
    %c0_i32 = arith.constant 0 : i32
    %c0_i32_0 = arith.constant 0 : i32
    return %arg0, %c0_i32 : i32, i32
  }
  func.func @transform_4(%arg0: i32) -> (i32, i32) {
    %c0_i32 = arith.constant 0 : i32
    %c0_i32_0 = arith.constant 0 : i32
    return %arg0, %c0_i32 : i32, i32
  }
}

module attributes {stable_mosaic.version = 11 : i64} {
  func.func @_matmul_bias_kernel(%arg0: i32, %arg1: memref<32x128xbf16, #tpu.memory_space<vmem>>, %arg2: memref<128x128xbf16, #tpu.memory_space<vmem>>, %arg3: memref<1x128xf32, #tpu.memory_space<vmem>>, %arg4: memref<32x128xbf16, #tpu.memory_space<vmem>>) attributes {dimension_semantics = [#tpu.dimension_semantics<parallel>], iteration_bounds = array<i64: 1>, scalar_prefetch = 0 : i64, scratch_operands = 0 : i64, tpu.core_type = #tpu.core_type<tc>, window_params = [{transform_indices = @transform_0, window_bounds = array<i64: 32, 128>}, {pipeline_mode = #tpu.pipeline_mode<synchronous>, transform_indices = @transform_1, window_bounds = array<i64: 128, 128>}, {pipeline_mode = #tpu.pipeline_mode<synchronous>, transform_indices = @transform_2, window_bounds = array<i64: 1, 128>}, {transform_indices = @transform_3, window_bounds = array<i64: 32, 128>}]} {
    %c0 = arith.constant 0 : index
    %c0_0 = arith.constant 0 : index
    %0 = vector.load %arg1[%c0, %c0_0] : memref<32x128xbf16, #tpu.memory_space<vmem>>, vector<32x128xbf16>
    %c0_1 = arith.constant 0 : index
    %c0_2 = arith.constant 0 : index
    %1 = vector.load %arg2[%c0_1, %c0_2] : memref<128x128xbf16, #tpu.memory_space<vmem>>, vector<128x128xbf16>
    %cst = arith.constant dense<0.000000e+00> : vector<32x128xf32>
    %2 = tpu.matmul %0, %1, %cst {dimension_numbers = #tpu.dot_dimension_numbers<[1], [0], [0], [1], [0, 0, 1, 1], [], []>} : vector<32x128xbf16>, vector<128x128xbf16>, vector<32x128xf32> -> vector<32x128xf32>
    %c0_3 = arith.constant 0 : index
    %c0_4 = arith.constant 0 : index
    %3 = vector.load %arg3[%c0_3, %c0_4] : memref<1x128xf32, #tpu.memory_space<vmem>>, vector<1x128xf32>
    %4 = vector.broadcast %3 : vector<1x128xf32> to vector<32x128xf32>
    %5 = arith.addf %2, %4 : vector<32x128xf32>
    %6 = arith.truncf %5 : vector<32x128xf32> to vector<32x128xbf16>
    %c0_5 = arith.constant 0 : index
    %c0_6 = arith.constant 0 : index
    %7 = vector.load %arg4[%c0_5, %c0_6] : memref<32x128xbf16, #tpu.memory_space<vmem>>, vector<32x128xbf16>
    tpu.vector_store %arg4[%c0_5, %c0_6], %6 {strides = array<i32>} : memref<32x128xbf16, #tpu.memory_space<vmem>>, vector<32x128xbf16>,
    return
  }
  func.func @transform_0(%arg0: i32) -> (i32, i32) {
    %c0_i32 = arith.constant 0 : i32
    %c0_i32_0 = arith.constant 0 : i32
    return %arg0, %c0_i32 : i32, i32
  }
  func.func @transform_1(%arg0: i32) -> (i32, i32) {
    %c0_i32 = arith.constant 0 : i32
    %c0_i32_0 = arith.constant 0 : i32
    %c0_i32_1 = arith.constant 0 : i32
    return %c0_i32, %c0_i32_0 : i32, i32
  }
  func.func @transform_2(%arg0: i32) -> (i32, i32) {
    %c0_i32 = arith.constant 0 : i32
    %c0_i32_0 = arith.constant 0 : i32
    %c0_i32_1 = arith.constant 0 : i32
    return %c0_i32, %c0_i32_0 : i32, i32
  }
  func.func @transform_3(%arg0: i32) -> (i32, i32) {
    %c0_i32 = arith.constant 0 : i32
    %c0_i32_0 = arith.constant 0 : i32
    return %arg0, %c0_i32 : i32, i32
  }
}

module attributes {stable_mosaic.version = 11 : i64} {
  func.func @_matmul_bias_kernel(%arg0: i32, %arg1: memref<128x1152xbf16, #tpu.memory_space<vmem>>, %arg2: memref<1152x128xbf16, #tpu.memory_space<vmem>>, %arg3: memref<1x128xf32, #tpu.memory_space<vmem>>, %arg4: memref<128x128xbf16, #tpu.memory_space<vmem>>) attributes {dimension_semantics = [#tpu.dimension_semantics<parallel>], iteration_bounds = array<i64: 1>, scalar_prefetch = 0 : i64, scratch_operands = 0 : i64, tpu.core_type = #tpu.core_type<tc>, window_params = [{transform_indices = @transform_0, window_bounds = array<i64: 128, 1152>}, {pipeline_mode = #tpu.pipeline_mode<synchronous>, transform_indices = @transform_1, window_bounds = array<i64: 1152, 128>}, {pipeline_mode = #tpu.pipeline_mode<synchronous>, transform_indices = @transform_2, window_bounds = array<i64: 1, 128>}, {transform_indices = @transform_3, window_bounds = array<i64: 128, 128>}]} {
    %c0 = arith.constant 0 : index
    %c0_0 = arith.constant 0 : index
    %0 = vector.load %arg1[%c0, %c0_0] : memref<128x1152xbf16, #tpu.memory_space<vmem>>, vector<128x1152xbf16>
    %c0_1 = arith.constant 0 : index
    %c0_2 = arith.constant 0 : index
    %1 = vector.load %arg2[%c0_1, %c0_2] : memref<1152x128xbf16, #tpu.memory_space<vmem>>, vector<1152x128xbf16>
    %cst = arith.constant dense<0.000000e+00> : vector<128x128xf32>
    %2 = tpu.matmul %0, %1, %cst {dimension_numbers = #tpu.dot_dimension_numbers<[1], [0], [0], [1], [0, 0, 1, 1], [], []>} : vector<128x1152xbf16>, vector<1152x128xbf16>, vector<128x128xf32> -> vector<128x128xf32>
    %c0_3 = arith.constant 0 : index
    %c0_4 = arith.constant 0 : index
    %3 = vector.load %arg3[%c0_3, %c0_4] : memref<1x128xf32, #tpu.memory_space<vmem>>, vector<1x128xf32>
    %4 = vector.broadcast %3 : vector<1x128xf32> to vector<128x128xf32>
    %5 = arith.addf %2, %4 : vector<128x128xf32>
    %cst_5 = arith.constant 0.000000e+00 : f32
    %6 = vector.broadcast %cst_5 : f32 to vector<128x128xf32>
    %7 = arith.maximumf %5, %6 : vector<128x128xf32>
    %8 = arith.truncf %7 : vector<128x128xf32> to vector<128x128xbf16>
    %c0_6 = arith.constant 0 : index
    %c0_7 = arith.constant 0 : index
    %9 = vector.load %arg4[%c0_6, %c0_7] : memref<128x128xbf16, #tpu.memory_space<vmem>>, vector<128x128xbf16>
    tpu.vector_store %arg4[%c0_6, %c0_7], %8 {strides = array<i32>} : memref<128x128xbf16, #tpu.memory_space<vmem>>, vector<128x128xbf16>,
    return
  }
  func.func @transform_0(%arg0: i32) -> (i32, i32) {
    %c0_i32 = arith.constant 0 : i32
    %c0_i32_0 = arith.constant 0 : i32
    return %arg0, %c0_i32 : i32, i32
  }
  func.func @transform_1(%arg0: i32) -> (i32, i32) {
    %c0_i32 = arith.constant 0 : i32
    %c0_i32_0 = arith.constant 0 : i32
    %c0_i32_1 = arith.constant 0 : i32
    return %c0_i32, %c0_i32_0 : i32, i32
  }
  func.func @transform_2(%arg0: i32) -> (i32, i32) {
    %c0_i32 = arith.constant 0 : i32
    %c0_i32_0 = arith.constant 0 : i32
    %c0_i32_1 = arith.constant 0 : i32
    return %c0_i32, %c0_i32_0 : i32, i32
  }
  func.func @transform_3(%arg0: i32) -> (i32, i32) {
    %c0_i32 = arith.constant 0 : i32
    %c0_i32_0 = arith.constant 0 : i32
    return %arg0, %c0_i32 : i32, i32
  }
}

module attributes {stable_mosaic.version = 11 : i64} {
  func.func @_matmul_bias_kernel(%arg0: i32, %arg1: memref<32x1152xbf16, #tpu.memory_space<vmem>>, %arg2: memref<1152x128xbf16, #tpu.memory_space<vmem>>, %arg3: memref<1x128xf32, #tpu.memory_space<vmem>>, %arg4: memref<32x128xbf16, #tpu.memory_space<vmem>>) attributes {dimension_semantics = [#tpu.dimension_semantics<parallel>], iteration_bounds = array<i64: 1>, scalar_prefetch = 0 : i64, scratch_operands = 0 : i64, tpu.core_type = #tpu.core_type<tc>, window_params = [{transform_indices = @transform_0, window_bounds = array<i64: 32, 1152>}, {pipeline_mode = #tpu.pipeline_mode<synchronous>, transform_indices = @transform_1, window_bounds = array<i64: 1152, 128>}, {pipeline_mode = #tpu.pipeline_mode<synchronous>, transform_indices = @transform_2, window_bounds = array<i64: 1, 128>}, {transform_indices = @transform_3, window_bounds = array<i64: 32, 128>}]} {
    %c0 = arith.constant 0 : index
    %c0_0 = arith.constant 0 : index
    %0 = vector.load %arg1[%c0, %c0_0] : memref<32x1152xbf16, #tpu.memory_space<vmem>>, vector<32x1152xbf16>
    %c0_1 = arith.constant 0 : index
    %c0_2 = arith.constant 0 : index
    %1 = vector.load %arg2[%c0_1, %c0_2] : memref<1152x128xbf16, #tpu.memory_space<vmem>>, vector<1152x128xbf16>
    %cst = arith.constant dense<0.000000e+00> : vector<32x128xf32>
    %2 = tpu.matmul %0, %1, %cst {dimension_numbers = #tpu.dot_dimension_numbers<[1], [0], [0], [1], [0, 0, 1, 1], [], []>} : vector<32x1152xbf16>, vector<1152x128xbf16>, vector<32x128xf32> -> vector<32x128xf32>
    %c0_3 = arith.constant 0 : index
    %c0_4 = arith.constant 0 : index
    %3 = vector.load %arg3[%c0_3, %c0_4] : memref<1x128xf32, #tpu.memory_space<vmem>>, vector<1x128xf32>
    %4 = vector.broadcast %3 : vector<1x128xf32> to vector<32x128xf32>
    %5 = arith.addf %2, %4 : vector<32x128xf32>
    %cst_5 = arith.constant 0.000000e+00 : f32
    %6 = vector.broadcast %cst_5 : f32 to vector<32x128xf32>
    %7 = arith.maximumf %5, %6 : vector<32x128xf32>
    %8 = arith.truncf %7 : vector<32x128xf32> to vector<32x128xbf16>
    %c0_6 = arith.constant 0 : index
    %c0_7 = arith.constant 0 : index
    %9 = vector.load %arg4[%c0_6, %c0_7] : memref<32x128xbf16, #tpu.memory_space<vmem>>, vector<32x128xbf16>
    tpu.vector_store %arg4[%c0_6, %c0_7], %8 {strides = array<i32>} : memref<32x128xbf16, #tpu.memory_space<vmem>>, vector<32x128xbf16>,
    return
  }
  func.func @transform_0(%arg0: i32) -> (i32, i32) {
    %c0_i32 = arith.constant 0 : i32
    %c0_i32_0 = arith.constant 0 : i32
    return %arg0, %c0_i32 : i32, i32
  }
  func.func @transform_1(%arg0: i32) -> (i32, i32) {
    %c0_i32 = arith.constant 0 : i32
    %c0_i32_0 = arith.constant 0 : i32
    %c0_i32_1 = arith.constant 0 : i32
    return %c0_i32, %c0_i32_0 : i32, i32
  }
  func.func @transform_2(%arg0: i32) -> (i32, i32) {
    %c0_i32 = arith.constant 0 : i32
    %c0_i32_0 = arith.constant 0 : i32
    %c0_i32_1 = arith.constant 0 : i32
    return %c0_i32, %c0_i32_0 : i32, i32
  }
  func.func @transform_3(%arg0: i32) -> (i32, i32) {
    %c0_i32 = arith.constant 0 : i32
    %c0_i32_0 = arith.constant 0 : i32
    return %arg0, %c0_i32 : i32, i32
  }
}

module attributes {stable_mosaic.version = 11 : i64} {
  func.func @_matmul_bias_res_kernel(%arg0: i32, %arg1: memref<32x1152xbf16, #tpu.memory_space<vmem>>, %arg2: memref<1152x128xbf16, #tpu.memory_space<vmem>>, %arg3: memref<1x128xf32, #tpu.memory_space<vmem>>, %arg4: memref<32x128xbf16, #tpu.memory_space<vmem>>, %arg5: memref<32x128xbf16, #tpu.memory_space<vmem>>) attributes {dimension_semantics = [#tpu.dimension_semantics<parallel>], iteration_bounds = array<i64: 1>, scalar_prefetch = 0 : i64, scratch_operands = 0 : i64, tpu.core_type = #tpu.core_type<tc>, window_params = [{transform_indices = @transform_0, window_bounds = array<i64: 32, 1152>}, {pipeline_mode = #tpu.pipeline_mode<synchronous>, transform_indices = @transform_1, window_bounds = array<i64: 1152, 128>}, {pipeline_mode = #tpu.pipeline_mode<synchronous>, transform_indices = @transform_2, window_bounds = array<i64: 1, 128>}, {transform_indices = @transform_3, window_bounds = array<i64: 32, 128>}, {transform_indices = @transform_4, window_bounds = array<i64: 32, 128>}]} {
    %c0 = arith.constant 0 : index
    %c0_0 = arith.constant 0 : index
    %0 = vector.load %arg1[%c0, %c0_0] : memref<32x1152xbf16, #tpu.memory_space<vmem>>, vector<32x1152xbf16>
    %c0_1 = arith.constant 0 : index
    %c0_2 = arith.constant 0 : index
    %1 = vector.load %arg2[%c0_1, %c0_2] : memref<1152x128xbf16, #tpu.memory_space<vmem>>, vector<1152x128xbf16>
    %cst = arith.constant dense<0.000000e+00> : vector<32x128xf32>
    %2 = tpu.matmul %0, %1, %cst {dimension_numbers = #tpu.dot_dimension_numbers<[1], [0], [0], [1], [0, 0, 1, 1], [], []>} : vector<32x1152xbf16>, vector<1152x128xbf16>, vector<32x128xf32> -> vector<32x128xf32>
    %c0_3 = arith.constant 0 : index
    %c0_4 = arith.constant 0 : index
    %3 = vector.load %arg3[%c0_3, %c0_4] : memref<1x128xf32, #tpu.memory_space<vmem>>, vector<1x128xf32>
    %4 = vector.broadcast %3 : vector<1x128xf32> to vector<32x128xf32>
    %5 = arith.addf %2, %4 : vector<32x128xf32>
    %c0_5 = arith.constant 0 : index
    %c0_6 = arith.constant 0 : index
    %6 = vector.load %arg4[%c0_5, %c0_6] : memref<32x128xbf16, #tpu.memory_space<vmem>>, vector<32x128xbf16>
    %7 = arith.extf %6 : vector<32x128xbf16> to vector<32x128xf32>
    %8 = arith.addf %5, %7 : vector<32x128xf32>
    %cst_7 = arith.constant 0.000000e+00 : f32
    %9 = vector.broadcast %cst_7 : f32 to vector<32x128xf32>
    %10 = arith.maximumf %8, %9 : vector<32x128xf32>
    %11 = arith.truncf %10 : vector<32x128xf32> to vector<32x128xbf16>
    %c0_8 = arith.constant 0 : index
    %c0_9 = arith.constant 0 : index
    %12 = vector.load %arg5[%c0_8, %c0_9] : memref<32x128xbf16, #tpu.memory_space<vmem>>, vector<32x128xbf16>
    tpu.vector_store %arg5[%c0_8, %c0_9], %11 {strides = array<i32>} : memref<32x128xbf16, #tpu.memory_space<vmem>>, vector<32x128xbf16>,
    return
  }
  func.func @transform_0(%arg0: i32) -> (i32, i32) {
    %c0_i32 = arith.constant 0 : i32
    %c0_i32_0 = arith.constant 0 : i32
    return %arg0, %c0_i32 : i32, i32
  }
  func.func @transform_1(%arg0: i32) -> (i32, i32) {
    %c0_i32 = arith.constant 0 : i32
    %c0_i32_0 = arith.constant 0 : i32
    %c0_i32_1 = arith.constant 0 : i32
    return %c0_i32, %c0_i32_0 : i32, i32
  }
  func.func @transform_2(%arg0: i32) -> (i32, i32) {
    %c0_i32 = arith.constant 0 : i32
    %c0_i32_0 = arith.constant 0 : i32
    %c0_i32_1 = arith.constant 0 : i32
    return %c0_i32, %c0_i32_0 : i32, i32
  }
  func.func @transform_3(%arg0: i32) -> (i32, i32) {
    %c0_i32 = arith.constant 0 : i32
    %c0_i32_0 = arith.constant 0 : i32
    return %arg0, %c0_i32 : i32, i32
  }
  func.func @transform_4(%arg0: i32) -> (i32, i32) {
    %c0_i32 = arith.constant 0 : i32
    %c0_i32_0 = arith.constant 0 : i32
    return %arg0, %c0_i32 : i32, i32
  }
}

module attributes {stable_mosaic.version = 11 : i64} {
  func.func @_matmul_bias_kernel(%arg0: i32, %arg1: memref<8x128xbf16, #tpu.memory_space<vmem>>, %arg2: memref<128x256xbf16, #tpu.memory_space<vmem>>, %arg3: memref<1x256xf32, #tpu.memory_space<vmem>>, %arg4: memref<8x256xbf16, #tpu.memory_space<vmem>>) attributes {dimension_semantics = [#tpu.dimension_semantics<parallel>], iteration_bounds = array<i64: 1>, scalar_prefetch = 0 : i64, scratch_operands = 0 : i64, tpu.core_type = #tpu.core_type<tc>, window_params = [{transform_indices = @transform_0, window_bounds = array<i64: 8, 128>}, {pipeline_mode = #tpu.pipeline_mode<synchronous>, transform_indices = @transform_1, window_bounds = array<i64: 128, 256>}, {pipeline_mode = #tpu.pipeline_mode<synchronous>, transform_indices = @transform_2, window_bounds = array<i64: 1, 256>}, {transform_indices = @transform_3, window_bounds = array<i64: 8, 256>}]} {
    %c0 = arith.constant 0 : index
    %c0_0 = arith.constant 0 : index
    %0 = vector.load %arg1[%c0, %c0_0] : memref<8x128xbf16, #tpu.memory_space<vmem>>, vector<8x128xbf16>
    %c0_1 = arith.constant 0 : index
    %c0_2 = arith.constant 0 : index
    %1 = vector.load %arg2[%c0_1, %c0_2] : memref<128x256xbf16, #tpu.memory_space<vmem>>, vector<128x256xbf16>
    %cst = arith.constant dense<0.000000e+00> : vector<8x256xf32>
    %2 = tpu.matmul %0, %1, %cst {dimension_numbers = #tpu.dot_dimension_numbers<[1], [0], [0], [1], [0, 0, 1, 1], [], []>} : vector<8x128xbf16>, vector<128x256xbf16>, vector<8x256xf32> -> vector<8x256xf32>
    %c0_3 = arith.constant 0 : index
    %c0_4 = arith.constant 0 : index
    %3 = vector.load %arg3[%c0_3, %c0_4] : memref<1x256xf32, #tpu.memory_space<vmem>>, vector<1x256xf32>
    %4 = vector.broadcast %3 : vector<1x256xf32> to vector<8x256xf32>
    %5 = arith.addf %2, %4 : vector<8x256xf32>
    %6 = arith.truncf %5 : vector<8x256xf32> to vector<8x256xbf16>
    %c0_5 = arith.constant 0 : index
    %c0_6 = arith.constant 0 : index
    %7 = vector.load %arg4[%c0_5, %c0_6] : memref<8x256xbf16, #tpu.memory_space<vmem>>, vector<8x256xbf16>
    tpu.vector_store %arg4[%c0_5, %c0_6], %6 {strides = array<i32>} : memref<8x256xbf16, #tpu.memory_space<vmem>>, vector<8x256xbf16>,
    return
  }
  func.func @transform_0(%arg0: i32) -> (i32, i32) {
    %c0_i32 = arith.constant 0 : i32
    %c0_i32_0 = arith.constant 0 : i32
    return %arg0, %c0_i32 : i32, i32
  }
  func.func @transform_1(%arg0: i32) -> (i32, i32) {
    %c0_i32 = arith.constant 0 : i32
    %c0_i32_0 = arith.constant 0 : i32
    %c0_i32_1 = arith.constant 0 : i32
    return %c0_i32, %c0_i32_0 : i32, i32
  }
  func.func @transform_2(%arg0: i32) -> (i32, i32) {
    %c0_i32 = arith.constant 0 : i32
    %c0_i32_0 = arith.constant 0 : i32
    %c0_i32_1 = arith.constant 0 : i32
    return %c0_i32, %c0_i32_0 : i32, i32
  }
  func.func @transform_3(%arg0: i32) -> (i32, i32) {
    %c0_i32 = arith.constant 0 : i32
    %c0_i32_0 = arith.constant 0 : i32
    return %arg0, %c0_i32 : i32, i32
  }
}

module attributes {stable_mosaic.version = 11 : i64} {
  func.func @_matmul_bias_kernel(%arg0: i32, %arg1: memref<8x1152xbf16, #tpu.memory_space<vmem>>, %arg2: memref<1152x256xbf16, #tpu.memory_space<vmem>>, %arg3: memref<1x256xf32, #tpu.memory_space<vmem>>, %arg4: memref<8x256xbf16, #tpu.memory_space<vmem>>) attributes {dimension_semantics = [#tpu.dimension_semantics<parallel>], iteration_bounds = array<i64: 1>, scalar_prefetch = 0 : i64, scratch_operands = 0 : i64, tpu.core_type = #tpu.core_type<tc>, window_params = [{transform_indices = @transform_0, window_bounds = array<i64: 8, 1152>}, {pipeline_mode = #tpu.pipeline_mode<synchronous>, transform_indices = @transform_1, window_bounds = array<i64: 1152, 256>}, {pipeline_mode = #tpu.pipeline_mode<synchronous>, transform_indices = @transform_2, window_bounds = array<i64: 1, 256>}, {transform_indices = @transform_3, window_bounds = array<i64: 8, 256>}]} {
    %c0 = arith.constant 0 : index
    %c0_0 = arith.constant 0 : index
    %0 = vector.load %arg1[%c0, %c0_0] : memref<8x1152xbf16, #tpu.memory_space<vmem>>, vector<8x1152xbf16>
    %c0_1 = arith.constant 0 : index
    %c0_2 = arith.constant 0 : index
    %1 = vector.load %arg2[%c0_1, %c0_2] : memref<1152x256xbf16, #tpu.memory_space<vmem>>, vector<1152x256xbf16>
    %cst = arith.constant dense<0.000000e+00> : vector<8x256xf32>
    %2 = tpu.matmul %0, %1, %cst {dimension_numbers = #tpu.dot_dimension_numbers<[1], [0], [0], [1], [0, 0, 1, 1], [], []>} : vector<8x1152xbf16>, vector<1152x256xbf16>, vector<8x256xf32> -> vector<8x256xf32>
    %c0_3 = arith.constant 0 : index
    %c0_4 = arith.constant 0 : index
    %3 = vector.load %arg3[%c0_3, %c0_4] : memref<1x256xf32, #tpu.memory_space<vmem>>, vector<1x256xf32>
    %4 = vector.broadcast %3 : vector<1x256xf32> to vector<8x256xf32>
    %5 = arith.addf %2, %4 : vector<8x256xf32>
    %cst_5 = arith.constant 0.000000e+00 : f32
    %6 = vector.broadcast %cst_5 : f32 to vector<8x256xf32>
    %7 = arith.maximumf %5, %6 : vector<8x256xf32>
    %8 = arith.truncf %7 : vector<8x256xf32> to vector<8x256xbf16>
    %c0_6 = arith.constant 0 : index
    %c0_7 = arith.constant 0 : index
    %9 = vector.load %arg4[%c0_6, %c0_7] : memref<8x256xbf16, #tpu.memory_space<vmem>>, vector<8x256xbf16>
    tpu.vector_store %arg4[%c0_6, %c0_7], %8 {strides = array<i32>} : memref<8x256xbf16, #tpu.memory_space<vmem>>, vector<8x256xbf16>,
    return
  }
  func.func @transform_0(%arg0: i32) -> (i32, i32) {
    %c0_i32 = arith.constant 0 : i32
    %c0_i32_0 = arith.constant 0 : i32
    return %arg0, %c0_i32 : i32, i32
  }
  func.func @transform_1(%arg0: i32) -> (i32, i32) {
    %c0_i32 = arith.constant 0 : i32
    %c0_i32_0 = arith.constant 0 : i32
    %c0_i32_1 = arith.constant 0 : i32
    return %c0_i32, %c0_i32_0 : i32, i32
  }
  func.func @transform_2(%arg0: i32) -> (i32, i32) {
    %c0_i32 = arith.constant 0 : i32
    %c0_i32_0 = arith.constant 0 : i32
    %c0_i32_1 = arith.constant 0 : i32
    return %c0_i32, %c0_i32_0 : i32, i32
  }
  func.func @transform_3(%arg0: i32) -> (i32, i32) {
    %c0_i32 = arith.constant 0 : i32
    %c0_i32_0 = arith.constant 0 : i32
    return %arg0, %c0_i32 : i32, i32
  }
}

module attributes {stable_mosaic.version = 11 : i64} {
  func.func @_matmul_bias_res_kernel(%arg0: i32, %arg1: memref<8x2304xbf16, #tpu.memory_space<vmem>>, %arg2: memref<2304x256xbf16, #tpu.memory_space<vmem>>, %arg3: memref<1x256xf32, #tpu.memory_space<vmem>>, %arg4: memref<8x256xbf16, #tpu.memory_space<vmem>>, %arg5: memref<8x256xbf16, #tpu.memory_space<vmem>>) attributes {dimension_semantics = [#tpu.dimension_semantics<parallel>], iteration_bounds = array<i64: 1>, scalar_prefetch = 0 : i64, scratch_operands = 0 : i64, tpu.core_type = #tpu.core_type<tc>, window_params = [{transform_indices = @transform_0, window_bounds = array<i64: 8, 2304>}, {pipeline_mode = #tpu.pipeline_mode<synchronous>, transform_indices = @transform_1, window_bounds = array<i64: 2304, 256>}, {pipeline_mode = #tpu.pipeline_mode<synchronous>, transform_indices = @transform_2, window_bounds = array<i64: 1, 256>}, {transform_indices = @transform_3, window_bounds = array<i64: 8, 256>}, {transform_indices = @transform_4, window_bounds = array<i64: 8, 256>}]} {
    %c0 = arith.constant 0 : index
    %c0_0 = arith.constant 0 : index
    %0 = vector.load %arg1[%c0, %c0_0] : memref<8x2304xbf16, #tpu.memory_space<vmem>>, vector<8x2304xbf16>
    %c0_1 = arith.constant 0 : index
    %c0_2 = arith.constant 0 : index
    %1 = vector.load %arg2[%c0_1, %c0_2] : memref<2304x256xbf16, #tpu.memory_space<vmem>>, vector<2304x256xbf16>
    %cst = arith.constant dense<0.000000e+00> : vector<8x256xf32>
    %2 = tpu.matmul %0, %1, %cst {dimension_numbers = #tpu.dot_dimension_numbers<[1], [0], [0], [1], [0, 0, 1, 1], [], []>} : vector<8x2304xbf16>, vector<2304x256xbf16>, vector<8x256xf32> -> vector<8x256xf32>
    %c0_3 = arith.constant 0 : index
    %c0_4 = arith.constant 0 : index
    %3 = vector.load %arg3[%c0_3, %c0_4] : memref<1x256xf32, #tpu.memory_space<vmem>>, vector<1x256xf32>
    %4 = vector.broadcast %3 : vector<1x256xf32> to vector<8x256xf32>
    %5 = arith.addf %2, %4 : vector<8x256xf32>
    %c0_5 = arith.constant 0 : index
    %c0_6 = arith.constant 0 : index
    %6 = vector.load %arg4[%c0_5, %c0_6] : memref<8x256xbf16, #tpu.memory_space<vmem>>, vector<8x256xbf16>
    %7 = arith.extf %6 : vector<8x256xbf16> to vector<8x256xf32>
    %8 = arith.addf %5, %7 : vector<8x256xf32>
    %cst_7 = arith.constant 0.000000e+00 : f32
    %9 = vector.broadcast %cst_7 : f32 to vector<8x256xf32>
    %10 = arith.maximumf %8, %9 : vector<8x256xf32>
    %11 = arith.truncf %10 : vector<8x256xf32> to vector<8x256xbf16>
    %c0_8 = arith.constant 0 : index
    %c0_9 = arith.constant 0 : index
    %12 = vector.load %arg5[%c0_8, %c0_9] : memref<8x256xbf16, #tpu.memory_space<vmem>>, vector<8x256xbf16>
    tpu.vector_store %arg5[%c0_8, %c0_9], %11 {strides = array<i32>} : memref<8x256xbf16, #tpu.memory_space<vmem>>, vector<8x256xbf16>,
    return
  }
  func.func @transform_0(%arg0: i32) -> (i32, i32) {
    %c0_i32 = arith.constant 0 : i32
    %c0_i32_0 = arith.constant 0 : i32
    return %arg0, %c0_i32 : i32, i32
  }
  func.func @transform_1(%arg0: i32) -> (i32, i32) {
    %c0_i32 = arith.constant 0 : i32
    %c0_i32_0 = arith.constant 0 : i32
    %c0_i32_1 = arith.constant 0 : i32
    return %c0_i32, %c0_i32_0 : i32, i32
  }
  func.func @transform_2(%arg0: i32) -> (i32, i32) {
    %c0_i32 = arith.constant 0 : i32
    %c0_i32_0 = arith.constant 0 : i32
    %c0_i32_1 = arith.constant 0 : i32
    return %c0_i32, %c0_i32_0 : i32, i32
  }
  func.func @transform_3(%arg0: i32) -> (i32, i32) {
    %c0_i32 = arith.constant 0 : i32
    %c0_i32_0 = arith.constant 0 : i32
    return %arg0, %c0_i32 : i32, i32
  }
  func.func @transform_4(%arg0: i32) -> (i32, i32) {
    %c0_i32 = arith.constant 0 : i32
    %c0_i32_0 = arith.constant 0 : i32
    return %arg0, %c0_i32 : i32, i32
  }
}

module attributes {stable_mosaic.version = 11 : i64} {
  func.func @_matmul_bias_kernel(%arg0: i32, %arg1: memref<8x2304xbf16, #tpu.memory_space<vmem>>, %arg2: memref<2304x256xbf16, #tpu.memory_space<vmem>>, %arg3: memref<1x256xf32, #tpu.memory_space<vmem>>, %arg4: memref<8x256xbf16, #tpu.memory_space<vmem>>) attributes {dimension_semantics = [#tpu.dimension_semantics<parallel>], iteration_bounds = array<i64: 1>, scalar_prefetch = 0 : i64, scratch_operands = 0 : i64, tpu.core_type = #tpu.core_type<tc>, window_params = [{transform_indices = @transform_0, window_bounds = array<i64: 8, 2304>}, {pipeline_mode = #tpu.pipeline_mode<synchronous>, transform_indices = @transform_1, window_bounds = array<i64: 2304, 256>}, {pipeline_mode = #tpu.pipeline_mode<synchronous>, transform_indices = @transform_2, window_bounds = array<i64: 1, 256>}, {transform_indices = @transform_3, window_bounds = array<i64: 8, 256>}]} {
    %c0 = arith.constant 0 : index
    %c0_0 = arith.constant 0 : index
    %0 = vector.load %arg1[%c0, %c0_0] : memref<8x2304xbf16, #tpu.memory_space<vmem>>, vector<8x2304xbf16>
    %c0_1 = arith.constant 0 : index
    %c0_2 = arith.constant 0 : index
    %1 = vector.load %arg2[%c0_1, %c0_2] : memref<2304x256xbf16, #tpu.memory_space<vmem>>, vector<2304x256xbf16>
    %cst = arith.constant dense<0.000000e+00> : vector<8x256xf32>
    %2 = tpu.matmul %0, %1, %cst {dimension_numbers = #tpu.dot_dimension_numbers<[1], [0], [0], [1], [0, 0, 1, 1], [], []>} : vector<8x2304xbf16>, vector<2304x256xbf16>, vector<8x256xf32> -> vector<8x256xf32>
    %c0_3 = arith.constant 0 : index
    %c0_4 = arith.constant 0 : index
    %3 = vector.load %arg3[%c0_3, %c0_4] : memref<1x256xf32, #tpu.memory_space<vmem>>, vector<1x256xf32>
    %4 = vector.broadcast %3 : vector<1x256xf32> to vector<8x256xf32>
    %5 = arith.addf %2, %4 : vector<8x256xf32>
    %cst_5 = arith.constant 0.000000e+00 : f32
    %6 = vector.broadcast %cst_5 : f32 to vector<8x256xf32>
    %7 = arith.maximumf %5, %6 : vector<8x256xf32>
    %8 = arith.truncf %7 : vector<8x256xf32> to vector<8x256xbf16>
    %c0_6 = arith.constant 0 : index
    %c0_7 = arith.constant 0 : index
    %9 = vector.load %arg4[%c0_6, %c0_7] : memref<8x256xbf16, #tpu.memory_space<vmem>>, vector<8x256xbf16>
    tpu.vector_store %arg4[%c0_6, %c0_7], %8 {strides = array<i32>} : memref<8x256xbf16, #tpu.memory_space<vmem>>, vector<8x256xbf16>,
    return
  }
  func.func @transform_0(%arg0: i32) -> (i32, i32) {
    %c0_i32 = arith.constant 0 : i32
    %c0_i32_0 = arith.constant 0 : i32
    return %arg0, %c0_i32 : i32, i32
  }
  func.func @transform_1(%arg0: i32) -> (i32, i32) {
    %c0_i32 = arith.constant 0 : i32
    %c0_i32_0 = arith.constant 0 : i32
    %c0_i32_1 = arith.constant 0 : i32
    return %c0_i32, %c0_i32_0 : i32, i32
  }
  func.func @transform_2(%arg0: i32) -> (i32, i32) {
    %c0_i32 = arith.constant 0 : i32
    %c0_i32_0 = arith.constant 0 : i32
    %c0_i32_1 = arith.constant 0 : i32
    return %c0_i32, %c0_i32_0 : i32, i32
  }
  func.func @transform_3(%arg0: i32) -> (i32, i32) {
    %c0_i32 = arith.constant 0 : i32
    %c0_i32_0 = arith.constant 0 : i32
    return %arg0, %c0_i32 : i32, i32
  }
}

</mosaic_0001>

<bundles_post_ra>
// kernel: backbone_forward.16
= control target key start
LH: loop header
LB: loop body
LE: loop exit
PB: predicated region body
PF: predicated region fallthrough
CT: control target
= control target key end

     0   :  { %s1232_s12 = smov 0   ;;  %s1422_s0 = inlined_call_operand.vmem [shape: bf16[512,256], index: 0, kind: input, shape index: {}]   ;;  %s1423_s1 = inlined_call_operand.vmem [shape: bf16[256,128], index: 1, kind: input, shape index: {}]   ;;  %s1424_s2 = inlined_call_operand.vmem [shape: f32[1,128], index: 2, kind: input, shape index: {}]   ;;  %s1425_s3 = inlined_call_operand.vmem [shape: bf16[512,128], index: 3, kind: output, shape index: {}]  }
   0x1 LB: > { %s831_s13 = sadd.s32 4294967295, %s1210_s12   ;;  %p835_p0 = scmp.ge.s32.totalorder %s1210_s12, 1  ;;  %s1210_s12 = sphi %s1232_s12, %s13_s12  }
   0x2   : > { %p139_p1 = scmp.lt.s32.totalorder %s1210_s12, 3 }
   0x4   : > { %p140_p2 = pnand %p835_p0, %p139_p1 }
   0x5   : > { %s836_s26 = sshll.u32 (!%p140_p2), %s831_s13, 5 }
   0x6   : > { %143 = sbr.rel (%p140_p2) target bundleno = 304 (0x130), region = 32  ;;  %p165_p3 = scmp.lt.s32.totalorder (!%p140_p2), %s836_s26, 63 }
   0xb   : > { %v1075_v0 = vld [vmem:[%s1423_s1 + $0x38] sm:$0xff]  ;;  %v1074_v2 = vld [vmem:[%s1423_s1 + $0x30] sm:$0xff]  ;;  %v1073_v4 = vld [vmem:[%s1423_s1 + $0x28] sm:$0xff]  ;;  %s1427_s26 = smov (!%p165_p3, %s836_s26), 63 }
   0xc   : > { %v1083_v1 = vld [vmem:[%s1423_s1 + $0x78] sm:$0xff]  ;;  %501 = vmatpush.bf16.msra.mxu0 %v1075_v0  ;;  %1179 = vmatpush.bf16.msra.mxu2 %v1075_v0  ;;  %v1082_v3 = vld [vmem:[%s1423_s1 + $0x70] sm:$0xff]  ;;  %v1081_v5 = vld [vmem:[%s1423_s1 + $0x68] sm:$0xff]  ;;  %s1035_s13 = sshll.u32 %s1427_s26, 3  ;;  %s840_s28 = sshll.u32 %s1427_s26, 2 }
   0xd   : > { %590 = vmatpush.bf16.msra.mxu1 %v1083_v1  ;;  %1187 = vmatpush.bf16.msra.mxu3 %v1083_v1  ;;  %v1072_v6 = vld [vmem:[%s1423_s1 + $0x20] sm:$0xff]  ;;  %v1071_v8 = vld [vmem:[%s1423_s1 + $0x18] sm:$0xff]  ;;  %v1070_v10 = vld [vmem:[%s1423_s1 + $0x10] sm:$0xff]  ;;  %s1285_s18 = scalar_lea.vmem %s1422_s0, %s1035_s13  ;;  %s1372_s4 = scalar_lea.vmem %s1425_s3, %s840_s28 }
   0xe   : > { %v1080_v7 = vld [vmem:[%s1423_s1 + $0x60] sm:$0xff]  ;;  %v1079_v9 = vld [vmem:[%s1423_s1 + $0x58] sm:$0xff]  ;;  %v1078_v11 = vld [vmem:[%s1423_s1 + $0x50] sm:$0xff] }
   0xf   : > { %v1069_v12 = vld [vmem:[%s1423_s1 + $0x8] sm:$0xff]  ;;  %v1068_v14 = vld [vmem:[%s1423_s1] sm:$0xff]  ;;  %v851_v28 = vld [vmem:[%s1285_s18 + $0x10] sm:$0xf] }
  0x10   : > { %502 = vmatpush.bf16.msra.mxu0 %v1074_v2  ;;  %1180 = vmatpush.bf16.msra.mxu2 %v1074_v2  ;;  %v1077_v13 = vld [vmem:[%s1423_s1 + $0x48] sm:$0xff]  ;;  %v1076_v15 = vld [vmem:[%s1423_s1 + $0x40] sm:$0xff]  ;;  %v1039_v29 = vld [vmem:[%s1285_s18 + $0x14] sm:$0xf0] }
  0x11   : > { %591 = vmatpush.bf16.msra.mxu1 %v1082_v3  ;;  %1188 = vmatpush.bf16.msra.mxu3 %v1082_v3  ;;  %v843_v16 = vld [vmem:[%s1285_s18] sm:$0xf]  ;;  %v1037_v17 = vld [vmem:[%s1285_s18 + $0x4] sm:$0xf0]  ;;  %v1036_v20 = vld [vmem:[%s1285_s18 + $0x4] sm:$0xf]  ;;  %v852_v36 = vor.u32 %v1039_v29, %v851_v28 }
  0x12   : > { %v907_v18 = vld [vmem:[%s1285_s18 + $0x80] sm:$0xf]  ;;  %v1053_v19 = vld [vmem:[%s1285_s18 + $0x84] sm:$0xf0]  ;;  %v845_v21 = vld [vmem:[%s1285_s18 + $0x8] sm:$0xf0]  ;;  %v844_v24 = vor.u32 %v1037_v17, %v843_v16 }
  0x13   : > { %v1052_v22 = vld [vmem:[%s1285_s18 + $0x84] sm:$0xf]  ;;  %v909_v23 = vld [vmem:[%s1285_s18 + $0x88] sm:$0xf0]  ;;  %v908_v25 = vor.u32 %v1053_v19, %v907_v18  ;;  %v848_v26 = vor.u32 %v1036_v20, %v845_v21  ;;  %v915_v30 = vld [vmem:[%s1285_s18 + $0x90] sm:$0xf] }
  0x14   : > { %503 = vmatpush.bf16.msra.mxu0 %v1073_v4  ;;  %1181 = vmatpush.bf16.msra.mxu2 %v1073_v4  ;;  %v912_v27 = vor.u32 %v1052_v22, %v909_v23  ;;  %v1055_v31 = vld [vmem:[%s1285_s18 + $0x94] sm:$0xf0]  ;;  %v1038_v32 = vld [vmem:[%s1285_s18 + $0x14] sm:$0xf]  ;;  %v853_v33 = vld [vmem:[%s1285_s18 + $0x18] sm:$0xf0] }
  0x15   : > { %592 = vmatpush.bf16.msra.mxu1 %v1081_v5  ;;  %1189 = vmatpush.bf16.msra.mxu3 %v1081_v5  ;;  %v1054_v34 = vld [vmem:[%s1285_s18 + $0x94] sm:$0xf]  ;;  %v917_v35 = vld [vmem:[%s1285_s18 + $0x98] sm:$0xf0]  ;;  %v916_v37 = vor.u32 %v1055_v31, %v915_v30  ;;  %v856_v38 = vor.u32 %v1038_v32, %v853_v33  ;;  %v859_v40 = vld [vmem:[%s1285_s18 + $0x20] sm:$0xf] }
  0x16   : > { %v920_v39 = vor.u32 %v1054_v34, %v917_v35  ;;  %v1041_v41 = vld [vmem:[%s1285_s18 + $0x24] sm:$0xf0]  ;;  %v923_v42 = vld [vmem:[%s1285_s18 + $0xa0] sm:$0xf]  ;;  %v1040_v44 = vld [vmem:[%s1285_s18 + $0x24] sm:$0xf] }
  0x17   : > { %v1057_v43 = vld [vmem:[%s1285_s18 + $0xa4] sm:$0xf0]  ;;  %v861_v45 = vld [vmem:[%s1285_s18 + $0x28] sm:$0xf0]  ;;  %v1056_v46 = vld [vmem:[%s1285_s18 + $0xa4] sm:$0xf]  ;;  %v860_v48 = vor.u32 %v1041_v41, %v859_v40 }
  0x18   : > { %504 = vmatpush.bf16.msra.mxu0 %v1072_v6  ;;  %1182 = vmatpush.bf16.msra.mxu2 %v1072_v6  ;;  %v925_v47 = vld [vmem:[%s1285_s18 + $0xa8] sm:$0xf0]  ;;  %v924_v49 = vor.u32 %v1057_v43, %v923_v42  ;;  %v864_v50 = vor.u32 %v1040_v44, %v861_v45  ;;  %v867_v52 = vld [vmem:[%s1285_s18 + $0x30] sm:$0xf]  ;;  %v1043_v53 = vld [vmem:[%s1285_s18 + $0x34] sm:$0xf0] }
  0x19   : > { %593 = vmatpush.bf16.msra.mxu1 %v1080_v7  ;;  %1190 = vmatpush.bf16.msra.mxu3 %v1080_v7  ;;  %v928_v51 = vor.u32 %v1056_v46, %v925_v47  ;;  %v931_v54 = vld [vmem:[%s1285_s18 + $0xb0] sm:$0xf]  ;;  %v1059_v55 = vld [vmem:[%s1285_s18 + $0xb4] sm:$0xf0]  ;;  %v1042_v56 = vld [vmem:[%s1285_s18 + $0x34] sm:$0xf]  ;;  %v868_v60 = vor.u32 %v1043_v53, %v867_v52 }
  0x1a   : > { %v869_v57 = vld [vmem:[%s1285_s18 + $0x38] sm:$0xf0]  ;;  %v1058_v58 = vld [vmem:[%s1285_s18 + $0xb4] sm:$0xf]  ;;  %v932_v61 = vor.u32 %v1059_v55, %v931_v54  ;;  %v875_v0 = vld [vmem:[%s1285_s18 + $0x40] sm:$0xf] }
  0x1b   : > { %v933_v59 = vld [vmem:[%s1285_s18 + $0xb8] sm:$0xf0]  ;;  %v872_v62 = vor.u32 %v1042_v56, %v869_v57  ;;  %v1045_v1 = vld [vmem:[%s1285_s18 + $0x44] sm:$0xf0]  ;;  %v939_v2 = vld [vmem:[%s1285_s18 + $0xc0] sm:$0xf] }
  0x1c   : > { %505 = vmatpush.bf16.msra.mxu0 %v1071_v8  ;;  %1183 = vmatpush.bf16.msra.mxu2 %v1071_v8  ;;  %v936_v63 = vor.u32 %v1058_v58, %v933_v59  ;;  %v1061_v3 = vld [vmem:[%s1285_s18 + $0xc4] sm:$0xf0]  ;;  %v1044_v4 = vld [vmem:[%s1285_s18 + $0x44] sm:$0xf]  ;;  %v877_v5 = vld [vmem:[%s1285_s18 + $0x48] sm:$0xf0]  ;;  %v876_v8 = vor.u32 %v1045_v1, %v875_v0 }
  0x1d   : > { %594 = vmatpush.bf16.msra.mxu1 %v1079_v9  ;;  %1191 = vmatpush.bf16.msra.mxu3 %v1079_v9  ;;  %v1060_v6 = vld [vmem:[%s1285_s18 + $0xc4] sm:$0xf]  ;;  %v941_v7 = vld [vmem:[%s1285_s18 + $0xc8] sm:$0xf0]  ;;  %v940_v9 = vor.u32 %v1061_v3, %v939_v2  ;;  %v1046_v16 = vld [vmem:[%s1285_s18 + $0x54] sm:$0xf] }
  0x1e   : > { %v885_v17 = vld [vmem:[%s1285_s18 + $0x58] sm:$0xf0]  ;;  %v1062_v18 = vld [vmem:[%s1285_s18 + $0xd4] sm:$0xf]  ;;  %v1048_v28 = vld [vmem:[%s1285_s18 + $0x64] sm:$0xf] }
  0x1f   : > { %v949_v19 = vld [vmem:[%s1285_s18 + $0xd8] sm:$0xf0]  ;;  %v888_v22 = vor.u32 %v1046_v16, %v885_v17  ;;  %v893_v29 = vld [vmem:[%s1285_s18 + $0x68] sm:$0xf0]  ;;  %v1064_v30 = vld [vmem:[%s1285_s18 + $0xe4] sm:$0xf] }
  0x20   : > { %506 = vmatpush.bf16.msra.mxu0 %v1070_v10  ;;  %1184 = vmatpush.bf16.msra.mxu2 %v1070_v10  ;;  %v880_v10 = vor.u32 %v1044_v4, %v877_v5  ;;  %v952_v23 = vor.u32 %v1062_v18, %v949_v19  ;;  %v957_v31 = vld [vmem:[%s1285_s18 + $0xe8] sm:$0xf0]  ;;  %v896_v34 = vor.u32 %v1048_v28, %v893_v29  ;;  %v1050_v40 = vld [vmem:[%s1285_s18 + $0x74] sm:$0xf]  ;;  %v901_v41 = vld [vmem:[%s1285_s18 + $0x78] sm:$0xf0] }
  0x21   : > { %595 = vmatpush.bf16.msra.mxu1 %v1078_v11  ;;  %1192 = vmatpush.bf16.msra.mxu3 %v1078_v11  ;;  %v944_v11 = vor.u32 %v1060_v6, %v941_v7  ;;  %v960_v35 = vor.u32 %v1064_v30, %v957_v31  ;;  %v1066_v42 = vld [vmem:[%s1285_s18 + $0xf4] sm:$0xf]  ;;  %v965_v43 = vld [vmem:[%s1285_s18 + $0xf8] sm:$0xf0]  ;;  %v904_v46 = vor.u32 %v1050_v40, %v901_v41 }
  0x22   : > { %v968_v47 = vor.u32 %v1066_v42, %v965_v43 }
  0x24   : > { %507 = vmatpush.bf16.msra.mxu0 %v1069_v12  ;;  %1185 = vmatpush.bf16.msra.mxu2 %v1069_v12  ;;  %v883_v12 = vld [vmem:[%s1285_s18 + $0x50] sm:$0xf] }
  0x25   : > { %596 = vmatpush.bf16.msra.mxu1 %v1077_v13  ;;  %1193 = vmatpush.bf16.msra.mxu3 %v1077_v13  ;;  %v1047_v13 = vld [vmem:[%s1285_s18 + $0x54] sm:$0xf0] }
  0x26   : > { %v884_v20 = vor.u32 %v1047_v13, %v883_v12 }
  0x28   : > { %508 = vmatpush.bf16.msra.mxu0 %v1068_v14  ;;  %1186 = vmatpush.bf16.msra.mxu2 %v1068_v14  ;;  %v947_v14 = vld [vmem:[%s1285_s18 + $0xd0] sm:$0xf] }
  0x29   : > { %597 = vmatpush.bf16.msra.mxu1 %v1076_v15  ;;  %1194 = vmatpush.bf16.msra.mxu3 %v1076_v15  ;;  %v1063_v15 = vld [vmem:[%s1285_s18 + $0xd4] sm:$0xf0] }
  0x2a   : > { %v948_v21 = vor.u32 %v1063_v15, %v947_v14 }
  0x2b   : > { %509 = vmatmul.bf16.vlgmr.msra.gmra.mxu0 %v844_v24  ;;  %549 = vmatmul.bf16.vlgmr.msra.gmra.mxu2 %v908_v25  ;;  %v891_v24 = vld [vmem:[%s1285_s18 + $0x60] sm:$0xf]  ;;  %v1049_v25 = vld [vmem:[%s1285_s18 + $0x64] sm:$0xf0] }
  0x2c   : > { %598 = vmatmul.bf16.vlgmr.msra.gmra.mxu1 %v848_v26  ;;  %638 = vmatmul.bf16.vlgmr.msra.gmra.mxu3 %v912_v27  ;;  %v955_v26 = vld [vmem:[%s1285_s18 + $0xe0] sm:$0xf]  ;;  %v1065_v27 = vld [vmem:[%s1285_s18 + $0xe4] sm:$0xf0]  ;;  %v892_v32 = vor.u32 %v1049_v25, %v891_v24 }
  0x2d   : > { %v956_v33 = vor.u32 %v1065_v27, %v955_v26 }
  0x3b   : > { %514 = vmatmul.bf16.gmra.mxu0 %v852_v36  ;;  %554 = vmatmul.bf16.gmra.mxu2 %v916_v37  ;;  %v899_v36 = vld [vmem:[%s1285_s18 + $0x70] sm:$0xf]  ;;  %v1051_v37 = vld [vmem:[%s1285_s18 + $0x74] sm:$0xf0] }
  0x3c   : > { %603 = vmatmul.bf16.gmra.mxu1 %v856_v38  ;;  %643 = vmatmul.bf16.gmra.mxu3 %v920_v39  ;;  %v963_v38 = vld [vmem:[%s1285_s18 + $0xf0] sm:$0xf]  ;;  %v1067_v39 = vld [vmem:[%s1285_s18 + $0xf4] sm:$0xf0]  ;;  %v900_v44 = vor.u32 %v1051_v37, %v899_v36 }
  0x3d   : > { %v964_v45 = vor.u32 %v1067_v39, %v963_v38 }
  0x4b   : > { %519 = vmatmul.bf16.gmra.mxu0 %v860_v48  ;;  %559 = vmatmul.bf16.gmra.mxu2 %v924_v49  ;;  %v1363_v49 = vld [vmem:[%s1424_s2] ss:$0 sm:$0xff] }
  0x4c   : > { %608 = vmatmul.bf16.gmra.mxu1 %v864_v50  ;;  %648 = vmatmul.bf16.gmra.mxu3 %v928_v51 }
  0x5b   : > { %524 = vmatmul.bf16.gmra.mxu0 %v868_v60  ;;  %564 = vmatmul.bf16.gmra.mxu2 %v932_v61 }
  0x5c   : > { %613 = vmatmul.bf16.gmra.mxu1 %v872_v62  ;;  %653 = vmatmul.bf16.gmra.mxu3 %v936_v63 }
  0x6b   : > { %529 = vmatmul.bf16.gmra.mxu0 %v876_v8  ;;  %569 = vmatmul.bf16.gmra.mxu2 %v940_v9 }
  0x6c   : > { %618 = vmatmul.bf16.gmra.mxu1 %v880_v10  ;;  %658 = vmatmul.bf16.gmra.mxu3 %v944_v11 }
  0x7b   : > { %534 = vmatmul.bf16.gmra.mxu0 %v884_v20  ;;  %574 = vmatmul.bf16.gmra.mxu2 %v948_v21 }
  0x7c   : > { %623 = vmatmul.bf16.gmra.mxu1 %v888_v22  ;;  %663 = vmatmul.bf16.gmra.mxu3 %v952_v23 }
  0x8b   : > { %539 = vmatmul.bf16.gmra.mxu0 %v892_v32  ;;  %579 = vmatmul.bf16.gmra.mxu2 %v956_v33 }
  0x8c   : > { %628 = vmatmul.bf16.gmra.mxu1 %v896_v34  ;;  %668 = vmatmul.bf16.gmra.mxu3 %v960_v35 }
  0x9b   : > { %544 = vmatmul.bf16.gmra.mxu0 %v900_v44  ;;  %584 = vmatmul.bf16.gmra.mxu2 %v964_v45 }
  0x9c   : > { %633 = vmatmul.bf16.gmra.mxu1 %v904_v46  ;;  %673 = vmatmul.bf16.gmra.mxu3 %v968_v47 }
  0xa8   : > { %v510_v48 = vpop.f32.mrf.mxu0 }
  0xa9   : > { %v599_v50 = vpop.f32.mrf.mxu1  ;;  %v511_v51 = vadd.f32 %v1363_v49, %v510_v48 }
  0xab   : > { %v600_v55 = vadd.f32 %v599_v50, %v511_v51 }
  0xad   : > { %v679_v60 = vmax.f32 %v600_v55, 0.0 }
  0xae   : > { %v550_v52 = vpop.f32.mrf.mxu2 }
  0xaf   : > { %v639_v53 = vpop.f32.mrf.mxu3  ;;  %v551_v58 = vadd.f32 %v1363_v49, %v550_v52 }
  0xb0   : > { %v512_v54 = vpop.f32.mrf.mxu0 }
  0xb1   : > { %v513_v56 = vadd.f32 %v1363_v49, %v512_v54  ;;  %v601_v57 = vpop.f32.mrf.mxu1  ;;  %v640_v63 = vadd.f32 %v639_v53, %v551_v58 }
  0xb3   : > { %v602_v59 = vadd.f32 %v601_v57, %v513_v56  ;;  %v695_v6 = vmax.f32 %v640_v63, 0.0 }
  0xb5   : > { %v680_v61 = vmax.f32 %v602_v59, 0.0 }
  0xb6   : > { %v552_v62 = vpop.f32.mrf.mxu2 }
  0xb7   : > { %v1087_v0 = vpack.c.bf16 %v680_v61, %v679_v60  ;;  %v553_v1 = vadd.f32 %v1363_v49, %v552_v62  ;;  %v641_v2 = vpop.f32.mrf.mxu3 }
  0xb8   : > { %v515_v3 = vpop.f32.mrf.mxu0 }
  0xb9   : > { %1088 = vst [vmem:[%s1372_s4] sm:$0xff] %v1087_v0   ;;  %v642_v4 = vadd.f32 %v641_v2, %v553_v1  ;;  %v604_v5 = vpop.f32.mrf.mxu1  ;;  %v516_v9 = vadd.f32 %v1363_v49, %v515_v3 }
  0xbb   : > { %v696_v7 = vmax.f32 %v642_v4, 0.0  ;;  %v605_v13 = vadd.f32 %v604_v5, %v516_v9 }
  0xbd   : > { %v1127_v8 = vpack.c.bf16 %v696_v7, %v695_v6  ;;  %v681_v18 = vmax.f32 %v605_v13, 0.0 }
  0xbe   : > { %v555_v10 = vpop.f32.mrf.mxu2 }
  0xbf   : > { %1171 = vst [vmem:[%s1372_s4 + $0x40] sm:$0xff] %v1127_v8   ;;  %v644_v11 = vpop.f32.mrf.mxu3  ;;  %v556_v16 = vadd.f32 %v1363_v49, %v555_v10 }
  0xc0   : > { %v517_v12 = vpop.f32.mrf.mxu0 }
  0xc1   : > { %v518_v14 = vadd.f32 %v1363_v49, %v517_v12  ;;  %v606_v15 = vpop.f32.mrf.mxu1  ;;  %v645_v21 = vadd.f32 %v644_v11, %v556_v16 }
  0xc3   : > { %v607_v17 = vadd.f32 %v606_v15, %v518_v14  ;;  %v697_v28 = vmax.f32 %v645_v21, 0.0 }
  0xc5   : > { %v682_v19 = vmax.f32 %v607_v17, 0.0 }
  0xc6   : > { %v557_v20 = vpop.f32.mrf.mxu2 }
  0xc7   : > { %v1092_v22 = vpack.c.bf16 %v682_v19, %v681_v18  ;;  %v558_v23 = vadd.f32 %v1363_v49, %v557_v20  ;;  %v646_v24 = vpop.f32.mrf.mxu3 }
  0xc8   : > { %v520_v25 = vpop.f32.mrf.mxu0 }
  0xc9   : > { %1164 = vst [vmem:[%s1372_s4 + $0x8] sm:$0xff] %v1092_v22   ;;  %v647_v26 = vadd.f32 %v646_v24, %v558_v23  ;;  %v609_v27 = vpop.f32.mrf.mxu1  ;;  %v521_v31 = vadd.f32 %v1363_v49, %v520_v25 }
  0xcb   : > { %v698_v29 = vmax.f32 %v647_v26, 0.0  ;;  %v610_v35 = vadd.f32 %v609_v27, %v521_v31 }
  0xcd   : > { %v1132_v30 = vpack.c.bf16 %v698_v29, %v697_v28  ;;  %v683_v40 = vmax.f32 %v610_v35, 0.0 }
  0xce   : > { %v560_v32 = vpop.f32.mrf.mxu2 }
  0xcf   : > { %1172 = vst [vmem:[%s1372_s4 + $0x48] sm:$0xff] %v1132_v30   ;;  %v649_v33 = vpop.f32.mrf.mxu3  ;;  %v561_v38 = vadd.f32 %v1363_v49, %v560_v32 }
  0xd0   : > { %v522_v34 = vpop.f32.mrf.mxu0 }
  0xd1   : > { %v523_v36 = vadd.f32 %v1363_v49, %v522_v34  ;;  %v611_v37 = vpop.f32.mrf.mxu1  ;;  %v650_v43 = vadd.f32 %v649_v33, %v561_v38 }
  0xd3   : > { %v612_v39 = vadd.f32 %v611_v37, %v523_v36  ;;  %v699_v51 = vmax.f32 %v650_v43, 0.0 }
  0xd5   : > { %v684_v41 = vmax.f32 %v612_v39, 0.0 }
  0xd6   : > { %v562_v42 = vpop.f32.mrf.mxu2 }
  0xd7   : > { %v1097_v44 = vpack.c.bf16 %v684_v41, %v683_v40  ;;  %v563_v45 = vadd.f32 %v1363_v49, %v562_v42  ;;  %v651_v46 = vpop.f32.mrf.mxu3 }
  0xd8   : > { %v525_v47 = vpop.f32.mrf.mxu0 }
  0xd9   : > { %1165 = vst [vmem:[%s1372_s4 + $0x10] sm:$0xff] %v1097_v44   ;;  %v652_v48 = vadd.f32 %v651_v46, %v563_v45  ;;  %v614_v50 = vpop.f32.mrf.mxu1  ;;  %v526_v54 = vadd.f32 %v1363_v49, %v525_v47 }
  0xdb   : > { %v700_v52 = vmax.f32 %v652_v48, 0.0  ;;  %v615_v58 = vadd.f32 %v614_v50, %v526_v54 }
  0xdd   : > { %v1137_v53 = vpack.c.bf16 %v700_v52, %v699_v51  ;;  %v685_v63 = vmax.f32 %v615_v58, 0.0 }
  0xde   : > { %v565_v55 = vpop.f32.mrf.mxu2 }
  0xdf   : > { %1173 = vst [vmem:[%s1372_s4 + $0x50] sm:$0xff] %v1137_v53   ;;  %v654_v56 = vpop.f32.mrf.mxu3  ;;  %v566_v61 = vadd.f32 %v1363_v49, %v565_v55 }
  0xe0   : > { %v527_v57 = vpop.f32.mrf.mxu0 }
  0xe1   : > { %v528_v59 = vadd.f32 %v1363_v49, %v527_v57  ;;  %v616_v60 = vpop.f32.mrf.mxu1  ;;  %v655_v2 = vadd.f32 %v654_v56, %v566_v61 }
  0xe3   : > { %v617_v62 = vadd.f32 %v616_v60, %v528_v59  ;;  %v701_v9 = vmax.f32 %v655_v2, 0.0 }
  0xe5   : > { %v686_v0 = vmax.f32 %v617_v62, 0.0 }
  0xe6   : > { %v567_v1 = vpop.f32.mrf.mxu2 }
  0xe7   : > { %v1102_v3 = vpack.c.bf16 %v686_v0, %v685_v63  ;;  %v568_v4 = vadd.f32 %v1363_v49, %v567_v1  ;;  %v656_v5 = vpop.f32.mrf.mxu3 }
  0xe8   : > { %v530_v6 = vpop.f32.mrf.mxu0 }
  0xe9   : > { %1166 = vst [vmem:[%s1372_s4 + $0x18] sm:$0xff] %v1102_v3   ;;  %v657_v7 = vadd.f32 %v656_v5, %v568_v4  ;;  %v619_v8 = vpop.f32.mrf.mxu1  ;;  %v531_v12 = vadd.f32 %v1363_v49, %v530_v6 }
  0xeb   : > { %v702_v10 = vmax.f32 %v657_v7, 0.0  ;;  %v620_v16 = vadd.f32 %v619_v8, %v531_v12 }
  0xed   : > { %v1142_v11 = vpack.c.bf16 %v702_v10, %v701_v9  ;;  %v687_v21 = vmax.f32 %v620_v16, 0.0 }
  0xee   : > { %v570_v13 = vpop.f32.mrf.mxu2 }
  0xef   : > { %1174 = vst [vmem:[%s1372_s4 + $0x58] sm:$0xff] %v1142_v11   ;;  %v659_v14 = vpop.f32.mrf.mxu3  ;;  %v571_v19 = vadd.f32 %v1363_v49, %v570_v13 }
  0xf0   : > { %v532_v15 = vpop.f32.mrf.mxu0 }
  0xf1   : > { %v533_v17 = vadd.f32 %v1363_v49, %v532_v15  ;;  %v621_v18 = vpop.f32.mrf.mxu1  ;;  %v660_v24 = vadd.f32 %v659_v14, %v571_v19 }
  0xf3   : > { %v622_v20 = vadd.f32 %v621_v18, %v533_v17  ;;  %v703_v31 = vmax.f32 %v660_v24, 0.0 }
  0xf5   : > { %v688_v22 = vmax.f32 %v622_v20, 0.0 }
  0xf6   : > { %v572_v23 = vpop.f32.mrf.mxu2 }
  0xf7   : > { %v1107_v25 = vpack.c.bf16 %v688_v22, %v687_v21  ;;  %v573_v26 = vadd.f32 %v1363_v49, %v572_v23  ;;  %v661_v27 = vpop.f32.mrf.mxu3 }
  0xf8   : > { %v535_v28 = vpop.f32.mrf.mxu0 }
  0xf9   : > { %1167 = vst [vmem:[%s1372_s4 + $0x20] sm:$0xff] %v1107_v25   ;;  %v662_v29 = vadd.f32 %v661_v27, %v573_v26  ;;  %v624_v30 = vpop.f32.mrf.mxu1  ;;  %v536_v34 = vadd.f32 %v1363_v49, %v535_v28 }
  0xfb   : > { %v704_v32 = vmax.f32 %v662_v29, 0.0  ;;  %v625_v38 = vadd.f32 %v624_v30, %v536_v34 }
  0xfd   : > { %v1147_v33 = vpack.c.bf16 %v704_v32, %v703_v31  ;;  %v689_v43 = vmax.f32 %v625_v38, 0.0 }
  0xfe   : > { %v575_v35 = vpop.f32.mrf.mxu2 }
  0xff   : > { %1175 = vst [vmem:[%s1372_s4 + $0x60] sm:$0xff] %v1147_v33   ;;  %v664_v36 = vpop.f32.mrf.mxu3  ;;  %v576_v41 = vadd.f32 %v1363_v49, %v575_v35 }
 0x100   : > { %v537_v37 = vpop.f32.mrf.mxu0 }
 0x101   : > { %v538_v39 = vadd.f32 %v1363_v49, %v537_v37  ;;  %v626_v40 = vpop.f32.mrf.mxu1  ;;  %v665_v46 = vadd.f32 %v664_v36, %v576_v41 }
 0x103   : > { %v627_v42 = vadd.f32 %v626_v40, %v538_v39  ;;  %v705_v54 = vmax.f32 %v665_v46, 0.0 }
 0x105   : > { %v690_v44 = vmax.f32 %v627_v42, 0.0 }
 0x106   : > { %v577_v45 = vpop.f32.mrf.mxu2 }
 0x107   : > { %v1112_v47 = vpack.c.bf16 %v690_v44, %v689_v43  ;;  %v578_v48 = vadd.f32 %v1363_v49, %v577_v45  ;;  %v666_v50 = vpop.f32.mrf.mxu3 }
 0x108   : > { %v540_v51 = vpop.f32.mrf.mxu0 }
 0x109   : > { %1168 = vst [vmem:[%s1372_s4 + $0x28] sm:$0xff] %v1112_v47   ;;  %v667_v52 = vadd.f32 %v666_v50, %v578_v48  ;;  %v629_v53 = vpop.f32.mrf.mxu1  ;;  %v541_v57 = vadd.f32 %v1363_v49, %v540_v51 }
 0x10b   : > { %v706_v55 = vmax.f32 %v667_v52, 0.0  ;;  %v630_v61 = vadd.f32 %v629_v53, %v541_v57 }
 0x10d   : > { %v1152_v56 = vpack.c.bf16 %v706_v55, %v705_v54  ;;  %v691_v2 = vmax.f32 %v630_v61, 0.0 }
 0x10e   : > { %v580_v58 = vpop.f32.mrf.mxu2 }
 0x10f   : > { %1176 = vst [vmem:[%s1372_s4 + $0x68] sm:$0xff] %v1152_v56   ;;  %v669_v59 = vpop.f32.mrf.mxu3  ;;  %v581_v0 = vadd.f32 %v1363_v49, %v580_v58 }
 0x110   : > { %v542_v60 = vpop.f32.mrf.mxu0 }
 0x111   : > { %v543_v62 = vadd.f32 %v1363_v49, %v542_v60  ;;  %v631_v63 = vpop.f32.mrf.mxu1  ;;  %v670_v5 = vadd.f32 %v669_v59, %v581_v0 }
 0x113   : > { %v632_v1 = vadd.f32 %v631_v63, %v543_v62  ;;  %v707_v12 = vmax.f32 %v670_v5, 0.0 }
 0x115   : > { %v692_v3 = vmax.f32 %v632_v1, 0.0 }
 0x116   : > { %v582_v4 = vpop.f32.mrf.mxu2 }
 0x117   : > { %v1117_v6 = vpack.c.bf16 %v692_v3, %v691_v2  ;;  %v583_v7 = vadd.f32 %v1363_v49, %v582_v4  ;;  %v671_v8 = vpop.f32.mrf.mxu3 }
 0x118   : > { %v545_v9 = vpop.f32.mrf.mxu0 }
 0x119   : > { %1169 = vst [vmem:[%s1372_s4 + $0x30] sm:$0xff] %v1117_v6   ;;  %v672_v10 = vadd.f32 %v671_v8, %v583_v7  ;;  %v634_v11 = vpop.f32.mrf.mxu1  ;;  %v546_v15 = vadd.f32 %v1363_v49, %v545_v9 }
 0x11b   : > { %v708_v13 = vmax.f32 %v672_v10, 0.0  ;;  %v635_v19 = vadd.f32 %v634_v11, %v546_v15 }
 0x11d   : > { %v1157_v14 = vpack.c.bf16 %v708_v13, %v707_v12  ;;  %v693_v24 = vmax.f32 %v635_v19, 0.0 }
 0x11e   : > { %v585_v16 = vpop.f32.mrf.mxu2 }
 0x11f   : > { %1177 = vst [vmem:[%s1372_s4 + $0x70] sm:$0xff] %v1157_v14   ;;  %v674_v17 = vpop.f32.mrf.mxu3  ;;  %v586_v22 = vadd.f32 %v1363_v49, %v585_v16 }
 0x120   : > { %v547_v18 = vpop.f32.mrf.mxu0 }
 0x121   : > { %v548_v20 = vadd.f32 %v1363_v49, %v547_v18  ;;  %v636_v21 = vpop.f32.mrf.mxu1  ;;  %v675_v27 = vadd.f32 %v674_v17, %v586_v22 }
 0x123   : > { %v637_v23 = vadd.f32 %v636_v21, %v548_v20  ;;  %v709_v32 = vmax.f32 %v675_v27, 0.0 }
 0x125   : > { %v694_v25 = vmax.f32 %v637_v23, 0.0 }
 0x126   : > { %v587_v26 = vpop.f32.mrf.mxu2 }
 0x127   : > { %v1122_v28 = vpack.c.bf16 %v694_v25, %v693_v24  ;;  %v588_v29 = vadd.f32 %v1363_v49, %v587_v26  ;;  %v676_v30 = vpop.f32.mrf.mxu3 }
 0x129   : > { %1170 = vst [vmem:[%s1372_s4 + $0x38] sm:$0xff] %v1122_v28   ;;  %v677_v31 = vadd.f32 %v676_v30, %v588_v29 }
 0x12b   : > { %v710_v33 = vmax.f32 %v677_v31, 0.0 }
 0x12d   : > { %v1162_v34 = vpack.c.bf16 %v710_v33, %v709_v32 }
 0x12f   : > { %1178 = vst [vmem:[%s1372_s4 + $0x78] sm:$0xff] %v1162_v34  }
 0x130 PF: > { %s13_s12 = sadd.s32 1, %s1210_s12  }
 0x131   : > { %p10_p4 = scmp.ge.s32.totalorder %s13_s12, 4  }
 0x133   :  { %12 = sbr.rel (!%p10_p4) target bundleno = 1 (0x1), region = 62 }

// kernel: backbone_forward.17
= control target key start
LH: loop header
LB: loop body
LE: loop exit
PB: predicated region body
PF: predicated region fallthrough
CT: control target
= control target key end

     0   :  { %s1011_s0 = inlined_call_operand.vmem [shape: bf16[128,1152], index: 0, kind: input, shape index: {}]   ;;  %s1012_s1 = inlined_call_operand.vmem [shape: bf16[128,128], index: 1, kind: output, shape index: {}]  }
   0x1   :  { %v8_v0 = vld [vmem:[%s1011_s0] sm:$0xff]   ;;  %v104_v2 = vld [vmem:[%s1011_s0 + $0x8] sm:$0xff]   ;;  %v264_v8 = vld [vmem:[%s1011_s0 + $0x10] sm:$0xff]  }
   0x2   :  { %v9_v1 = vld [vmem:[%s1011_s0 + $0x24] sm:$0xff]   ;;  %v40_v3 = vunpack.c.l.bf16 %v8_v0  ;;  %v56_v5 = vunpack.c.h.bf16 %v8_v0  ;;  %v105_v7 = vld [vmem:[%s1011_s0 + $0x2c] sm:$0xff]   ;;  %v265_v9 = vld [vmem:[%s1011_s0 + $0x34] sm:$0xff]   ;;  %v136_v10 = vunpack.c.l.bf16 %v104_v2  ;;  %v216_v12 = vunpack.c.h.bf16 %v104_v2 }
   0x3   :  { %v41_v4 = vunpack.c.l.bf16 %v9_v1  ;;  %v57_v6 = vunpack.c.h.bf16 %v9_v1  ;;  %v137_v11 = vunpack.c.l.bf16 %v105_v7  ;;  %v762_v13 = vld [vmem:[%s1011_s0 + $0x18] sm:$0xff]   ;;  %v217_v17 = vunpack.c.h.bf16 %v105_v7  ;;  %v772_v19 = vld [vmem:[%s1011_s0 + $0x20] sm:$0xf]  ;;  %v777_v20 = vld [vmem:[%s1011_s0 + $0x44] sm:$0xff]  }
   0x4   :  { %v767_v14 = vld [vmem:[%s1011_s0 + $0x3c] sm:$0xff]   ;;  %v72_v15 = vmax.f32 %v40_v3, %v56_v5  ;;  %v296_v18 = vunpack.c.l.bf16 %v264_v8  ;;  %v11_v21 = vld [vmem:[%s1011_s0 + $0x6c] sm:$0xff]   ;;  %v297_v22 = vunpack.c.l.bf16 %v265_v9  ;;  %v376_v23 = vunpack.c.h.bf16 %v264_v8  ;;  %v107_v31 = vld [vmem:[%s1011_s0 + $0x74] sm:$0xff]  }
   0x5   :  { %v73_v16 = vmax.f32 %v41_v4, %v57_v6  ;;  %v377_v24 = vunpack.c.h.bf16 %v265_v9  ;;  %v456_v25 = vunpack.c.l.bf16 %v762_v13  ;;  %v26_v26 = vld [vmem:[%s1011_s0 + $0x4c] sm:$0xff]   ;;  %v457_v29 = vunpack.c.l.bf16 %v767_v14  ;;  %v186_v32 = vld [vmem:[%s1011_s0 + $0x54] sm:$0xff]   ;;  %v267_v41 = vld [vmem:[%s1011_s0 + $0x7c] sm:$0xff]  }
   0x6   :  { %v152_v27 = vmax.f32 %v72_v15, %v136_v10  ;;  %v536_v30 = vunpack.c.h.bf16 %v762_v13  ;;  %v537_v33 = vunpack.c.h.bf16 %v767_v14  ;;  %v616_v34 = vunpack.c.l.bf16 %v772_v19  ;;  %v346_v42 = vld [vmem:[%s1011_s0 + $0x5c] sm:$0xff]   ;;  %v427_v51 = vld [vmem:[%s1011_s0 + $0x84] sm:$0xff]   ;;  %v587_v61 = vld [vmem:[%s1011_s0 + $0x8c] sm:$0xff]  }
   0x7   :  { %v153_v28 = vmax.f32 %v73_v16, %v137_v11  ;;  %v42_v35 = vunpack.c.h.bf16 %v777_v20  ;;  %v43_v36 = vunpack.c.l.bf16 %v11_v21  ;;  %v58_v39 = vunpack.c.l.bf16 %v26_v26  ;;  %v809_v52 = vld [vmem:[%s1011_s0 + $0x64] sm:$0xff]   ;;  %v13_v62 = vld [vmem:[%s1011_s0 + $0xb4] sm:$0xff]   ;;  %v109_v8 = vld [vmem:[%s1011_s0 + $0xbc] sm:$0xff]  }
   0x8   :  { %v232_v37 = vmax.f32 %v152_v27, %v216_v12  ;;  %v59_v40 = vunpack.c.h.bf16 %v11_v21  ;;  %v138_v43 = vunpack.c.h.bf16 %v26_v26  ;;  %v139_v44 = vunpack.c.l.bf16 %v107_v31  ;;  %v28_v7 = vld [vmem:[%s1011_s0 + $0x94] sm:$0xff]   ;;  %v269_v26 = vld [vmem:[%s1011_s0 + $0xc4] sm:$0xff]  }
   0x9   :  { %v233_v38 = vmax.f32 %v153_v28, %v217_v17  ;;  %v218_v45 = vunpack.c.l.bf16 %v186_v32  ;;  %v219_v46 = vunpack.c.h.bf16 %v107_v31  ;;  %v74_v49 = vmax.f32 %v42_v35, %v58_v39  ;;  %v188_v17 = vld [vmem:[%s1011_s0 + $0x9c] sm:$0xff]   ;;  %v348_v31 = vld [vmem:[%s1011_s0 + $0xa4] sm:$0xff]  }
   0xa   :  { %v312_v47 = vmax.f32 %v232_v37, %v296_v18  ;;  %v75_v50 = vmax.f32 %v43_v36, %v59_v40  ;;  %v617_v53 = vunpack.c.l.bf16 %v777_v20  ;;  %v298_v54 = vunpack.c.h.bf16 %v186_v32 }
   0xb   :  { %v313_v48 = vmax.f32 %v233_v38, %v297_v22  ;;  %v299_v55 = vunpack.c.l.bf16 %v267_v41  ;;  %v378_v56 = vunpack.c.l.bf16 %v346_v42  ;;  %v154_v59 = vmax.f32 %v74_v49, %v138_v43 }
   0xc   :  { %v392_v57 = vmax.f32 %v312_v47, %v376_v23  ;;  %v155_v60 = vmax.f32 %v75_v50, %v139_v44  ;;  %v379_v63 = vunpack.c.h.bf16 %v267_v41  ;;  %v458_v0 = vunpack.c.h.bf16 %v346_v42  ;;  %v508_v41 = vld [vmem:[%s1011_s0 + $0xac] sm:$0xff]  }
   0xd   :  { %v393_v58 = vmax.f32 %v313_v48, %v377_v24  ;;  %v459_v1 = vunpack.c.l.bf16 %v427_v51  ;;  %v538_v2 = vunpack.c.l.bf16 %v809_v52  ;;  %v234_v5 = vmax.f32 %v154_v59, %v218_v45 }
   0xe   :  { %v472_v3 = vmax.f32 %v392_v57, %v456_v25  ;;  %v235_v6 = vmax.f32 %v155_v60, %v219_v46  ;;  %v539_v9 = vunpack.c.h.bf16 %v427_v51  ;;  %v618_v10 = vunpack.c.h.bf16 %v809_v52  ;;  %v589_v46 = vld [vmem:[%s1011_s0 + $0xd4] sm:$0xff]   ;;  %v15_v51 = vld [vmem:[%s1011_s0 + $0xfc] sm:$0xff]   ;;  %v111_v57 = vld [vmem:[%s1011_s0 + $0x104] sm:$0xff]  }
   0xf   :  { %v473_v4 = vmax.f32 %v393_v58, %v457_v29  ;;  %v44_v11 = vunpack.c.h.bf16 %v587_v61  ;;  %v45_v12 = vunpack.c.l.bf16 %v13_v62  ;;  %v314_v15 = vmax.f32 %v234_v5, %v298_v54  ;;  %v30_v52 = vld [vmem:[%s1011_s0 + $0xdc] sm:$0xff]  }
  0x10   :  { %v552_v13 = vmax.f32 %v472_v3, %v536_v30  ;;  %v315_v16 = vmax.f32 %v235_v6, %v299_v55  ;;  %v60_v18 = vunpack.c.l.bf16 %v28_v7  ;;  %v61_v19 = vunpack.c.h.bf16 %v13_v62  ;;  %v190_v62 = vld [vmem:[%s1011_s0 + $0xe4] sm:$0xff]  }
  0x11   :  { %v553_v14 = vmax.f32 %v473_v4, %v537_v33  ;;  %v140_v20 = vunpack.c.h.bf16 %v28_v7  ;;  %v141_v21 = vunpack.c.l.bf16 %v109_v8  ;;  %v394_v24 = vmax.f32 %v314_v15, %v378_v56  ;;  %v271_v7 = vld [vmem:[%s1011_s0 + $0x10c] sm:$0xff]  }
  0x12   :  { %v632_v22 = vmax.f32 %v552_v13, %v616_v34  ;;  %v395_v25 = vmax.f32 %v315_v16, %v379_v63  ;;  %v76_v27 = vmax.f32 %v44_v11, %v60_v18  ;;  %v77_v28 = vmax.f32 %v45_v12, %v61_v19  ;;  %v429_v34 = vld [vmem:[%s1011_s0 + $0xcc] sm:$0xff]   ;;  %v874_v18 = vld [vmem:[%s1011_s0 + $0xf4] sm:$0xff]  }
  0x13   :  { %v633_v23 = vmax.f32 %v553_v14, %v617_v53  ;;  %v220_v29 = vunpack.c.l.bf16 %v188_v17  ;;  %v221_v30 = vunpack.c.h.bf16 %v109_v8  ;;  %v474_v33 = vmax.f32 %v394_v24, %v458_v0  ;;  %v350_v8 = vld [vmem:[%s1011_s0 + $0xec] sm:$0xff]  }
  0x14   :  { %v475_v35 = vmax.f32 %v395_v25, %v459_v1  ;;  %v619_v36 = vunpack.c.l.bf16 %v587_v61  ;;  %v156_v37 = vmax.f32 %v76_v27, %v140_v20  ;;  %v157_v38 = vmax.f32 %v77_v28, %v141_v21  ;;  %v591_v27 = vld [vmem:[%s1011_s0 + $0x11c] sm:$0xff]   ;;  %v17_v28 = vld [vmem:[%s1011_s0 + $0x144] sm:$0xff]  }
  0x15   :  { %v687_v32 = vpack.c.bf16 %v633_v23, %v632_v22  ;;  %v300_v39 = vunpack.c.h.bf16 %v188_v17  ;;  %v301_v40 = vunpack.c.l.bf16 %v269_v26  ;;  %v554_v42 = vmax.f32 %v474_v33, %v538_v2  ;;  %v431_v17 = vld [vmem:[%s1011_s0 + $0x114] sm:$0xff]   ;;  %v32_v33 = vld [vmem:[%s1011_s0 + $0x124] sm:$0xff]  }
  0x16   :  { %v555_v43 = vmax.f32 %v475_v35, %v539_v9  ;;  %v380_v44 = vunpack.c.l.bf16 %v348_v31  ;;  %v381_v45 = vunpack.c.h.bf16 %v269_v26  ;;  %v236_v47 = vmax.f32 %v156_v37, %v220_v29 }
  0x17   :  { %688 = vst [vmem:[%s1012_s1] sm:$0xff] %v687_v32   ;;  %v237_v48 = vmax.f32 %v157_v38, %v221_v30  ;;  %v460_v49 = vunpack.c.h.bf16 %v348_v31  ;;  %v461_v50 = vunpack.c.l.bf16 %v429_v34  ;;  %v634_v53 = vmax.f32 %v554_v42, %v618_v10  ;;  %v113_v38 = vld [vmem:[%s1011_s0 + $0x14c] sm:$0xff]  }
  0x18   :  { %v635_v54 = vmax.f32 %v555_v43, %v619_v36  ;;  %v540_v55 = vunpack.c.l.bf16 %v508_v41  ;;  %v541_v56 = vunpack.c.h.bf16 %v429_v34  ;;  %v316_v58 = vmax.f32 %v236_v47, %v300_v39  ;;  %v192_v43 = vld [vmem:[%s1011_s0 + $0x12c] sm:$0xff]  }
  0x19   :  { %v317_v59 = vmax.f32 %v237_v48, %v301_v40  ;;  %v620_v60 = vunpack.c.h.bf16 %v508_v41  ;;  %v46_v61 = vunpack.c.h.bf16 %v589_v46  ;;  %v47_v0 = vunpack.c.l.bf16 %v15_v51  ;;  %v273_v48 = vld [vmem:[%s1011_s0 + $0x154] sm:$0xff]  }
  0x1a   :  { %v692_v63 = vpack.c.bf16 %v635_v54, %v634_v53  ;;  %v62_v1 = vunpack.c.l.bf16 %v30_v52  ;;  %v63_v2 = vunpack.c.h.bf16 %v15_v51  ;;  %v396_v3 = vmax.f32 %v316_v58, %v380_v44  ;;  %v352_v53 = vld [vmem:[%s1011_s0 + $0x134] sm:$0xff]   ;;  %v433_v58 = vld [vmem:[%s1011_s0 + $0x15c] sm:$0xff]  }
  0x1b   :  { %v397_v4 = vmax.f32 %v317_v59, %v381_v45  ;;  %v142_v5 = vunpack.c.h.bf16 %v30_v52  ;;  %v143_v6 = vunpack.c.l.bf16 %v111_v57  ;;  %v222_v11 = vunpack.c.l.bf16 %v190_v62 }
  0x1c   :  { %724 = vst [vmem:[%s1012_s1 + $0x8] sm:$0xff] %v692_v63   ;;  %v78_v9 = vmax.f32 %v46_v61, %v62_v1  ;;  %v79_v10 = vmax.f32 %v47_v0, %v63_v2  ;;  %v223_v12 = vunpack.c.h.bf16 %v111_v57  ;;  %v476_v13 = vmax.f32 %v396_v3, %v460_v49  ;;  %v908_v63 = vld [vmem:[%s1011_s0 + $0x13c] sm:$0xff]  }
  0x1d   :  { %v477_v14 = vmax.f32 %v397_v4, %v461_v50  ;;  %v621_v15 = vunpack.c.l.bf16 %v589_v46  ;;  %v302_v16 = vunpack.c.h.bf16 %v190_v62  ;;  %v303_v21 = vunpack.c.l.bf16 %v271_v7  ;;  %v593_v4 = vld [vmem:[%s1011_s0 + $0x164] sm:$0xff]  }
  0x1e   :  { %v158_v19 = vmax.f32 %v78_v9, %v142_v5  ;;  %v159_v20 = vmax.f32 %v79_v10, %v143_v6  ;;  %v382_v22 = vunpack.c.l.bf16 %v350_v8  ;;  %v556_v23 = vmax.f32 %v476_v13, %v540_v55  ;;  %v19_v9 = vld [vmem:[%s1011_s0 + $0x18c] sm:$0xff]  }
  0x1f   :  { %v557_v24 = vmax.f32 %v477_v14, %v541_v56  ;;  %v383_v25 = vunpack.c.h.bf16 %v271_v7  ;;  %v462_v26 = vunpack.c.h.bf16 %v350_v8  ;;  %v463_v31 = vunpack.c.l.bf16 %v431_v17  ;;  %v34_v10 = vld [vmem:[%s1011_s0 + $0x16c] sm:$0xff]  }
  0x20   :  { %v238_v29 = vmax.f32 %v158_v19, %v222_v11  ;;  %v239_v30 = vmax.f32 %v159_v20, %v223_v12  ;;  %v542_v32 = vunpack.c.l.bf16 %v874_v18  ;;  %v636_v35 = vmax.f32 %v556_v23, %v620_v60  ;;  %v194_v20 = vld [vmem:[%s1011_s0 + $0x174] sm:$0xff]  }
  0x21   :  { %v637_v36 = vmax.f32 %v557_v24, %v621_v15  ;;  %v543_v34 = vunpack.c.h.bf16 %v431_v17  ;;  %v622_v37 = vunpack.c.h.bf16 %v874_v18  ;;  %v48_v41 = vunpack.c.h.bf16 %v591_v27  ;;  %v115_v15 = vld [vmem:[%s1011_s0 + $0x194] sm:$0xff]  }
  0x22   :  { %v318_v39 = vmax.f32 %v238_v29, %v302_v16  ;;  %v319_v40 = vmax.f32 %v239_v30, %v303_v21  ;;  %v49_v42 = vunpack.c.l.bf16 %v17_v28  ;;  %v64_v45 = vunpack.c.l.bf16 %v32_v33  ;;  %v275_v29 = vld [vmem:[%s1011_s0 + $0x19c] sm:$0xff]  }
  0x23   :  { %v697_v44 = vpack.c.bf16 %v637_v36, %v636_v35  ;;  %v65_v46 = vunpack.c.h.bf16 %v17_v28  ;;  %v144_v47 = vunpack.c.h.bf16 %v32_v33  ;;  %v623_v51 = vunpack.c.l.bf16 %v591_v27  ;;  %v354_v35 = vld [vmem:[%s1011_s0 + $0x17c] sm:$0xff]  }
  0x24   :  { %v398_v49 = vmax.f32 %v318_v39, %v382_v22  ;;  %v399_v50 = vmax.f32 %v319_v40, %v383_v25  ;;  %v145_v52 = vunpack.c.l.bf16 %v113_v38  ;;  %v80_v54 = vmax.f32 %v48_v41, %v64_v45  ;;  %v435_v39 = vld [vmem:[%s1011_s0 + $0x1a4] sm:$0xff]  }
  0x25   :  { %725 = vst [vmem:[%s1012_s1 + $0x10] sm:$0xff] %v697_v44   ;;  %v81_v55 = vmax.f32 %v49_v42, %v65_v46  ;;  %v224_v56 = vunpack.c.l.bf16 %v192_v43  ;;  %v225_v57 = vunpack.c.h.bf16 %v113_v38  ;;  %v304_v61 = vunpack.c.h.bf16 %v192_v43  ;;  %v514_v44 = vld [vmem:[%s1011_s0 + $0x184] sm:$0xff]  }
  0x26   :  { %v478_v59 = vmax.f32 %v398_v49, %v462_v26  ;;  %v479_v60 = vmax.f32 %v399_v50, %v463_v31  ;;  %v305_v62 = vunpack.c.l.bf16 %v273_v48  ;;  %v160_v0 = vmax.f32 %v80_v54, %v144_v47  ;;  %v595_v49 = vld [vmem:[%s1011_s0 + $0x1ac] sm:$0xff]   ;;  %v21_v54 = vld [vmem:[%s1011_s0 + $0x1d4] sm:$0xff]  }
  0x27   :  { %v161_v1 = vmax.f32 %v81_v55, %v145_v52  ;;  %v384_v2 = vunpack.c.l.bf16 %v352_v53  ;;  %v385_v3 = vunpack.c.h.bf16 %v273_v48  ;;  %v464_v7 = vunpack.c.h.bf16 %v352_v53  ;;  %v36_v55 = vld [vmem:[%s1011_s0 + $0x1b4] sm:$0xff]  }
  0x28   :  { %v558_v5 = vmax.f32 %v478_v59, %v542_v32  ;;  %v559_v6 = vmax.f32 %v479_v60, %v543_v34  ;;  %v465_v8 = vunpack.c.l.bf16 %v433_v58  ;;  %v240_v11 = vmax.f32 %v160_v0, %v224_v56  ;;  %v117_v60 = vld [vmem:[%s1011_s0 + $0x1dc] sm:$0xff]  }
  0x29   :  { %v241_v12 = vmax.f32 %v161_v1, %v225_v57  ;;  %v544_v13 = vunpack.c.l.bf16 %v908_v63  ;;  %v545_v14 = vunpack.c.h.bf16 %v433_v58  ;;  %v624_v18 = vunpack.c.h.bf16 %v908_v63  ;;  %v196_v1 = vld [vmem:[%s1011_s0 + $0x1bc] sm:$0xff]  }
  0x2a   :  { %v638_v16 = vmax.f32 %v558_v5, %v622_v37  ;;  %v639_v17 = vmax.f32 %v559_v6, %v623_v51  ;;  %v50_v19 = vunpack.c.h.bf16 %v593_v4  ;;  %v320_v21 = vmax.f32 %v240_v11, %v304_v61 }
  0x2b   :  { %v321_v22 = vmax.f32 %v241_v12, %v305_v62  ;;  %v51_v23 = vunpack.c.l.bf16 %v19_v9  ;;  %v66_v24 = vunpack.c.l.bf16 %v34_v10  ;;  %v67_v26 = vunpack.c.h.bf16 %v19_v9 }
  0x2c   :  { %v702_v25 = vpack.c.bf16 %v639_v17, %v638_v16  ;;  %v146_v27 = vunpack.c.h.bf16 %v34_v10  ;;  %v147_v28 = vunpack.c.l.bf16 %v115_v15  ;;  %v400_v30 = vmax.f32 %v320_v21, %v384_v2  ;;  %v277_v10 = vld [vmem:[%s1011_s0 + $0x1e4] sm:$0xff]  }
  0x2d   :  { %v401_v31 = vmax.f32 %v321_v22, %v385_v3  ;;  %v82_v32 = vmax.f32 %v50_v19, %v66_v24  ;;  %v226_v33 = vunpack.c.l.bf16 %v194_v20  ;;  %v625_v36 = vunpack.c.l.bf16 %v593_v4  ;;  %v437_v24 = vld [vmem:[%s1011_s0 + $0x1ec] sm:$0xff]  }
  0x2e   :  { %726 = vst [vmem:[%s1012_s1 + $0x18] sm:$0xff] %v702_v25   ;;  %v83_v34 = vmax.f32 %v51_v23, %v67_v26  ;;  %v227_v37 = vunpack.c.h.bf16 %v115_v15  ;;  %v306_v38 = vunpack.c.h.bf16 %v194_v20  ;;  %v480_v40 = vmax.f32 %v400_v30, %v464_v7  ;;  %v356_v15 = vld [vmem:[%s1011_s0 + $0x1c4] sm:$0xff]   ;;  %v516_v25 = vld [vmem:[%s1011_s0 + $0x1cc] sm:$0xff]  }
  0x2f   :  { %v481_v41 = vmax.f32 %v401_v31, %v465_v8  ;;  %v162_v42 = vmax.f32 %v82_v32, %v146_v27  ;;  %v307_v43 = vunpack.c.l.bf16 %v275_v29  ;;  %v386_v46 = vunpack.c.l.bf16 %v354_v35 }
  0x30   :  { %v163_v45 = vmax.f32 %v83_v34, %v147_v28  ;;  %v387_v47 = vunpack.c.h.bf16 %v275_v29  ;;  %v466_v48 = vunpack.c.h.bf16 %v354_v35  ;;  %v560_v50 = vmax.f32 %v480_v40, %v544_v13  ;;  %v597_v29 = vld [vmem:[%s1011_s0 + $0x1f4] sm:$0xff]   ;;  %v23_v35 = vld [vmem:[%s1011_s0 + $0x21c] sm:$0xff]   ;;  %v119_v40 = vld [vmem:[%s1011_s0 + $0x224] sm:$0xff]  }
  0x31   :  { %v561_v51 = vmax.f32 %v481_v41, %v545_v14  ;;  %v242_v52 = vmax.f32 %v162_v42, %v226_v33  ;;  %v467_v53 = vunpack.c.l.bf16 %v435_v39  ;;  %v546_v57 = vunpack.c.l.bf16 %v514_v44 }
  0x32   :  { %v243_v56 = vmax.f32 %v163_v45, %v227_v37  ;;  %v547_v58 = vunpack.c.h.bf16 %v435_v39  ;;  %v626_v59 = vunpack.c.h.bf16 %v514_v44  ;;  %v640_v61 = vmax.f32 %v560_v50, %v624_v18  ;;  %v198_v45 = vld [vmem:[%s1011_s0 + $0x204] sm:$0xff]  }
  0x33   :  { %v641_v62 = vmax.f32 %v561_v51, %v625_v36  ;;  %v322_v63 = vmax.f32 %v242_v52, %v306_v38  ;;  %v52_v0 = vunpack.c.h.bf16 %v595_v49  ;;  %v53_v3 = vunpack.c.l.bf16 %v21_v54  ;;  %v38_v36 = vld [vmem:[%s1011_s0 + $0x1fc] sm:$0xff]  }
  0x34   :  { %v323_v2 = vmax.f32 %v243_v56, %v307_v43  ;;  %v68_v4 = vunpack.c.l.bf16 %v36_v55  ;;  %v69_v5 = vunpack.c.h.bf16 %v21_v54  ;;  %v148_v8 = vunpack.c.h.bf16 %v36_v55  ;;  %v279_v54 = vld [vmem:[%s1011_s0 + $0x22c] sm:$0xff]  }
  0x35   :  { %v707_v6 = vpack.c.bf16 %v641_v62, %v640_v61  ;;  %v402_v7 = vmax.f32 %v322_v63, %v386_v46  ;;  %v149_v9 = vunpack.c.l.bf16 %v117_v60  ;;  %v228_v14 = vunpack.c.l.bf16 %v196_v1  ;;  %v358_v63 = vld [vmem:[%s1011_s0 + $0x20c] sm:$0xff]  }
  0x36   :  { %v403_v11 = vmax.f32 %v323_v2, %v387_v47  ;;  %v84_v12 = vmax.f32 %v52_v0, %v68_v4  ;;  %v85_v13 = vmax.f32 %v53_v3, %v69_v5  ;;  %v627_v17 = vunpack.c.l.bf16 %v595_v49 }
  0x37   :  { %727 = vst [vmem:[%s1012_s1 + $0x20] sm:$0xff] %v707_v6   ;;  %v482_v16 = vmax.f32 %v402_v7, %v466_v48  ;;  %v229_v18 = vunpack.c.h.bf16 %v117_v60  ;;  %v308_v19 = vunpack.c.h.bf16 %v196_v1  ;;  %v309_v23 = vunpack.c.l.bf16 %v277_v10  ;;  %v439_v6 = vld [vmem:[%s1011_s0 + $0x234] sm:$0xff]  }
  0x38   :  { %v483_v20 = vmax.f32 %v403_v11, %v467_v53  ;;  %v164_v21 = vmax.f32 %v84_v12, %v148_v8  ;;  %v165_v22 = vmax.f32 %v85_v13, %v149_v9  ;;  %v388_v27 = vunpack.c.l.bf16 %v356_v15  ;;  %v518_v13 = vld [vmem:[%s1011_s0 + $0x214] sm:$0xff]  }
  0x39   :  { %v562_v26 = vmax.f32 %v482_v16, %v546_v57  ;;  %v389_v28 = vunpack.c.h.bf16 %v277_v10  ;;  %v468_v33 = vunpack.c.h.bf16 %v356_v15  ;;  %v469_v37 = vunpack.c.l.bf16 %v437_v24 }
  0x3a   :  { %v563_v30 = vmax.f32 %v483_v20, %v547_v58  ;;  %v244_v31 = vmax.f32 %v164_v21, %v228_v14  ;;  %v245_v32 = vmax.f32 %v165_v22, %v229_v18  ;;  %v548_v38 = vunpack.c.l.bf16 %v516_v25 }
  0x3b   :  { %v642_v34 = vmax.f32 %v562_v26, %v626_v59  ;;  %v549_v39 = vunpack.c.h.bf16 %v437_v24  ;;  %v54_v44 = vunpack.c.h.bf16 %v597_v29  ;;  %v55_v46 = vunpack.c.l.bf16 %v23_v35 }
  0x3c   :  { %v643_v41 = vmax.f32 %v563_v30, %v627_v17  ;;  %v324_v42 = vmax.f32 %v244_v31, %v308_v19  ;;  %v325_v43 = vmax.f32 %v245_v32, %v309_v23  ;;  %v70_v47 = vunpack.c.l.bf16 %v38_v36  ;;  %v599_v19 = vld [vmem:[%s1011_s0 + $0x23c] sm:$0xf] }
  0x3d   :  { %v71_v48 = vunpack.c.h.bf16 %v23_v35  ;;  %v150_v49 = vunpack.c.h.bf16 %v38_v36  ;;  %v151_v53 = vunpack.c.l.bf16 %v119_v40  ;;  %v230_v57 = vunpack.c.l.bf16 %v198_v45 }
  0x3e   :  { %v712_v50 = vpack.c.bf16 %v643_v41, %v642_v34  ;;  %v404_v51 = vmax.f32 %v324_v42, %v388_v27  ;;  %v405_v52 = vmax.f32 %v325_v43, %v389_v28  ;;  %v86_v55 = vmax.f32 %v54_v44, %v70_v47 }
  0x3f   :  { %v87_v56 = vmax.f32 %v55_v46, %v71_v48  ;;  %v231_v58 = vunpack.c.h.bf16 %v119_v40  ;;  %v628_v61 = vunpack.c.h.bf16 %v516_v25  ;;  %v629_v62 = vunpack.c.l.bf16 %v597_v29 }
  0x40   :  { %728 = vst [vmem:[%s1012_s1 + $0x28] sm:$0xff] %v712_v50   ;;  %v484_v59 = vmax.f32 %v404_v51, %v468_v33  ;;  %v485_v60 = vmax.f32 %v405_v52, %v469_v37  ;;  %v166_v0 = vmax.f32 %v86_v55, %v150_v49  ;;  %v310_v2 = vunpack.c.h.bf16 %v198_v45 }
  0x41   :  { %v167_v1 = vmax.f32 %v87_v56, %v151_v53  ;;  %v311_v3 = vunpack.c.l.bf16 %v279_v54  ;;  %v390_v9 = vunpack.c.l.bf16 %v358_v63  ;;  %v391_v10 = vunpack.c.h.bf16 %v279_v54 }
  0x42   :  { %v564_v4 = vmax.f32 %v484_v59, %v548_v38  ;;  %v565_v5 = vmax.f32 %v485_v60, %v549_v39  ;;  %v246_v7 = vmax.f32 %v166_v0, %v230_v57  ;;  %v470_v16 = vunpack.c.h.bf16 %v358_v63 }
  0x43   :  { %v247_v8 = vmax.f32 %v167_v1, %v231_v58  ;;  %v471_v17 = vunpack.c.l.bf16 %v439_v6  ;;  %v550_v22 = vunpack.c.l.bf16 %v518_v13  ;;  %v551_v23 = vunpack.c.h.bf16 %v439_v6 }
  0x44   :  { %v644_v11 = vmax.f32 %v564_v4, %v628_v61  ;;  %v645_v12 = vmax.f32 %v565_v5, %v629_v62  ;;  %v326_v14 = vmax.f32 %v246_v7, %v310_v2  ;;  %v630_v26 = vunpack.c.h.bf16 %v518_v13 }
  0x45   :  { %v327_v15 = vmax.f32 %v247_v8, %v311_v3  ;;  %v631_v27 = vunpack.c.l.bf16 %v599_v19 }
  0x46   :  { %v717_v18 = vpack.c.bf16 %v645_v12, %v644_v11  ;;  %v406_v20 = vmax.f32 %v326_v14, %v390_v9 }
  0x47   :  { %v407_v21 = vmax.f32 %v327_v15, %v391_v10 }
  0x48   :  { %729 = vst [vmem:[%s1012_s1 + $0x30] sm:$0xff] %v717_v18   ;;  %v486_v24 = vmax.f32 %v406_v20, %v470_v16 }
  0x49   :  { %v487_v25 = vmax.f32 %v407_v21, %v471_v17 }
  0x4a   :  { %v566_v28 = vmax.f32 %v486_v24, %v550_v22 }
  0x4b   :  { %v567_v29 = vmax.f32 %v487_v25, %v551_v23 }
  0x4c   :  { %v646_v30 = vmax.f32 %v566_v28, %v630_v26 }
  0x4d   :  { %v647_v31 = vmax.f32 %v567_v29, %v631_v27 }
  0x4f   :  { %v722_v32 = vpack.c.bf16 %v647_v31, %v646_v30 }
  0x51   :  { %730 = vst [vmem:[%s1012_s1 + $0x38] sm:$0xff] %v722_v32  }

// kernel: backbone_forward.23
= control target key start
LH: loop header
LB: loop body
LE: loop exit
PB: predicated region body
PF: predicated region fallthrough
CT: control target
= control target key end

     0   :  { %s258_s1 = inlined_call_operand.vmem [shape: bf16[128,128], index: 1, kind: input, shape index: {}]   ;;  %s259_s2 = inlined_call_operand.vmem [shape: f32[1,128], index: 2, kind: input, shape index: {}]   ;;  %s260_s0 = inlined_call_operand.vmem [shape: bf16[32,128], index: 0, kind: input, shape index: {}]   ;;  %s261_s3 = inlined_call_operand.vmem [shape: bf16[32,128], index: 3, kind: output, shape index: {}]  }
   0x1   :  { %v178_v0 = vld [vmem:[%s258_s1 + $0x38] sm:$0xff]  ;;  %v177_v1 = vld [vmem:[%s258_s1 + $0x30] sm:$0xff]  ;;  %v176_v2 = vld [vmem:[%s258_s1 + $0x28] sm:$0xff] }
   0x2   :  { %98 = vmatpush.bf16.msra.mxu0 %v178_v0  ;;  %190 = vmatpush.bf16.msra.mxu1 %v178_v0  ;;  %v175_v3 = vld [vmem:[%s258_s1 + $0x20] sm:$0xff]  ;;  %v174_v4 = vld [vmem:[%s258_s1 + $0x18] sm:$0xff]  ;;  %v173_v5 = vld [vmem:[%s258_s1 + $0x10] sm:$0xff] }
   0x3   :  { %v172_v6 = vld [vmem:[%s258_s1 + $0x8] sm:$0xff]  ;;  %v171_v7 = vld [vmem:[%s258_s1] sm:$0xff] }
   0x4   :  { %v169_v8 = vld [vmem:[%s260_s0] sm:$0xff]  ;;  %v170_v9 = vld [vmem:[%s260_s0 + $0x8] sm:$0xff] }
   0x5   :  { %v198_v12 = vld [vmem:[%s259_s2] ss:$0 sm:$0xff] }
   0x6   :  { %99 = vmatpush.bf16.msra.mxu0 %v177_v1  ;;  %191 = vmatpush.bf16.msra.mxu1 %v177_v1 }
   0xa   :  { %100 = vmatpush.bf16.msra.mxu0 %v176_v2  ;;  %192 = vmatpush.bf16.msra.mxu1 %v176_v2 }
   0xe   :  { %101 = vmatpush.bf16.msra.mxu0 %v175_v3  ;;  %193 = vmatpush.bf16.msra.mxu1 %v175_v3 }
  0x12   :  { %102 = vmatpush.bf16.msra.mxu0 %v174_v4  ;;  %194 = vmatpush.bf16.msra.mxu1 %v174_v4 }
  0x16   :  { %103 = vmatpush.bf16.msra.mxu0 %v173_v5  ;;  %195 = vmatpush.bf16.msra.mxu1 %v173_v5 }
  0x1a   :  { %104 = vmatpush.bf16.msra.mxu0 %v172_v6  ;;  %196 = vmatpush.bf16.msra.mxu1 %v172_v6 }
  0x1e   :  { %105 = vmatpush.bf16.msra.mxu0 %v171_v7  ;;  %197 = vmatpush.bf16.msra.mxu1 %v171_v7 }
  0x21   :  { %106 = vmatmul.bf16.vlgmr.msra.gmra.mxu0 %v169_v8  ;;  %111 = vmatmul.bf16.vlgmr.msra.gmra.mxu1 %v170_v9 }
  0x9e   :  { %v107_v10 = vpop.f32.mrf.mxu0  ;;  %v112_v11 = vpop.f32.mrf.mxu1 }
  0x9f   :  { %v108_v15 = vadd.f32 %v198_v12, %v107_v10  ;;  %v113_v16 = vadd.f32 %v198_v12, %v112_v11 }
  0xa6   :  { %v109_v13 = vpop.f32.mrf.mxu0  ;;  %v114_v14 = vpop.f32.mrf.mxu1 }
  0xa7   :  { %v110_v17 = vadd.f32 %v198_v12, %v109_v13  ;;  %v115_v18 = vadd.f32 %v198_v12, %v114_v14 }
  0xa9   :  { %v182_v19 = vpack.c.bf16 %v110_v17, %v108_v15  ;;  %v187_v20 = vpack.c.bf16 %v115_v18, %v113_v16 }
  0xab   :  { %183 = vst [vmem:[%s261_s3] sm:$0xff] %v182_v19  }
  0xac   :  { %189 = vst [vmem:[%s261_s3 + $0x8] sm:$0xff] %v187_v20  }

// kernel: backbone_forward.19
= control target key start
LH: loop header
LB: loop body
LE: loop exit
PB: predicated region body
PF: predicated region fallthrough
CT: control target
= control target key end

     0   :  { %s3243_s1 = inlined_call_operand.vmem [shape: bf16[1152,128], index: 1, kind: input, shape index: {}]   ;;  %s3244_s2 = inlined_call_operand.vmem [shape: f32[1,128], index: 2, kind: input, shape index: {}]   ;;  %s3245_s0 = inlined_call_operand.vmem [shape: bf16[128,1152], index: 0, kind: input, shape index: {}]   ;;  %s3246_s3 = inlined_call_operand.vmem [shape: bf16[128,128], index: 3, kind: input, shape index: {}]   ;;  %s3247_s4 = inlined_call_operand.vmem [shape: bf16[128,128], index: 4, kind: output, shape index: {}]  }
   0x1   :  { %v2241_v0 = vld [vmem:[%s3243_s1 + $0x38] sm:$0xff]  ;;  %v2240_v1 = vld [vmem:[%s3243_s1 + $0x30] sm:$0xff]  ;;  %v2239_v2 = vld [vmem:[%s3243_s1 + $0x28] sm:$0xff] }
   0x2   :  { %2392 = vmatpush.bf16.msra.mxu1 %v2241_v0  ;;  %2393 = vmatpush.bf16.msra.mxu2 %v2241_v0  ;;  %v2238_v3 = vld [vmem:[%s3243_s1 + $0x20] sm:$0xff]  ;;  %v2237_v4 = vld [vmem:[%s3243_s1 + $0x18] sm:$0xff]  ;;  %v2236_v5 = vld [vmem:[%s3243_s1 + $0x10] sm:$0xff] }
   0x3   :  { %2394 = vmatpush.bf16.msra.mxu3 %v2241_v0  ;;  %1045 = vmatpush.bf16.msra.mxu0 %v2241_v0  ;;  %v2235_v6 = vld [vmem:[%s3243_s1 + $0x8] sm:$0xff]  ;;  %v2234_v7 = vld [vmem:[%s3243_s1] sm:$0xff]  ;;  %v1660_v8 = vld [vmem:[%s3245_s0 + $0x90] sm:$0xf] }
   0x4   :  { %v2184_v9 = vld [vmem:[%s3245_s0 + $0xb0] sm:$0xf0]  ;;  %v1732_v10 = vld [vmem:[%s3245_s0 + $0x120] sm:$0xf]  ;;  %v2202_v11 = vld [vmem:[%s3245_s0 + $0x140] sm:$0xf0] }
   0x5   :  { %v1804_v12 = vld [vmem:[%s3245_s0 + $0x1b0] sm:$0xf]  ;;  %v2220_v13 = vld [vmem:[%s3245_s0 + $0x1d0] sm:$0xf0]  ;;  %v1588_v14 = vld [vmem:[%s3245_s0] sm:$0xf]  ;;  %v1661_v18 = vor.u32 %v2184_v9, %v1660_v8  ;;  %v1733_v19 = vor.u32 %v2202_v11, %v1732_v10 }
   0x6   :  { %2395 = vmatpush.bf16.msra.mxu1 %v2240_v1  ;;  %2396 = vmatpush.bf16.msra.mxu2 %v2240_v1  ;;  %v2166_v15 = vld [vmem:[%s3245_s0 + $0x20] sm:$0xf0]  ;;  %v2257_v16 = vld [vmem:[%s3243_s1 + $0xb8] sm:$0xff]  ;;  %v1805_v20 = vor.u32 %v2220_v13, %v1804_v12  ;;  %v2256_v24 = vld [vmem:[%s3243_s1 + $0xb0] sm:$0xff] }
   0x7   :  { %2397 = vmatpush.bf16.msra.mxu3 %v2240_v1  ;;  %1046 = vmatpush.bf16.msra.mxu0 %v2240_v1  ;;  %v2249_v17 = vld [vmem:[%s3243_s1 + $0x78] sm:$0xff]  ;;  %v1589_v21 = vor.u32 %v2166_v15, %v1588_v14  ;;  %v2248_v25 = vld [vmem:[%s3243_s1 + $0x70] sm:$0xff]  ;;  %v2255_v28 = vld [vmem:[%s3243_s1 + $0xa8] sm:$0xff] }
   0x8   :  { %v2265_v22 = vld [vmem:[%s3243_s1 + $0xf8] sm:$0xff]  ;;  %v2264_v26 = vld [vmem:[%s3243_s1 + $0xf0] sm:$0xff]  ;;  %v2247_v29 = vld [vmem:[%s3243_s1 + $0x68] sm:$0xff] }
   0x9   :  { %v2273_v23 = vld [vmem:[%s3243_s1 + $0x138] sm:$0xff]  ;;  %v2272_v27 = vld [vmem:[%s3243_s1 + $0x130] sm:$0xff]  ;;  %v2263_v30 = vld [vmem:[%s3243_s1 + $0xe8] sm:$0xff] }
   0xa   :  { %2398 = vmatpush.bf16.msra.mxu1 %v2239_v2  ;;  %2399 = vmatpush.bf16.msra.mxu2 %v2239_v2  ;;  %v2271_v31 = vld [vmem:[%s3243_s1 + $0x128] sm:$0xff]  ;;  %v2254_v32 = vld [vmem:[%s3243_s1 + $0xa0] sm:$0xff]  ;;  %v1696_v36 = vld [vmem:[%s3245_s0 + $0xd8] sm:$0xf] }
   0xb   :  { %2400 = vmatpush.bf16.msra.mxu3 %v2239_v2  ;;  %1047 = vmatpush.bf16.msra.mxu0 %v2239_v2  ;;  %v2246_v33 = vld [vmem:[%s3243_s1 + $0x60] sm:$0xff]  ;;  %v2193_v37 = vld [vmem:[%s3245_s0 + $0xf8] sm:$0xf0]  ;;  %v1768_v38 = vld [vmem:[%s3245_s0 + $0x168] sm:$0xf] }
   0xc   :  { %v2262_v34 = vld [vmem:[%s3243_s1 + $0xe0] sm:$0xff]  ;;  %v2211_v39 = vld [vmem:[%s3245_s0 + $0x188] sm:$0xf0]  ;;  %v1840_v40 = vld [vmem:[%s3245_s0 + $0x1f8] sm:$0xf]  ;;  %v1697_v46 = vor.u32 %v2193_v37, %v1696_v36 }
   0xd   :  { %v2270_v35 = vld [vmem:[%s3243_s1 + $0x120] sm:$0xff]  ;;  %v2229_v41 = vld [vmem:[%s3245_s0 + $0x218] sm:$0xf0]  ;;  %v1624_v42 = vld [vmem:[%s3245_s0 + $0x48] sm:$0xf]  ;;  %v1769_v47 = vor.u32 %v2211_v39, %v1768_v38 }
   0xe   :  { %2401 = vmatpush.bf16.msra.mxu1 %v2238_v3  ;;  %2402 = vmatpush.bf16.msra.mxu2 %v2238_v3  ;;  %v2175_v43 = vld [vmem:[%s3245_s0 + $0x68] sm:$0xf0]  ;;  %v2253_v44 = vld [vmem:[%s3243_s1 + $0x98] sm:$0xff]  ;;  %v1841_v48 = vor.u32 %v2229_v41, %v1840_v40  ;;  %v2252_v52 = vld [vmem:[%s3243_s1 + $0x90] sm:$0xff] }
   0xf   :  { %2403 = vmatpush.bf16.msra.mxu3 %v2238_v3  ;;  %1048 = vmatpush.bf16.msra.mxu0 %v2238_v3  ;;  %v2245_v45 = vld [vmem:[%s3243_s1 + $0x58] sm:$0xff]  ;;  %v1625_v49 = vor.u32 %v2175_v43, %v1624_v42  ;;  %v2244_v53 = vld [vmem:[%s3243_s1 + $0x50] sm:$0xff]  ;;  %v2251_v56 = vld [vmem:[%s3243_s1 + $0x88] sm:$0xff] }
  0x10   :  { %v2261_v50 = vld [vmem:[%s3243_s1 + $0xd8] sm:$0xff]  ;;  %v2260_v54 = vld [vmem:[%s3243_s1 + $0xd0] sm:$0xff]  ;;  %v2243_v57 = vld [vmem:[%s3243_s1 + $0x48] sm:$0xff] }
  0x11   :  { %v2269_v51 = vld [vmem:[%s3243_s1 + $0x118] sm:$0xff]  ;;  %v2268_v55 = vld [vmem:[%s3243_s1 + $0x110] sm:$0xff]  ;;  %v2259_v58 = vld [vmem:[%s3243_s1 + $0xc8] sm:$0xff] }
  0x12   :  { %2404 = vmatpush.bf16.msra.mxu1 %v2237_v4  ;;  %2405 = vmatpush.bf16.msra.mxu2 %v2237_v4  ;;  %v2267_v59 = vld [vmem:[%s3243_s1 + $0x108] sm:$0xff]  ;;  %v2250_v60 = vld [vmem:[%s3243_s1 + $0x80] sm:$0xff]  ;;  %v2289_v2 = vld [vmem:[%s3243_s1 + $0x1b8] sm:$0xff] }
  0x13   :  { %2406 = vmatpush.bf16.msra.mxu3 %v2237_v4  ;;  %1049 = vmatpush.bf16.msra.mxu0 %v2237_v4  ;;  %v2242_v61 = vld [vmem:[%s3243_s1 + $0x40] sm:$0xff]  ;;  %v1590_v1 = vld [vmem:[%s3245_s0 + $0x24] sm:$0xf0]  ;;  %v2281_v3 = vld [vmem:[%s3243_s1 + $0x178] sm:$0xff] }
  0x14   :  { %v2162_v62 = vld [vmem:[%s3245_s0 + $0x4] sm:$0xf]  ;;  %v1596_v4 = vld [vmem:[%s3245_s0 + $0x8] sm:$0xf]  ;;  %v1604_v8 = vld [vmem:[%s3245_s0 + $0x10] sm:$0xf] }
  0x15   :  { %v2258_v63 = vld [vmem:[%s3243_s1 + $0xc0] sm:$0xff]  ;;  %v2168_v9 = vld [vmem:[%s3245_s0 + $0x30] sm:$0xf0]  ;;  %v2297_v10 = vld [vmem:[%s3243_s1 + $0x1f8] sm:$0xff]  ;;  %v1593_v12 = vor.u32 %v2162_v62, %v1590_v1 }
  0x16   :  { %2407 = vmatpush.bf16.msra.mxu1 %v2236_v5  ;;  %2408 = vmatpush.bf16.msra.mxu2 %v2236_v5  ;;  %v2266_v0 = vld [vmem:[%s3243_s1 + $0x100] sm:$0xff]  ;;  %v2305_v11 = vld [vmem:[%s3243_s1 + $0x238] sm:$0xff]  ;;  %v1605_v15 = vor.u32 %v2168_v9, %v1604_v8  ;;  %v2180_v40 = vld [vmem:[%s3245_s0 + $0x94] sm:$0xf] }
  0x17   :  { %2409 = vmatpush.bf16.msra.mxu3 %v2236_v5  ;;  %1050 = vmatpush.bf16.msra.mxu0 %v2236_v5  ;;  %v2167_v5 = vld [vmem:[%s3245_s0 + $0x28] sm:$0xf0]  ;;  %v2286_v36 = vld [vmem:[%s3243_s1 + $0x1a0] sm:$0xff]  ;;  %v1662_v41 = vld [vmem:[%s3245_s0 + $0xb4] sm:$0xf0] }
  0x18   :  { %v1597_v13 = vor.u32 %v2167_v5, %v1596_v4  ;;  %v2294_v37 = vld [vmem:[%s3243_s1 + $0x1e0] sm:$0xff]  ;;  %v1668_v42 = vld [vmem:[%s3245_s0 + $0x98] sm:$0xf]  ;;  %v2185_v43 = vld [vmem:[%s3245_s0 + $0xb8] sm:$0xf0] }
  0x19   :  { %v2278_v38 = vld [vmem:[%s3243_s1 + $0x160] sm:$0xff]  ;;  %v1712_v62 = vld [vmem:[%s3245_s0 + $0xe8] sm:$0xf]  ;;  %v2284_v4 = vld [vmem:[%s3243_s1 + $0x190] sm:$0xff] }
  0x1a   :  { %2410 = vmatpush.bf16.msra.mxu1 %v2235_v6  ;;  %2411 = vmatpush.bf16.msra.mxu2 %v2235_v6  ;;  %v2302_v39 = vld [vmem:[%s3243_s1 + $0x220] sm:$0xff]  ;;  %v2292_v5 = vld [vmem:[%s3243_s1 + $0x1d0] sm:$0xff]  ;;  %v1734_v9 = vld [vmem:[%s3245_s0 + $0x144] sm:$0xf0] }
  0x1b   :  { %2412 = vmatpush.bf16.msra.mxu3 %v2235_v6  ;;  %1051 = vmatpush.bf16.msra.mxu0 %v2235_v6  ;;  %v2163_v6 = vld [vmem:[%s3245_s0 + $0xc] sm:$0xf]  ;;  %v2198_v8 = vld [vmem:[%s3245_s0 + $0x124] sm:$0xf] }
  0x1e   :  { %2413 = vmatpush.bf16.msra.mxu1 %v2234_v7  ;;  %2414 = vmatpush.bf16.msra.mxu2 %v2234_v7 }
  0x1f   :  { %2415 = vmatpush.bf16.msra.mxu3 %v2234_v7  ;;  %1052 = vmatpush.bf16.msra.mxu0 %v2234_v7  ;;  %v1598_v7 = vld [vmem:[%s3245_s0 + $0x2c] sm:$0xf0] }
  0x20   :  { %v1601_v14 = vor.u32 %v2163_v6, %v1598_v7  ;;  %v2276_v6 = vld [vmem:[%s3243_s1 + $0x150] sm:$0xff] }
  0x21   :  { %1063 = vmatmul.bf16.vlgmr.msra.gmra.mxu1 %v1661_v18  ;;  %1073 = vmatmul.bf16.vlgmr.msra.gmra.mxu2 %v1733_v19  ;;  %v2296_v18 = vld [vmem:[%s3243_s1 + $0x1f0] sm:$0xff] }
  0x22   :  { %1143 = vmatpush.bf16.msrb.mxu2 %v2257_v16  ;;  %1094 = vmatpush.bf16.msrb.mxu1 %v2249_v17  ;;  %v2288_v16 = vld [vmem:[%s3243_s1 + $0x1b0] sm:$0xff] }
  0x23   :  { %1083 = vmatmul.bf16.vlgmr.msra.gmra.mxu3 %v1805_v20  ;;  %1053 = vmatmul.bf16.vlgmr.msra.gmra.mxu0 %v1589_v21  ;;  %v2280_v17 = vld [vmem:[%s3243_s1 + $0x170] sm:$0xff]  ;;  %v2287_v20 = vld [vmem:[%s3243_s1 + $0x1a8] sm:$0xff] }
  0x24   :  { %1192 = vmatpush.bf16.msrb.mxu3 %v2265_v22  ;;  %1241 = vmatpush.bf16.msrb.mxu0 %v2273_v23  ;;  %v2304_v19 = vld [vmem:[%s3243_s1 + $0x230] sm:$0xff]  ;;  %v2279_v21 = vld [vmem:[%s3243_s1 + $0x168] sm:$0xff] }
  0x25   :  { %v2295_v22 = vld [vmem:[%s3243_s1 + $0x1e8] sm:$0xff]  ;;  %v2300_v7 = vld [vmem:[%s3243_s1 + $0x210] sm:$0xff] }
  0x26   :  { %1144 = vmatpush.bf16.msrb.mxu2 %v2256_v24  ;;  %1095 = vmatpush.bf16.msrb.mxu1 %v2248_v25  ;;  %v2303_v23 = vld [vmem:[%s3243_s1 + $0x228] sm:$0xff]  ;;  %v1626_v25 = vld [vmem:[%s3245_s0 + $0x6c] sm:$0xf0] }
  0x27   :  { %v2171_v24 = vld [vmem:[%s3245_s0 + $0x4c] sm:$0xf] }
  0x28   :  { %1193 = vmatpush.bf16.msrb.mxu3 %v2264_v26  ;;  %1242 = vmatpush.bf16.msrb.mxu0 %v2272_v27  ;;  %v1632_v26 = vld [vmem:[%s3245_s0 + $0x50] sm:$0xf]  ;;  %v2176_v27 = vld [vmem:[%s3245_s0 + $0x70] sm:$0xf0] }
  0x2a   :  { %1145 = vmatpush.bf16.msrb.mxu2 %v2255_v28  ;;  %1096 = vmatpush.bf16.msrb.mxu1 %v2247_v29  ;;  %v2172_v28 = vld [vmem:[%s3245_s0 + $0x54] sm:$0xf]  ;;  %v1634_v29 = vld [vmem:[%s3245_s0 + $0x74] sm:$0xf0] }
  0x2c   :  { %1194 = vmatpush.bf16.msrb.mxu3 %v2263_v30  ;;  %1243 = vmatpush.bf16.msrb.mxu0 %v2271_v31  ;;  %v1640_v30 = vld [vmem:[%s3245_s0 + $0x58] sm:$0xf]  ;;  %v2177_v31 = vld [vmem:[%s3245_s0 + $0x78] sm:$0xf0] }
  0x2e   :  { %1146 = vmatpush.bf16.msrb.mxu2 %v2254_v32  ;;  %1097 = vmatpush.bf16.msrb.mxu1 %v2246_v33  ;;  %v1629_v32 = vor.u32 %v2171_v24, %v1626_v25  ;;  %v1633_v33 = vor.u32 %v2176_v27, %v1632_v26  ;;  %v2207_v24 = vld [vmem:[%s3245_s0 + $0x16c] sm:$0xf]  ;;  %v1770_v25 = vld [vmem:[%s3245_s0 + $0x18c] sm:$0xf0]  ;;  %v2212_v27 = vld [vmem:[%s3245_s0 + $0x190] sm:$0xf0] }
  0x2f   :  { %v1776_v26 = vld [vmem:[%s3245_s0 + $0x170] sm:$0xf] }
  0x30   :  { %1195 = vmatpush.bf16.msrb.mxu3 %v2262_v34  ;;  %1244 = vmatpush.bf16.msrb.mxu0 %v2270_v35  ;;  %v1637_v34 = vor.u32 %v2172_v28, %v1634_v29  ;;  %v1641_v35 = vor.u32 %v2177_v31, %v1640_v30  ;;  %v2208_v28 = vld [vmem:[%s3245_s0 + $0x174] sm:$0xf]  ;;  %v1778_v29 = vld [vmem:[%s3245_s0 + $0x194] sm:$0xf0]  ;;  %v2213_v31 = vld [vmem:[%s3245_s0 + $0x198] sm:$0xf0] }
  0x31   :  { %1068 = vmatmul.bf16.gmra.mxu1 %v1697_v46  ;;  %1078 = vmatmul.bf16.gmra.mxu2 %v1769_v47  ;;  %v1676_v46 = vld [vmem:[%s3245_s0 + $0xa0] sm:$0xf]  ;;  %v2186_v47 = vld [vmem:[%s3245_s0 + $0xc0] sm:$0xf0]  ;;  %v1784_v30 = vld [vmem:[%s3245_s0 + $0x178] sm:$0xf] }
  0x32   :  { %1147 = vmatpush.bf16.msrb.mxu2 %v2253_v44  ;;  %1098 = vmatpush.bf16.msrb.mxu1 %v2245_v45  ;;  %v2181_v44 = vld [vmem:[%s3245_s0 + $0x9c] sm:$0xf]  ;;  %v1670_v45 = vld [vmem:[%s3245_s0 + $0xbc] sm:$0xf0] }
  0x33   :  { %1088 = vmatmul.bf16.gmra.mxu3 %v1841_v48  ;;  %1058 = vmatmul.bf16.gmra.mxu0 %v1625_v49  ;;  %v1665_v48 = vor.u32 %v2180_v40, %v1662_v41  ;;  %v1669_v49 = vor.u32 %v2185_v43, %v1668_v42  ;;  %v2216_v40 = vld [vmem:[%s3245_s0 + $0x1b4] sm:$0xf]  ;;  %v1806_v41 = vld [vmem:[%s3245_s0 + $0x1d4] sm:$0xf0]  ;;  %v2221_v43 = vld [vmem:[%s3245_s0 + $0x1d8] sm:$0xf0] }
  0x34   :  { %1196 = vmatpush.bf16.msrb.mxu3 %v2261_v50  ;;  %1245 = vmatpush.bf16.msrb.mxu0 %v2269_v51  ;;  %v1673_v50 = vor.u32 %v2181_v44, %v1670_v45  ;;  %v1677_v51 = vor.u32 %v2186_v47, %v1676_v46  ;;  %v1812_v42 = vld [vmem:[%s3245_s0 + $0x1b8] sm:$0xf]  ;;  %v2217_v44 = vld [vmem:[%s3245_s0 + $0x1bc] sm:$0xf]  ;;  %v1814_v45 = vld [vmem:[%s3245_s0 + $0x1dc] sm:$0xf0] }
  0x35   :  { %v1820_v46 = vld [vmem:[%s3245_s0 + $0x1c0] sm:$0xf]  ;;  %v2222_v47 = vld [vmem:[%s3245_s0 + $0x1e0] sm:$0xf0] }
  0x36   :  { %1148 = vmatpush.bf16.msrb.mxu2 %v2252_v52  ;;  %1099 = vmatpush.bf16.msrb.mxu1 %v2244_v53  ;;  %v2285_v52 = vld [vmem:[%s3243_s1 + $0x198] sm:$0xff] }
  0x37   :  { %v2293_v53 = vld [vmem:[%s3243_s1 + $0x1d8] sm:$0xff] }
  0x38   :  { %1197 = vmatpush.bf16.msrb.mxu3 %v2260_v54  ;;  %1246 = vmatpush.bf16.msrb.mxu0 %v2268_v55  ;;  %v2277_v54 = vld [vmem:[%s3243_s1 + $0x158] sm:$0xff] }
  0x39   :  { %v2301_v55 = vld [vmem:[%s3243_s1 + $0x218] sm:$0xff] }
  0x3a   :  { %1149 = vmatpush.bf16.msrb.mxu2 %v2251_v56  ;;  %1100 = vmatpush.bf16.msrb.mxu1 %v2243_v57  ;;  %v2189_v56 = vld [vmem:[%s3245_s0 + $0xdc] sm:$0xf]  ;;  %v1698_v57 = vld [vmem:[%s3245_s0 + $0xfc] sm:$0xf0] }
  0x3c   :  { %1198 = vmatpush.bf16.msrb.mxu3 %v2259_v58  ;;  %1247 = vmatpush.bf16.msrb.mxu0 %v2267_v59  ;;  %v1704_v58 = vld [vmem:[%s3245_s0 + $0xe0] sm:$0xf]  ;;  %v2194_v59 = vld [vmem:[%s3245_s0 + $0x100] sm:$0xf0] }
  0x3d   :  { %v1705_v1 = vor.u32 %v2194_v59, %v1704_v58 }
  0x3e   :  { %1150 = vmatpush.bf16.msrb.mxu2 %v2250_v60  ;;  %1101 = vmatpush.bf16.msrb.mxu1 %v2242_v61  ;;  %v2190_v60 = vld [vmem:[%s3245_s0 + $0xe4] sm:$0xf]  ;;  %v1706_v61 = vld [vmem:[%s3245_s0 + $0x104] sm:$0xf0] }
  0x40   :  { %1199 = vmatpush.bf16.msrb.mxu3 %v2258_v63  ;;  %1248 = vmatpush.bf16.msrb.mxu0 %v2266_v0  ;;  %v2195_v63 = vld [vmem:[%s3245_s0 + $0x108] sm:$0xf0]  ;;  %v1701_v0 = vor.u32 %v2189_v56, %v1698_v57 }
  0x41   :  { %1102 = vmatmul.bf16.vlgmr.msrb.gmra.mxu1 %v1593_v12  ;;  %1151 = vmatmul.bf16.vlgmr.msrb.gmra.mxu2 %v1597_v13  ;;  %v2199_v12 = vld [vmem:[%s3245_s0 + $0x12c] sm:$0xf]  ;;  %v1742_v13 = vld [vmem:[%s3245_s0 + $0x14c] sm:$0xf0] }
  0x42   :  { %1339 = vmatpush.bf16.msra.mxu2 %v2289_v2  ;;  %1290 = vmatpush.bf16.msra.mxu1 %v2281_v3  ;;  %v1709_v2 = vor.u32 %v2190_v60, %v1706_v61  ;;  %v1713_v3 = vor.u32 %v2195_v63, %v1712_v62  ;;  %v2225_v61 = vld [vmem:[%s3245_s0 + $0x1fc] sm:$0xf]  ;;  %v1842_v62 = vld [vmem:[%s3245_s0 + $0x21c] sm:$0xf0] }
  0x43   :  { %1200 = vmatmul.bf16.vlgmr.msrb.gmra.mxu3 %v1601_v14  ;;  %1249 = vmatmul.bf16.vlgmr.msrb.gmra.mxu0 %v1605_v15  ;;  %v1748_v14 = vld [vmem:[%s3245_s0 + $0x130] sm:$0xf]  ;;  %v2204_v15 = vld [vmem:[%s3245_s0 + $0x150] sm:$0xf0]  ;;  %v1848_v63 = vld [vmem:[%s3245_s0 + $0x200] sm:$0xf] }
  0x44   :  { %1388 = vmatpush.bf16.msra.mxu3 %v2297_v10  ;;  %1437 = vmatpush.bf16.msra.mxu0 %v2305_v11  ;;  %v1740_v10 = vld [vmem:[%s3245_s0 + $0x128] sm:$0xf]  ;;  %v2203_v11 = vld [vmem:[%s3245_s0 + $0x148] sm:$0xf0] }
  0x46   :  { %1340 = vmatpush.bf16.msra.mxu2 %v2288_v16  ;;  %1291 = vmatpush.bf16.msra.mxu1 %v2280_v17  ;;  %v1737_v16 = vor.u32 %v2198_v8, %v1734_v9  ;;  %v1741_v17 = vor.u32 %v2203_v11, %v1740_v10  ;;  %v1845_v8 = vor.u32 %v2225_v61, %v1842_v62  ;;  %v1656_v61 = vld [vmem:[%s3245_s0 + $0x68] sm:$0xf]  ;;  %v2179_v62 = vld [vmem:[%s3245_s0 + $0x88] sm:$0xf0] }
  0x48   :  { %1389 = vmatpush.bf16.msra.mxu3 %v2296_v18  ;;  %1438 = vmatpush.bf16.msra.mxu0 %v2304_v19  ;;  %v1745_v18 = vor.u32 %v2199_v12, %v1742_v13  ;;  %v1749_v19 = vor.u32 %v2204_v15, %v1748_v14 }
  0x4a   :  { %1341 = vmatpush.bf16.msra.mxu2 %v2287_v20  ;;  %1292 = vmatpush.bf16.msra.mxu1 %v2279_v21  ;;  %v2283_v20 = vld [vmem:[%s3243_s1 + $0x188] sm:$0xff] }
  0x4b   :  { %v2291_v21 = vld [vmem:[%s3243_s1 + $0x1c8] sm:$0xff] }
  0x4c   :  { %1390 = vmatpush.bf16.msra.mxu3 %v2295_v22  ;;  %1439 = vmatpush.bf16.msra.mxu0 %v2303_v23  ;;  %v2275_v22 = vld [vmem:[%s3243_s1 + $0x148] sm:$0xff] }
  0x4d   :  { %v2299_v23 = vld [vmem:[%s3243_s1 + $0x208] sm:$0xff] }
  0x4e   :  { %1342 = vmatpush.bf16.msra.mxu2 %v2286_v36  ;;  %1293 = vmatpush.bf16.msra.mxu1 %v2278_v38  ;;  %v2282_v36 = vld [vmem:[%s3243_s1 + $0x180] sm:$0xff] }
  0x4f   :  { %v2274_v38 = vld [vmem:[%s3243_s1 + $0x140] sm:$0xff] }
  0x50   :  { %1391 = vmatpush.bf16.msra.mxu3 %v2294_v37  ;;  %1440 = vmatpush.bf16.msra.mxu0 %v2302_v39  ;;  %v2290_v37 = vld [vmem:[%s3243_s1 + $0x1c0] sm:$0xff] }
  0x51   :  { %1107 = vmatmul.bf16.gmra.mxu1 %v1629_v32  ;;  %1156 = vmatmul.bf16.gmra.mxu2 %v1633_v33  ;;  %v1773_v32 = vor.u32 %v2207_v24, %v1770_v25  ;;  %v1777_v33 = vor.u32 %v2212_v27, %v1776_v26  ;;  %v2298_v39 = vld [vmem:[%s3243_s1 + $0x200] sm:$0xff]  ;;  %v2169_v24 = vld [vmem:[%s3245_s0 + $0x38] sm:$0xf0] }
  0x52   :  { %1343 = vmatpush.bf16.msra.mxu2 %v2285_v52  ;;  %1294 = vmatpush.bf16.msra.mxu1 %v2277_v54  ;;  %v1821_v52 = vor.u32 %v2222_v47, %v1820_v46  ;;  %v2879_v54 = vld [vmem:[%s3244_s2] ss:$0 sm:$0xff]  ;;  %v2165_v25 = vld [vmem:[%s3245_s0 + $0x1c] sm:$0xf] }
  0x53   :  { %1205 = vmatmul.bf16.gmra.mxu3 %v1637_v34  ;;  %1254 = vmatmul.bf16.gmra.mxu0 %v1641_v35  ;;  %v1781_v34 = vor.u32 %v2208_v28, %v1778_v29  ;;  %v1785_v35 = vor.u32 %v2213_v31, %v1784_v30  ;;  %v1614_v26 = vld [vmem:[%s3245_s0 + $0x3c] sm:$0xf0]  ;;  %v2170_v28 = vld [vmem:[%s3245_s0 + $0x40] sm:$0xf0] }
  0x54   :  { %1392 = vmatpush.bf16.msra.mxu3 %v2293_v53  ;;  %1441 = vmatpush.bf16.msra.mxu0 %v2301_v55  ;;  %v1620_v27 = vld [vmem:[%s3245_s0 + $0x20] sm:$0xf] }
  0x56   :  { %1344 = vmatpush.bf16.msra.mxu2 %v2284_v4  ;;  %1295 = vmatpush.bf16.msra.mxu1 %v2276_v6  ;;  %v2231_v4 = vld [vmem:[%s3245_s0 + $0x228] sm:$0xf0] }
  0x58   :  { %1393 = vmatpush.bf16.msra.mxu3 %v2292_v5  ;;  %1442 = vmatpush.bf16.msra.mxu0 %v2300_v7 }
  0x5a   :  { %1345 = vmatpush.bf16.msra.mxu2 %v2283_v20  ;;  %1296 = vmatpush.bf16.msra.mxu1 %v2275_v22  ;;  %v1606_v22 = vld [vmem:[%s3245_s0 + $0x34] sm:$0xf0] }
  0x5c   :  { %1394 = vmatpush.bf16.msra.mxu3 %v2291_v21  ;;  %1443 = vmatpush.bf16.msra.mxu0 %v2299_v23  ;;  %v2164_v21 = vld [vmem:[%s3245_s0 + $0x14] sm:$0xf]  ;;  %v1612_v23 = vld [vmem:[%s3245_s0 + $0x18] sm:$0xf] }
  0x5e   :  { %1346 = vmatpush.bf16.msra.mxu2 %v2282_v36  ;;  %1297 = vmatpush.bf16.msra.mxu1 %v2274_v38  ;;  %v1621_v38 = vor.u32 %v2170_v28, %v1620_v27  ;;  %v2182_v27 = vld [vmem:[%s3245_s0 + $0xa4] sm:$0xf]  ;;  %v1678_v28 = vld [vmem:[%s3245_s0 + $0xc4] sm:$0xf0] }
  0x60   :  { %1395 = vmatpush.bf16.msra.mxu3 %v2290_v37  ;;  %1444 = vmatpush.bf16.msra.mxu0 %v2298_v39  ;;  %v1617_v37 = vor.u32 %v2165_v25, %v1614_v26 }
  0x61   :  { %1112 = vmatmul.bf16.gmra.mxu1 %v1665_v48  ;;  %1161 = vmatmul.bf16.gmra.mxu2 %v1669_v49  ;;  %v1809_v48 = vor.u32 %v2216_v40, %v1806_v41  ;;  %v1813_v49 = vor.u32 %v2221_v43, %v1812_v42 }
  0x63   :  { %1210 = vmatmul.bf16.gmra.mxu3 %v1673_v50  ;;  %1259 = vmatmul.bf16.gmra.mxu0 %v1677_v51  ;;  %v1817_v51 = vor.u32 %v2217_v44, %v1814_v45 }
  0x71   :  { %1117 = vmatmul.bf16.gmra.mxu1 %v1701_v0  ;;  %1166 = vmatmul.bf16.gmra.mxu2 %v1705_v1  ;;  %v2230_v0 = vld [vmem:[%s3245_s0 + $0x220] sm:$0xf0] }
  0x72   :  { %v2226_v1 = vld [vmem:[%s3245_s0 + $0x204] sm:$0xf]  ;;  %v1849_v9 = vor.u32 %v2230_v0, %v1848_v63 }
  0x73   :  { %1215 = vmatmul.bf16.gmra.mxu3 %v1709_v2  ;;  %1264 = vmatmul.bf16.gmra.mxu0 %v1713_v3  ;;  %v1850_v2 = vld [vmem:[%s3245_s0 + $0x224] sm:$0xf0] }
  0x74   :  { %v1856_v3 = vld [vmem:[%s3245_s0 + $0x208] sm:$0xf]  ;;  %v1853_v12 = vor.u32 %v2226_v1, %v1850_v2 }
  0x75   :  { %v1857_v13 = vor.u32 %v2231_v4, %v1856_v3 }
  0x81   :  { %1122 = vmatmul.bf16.gmra.mxu1 %v1737_v16  ;;  %1171 = vmatmul.bf16.gmra.mxu2 %v1741_v17 }
  0x83   :  { %1220 = vmatmul.bf16.gmra.mxu3 %v1745_v18  ;;  %1269 = vmatmul.bf16.gmra.mxu0 %v1749_v19 }
  0x91   :  { %1127 = vmatmul.bf16.gmra.mxu1 %v1773_v32  ;;  %1176 = vmatmul.bf16.gmra.mxu2 %v1777_v33  ;;  %v1609_v33 = vor.u32 %v2164_v21, %v1606_v22 }
  0x93   :  { %1225 = vmatmul.bf16.gmra.mxu3 %v1781_v34  ;;  %1274 = vmatmul.bf16.gmra.mxu0 %v1785_v35  ;;  %v1613_v34 = vor.u32 %v2169_v24, %v1612_v23 }
  0x9e   :  { %v2874_v50 = vpop.f32.mrf.mxu1 }
  0xa0   :  { %v1054_v53 = vpop.f32.mrf.mxu0 }
  0xa1   :  { %1132 = vmatmul.bf16.gmra.mxu1 %v1809_v48  ;;  %1181 = vmatmul.bf16.gmra.mxu2 %v1813_v49  ;;  %v1055_v30 = vadd.f32 %v2879_v54, %v1054_v53  ;;  %v2173_v49 = vld [vmem:[%s3245_s0 + $0x5c] sm:$0xf]  ;;  %v1648_v53 = vld [vmem:[%s3245_s0 + $0x60] sm:$0xf] }
  0xa3   :  { %1230 = vmatmul.bf16.gmra.mxu3 %v1817_v51  ;;  %1279 = vmatmul.bf16.gmra.mxu0 %v1821_v52  ;;  %v1642_v51 = vld [vmem:[%s3245_s0 + $0x7c] sm:$0xf0] }
  0xa4   :  { %v1074_v55 = vpop.f32.mrf.mxu2  ;;  %v1645_v3 = vor.u32 %v2173_v49, %v1642_v51 }
  0xa5   :  { %v2882_v56 = vadd.f32 %v2879_v54, %v1074_v55  ;;  %v2178_v55 = vld [vmem:[%s3245_s0 + $0x80] sm:$0xf0] }
  0xa6   :  { %v1084_v57 = vpop.f32.mrf.mxu3  ;;  %v2887_v59 = vpop.f32.mrf.mxu1  ;;  %v1649_v4 = vor.u32 %v2178_v55, %v1648_v53 }
  0xa7   :  { %v2885_v58 = vadd.f32 %v2879_v54, %v1084_v57  ;;  %v2174_v57 = vld [vmem:[%s3245_s0 + $0x64] sm:$0xf] }
  0xa8   :  { %v1056_v60 = vpop.f32.mrf.mxu0 }
  0xa9   :  { %v1057_v42 = vadd.f32 %v2879_v54, %v1056_v60  ;;  %v1650_v60 = vld [vmem:[%s3245_s0 + $0x84] sm:$0xf0] }
  0xac   :  { %v1076_v5 = vpop.f32.mrf.mxu2 }
  0xad   :  { %v2914_v6 = vadd.f32 %v2879_v54, %v1076_v5 }
  0xae   :  { %v1086_v7 = vpop.f32.mrf.mxu3  ;;  %v2919_v11 = vpop.f32.mrf.mxu1 }
  0xaf   :  { %v2917_v10 = vadd.f32 %v2879_v54, %v1086_v7  ;;  %v1653_v7 = vor.u32 %v2174_v57, %v1650_v60 }
  0xb0   :  { %v1059_v14 = vpop.f32.mrf.mxu0 }
  0xb1   :  { %1137 = vmatmul.bf16.gmra.mxu1 %v1845_v8  ;;  %1186 = vmatmul.bf16.gmra.mxu2 %v1849_v9  ;;  %v1060_v0 = vadd.f32 %v2879_v54, %v1059_v14  ;;  %v1657_v8 = vor.u32 %v2179_v62, %v1656_v61 }
  0xb3   :  { %1235 = vmatmul.bf16.gmra.mxu3 %v1853_v12  ;;  %1284 = vmatmul.bf16.gmra.mxu0 %v1857_v13 }
  0xb4   :  { %v1079_v15 = vpop.f32.mrf.mxu2 }
  0xb5   :  { %v2922_v16 = vadd.f32 %v2879_v54, %v1079_v15 }
  0xb6   :  { %v1089_v17 = vpop.f32.mrf.mxu3  ;;  %v2927_v19 = vpop.f32.mrf.mxu1 }
  0xb7   :  { %v2925_v18 = vadd.f32 %v2879_v54, %v1089_v17 }
  0xb8   :  { %v1061_v20 = vpop.f32.mrf.mxu0 }
  0xb9   :  { %v1062_v21 = vadd.f32 %v2879_v54, %v1061_v20  ;;  %v1684_v20 = vld [vmem:[%s3245_s0 + $0xa8] sm:$0xf] }
  0xbc   :  { %v1081_v29 = vpop.f32.mrf.mxu2 }
  0xbd   :  { %v2955_v31 = vadd.f32 %v2879_v54, %v1081_v29 }
  0xbe   :  { %v1091_v32 = vpop.f32.mrf.mxu3  ;;  %v1103_v36 = vpop.f32.mrf.mxu1 }
  0xbf   :  { %v2958_v35 = vadd.f32 %v2879_v54, %v1091_v32  ;;  %v1104_v39 = vadd.f32 %v1103_v36, %v1055_v30  ;;  %v2187_v30 = vld [vmem:[%s3245_s0 + $0xc8] sm:$0xf0]  ;;  %v2188_v36 = vld [vmem:[%s3245_s0 + $0xd0] sm:$0xf0] }
  0xc0   :  { %v1250_v40 = vpop.f32.mrf.mxu0  ;;  %v2183_v32 = vld [vmem:[%s3245_s0 + $0xac] sm:$0xf] }
  0xc1   :  { %1298 = vmatmul.bf16.vlgmr.msra.gmra.mxu1 %v1609_v33  ;;  %1347 = vmatmul.bf16.vlgmr.msra.gmra.mxu2 %v1613_v34  ;;  %v1686_v33 = vld [vmem:[%s3245_s0 + $0xcc] sm:$0xf0] }
  0xc2   :  { %v1692_v34 = vld [vmem:[%s3245_s0 + $0xb0] sm:$0xf] }
  0xc3   :  { %1396 = vmatmul.bf16.vlgmr.msra.gmra.mxu3 %v1617_v37  ;;  %1445 = vmatmul.bf16.vlgmr.msra.gmra.mxu0 %v1621_v38  ;;  %v1065_v38 = vadd.f32 %v2879_v54, %v2874_v50  ;;  %v1067_v50 = vadd.f32 %v2879_v54, %v2887_v59  ;;  %v1720_v59 = vld [vmem:[%s3245_s0 + $0xf0] sm:$0xf] }
  0xc4   :  { %v1152_v41 = vpop.f32.mrf.mxu2 }
  0xc5   :  { %v1153_v43 = vadd.f32 %v1152_v41, %v1104_v39  ;;  %v1681_v41 = vor.u32 %v2182_v27, %v1678_v28 }
  0xc6   :  { %v1201_v44 = vpop.f32.mrf.mxu3  ;;  %v1105_v45 = vpop.f32.mrf.mxu1 }
  0xc7   :  { %v1202_v46 = vadd.f32 %v1201_v44, %v1153_v43  ;;  %v1106_v47 = vadd.f32 %v1105_v45, %v1057_v42  ;;  %v1685_v42 = vor.u32 %v2187_v30, %v1684_v20  ;;  %v1689_v44 = vor.u32 %v2183_v32, %v1686_v33 }
  0xc8   :  { %v1252_v48 = vpop.f32.mrf.mxu0  ;;  %v1693_v45 = vor.u32 %v2188_v36, %v1692_v34 }
  0xc9   :  { %v2967_v52 = vadd.f32 %v1250_v40, %v1202_v46 }
  0xcc   :  { %v1154_v63 = vpop.f32.mrf.mxu2 }
  0xcd   :  { %v1155_v1 = vadd.f32 %v1154_v63, %v1106_v47  ;;  %v2191_v63 = vld [vmem:[%s3245_s0 + $0xec] sm:$0xf] }
  0xce   :  { %v1203_v2 = vpop.f32.mrf.mxu3  ;;  %v1108_v5 = vpop.f32.mrf.mxu1 }
  0xcf   :  { %v1204_v9 = vadd.f32 %v1203_v2, %v1155_v1  ;;  %v1109_v12 = vadd.f32 %v1108_v5, %v1060_v0  ;;  %v1714_v0 = vld [vmem:[%s3245_s0 + $0x10c] sm:$0xf0]  ;;  %v2196_v2 = vld [vmem:[%s3245_s0 + $0x110] sm:$0xf0]  ;;  %v1728_v5 = vld [vmem:[%s3245_s0 + $0xf8] sm:$0xf] }
  0xd0   :  { %v1255_v13 = vpop.f32.mrf.mxu0 }
  0xd1   :  { %1303 = vmatmul.bf16.gmra.mxu1 %v1645_v3  ;;  %1352 = vmatmul.bf16.gmra.mxu2 %v1649_v4  ;;  %v2988_v15 = vadd.f32 %v1252_v48, %v1204_v9  ;;  %v2192_v3 = vld [vmem:[%s3245_s0 + $0xf4] sm:$0xf]  ;;  %v1722_v4 = vld [vmem:[%s3245_s0 + $0x114] sm:$0xf0]  ;;  %v1070_v9 = vadd.f32 %v2879_v54, %v2919_v11  ;;  %v1072_v11 = vadd.f32 %v2879_v54, %v2927_v19  ;;  %v2205_v19 = vld [vmem:[%s3245_s0 + $0x158] sm:$0xf0] }
  0xd2   :  { %v1756_v54 = vld [vmem:[%s3245_s0 + $0x138] sm:$0xf] }
  0xd3   :  { %1401 = vmatmul.bf16.gmra.mxu3 %v1653_v7  ;;  %1450 = vmatmul.bf16.gmra.mxu0 %v1657_v8  ;;  %v2197_v7 = vld [vmem:[%s3245_s0 + $0x118] sm:$0xf0] }
  0xd4   :  { %v1157_v17 = vpop.f32.mrf.mxu2 }
  0xd5   :  { %v1158_v14 = vadd.f32 %v1157_v17, %v1109_v12  ;;  %v1717_v17 = vor.u32 %v2191_v63, %v1714_v0 }
  0xd6   :  { %v1206_v22 = vpop.f32.mrf.mxu3  ;;  %v1110_v23 = vpop.f32.mrf.mxu1 }
  0xd7   :  { %v1207_v24 = vadd.f32 %v1206_v22, %v1158_v14  ;;  %v1111_v25 = vadd.f32 %v1110_v23, %v1062_v21  ;;  %v1721_v21 = vor.u32 %v2196_v2, %v1720_v59  ;;  %v1725_v22 = vor.u32 %v2192_v3, %v1722_v4 }
  0xd8   :  { %v1257_v26 = vpop.f32.mrf.mxu0  ;;  %v1729_v23 = vor.u32 %v2197_v7, %v1728_v5  ;;  %v2209_v5 = vld [vmem:[%s3245_s0 + $0x17c] sm:$0xf] }
  0xd9   :  { %v2997_v29 = vadd.f32 %v1255_v13, %v1207_v24 }
  0xdc   :  { %v1159_v37 = vpop.f32.mrf.mxu2 }
  0xdd   :  { %v1160_v39 = vadd.f32 %v1159_v37, %v1111_v25  ;;  %v2200_v37 = vld [vmem:[%s3245_s0 + $0x134] sm:$0xf] }
  0xde   :  { %v1208_v40 = vpop.f32.mrf.mxu3  ;;  %v1113_v43 = vpop.f32.mrf.mxu1 }
  0xdf   :  { %v1209_v46 = vadd.f32 %v1208_v40, %v1160_v39  ;;  %v1114_v47 = vadd.f32 %v1113_v43, %v1065_v38  ;;  %v1750_v38 = vld [vmem:[%s3245_s0 + $0x154] sm:$0xf0]  ;;  %v2201_v40 = vld [vmem:[%s3245_s0 + $0x13c] sm:$0xf]  ;;  %v2206_v43 = vld [vmem:[%s3245_s0 + $0x160] sm:$0xf0] }
  0xe0   :  { %v1260_v48 = vpop.f32.mrf.mxu0 }
  0xe1   :  { %1308 = vmatmul.bf16.gmra.mxu1 %v1681_v41  ;;  %1357 = vmatmul.bf16.gmra.mxu2 %v1685_v42  ;;  %v3019_v49 = vadd.f32 %v1257_v26, %v1209_v46  ;;  %v1758_v41 = vld [vmem:[%s3245_s0 + $0x15c] sm:$0xf0] }
  0xe2   :  { %v1764_v42 = vld [vmem:[%s3245_s0 + $0x140] sm:$0xf] }
  0xe3   :  { %1406 = vmatmul.bf16.gmra.mxu3 %v1689_v44  ;;  %1455 = vmatmul.bf16.gmra.mxu0 %v1693_v45 }
  0xe4   :  { %v1162_v51 = vpop.f32.mrf.mxu2 }
  0xe5   :  { %v1163_v53 = vadd.f32 %v1162_v51, %v1114_v47  ;;  %v1753_v47 = vor.u32 %v2200_v37, %v1750_v38 }
  0xe6   :  { %v1211_v55 = vpop.f32.mrf.mxu3  ;;  %v1115_v57 = vpop.f32.mrf.mxu1 }
  0xe7   :  { %v1212_v60 = vadd.f32 %v1211_v55, %v1163_v53  ;;  %v1116_v61 = vadd.f32 %v1115_v57, %v1067_v50  ;;  %v1761_v50 = vor.u32 %v2201_v40, %v1758_v41  ;;  %v1765_v53 = vor.u32 %v2206_v43, %v1764_v42  ;;  %v2218_v40 = vld [vmem:[%s3245_s0 + $0x1c4] sm:$0xf]  ;;  %v1828_v42 = vld [vmem:[%s3245_s0 + $0x1c8] sm:$0xf]  ;;  %v2223_v43 = vld [vmem:[%s3245_s0 + $0x1e8] sm:$0xf0] }
  0xe8   :  { %v1262_v62 = vpop.f32.mrf.mxu0 }
  0xe9   :  { %v3029_v1 = vadd.f32 %v1260_v48, %v1212_v60  ;;  %v1757_v48 = vor.u32 %v2205_v19, %v1756_v54 }
  0xec   :  { %v1164_v8 = vpop.f32.mrf.mxu2 }
  0xed   :  { %v1165_v12 = vadd.f32 %v1164_v8, %v1116_v61  ;;  %v1792_v8 = vld [vmem:[%s3245_s0 + $0x180] sm:$0xf] }
  0xee   :  { %v1213_v13 = vpop.f32.mrf.mxu3  ;;  %v1118_v14 = vpop.f32.mrf.mxu1 }
  0xef   :  { %v1214_v24 = vadd.f32 %v1213_v13, %v1165_v12  ;;  %v1119_v25 = vadd.f32 %v1118_v14, %v1070_v9  ;;  %v2214_v9 = vld [vmem:[%s3245_s0 + $0x1a0] sm:$0xf0]  ;;  %v1794_v12 = vld [vmem:[%s3245_s0 + $0x1a4] sm:$0xf0] }
  0xf0   :  { %v1265_v26 = vpop.f32.mrf.mxu0  ;;  %v1800_v13 = vld [vmem:[%s3245_s0 + $0x188] sm:$0xf] }
  0xf1   :  { %1313 = vmatmul.bf16.gmra.mxu1 %v1717_v17  ;;  %1362 = vmatmul.bf16.gmra.mxu2 %v1721_v21  ;;  %v3051_v27 = vadd.f32 %v1262_v62, %v1214_v24  ;;  %v2215_v17 = vld [vmem:[%s3245_s0 + $0x1a8] sm:$0xf0]  ;;  %v1793_v24 = vor.u32 %v2214_v9, %v1792_v8 }
  0xf3   :  { %1411 = vmatmul.bf16.gmra.mxu3 %v1725_v22  ;;  %1460 = vmatmul.bf16.gmra.mxu0 %v1729_v23 }
  0xf4   :  { %v1167_v28 = vpop.f32.mrf.mxu2 }
  0xf5   :  { %v1168_v20 = vadd.f32 %v1167_v28, %v1119_v25  ;;  %v1801_v28 = vor.u32 %v2215_v17, %v1800_v13  ;;  %v1864_v13 = vld [vmem:[%s3245_s0 + $0x210] sm:$0xf]  ;;  %v2232_v17 = vld [vmem:[%s3245_s0 + $0x230] sm:$0xf0] }
  0xf6   :  { %v1216_v30 = vpop.f32.mrf.mxu3  ;;  %v1120_v32 = vpop.f32.mrf.mxu1 }
  0xf7   :  { %v1217_v33 = vadd.f32 %v1216_v30, %v1168_v20  ;;  %v1121_v34 = vadd.f32 %v1120_v32, %v1072_v11 }
  0xf8   :  { %v1267_v36 = vpop.f32.mrf.mxu0 }
  0xf9   :  { %v3061_v39 = vadd.f32 %v1265_v26, %v1217_v33 }
  0xfc   :  { %v1169_v44 = vpop.f32.mrf.mxu2 }
  0xfd   :  { %v1170_v45 = vadd.f32 %v1169_v44, %v1121_v34  ;;  %v1830_v44 = vld [vmem:[%s3245_s0 + $0x1ec] sm:$0xf0] }
  0xfe   :  { %v1218_v46 = vpop.f32.mrf.mxu3  ;;  %v1123_v51 = vpop.f32.mrf.mxu1 }
  0xff   :  { %v1219_v55 = vadd.f32 %v1218_v46, %v1170_v45  ;;  %v1124_v57 = vadd.f32 %v1123_v51, %v2882_v56  ;;  %v1786_v56 = vld [vmem:[%s3245_s0 + $0x19c] sm:$0xf0]  ;;  %v1836_v45 = vld [vmem:[%s3245_s0 + $0x1d0] sm:$0xf]  ;;  %v2224_v46 = vld [vmem:[%s3245_s0 + $0x1f0] sm:$0xf0] }
 0x100   :  { %v1270_v60 = vpop.f32.mrf.mxu0  ;;  %v1789_v23 = vor.u32 %v2209_v5, %v1786_v56 }
 0x101   :  { %1318 = vmatmul.bf16.gmra.mxu1 %v1753_v47  ;;  %1367 = vmatmul.bf16.gmra.mxu2 %v1757_v48  ;;  %v3082_v61 = vadd.f32 %v1267_v36, %v1219_v55 }
 0x103   :  { %1416 = vmatmul.bf16.gmra.mxu3 %v1761_v50  ;;  %1465 = vmatmul.bf16.gmra.mxu0 %v1765_v53  ;;  %v1829_v53 = vor.u32 %v2223_v43, %v1828_v42 }
 0x104   :  { %v1172_v62 = vpop.f32.mrf.mxu2 }
 0x105   :  { %v1173_v63 = vadd.f32 %v1172_v62, %v1124_v57 }
 0x106   :  { %v1221_v0 = vpop.f32.mrf.mxu3  ;;  %v1125_v59 = vpop.f32.mrf.mxu1 }
 0x107   :  { %v1222_v2 = vadd.f32 %v1221_v0, %v1173_v63  ;;  %v1126_v3 = vadd.f32 %v1125_v59, %v2914_v6  ;;  %v2210_v6 = vld [vmem:[%s3245_s0 + $0x184] sm:$0xf] }
 0x108   :  { %v1272_v4 = vpop.f32.mrf.mxu0  ;;  %v1797_v26 = vor.u32 %v2210_v6, %v1794_v12  ;;  %v2227_v6 = vld [vmem:[%s3245_s0 + $0x20c] sm:$0xf] }
 0x109   :  { %v3091_v7 = vadd.f32 %v1270_v60, %v1222_v2  ;;  %v1837_v60 = vor.u32 %v2224_v46, %v1836_v45 }
 0x10c   :  { %v1174_v21 = vpop.f32.mrf.mxu2 }
 0x10d   :  { %v1175_v14 = vadd.f32 %v1174_v21, %v1126_v3  ;;  %v1866_v21 = vld [vmem:[%s3245_s0 + $0x234] sm:$0xf0] }
 0x10e   :  { %v1223_v22 = vpop.f32.mrf.mxu3  ;;  %v1128_v25 = vpop.f32.mrf.mxu1 }
 0x10f   :  { %v1224_v11 = vadd.f32 %v1223_v22, %v1175_v14  ;;  %v1129_v20 = vadd.f32 %v1128_v25, %v2922_v16  ;;  %v1822_v16 = vld [vmem:[%s3245_s0 + $0x1e4] sm:$0xf0]  ;;  %v1872_v14 = vld [vmem:[%s3245_s0 + $0x218] sm:$0xf]  ;;  %v2233_v22 = vld [vmem:[%s3245_s0 + $0x238] sm:$0xf0] }
 0x110   :  { %v1275_v30 = vpop.f32.mrf.mxu0  ;;  %v1825_v50 = vor.u32 %v2218_v40, %v1822_v16 }
 0x111   :  { %1323 = vmatmul.bf16.gmra.mxu1 %v1789_v23  ;;  %1372 = vmatmul.bf16.gmra.mxu2 %v1793_v24  ;;  %v3112_v32 = vadd.f32 %v1272_v4, %v1224_v11 }
 0x113   :  { %1421 = vmatmul.bf16.gmra.mxu3 %v1797_v26  ;;  %1470 = vmatmul.bf16.gmra.mxu0 %v1801_v28  ;;  %v1865_v28 = vor.u32 %v2232_v17, %v1864_v13 }
 0x114   :  { %v1177_v33 = vpop.f32.mrf.mxu2 }
 0x115   :  { %v1178_v34 = vadd.f32 %v1177_v33, %v1129_v20 }
 0x116   :  { %v1226_v36 = vpop.f32.mrf.mxu3  ;;  %v1130_v37 = vpop.f32.mrf.mxu1 }
 0x117   :  { %v1227_v38 = vadd.f32 %v1226_v36, %v1178_v34  ;;  %v1131_v54 = vadd.f32 %v1130_v37, %v2955_v31  ;;  %v2219_v31 = vld [vmem:[%s3245_s0 + $0x1cc] sm:$0xf] }
 0x118   :  { %v1277_v19 = vpop.f32.mrf.mxu0  ;;  %v1833_v57 = vor.u32 %v2219_v31, %v1830_v44 }
 0x119   :  { %v3121_v41 = vadd.f32 %v1275_v30, %v1227_v38  ;;  %v1873_v30 = vor.u32 %v2233_v22, %v1872_v14 }
 0x11c   :  { %v1179_v47 = vpop.f32.mrf.mxu2 }
 0x11d   :  { %v1180_v48 = vadd.f32 %v1179_v47, %v1131_v54 }
 0x11e   :  { %v1228_v51 = vpop.f32.mrf.mxu3  ;;  %v1133_v55 = vpop.f32.mrf.mxu1 }
 0x11f   :  { %v1229_v62 = vadd.f32 %v1228_v51, %v1180_v48  ;;  %v1134_v63 = vadd.f32 %v1133_v55, %v2885_v58  ;;  %v1858_v58 = vld [vmem:[%s3245_s0 + $0x22c] sm:$0xf0] }
 0x120   :  { %v1280_v0 = vpop.f32.mrf.mxu0  ;;  %v1861_v26 = vor.u32 %v2227_v6, %v1858_v58 }
 0x121   :  { %1328 = vmatmul.bf16.gmra.mxu1 %v1825_v50  ;;  %1377 = vmatmul.bf16.gmra.mxu2 %v1829_v53  ;;  %v3142_v59 = vadd.f32 %v1277_v19, %v1229_v62 }
 0x123   :  { %1426 = vmatmul.bf16.gmra.mxu3 %v1833_v57  ;;  %1475 = vmatmul.bf16.gmra.mxu0 %v1837_v60 }
 0x124   :  { %v1182_v2 = vpop.f32.mrf.mxu2 }
 0x125   :  { %v1183_v3 = vadd.f32 %v1182_v2, %v1134_v63 }
 0x126   :  { %v1231_v4 = vpop.f32.mrf.mxu3  ;;  %v1135_v5 = vpop.f32.mrf.mxu1 }
 0x127   :  { %v1232_v56 = vadd.f32 %v1231_v4, %v1183_v3  ;;  %v1136_v8 = vadd.f32 %v1135_v5, %v2917_v10  ;;  %v2228_v10 = vld [vmem:[%s3245_s0 + $0x214] sm:$0xf] }
 0x128   :  { %v1282_v9 = vpop.f32.mrf.mxu0  ;;  %v1869_v20 = vor.u32 %v2228_v10, %v1866_v21 }
 0x129   :  { %v3151_v12 = vadd.f32 %v1280_v0, %v1232_v56 }
 0x12c   :  { %v1184_v23 = vpop.f32.mrf.mxu2 }
 0x12d   :  { %v1185_v24 = vadd.f32 %v1184_v23, %v1136_v8 }
 0x12e   :  { %v1233_v25 = vpop.f32.mrf.mxu3  ;;  %v1138_v11 = vpop.f32.mrf.mxu1 }
 0x12f   :  { %v1234_v33 = vadd.f32 %v1233_v25, %v1185_v24  ;;  %v1139_v34 = vadd.f32 %v1138_v11, %v2925_v18  ;;  %v2378_v11 = vld [vmem:[%s3246_s3 + $0x8] sm:$0xff]  }
 0x130   :  { %v1285_v36 = vpop.f32.mrf.mxu0 }
 0x131   :  { %1333 = vmatmul.bf16.gmra.mxu1 %v1861_v26  ;;  %1382 = vmatmul.bf16.gmra.mxu2 %v1865_v28  ;;  %v3172_v37 = vadd.f32 %v1282_v9, %v1234_v33  ;;  %v2312_v33 = vunpack.c.l.bf16 %v2378_v11 }
 0x133   :  { %1431 = vmatmul.bf16.gmra.mxu3 %v1869_v20  ;;  %1480 = vmatmul.bf16.gmra.mxu0 %v1873_v30 }
 0x134   :  { %v1187_v38 = vpop.f32.mrf.mxu2 }
 0x135   :  { %v1188_v54 = vadd.f32 %v1187_v38, %v1139_v34 }
 0x136   :  { %v1236_v19 = vpop.f32.mrf.mxu3  ;;  %v1140_v40 = vpop.f32.mrf.mxu1 }
 0x137   :  { %v1237_v16 = vadd.f32 %v1236_v19, %v1188_v54  ;;  %v1141_v42 = vadd.f32 %v1140_v40, %v2958_v35  ;;  %v2307_v35 = vld [vmem:[%s3246_s3] sm:$0xff]   ;;  %v2313_v19 = vunpack.c.h.bf16 %v2378_v11 }
 0x138   :  { %v1287_v43 = vpop.f32.mrf.mxu0  ;;  %v2308_v4 = vunpack.c.l.bf16 %v2307_v35 }
 0x139   :  { %v3175_v31 = vadd.f32 %v1285_v36, %v1237_v16 }
 0x13c   :  { %v1189_v44 = vpop.f32.mrf.mxu2 }
 0x13d   :  { %v1190_v45 = vadd.f32 %v1189_v44, %v1141_v42 }
 0x13e   :  { %v1238_v18 = vpop.f32.mrf.mxu3  ;;  %v1299_v46 = vpop.f32.mrf.mxu1 }
 0x13f   :  { %v1239_v47 = vadd.f32 %v1238_v18, %v1190_v45  ;;  %v1300_v50 = vadd.f32 %v1299_v46, %v2967_v52  ;;  %v2309_v52 = vunpack.c.h.bf16 %v2307_v35 }
 0x140   :  { %v1446_v48 = vpop.f32.mrf.mxu0 }
 0x141   :  { %v3177_v51 = vadd.f32 %v1287_v43, %v1239_v47 }
 0x144   :  { %v1348_v53 = vpop.f32.mrf.mxu2 }
 0x145   :  { %v1349_v55 = vadd.f32 %v1348_v53, %v1300_v50 }
 0x146   :  { %v1397_v57 = vpop.f32.mrf.mxu3  ;;  %v1301_v60 = vpop.f32.mrf.mxu1 }
 0x147   :  { %v1398_v63 = vadd.f32 %v1397_v57, %v1349_v55  ;;  %v1302_v0 = vadd.f32 %v1301_v60, %v2988_v15  ;;  %v2379_v57 = vld [vmem:[%s3246_s3 + $0x10] sm:$0xff]  }
 0x148   :  { %v1448_v62 = vpop.f32.mrf.mxu0 }
 0x149   :  { %v1447_v3 = vadd.f32 %v1446_v48, %v1398_v63  ;;  %v2316_v63 = vunpack.c.l.bf16 %v2379_v57 }
 0x14b   :  { %v1518_v58 = vadd.f32 %v2308_v4, %v1447_v3  ;;  %v2317_v4 = vunpack.c.h.bf16 %v2379_v57 }
 0x14c   :  { %v1350_v2 = vpop.f32.mrf.mxu2 }
 0x14d   :  { %v1351_v5 = vadd.f32 %v1350_v2, %v1302_v0  ;;  %v1534_v14 = vmax.f32 %v1518_v58, 0.0 }
 0x14e   :  { %v1399_v56 = vpop.f32.mrf.mxu3  ;;  %v1304_v8 = vpop.f32.mrf.mxu1 }
 0x14f   :  { %v1400_v9 = vadd.f32 %v1399_v56, %v1351_v5  ;;  %v1305_v10 = vadd.f32 %v1304_v8, %v2997_v29 }
 0x150   :  { %v1451_v6 = vpop.f32.mrf.mxu0 }
 0x151   :  { %v1449_v13 = vadd.f32 %v1448_v62, %v1400_v9 }
 0x153   :  { %v1519_v17 = vadd.f32 %v2309_v52, %v1449_v13 }
 0x154   :  { %v1353_v21 = vpop.f32.mrf.mxu2 }
 0x155   :  { %v1535_v22 = vmax.f32 %v1519_v17, 0.0  ;;  %v1354_v23 = vadd.f32 %v1353_v21, %v1305_v10 }
 0x156   :  { %v1402_v24 = vpop.f32.mrf.mxu3  ;;  %v1306_v15 = vpop.f32.mrf.mxu1 }
 0x157   :  { %v2341_v25 = vpack.c.bf16 %v1535_v22, %v1534_v14  ;;  %v1403_v28 = vadd.f32 %v1402_v24, %v1354_v23  ;;  %v1307_v20 = vadd.f32 %v1306_v15, %v3019_v49  ;;  %v2380_v23 = vld [vmem:[%s3246_s3 + $0x18] sm:$0xff]  }
 0x158   :  { %v1453_v26 = vpop.f32.mrf.mxu0 }
 0x159   :  { %2342 = vst [vmem:[%s3247_s4] sm:$0xff] %v2341_v25   ;;  %v1452_v30 = vadd.f32 %v1451_v6, %v1403_v28  ;;  %v2320_v25 = vunpack.c.l.bf16 %v2380_v23 }
 0x15b   :  { %v1520_v16 = vadd.f32 %v2312_v33, %v1452_v30 }
 0x15c   :  { %v1355_v29 = vpop.f32.mrf.mxu2 }
 0x15d   :  { %v1356_v34 = vadd.f32 %v1355_v29, %v1307_v20  ;;  %v1536_v18 = vmax.f32 %v1520_v16, 0.0  ;;  %v2321_v29 = vunpack.c.h.bf16 %v2380_v23 }
 0x15e   :  { %v1404_v36 = vpop.f32.mrf.mxu3  ;;  %v1309_v38 = vpop.f32.mrf.mxu1 }
 0x15f   :  { %v1405_v54 = vadd.f32 %v1404_v36, %v1356_v34  ;;  %v1310_v44 = vadd.f32 %v1309_v38, %v3029_v1 }
 0x160   :  { %v1456_v40 = vpop.f32.mrf.mxu0 }
 0x161   :  { %v1454_v42 = vadd.f32 %v1453_v26, %v1405_v54 }
 0x163   :  { %v1521_v43 = vadd.f32 %v2313_v19, %v1454_v42 }
 0x164   :  { %v1358_v45 = vpop.f32.mrf.mxu2 }
 0x165   :  { %v1537_v46 = vmax.f32 %v1521_v43, 0.0  ;;  %v1359_v47 = vadd.f32 %v1358_v45, %v1310_v44 }
 0x166   :  { %v1407_v48 = vpop.f32.mrf.mxu3  ;;  %v1311_v49 = vpop.f32.mrf.mxu1 }
 0x167   :  { %v2346_v50 = vpack.c.bf16 %v1537_v46, %v1536_v18  ;;  %v1408_v55 = vadd.f32 %v1407_v48, %v1359_v47  ;;  %v1312_v60 = vadd.f32 %v1311_v49, %v3051_v27  ;;  %v2381_v18 = vld [vmem:[%s3246_s3 + $0x20] sm:$0xff]  }
 0x168   :  { %v1458_v53 = vpop.f32.mrf.mxu0  ;;  %v2324_v48 = vunpack.c.l.bf16 %v2381_v18  ;;  %v2325_v57 = vunpack.c.h.bf16 %v2381_v18 }
 0x169   :  { %2385 = vst [vmem:[%s3247_s4 + $0x8] sm:$0xff] %v2346_v50   ;;  %v1457_v62 = vadd.f32 %v1456_v40, %v1408_v55 }
 0x16b   :  { %v1522_v56 = vadd.f32 %v2316_v63, %v1457_v62 }
 0x16c   :  { %v1360_v1 = vpop.f32.mrf.mxu2 }
 0x16d   :  { %v1361_v35 = vadd.f32 %v1360_v1, %v1312_v60  ;;  %v1538_v58 = vmax.f32 %v1522_v56, 0.0 }
 0x16e   :  { %v1409_v0 = vpop.f32.mrf.mxu3  ;;  %v1314_v2 = vpop.f32.mrf.mxu1 }
 0x16f   :  { %v1410_v3 = vadd.f32 %v1409_v0, %v1361_v35  ;;  %v1315_v52 = vadd.f32 %v1314_v2, %v3061_v39 }
 0x170   :  { %v1461_v5 = vpop.f32.mrf.mxu0 }
 0x171   :  { %v1459_v8 = vadd.f32 %v1458_v53, %v1410_v3 }
 0x173   :  { %v1523_v9 = vadd.f32 %v2317_v4, %v1459_v8 }
 0x174   :  { %v1363_v6 = vpop.f32.mrf.mxu2 }
 0x175   :  { %v1539_v13 = vmax.f32 %v1523_v9, 0.0  ;;  %v1364_v17 = vadd.f32 %v1363_v6, %v1315_v52  ;;  %v2382_v52 = vld [vmem:[%s3246_s3 + $0x28] sm:$0xff]  }
 0x176   :  { %v1412_v10 = vpop.f32.mrf.mxu3  ;;  %v1316_v27 = vpop.f32.mrf.mxu1 }
 0x177   :  { %v2351_v21 = vpack.c.bf16 %v1539_v13, %v1538_v58  ;;  %v1413_v22 = vadd.f32 %v1412_v10, %v1364_v17  ;;  %v1317_v24 = vadd.f32 %v1316_v27, %v3082_v61  ;;  %v2328_v13 = vunpack.c.l.bf16 %v2382_v52 }
 0x178   :  { %v1463_v14 = vpop.f32.mrf.mxu0 }
 0x179   :  { %2386 = vst [vmem:[%s3247_s4 + $0x10] sm:$0xff] %v2351_v21   ;;  %v1462_v15 = vadd.f32 %v1461_v5, %v1413_v22 }
 0x17b   :  { %v1524_v33 = vadd.f32 %v2320_v25, %v1462_v15 }
 0x17c   :  { %v1365_v39 = vpop.f32.mrf.mxu2 }
 0x17d   :  { %v1366_v26 = vadd.f32 %v1365_v39, %v1317_v24  ;;  %v1540_v19 = vmax.f32 %v1524_v33, 0.0  ;;  %v2383_v33 = vld [vmem:[%s3246_s3 + $0x30] sm:$0xff]  }
 0x17e   :  { %v1414_v28 = vpop.f32.mrf.mxu3  ;;  %v1319_v11 = vpop.f32.mrf.mxu1 }
 0x17f   :  { %v1415_v20 = vadd.f32 %v1414_v28, %v1366_v26  ;;  %v1320_v38 = vadd.f32 %v1319_v11, %v3091_v7 }
 0x180   :  { %v1466_v30 = vpop.f32.mrf.mxu0 }
 0x181   :  { %v1464_v34 = vadd.f32 %v1463_v14, %v1415_v20  ;;  %v2329_v14 = vunpack.c.h.bf16 %v2382_v52 }
 0x183   :  { %v1525_v36 = vadd.f32 %v2321_v29, %v1464_v34 }
 0x184   :  { %v1368_v54 = vpop.f32.mrf.mxu2 }
 0x185   :  { %v1541_v40 = vmax.f32 %v1525_v36, 0.0  ;;  %v1369_v16 = vadd.f32 %v1368_v54, %v1320_v38  ;;  %v2332_v54 = vunpack.c.l.bf16 %v2383_v33 }
 0x186   :  { %v1417_v42 = vpop.f32.mrf.mxu3  ;;  %v1321_v61 = vpop.f32.mrf.mxu1 }
 0x187   :  { %v2356_v43 = vpack.c.bf16 %v1541_v40, %v1540_v19  ;;  %v1418_v45 = vadd.f32 %v1417_v42, %v1369_v16  ;;  %v1322_v46 = vadd.f32 %v1321_v61, %v3112_v32  ;;  %v2333_v61 = vunpack.c.h.bf16 %v2383_v33 }
 0x188   :  { %v1468_v44 = vpop.f32.mrf.mxu0 }
 0x189   :  { %2387 = vst [vmem:[%s3247_s4 + $0x18] sm:$0xff] %v2356_v43   ;;  %v1467_v47 = vadd.f32 %v1466_v30, %v1418_v45 }
 0x18b   :  { %v1526_v1 = vadd.f32 %v2324_v48, %v1467_v47 }
 0x18c   :  { %v1370_v7 = vpop.f32.mrf.mxu2 }
 0x18d   :  { %v1371_v49 = vadd.f32 %v1370_v7, %v1322_v46  ;;  %v1542_v2 = vmax.f32 %v1526_v1, 0.0 }
 0x18e   :  { %v1419_v50 = vpop.f32.mrf.mxu3  ;;  %v1324_v53 = vpop.f32.mrf.mxu1 }
 0x18f   :  { %v1420_v55 = vadd.f32 %v1419_v50, %v1371_v49  ;;  %v1325_v35 = vadd.f32 %v1324_v53, %v3121_v41 }
 0x190   :  { %v1471_v60 = vpop.f32.mrf.mxu0 }
 0x191   :  { %v1469_v62 = vadd.f32 %v1468_v44, %v1420_v55 }
 0x193   :  { %v1527_v63 = vadd.f32 %v2325_v57, %v1469_v62  ;;  %v2384_v57 = vld [vmem:[%s3246_s3 + $0x38] sm:$0xff]  }
 0x194   :  { %v1373_v0 = vpop.f32.mrf.mxu2  ;;  %v2336_v62 = vunpack.c.l.bf16 %v2384_v57 }
 0x195   :  { %v1543_v3 = vmax.f32 %v1527_v63, 0.0  ;;  %v1374_v4 = vadd.f32 %v1373_v0, %v1325_v35 }
 0x196   :  { %v1422_v5 = vpop.f32.mrf.mxu3  ;;  %v1326_v32 = vpop.f32.mrf.mxu1 }
 0x197   :  { %v2361_v56 = vpack.c.bf16 %v1543_v3, %v1542_v2  ;;  %v1423_v9 = vadd.f32 %v1422_v5, %v1374_v4  ;;  %v1327_v6 = vadd.f32 %v1326_v32, %v3142_v59  ;;  %v2337_v2 = vunpack.c.h.bf16 %v2384_v57 }
 0x198   :  { %v1473_v8 = vpop.f32.mrf.mxu0 }
 0x199   :  { %2388 = vst [vmem:[%s3247_s4 + $0x20] sm:$0xff] %v2361_v56   ;;  %v1472_v58 = vadd.f32 %v1471_v60, %v1423_v9 }
 0x19b   :  { %v1528_v22 = vadd.f32 %v2328_v13, %v1472_v58 }
 0x19c   :  { %v1375_v41 = vpop.f32.mrf.mxu2 }
 0x19d   :  { %v1376_v17 = vadd.f32 %v1375_v41, %v1327_v6  ;;  %v1544_v26 = vmax.f32 %v1528_v22, 0.0 }
 0x19e   :  { %v1424_v10 = vpop.f32.mrf.mxu3  ;;  %v1329_v27 = vpop.f32.mrf.mxu1 }
 0x19f   :  { %v1425_v21 = vadd.f32 %v1424_v10, %v1376_v17  ;;  %v1330_v15 = vadd.f32 %v1329_v27, %v3151_v12 }
 0x1a0   :  { %v1476_v24 = vpop.f32.mrf.mxu0 }
 0x1a1   :  { %v1474_v23 = vadd.f32 %v1473_v8, %v1425_v21 }
 0x1a3   :  { %v1529_v39 = vadd.f32 %v2329_v14, %v1474_v23 }
 0x1a4   :  { %v1378_v25 = vpop.f32.mrf.mxu2 }
 0x1a5   :  { %v1545_v28 = vmax.f32 %v1529_v39, 0.0  ;;  %v1379_v11 = vadd.f32 %v1378_v25, %v1330_v15 }
 0x1a6   :  { %v1427_v20 = vpop.f32.mrf.mxu3  ;;  %v1331_v59 = vpop.f32.mrf.mxu1 }
 0x1a7   :  { %v2366_v29 = vpack.c.bf16 %v1545_v28, %v1544_v26  ;;  %v1428_v30 = vadd.f32 %v1427_v20, %v1379_v11  ;;  %v1332_v34 = vadd.f32 %v1331_v59, %v3172_v37 }
 0x1a8   :  { %v1478_v36 = vpop.f32.mrf.mxu0 }
 0x1a9   :  { %2389 = vst [vmem:[%s3247_s4 + $0x28] sm:$0xff] %v2366_v29   ;;  %v1477_v38 = vadd.f32 %v1476_v24, %v1428_v30 }
 0x1ab   :  { %v1530_v43 = vadd.f32 %v2332_v54, %v1477_v38 }
 0x1ac   :  { %v1380_v12 = vpop.f32.mrf.mxu2 }
 0x1ad   :  { %v1381_v19 = vadd.f32 %v1380_v12, %v1332_v34  ;;  %v1546_v7 = vmax.f32 %v1530_v43, 0.0 }
 0x1ae   :  { %v1429_v40 = vpop.f32.mrf.mxu3  ;;  %v1334_v16 = vpop.f32.mrf.mxu1 }
 0x1af   :  { %v1430_v42 = vadd.f32 %v1429_v40, %v1381_v19  ;;  %v1335_v18 = vadd.f32 %v1334_v16, %v3175_v31 }
 0x1b0   :  { %v1481_v37 = vpop.f32.mrf.mxu0 }
 0x1b1   :  { %v1479_v44 = vadd.f32 %v1478_v36, %v1430_v42 }
 0x1b3   :  { %v1531_v45 = vadd.f32 %v2333_v61, %v1479_v44 }
 0x1b4   :  { %v1383_v46 = vpop.f32.mrf.mxu2 }
 0x1b5   :  { %v1547_v47 = vmax.f32 %v1531_v45, 0.0  ;;  %v1384_v48 = vadd.f32 %v1383_v46, %v1335_v18 }
 0x1b6   :  { %v1432_v49 = vpop.f32.mrf.mxu3  ;;  %v1336_v53 = vpop.f32.mrf.mxu1 }
 0x1b7   :  { %v2371_v50 = vpack.c.bf16 %v1547_v47, %v1546_v7  ;;  %v1433_v55 = vadd.f32 %v1432_v49, %v1384_v48  ;;  %v1337_v60 = vadd.f32 %v1336_v53, %v3177_v51 }
 0x1b8   :  { %v1483_v3 = vpop.f32.mrf.mxu0 }
 0x1b9   :  { %2390 = vst [vmem:[%s3247_s4 + $0x30] sm:$0xff] %v2371_v50   ;;  %v1482_v1 = vadd.f32 %v1481_v37, %v1433_v55 }
 0x1bb   :  { %v1532_v4 = vadd.f32 %v2336_v62, %v1482_v1 }
 0x1bc   :  { %v1385_v31 = vpop.f32.mrf.mxu2 }
 0x1bd   :  { %v1386_v63 = vadd.f32 %v1385_v31, %v1337_v60  ;;  %v1548_v56 = vmax.f32 %v1532_v4, 0.0 }
 0x1be   :  { %v1434_v35 = vpop.f32.mrf.mxu3 }
 0x1bf   :  { %v1435_v0 = vadd.f32 %v1434_v35, %v1386_v63 }
 0x1c1   :  { %v1484_v5 = vadd.f32 %v1483_v3, %v1435_v0 }
 0x1c3   :  { %v1533_v32 = vadd.f32 %v2337_v2, %v1484_v5 }
 0x1c5   :  { %v1549_v8 = vmax.f32 %v1533_v32, 0.0 }
 0x1c7   :  { %v2376_v9 = vpack.c.bf16 %v1549_v8, %v1548_v56 }
 0x1c9   :  { %2391 = vst [vmem:[%s3247_s4 + $0x38] sm:$0xff] %v2376_v9  }

// kernel: backbone_forward.18
= control target key start
LH: loop header
LB: loop body
LE: loop exit
PB: predicated region body
PF: predicated region fallthrough
CT: control target
= control target key end

     0   :  { %s3124_s1 = inlined_call_operand.vmem [shape: bf16[1152,128], index: 1, kind: input, shape index: {}]   ;;  %s3125_s2 = inlined_call_operand.vmem [shape: f32[1,128], index: 2, kind: input, shape index: {}]   ;;  %s3126_s0 = inlined_call_operand.vmem [shape: bf16[128,1152], index: 0, kind: input, shape index: {}]   ;;  %s3127_s3 = inlined_call_operand.vmem [shape: bf16[128,128], index: 3, kind: output, shape index: {}]  }
   0x1   :  { %v2190_v0 = vld [vmem:[%s3124_s1 + $0x38] sm:$0xff]  ;;  %v2189_v1 = vld [vmem:[%s3124_s1 + $0x30] sm:$0xff]  ;;  %v2188_v2 = vld [vmem:[%s3124_s1 + $0x28] sm:$0xff] }
   0x2   :  { %2302 = vmatpush.bf16.msra.mxu1 %v2190_v0  ;;  %2303 = vmatpush.bf16.msra.mxu2 %v2190_v0  ;;  %v2187_v3 = vld [vmem:[%s3124_s1 + $0x20] sm:$0xff]  ;;  %v2186_v4 = vld [vmem:[%s3124_s1 + $0x18] sm:$0xff]  ;;  %v2185_v5 = vld [vmem:[%s3124_s1 + $0x10] sm:$0xff] }
   0x3   :  { %2304 = vmatpush.bf16.msra.mxu3 %v2190_v0  ;;  %1042 = vmatpush.bf16.msra.mxu0 %v2190_v0  ;;  %v2184_v6 = vld [vmem:[%s3124_s1 + $0x8] sm:$0xff]  ;;  %v2183_v7 = vld [vmem:[%s3124_s1] sm:$0xff]  ;;  %v1609_v8 = vld [vmem:[%s3126_s0 + $0x90] sm:$0xf] }
   0x4   :  { %v2133_v9 = vld [vmem:[%s3126_s0 + $0xb0] sm:$0xf0]  ;;  %v1681_v10 = vld [vmem:[%s3126_s0 + $0x120] sm:$0xf]  ;;  %v2151_v11 = vld [vmem:[%s3126_s0 + $0x140] sm:$0xf0] }
   0x5   :  { %v1753_v12 = vld [vmem:[%s3126_s0 + $0x1b0] sm:$0xf]  ;;  %v2169_v13 = vld [vmem:[%s3126_s0 + $0x1d0] sm:$0xf0]  ;;  %v1537_v14 = vld [vmem:[%s3126_s0] sm:$0xf]  ;;  %v1610_v18 = vor.u32 %v2133_v9, %v1609_v8  ;;  %v1682_v19 = vor.u32 %v2151_v11, %v1681_v10 }
   0x6   :  { %2305 = vmatpush.bf16.msra.mxu1 %v2189_v1  ;;  %2306 = vmatpush.bf16.msra.mxu2 %v2189_v1  ;;  %v2115_v15 = vld [vmem:[%s3126_s0 + $0x20] sm:$0xf0]  ;;  %v2206_v16 = vld [vmem:[%s3124_s1 + $0xb8] sm:$0xff]  ;;  %v1754_v20 = vor.u32 %v2169_v13, %v1753_v12  ;;  %v2205_v24 = vld [vmem:[%s3124_s1 + $0xb0] sm:$0xff] }
   0x7   :  { %2307 = vmatpush.bf16.msra.mxu3 %v2189_v1  ;;  %1043 = vmatpush.bf16.msra.mxu0 %v2189_v1  ;;  %v2198_v17 = vld [vmem:[%s3124_s1 + $0x78] sm:$0xff]  ;;  %v1538_v21 = vor.u32 %v2115_v15, %v1537_v14  ;;  %v2197_v25 = vld [vmem:[%s3124_s1 + $0x70] sm:$0xff]  ;;  %v2204_v28 = vld [vmem:[%s3124_s1 + $0xa8] sm:$0xff] }
   0x8   :  { %v2214_v22 = vld [vmem:[%s3124_s1 + $0xf8] sm:$0xff]  ;;  %v2213_v26 = vld [vmem:[%s3124_s1 + $0xf0] sm:$0xff]  ;;  %v2196_v29 = vld [vmem:[%s3124_s1 + $0x68] sm:$0xff] }
   0x9   :  { %v2222_v23 = vld [vmem:[%s3124_s1 + $0x138] sm:$0xff]  ;;  %v2221_v27 = vld [vmem:[%s3124_s1 + $0x130] sm:$0xff]  ;;  %v2212_v30 = vld [vmem:[%s3124_s1 + $0xe8] sm:$0xff] }
   0xa   :  { %2308 = vmatpush.bf16.msra.mxu1 %v2188_v2  ;;  %2309 = vmatpush.bf16.msra.mxu2 %v2188_v2  ;;  %v2220_v31 = vld [vmem:[%s3124_s1 + $0x128] sm:$0xff]  ;;  %v2203_v32 = vld [vmem:[%s3124_s1 + $0xa0] sm:$0xff]  ;;  %v1645_v36 = vld [vmem:[%s3126_s0 + $0xd8] sm:$0xf] }
   0xb   :  { %2310 = vmatpush.bf16.msra.mxu3 %v2188_v2  ;;  %1044 = vmatpush.bf16.msra.mxu0 %v2188_v2  ;;  %v2195_v33 = vld [vmem:[%s3124_s1 + $0x60] sm:$0xff]  ;;  %v2142_v37 = vld [vmem:[%s3126_s0 + $0xf8] sm:$0xf0]  ;;  %v1717_v38 = vld [vmem:[%s3126_s0 + $0x168] sm:$0xf] }
   0xc   :  { %v2211_v34 = vld [vmem:[%s3124_s1 + $0xe0] sm:$0xff]  ;;  %v2160_v39 = vld [vmem:[%s3126_s0 + $0x188] sm:$0xf0]  ;;  %v1789_v40 = vld [vmem:[%s3126_s0 + $0x1f8] sm:$0xf]  ;;  %v1646_v46 = vor.u32 %v2142_v37, %v1645_v36 }
   0xd   :  { %v2219_v35 = vld [vmem:[%s3124_s1 + $0x120] sm:$0xff]  ;;  %v2178_v41 = vld [vmem:[%s3126_s0 + $0x218] sm:$0xf0]  ;;  %v1573_v42 = vld [vmem:[%s3126_s0 + $0x48] sm:$0xf]  ;;  %v1718_v47 = vor.u32 %v2160_v39, %v1717_v38 }
   0xe   :  { %2311 = vmatpush.bf16.msra.mxu1 %v2187_v3  ;;  %2312 = vmatpush.bf16.msra.mxu2 %v2187_v3  ;;  %v2124_v43 = vld [vmem:[%s3126_s0 + $0x68] sm:$0xf0]  ;;  %v2202_v44 = vld [vmem:[%s3124_s1 + $0x98] sm:$0xff]  ;;  %v1790_v48 = vor.u32 %v2178_v41, %v1789_v40  ;;  %v2201_v52 = vld [vmem:[%s3124_s1 + $0x90] sm:$0xff] }
   0xf   :  { %2313 = vmatpush.bf16.msra.mxu3 %v2187_v3  ;;  %1045 = vmatpush.bf16.msra.mxu0 %v2187_v3  ;;  %v2194_v45 = vld [vmem:[%s3124_s1 + $0x58] sm:$0xff]  ;;  %v1574_v49 = vor.u32 %v2124_v43, %v1573_v42  ;;  %v2193_v53 = vld [vmem:[%s3124_s1 + $0x50] sm:$0xff]  ;;  %v2200_v56 = vld [vmem:[%s3124_s1 + $0x88] sm:$0xff] }
  0x10   :  { %v2210_v50 = vld [vmem:[%s3124_s1 + $0xd8] sm:$0xff]  ;;  %v2209_v54 = vld [vmem:[%s3124_s1 + $0xd0] sm:$0xff]  ;;  %v2192_v57 = vld [vmem:[%s3124_s1 + $0x48] sm:$0xff] }
  0x11   :  { %v2218_v51 = vld [vmem:[%s3124_s1 + $0x118] sm:$0xff]  ;;  %v2217_v55 = vld [vmem:[%s3124_s1 + $0x110] sm:$0xff]  ;;  %v2208_v58 = vld [vmem:[%s3124_s1 + $0xc8] sm:$0xff] }
  0x12   :  { %2314 = vmatpush.bf16.msra.mxu1 %v2186_v4  ;;  %2315 = vmatpush.bf16.msra.mxu2 %v2186_v4  ;;  %v2216_v59 = vld [vmem:[%s3124_s1 + $0x108] sm:$0xff]  ;;  %v2199_v60 = vld [vmem:[%s3124_s1 + $0x80] sm:$0xff]  ;;  %v2238_v2 = vld [vmem:[%s3124_s1 + $0x1b8] sm:$0xff] }
  0x13   :  { %2316 = vmatpush.bf16.msra.mxu3 %v2186_v4  ;;  %1046 = vmatpush.bf16.msra.mxu0 %v2186_v4  ;;  %v2191_v61 = vld [vmem:[%s3124_s1 + $0x40] sm:$0xff]  ;;  %v1539_v1 = vld [vmem:[%s3126_s0 + $0x24] sm:$0xf0]  ;;  %v2230_v3 = vld [vmem:[%s3124_s1 + $0x178] sm:$0xff] }
  0x14   :  { %v2111_v62 = vld [vmem:[%s3126_s0 + $0x4] sm:$0xf]  ;;  %v1545_v4 = vld [vmem:[%s3126_s0 + $0x8] sm:$0xf]  ;;  %v1553_v8 = vld [vmem:[%s3126_s0 + $0x10] sm:$0xf] }
  0x15   :  { %v2207_v63 = vld [vmem:[%s3124_s1 + $0xc0] sm:$0xff]  ;;  %v2117_v9 = vld [vmem:[%s3126_s0 + $0x30] sm:$0xf0]  ;;  %v2246_v10 = vld [vmem:[%s3124_s1 + $0x1f8] sm:$0xff]  ;;  %v1542_v12 = vor.u32 %v2111_v62, %v1539_v1 }
  0x16   :  { %2317 = vmatpush.bf16.msra.mxu1 %v2185_v5  ;;  %2318 = vmatpush.bf16.msra.mxu2 %v2185_v5  ;;  %v2215_v0 = vld [vmem:[%s3124_s1 + $0x100] sm:$0xff]  ;;  %v2254_v11 = vld [vmem:[%s3124_s1 + $0x238] sm:$0xff]  ;;  %v1554_v15 = vor.u32 %v2117_v9, %v1553_v8  ;;  %v2129_v40 = vld [vmem:[%s3126_s0 + $0x94] sm:$0xf] }
  0x17   :  { %2319 = vmatpush.bf16.msra.mxu3 %v2185_v5  ;;  %1047 = vmatpush.bf16.msra.mxu0 %v2185_v5  ;;  %v2116_v5 = vld [vmem:[%s3126_s0 + $0x28] sm:$0xf0]  ;;  %v2235_v36 = vld [vmem:[%s3124_s1 + $0x1a0] sm:$0xff]  ;;  %v1611_v41 = vld [vmem:[%s3126_s0 + $0xb4] sm:$0xf0] }
  0x18   :  { %v1546_v13 = vor.u32 %v2116_v5, %v1545_v4  ;;  %v2243_v37 = vld [vmem:[%s3124_s1 + $0x1e0] sm:$0xff]  ;;  %v1617_v42 = vld [vmem:[%s3126_s0 + $0x98] sm:$0xf]  ;;  %v2134_v43 = vld [vmem:[%s3126_s0 + $0xb8] sm:$0xf0] }
  0x19   :  { %v2227_v38 = vld [vmem:[%s3124_s1 + $0x160] sm:$0xff]  ;;  %v1661_v62 = vld [vmem:[%s3126_s0 + $0xe8] sm:$0xf]  ;;  %v2233_v4 = vld [vmem:[%s3124_s1 + $0x190] sm:$0xff] }
  0x1a   :  { %2320 = vmatpush.bf16.msra.mxu1 %v2184_v6  ;;  %2321 = vmatpush.bf16.msra.mxu2 %v2184_v6  ;;  %v2251_v39 = vld [vmem:[%s3124_s1 + $0x220] sm:$0xff]  ;;  %v2241_v5 = vld [vmem:[%s3124_s1 + $0x1d0] sm:$0xff]  ;;  %v1683_v9 = vld [vmem:[%s3126_s0 + $0x144] sm:$0xf0] }
  0x1b   :  { %2322 = vmatpush.bf16.msra.mxu3 %v2184_v6  ;;  %1048 = vmatpush.bf16.msra.mxu0 %v2184_v6  ;;  %v2112_v6 = vld [vmem:[%s3126_s0 + $0xc] sm:$0xf]  ;;  %v2147_v8 = vld [vmem:[%s3126_s0 + $0x124] sm:$0xf] }
  0x1e   :  { %2323 = vmatpush.bf16.msra.mxu1 %v2183_v7  ;;  %2324 = vmatpush.bf16.msra.mxu2 %v2183_v7 }
  0x1f   :  { %2325 = vmatpush.bf16.msra.mxu3 %v2183_v7  ;;  %1049 = vmatpush.bf16.msra.mxu0 %v2183_v7  ;;  %v1547_v7 = vld [vmem:[%s3126_s0 + $0x2c] sm:$0xf0] }
  0x20   :  { %v1550_v14 = vor.u32 %v2112_v6, %v1547_v7  ;;  %v2225_v6 = vld [vmem:[%s3124_s1 + $0x150] sm:$0xff] }
  0x21   :  { %1060 = vmatmul.bf16.vlgmr.msra.gmra.mxu1 %v1610_v18  ;;  %1070 = vmatmul.bf16.vlgmr.msra.gmra.mxu2 %v1682_v19  ;;  %v2245_v18 = vld [vmem:[%s3124_s1 + $0x1f0] sm:$0xff] }
  0x22   :  { %1140 = vmatpush.bf16.msrb.mxu2 %v2206_v16  ;;  %1091 = vmatpush.bf16.msrb.mxu1 %v2198_v17  ;;  %v2237_v16 = vld [vmem:[%s3124_s1 + $0x1b0] sm:$0xff] }
  0x23   :  { %1080 = vmatmul.bf16.vlgmr.msra.gmra.mxu3 %v1754_v20  ;;  %1050 = vmatmul.bf16.vlgmr.msra.gmra.mxu0 %v1538_v21  ;;  %v2229_v17 = vld [vmem:[%s3124_s1 + $0x170] sm:$0xff]  ;;  %v2236_v20 = vld [vmem:[%s3124_s1 + $0x1a8] sm:$0xff] }
  0x24   :  { %1189 = vmatpush.bf16.msrb.mxu3 %v2214_v22  ;;  %1238 = vmatpush.bf16.msrb.mxu0 %v2222_v23  ;;  %v2253_v19 = vld [vmem:[%s3124_s1 + $0x230] sm:$0xff]  ;;  %v2228_v21 = vld [vmem:[%s3124_s1 + $0x168] sm:$0xff] }
  0x25   :  { %v2244_v22 = vld [vmem:[%s3124_s1 + $0x1e8] sm:$0xff]  ;;  %v2249_v7 = vld [vmem:[%s3124_s1 + $0x210] sm:$0xff] }
  0x26   :  { %1141 = vmatpush.bf16.msrb.mxu2 %v2205_v24  ;;  %1092 = vmatpush.bf16.msrb.mxu1 %v2197_v25  ;;  %v2252_v23 = vld [vmem:[%s3124_s1 + $0x228] sm:$0xff]  ;;  %v1575_v25 = vld [vmem:[%s3126_s0 + $0x6c] sm:$0xf0] }
  0x27   :  { %v2120_v24 = vld [vmem:[%s3126_s0 + $0x4c] sm:$0xf] }
  0x28   :  { %1190 = vmatpush.bf16.msrb.mxu3 %v2213_v26  ;;  %1239 = vmatpush.bf16.msrb.mxu0 %v2221_v27  ;;  %v1581_v26 = vld [vmem:[%s3126_s0 + $0x50] sm:$0xf]  ;;  %v2125_v27 = vld [vmem:[%s3126_s0 + $0x70] sm:$0xf0] }
  0x2a   :  { %1142 = vmatpush.bf16.msrb.mxu2 %v2204_v28  ;;  %1093 = vmatpush.bf16.msrb.mxu1 %v2196_v29  ;;  %v2121_v28 = vld [vmem:[%s3126_s0 + $0x54] sm:$0xf]  ;;  %v1583_v29 = vld [vmem:[%s3126_s0 + $0x74] sm:$0xf0] }
  0x2c   :  { %1191 = vmatpush.bf16.msrb.mxu3 %v2212_v30  ;;  %1240 = vmatpush.bf16.msrb.mxu0 %v2220_v31  ;;  %v1589_v30 = vld [vmem:[%s3126_s0 + $0x58] sm:$0xf]  ;;  %v2126_v31 = vld [vmem:[%s3126_s0 + $0x78] sm:$0xf0] }
  0x2e   :  { %1143 = vmatpush.bf16.msrb.mxu2 %v2203_v32  ;;  %1094 = vmatpush.bf16.msrb.mxu1 %v2195_v33  ;;  %v1578_v32 = vor.u32 %v2120_v24, %v1575_v25  ;;  %v1582_v33 = vor.u32 %v2125_v27, %v1581_v26  ;;  %v2156_v24 = vld [vmem:[%s3126_s0 + $0x16c] sm:$0xf]  ;;  %v1719_v25 = vld [vmem:[%s3126_s0 + $0x18c] sm:$0xf0]  ;;  %v2161_v27 = vld [vmem:[%s3126_s0 + $0x190] sm:$0xf0] }
  0x2f   :  { %v1725_v26 = vld [vmem:[%s3126_s0 + $0x170] sm:$0xf] }
  0x30   :  { %1192 = vmatpush.bf16.msrb.mxu3 %v2211_v34  ;;  %1241 = vmatpush.bf16.msrb.mxu0 %v2219_v35  ;;  %v1586_v34 = vor.u32 %v2121_v28, %v1583_v29  ;;  %v1590_v35 = vor.u32 %v2126_v31, %v1589_v30  ;;  %v2157_v28 = vld [vmem:[%s3126_s0 + $0x174] sm:$0xf]  ;;  %v1727_v29 = vld [vmem:[%s3126_s0 + $0x194] sm:$0xf0]  ;;  %v2162_v31 = vld [vmem:[%s3126_s0 + $0x198] sm:$0xf0] }
  0x31   :  { %1065 = vmatmul.bf16.gmra.mxu1 %v1646_v46  ;;  %1075 = vmatmul.bf16.gmra.mxu2 %v1718_v47  ;;  %v1625_v46 = vld [vmem:[%s3126_s0 + $0xa0] sm:$0xf]  ;;  %v2135_v47 = vld [vmem:[%s3126_s0 + $0xc0] sm:$0xf0]  ;;  %v1733_v30 = vld [vmem:[%s3126_s0 + $0x178] sm:$0xf] }
  0x32   :  { %1144 = vmatpush.bf16.msrb.mxu2 %v2202_v44  ;;  %1095 = vmatpush.bf16.msrb.mxu1 %v2194_v45  ;;  %v2130_v44 = vld [vmem:[%s3126_s0 + $0x9c] sm:$0xf]  ;;  %v1619_v45 = vld [vmem:[%s3126_s0 + $0xbc] sm:$0xf0] }
  0x33   :  { %1085 = vmatmul.bf16.gmra.mxu3 %v1790_v48  ;;  %1055 = vmatmul.bf16.gmra.mxu0 %v1574_v49  ;;  %v1614_v48 = vor.u32 %v2129_v40, %v1611_v41  ;;  %v1618_v49 = vor.u32 %v2134_v43, %v1617_v42  ;;  %v2165_v40 = vld [vmem:[%s3126_s0 + $0x1b4] sm:$0xf]  ;;  %v1755_v41 = vld [vmem:[%s3126_s0 + $0x1d4] sm:$0xf0]  ;;  %v2170_v43 = vld [vmem:[%s3126_s0 + $0x1d8] sm:$0xf0] }
  0x34   :  { %1193 = vmatpush.bf16.msrb.mxu3 %v2210_v50  ;;  %1242 = vmatpush.bf16.msrb.mxu0 %v2218_v51  ;;  %v1622_v50 = vor.u32 %v2130_v44, %v1619_v45  ;;  %v1626_v51 = vor.u32 %v2135_v47, %v1625_v46  ;;  %v1761_v42 = vld [vmem:[%s3126_s0 + $0x1b8] sm:$0xf]  ;;  %v2166_v44 = vld [vmem:[%s3126_s0 + $0x1bc] sm:$0xf]  ;;  %v1763_v45 = vld [vmem:[%s3126_s0 + $0x1dc] sm:$0xf0] }
  0x35   :  { %v1769_v46 = vld [vmem:[%s3126_s0 + $0x1c0] sm:$0xf]  ;;  %v2171_v47 = vld [vmem:[%s3126_s0 + $0x1e0] sm:$0xf0] }
  0x36   :  { %1145 = vmatpush.bf16.msrb.mxu2 %v2201_v52  ;;  %1096 = vmatpush.bf16.msrb.mxu1 %v2193_v53  ;;  %v2234_v52 = vld [vmem:[%s3124_s1 + $0x198] sm:$0xff] }
  0x37   :  { %v2242_v53 = vld [vmem:[%s3124_s1 + $0x1d8] sm:$0xff] }
  0x38   :  { %1194 = vmatpush.bf16.msrb.mxu3 %v2209_v54  ;;  %1243 = vmatpush.bf16.msrb.mxu0 %v2217_v55  ;;  %v2226_v54 = vld [vmem:[%s3124_s1 + $0x158] sm:$0xff] }
  0x39   :  { %v2250_v55 = vld [vmem:[%s3124_s1 + $0x218] sm:$0xff] }
  0x3a   :  { %1146 = vmatpush.bf16.msrb.mxu2 %v2200_v56  ;;  %1097 = vmatpush.bf16.msrb.mxu1 %v2192_v57  ;;  %v2138_v56 = vld [vmem:[%s3126_s0 + $0xdc] sm:$0xf]  ;;  %v1647_v57 = vld [vmem:[%s3126_s0 + $0xfc] sm:$0xf0] }
  0x3c   :  { %1195 = vmatpush.bf16.msrb.mxu3 %v2208_v58  ;;  %1244 = vmatpush.bf16.msrb.mxu0 %v2216_v59  ;;  %v1653_v58 = vld [vmem:[%s3126_s0 + $0xe0] sm:$0xf]  ;;  %v2143_v59 = vld [vmem:[%s3126_s0 + $0x100] sm:$0xf0] }
  0x3d   :  { %v1654_v1 = vor.u32 %v2143_v59, %v1653_v58 }
  0x3e   :  { %1147 = vmatpush.bf16.msrb.mxu2 %v2199_v60  ;;  %1098 = vmatpush.bf16.msrb.mxu1 %v2191_v61  ;;  %v2139_v60 = vld [vmem:[%s3126_s0 + $0xe4] sm:$0xf]  ;;  %v1655_v61 = vld [vmem:[%s3126_s0 + $0x104] sm:$0xf0] }
  0x40   :  { %1196 = vmatpush.bf16.msrb.mxu3 %v2207_v63  ;;  %1245 = vmatpush.bf16.msrb.mxu0 %v2215_v0  ;;  %v2144_v63 = vld [vmem:[%s3126_s0 + $0x108] sm:$0xf0]  ;;  %v1650_v0 = vor.u32 %v2138_v56, %v1647_v57 }
  0x41   :  { %1099 = vmatmul.bf16.vlgmr.msrb.gmra.mxu1 %v1542_v12  ;;  %1148 = vmatmul.bf16.vlgmr.msrb.gmra.mxu2 %v1546_v13  ;;  %v2148_v12 = vld [vmem:[%s3126_s0 + $0x12c] sm:$0xf]  ;;  %v1691_v13 = vld [vmem:[%s3126_s0 + $0x14c] sm:$0xf0] }
  0x42   :  { %1336 = vmatpush.bf16.msra.mxu2 %v2238_v2  ;;  %1287 = vmatpush.bf16.msra.mxu1 %v2230_v3  ;;  %v1658_v2 = vor.u32 %v2139_v60, %v1655_v61  ;;  %v1662_v3 = vor.u32 %v2144_v63, %v1661_v62  ;;  %v2174_v61 = vld [vmem:[%s3126_s0 + $0x1fc] sm:$0xf]  ;;  %v1791_v62 = vld [vmem:[%s3126_s0 + $0x21c] sm:$0xf0] }
  0x43   :  { %1197 = vmatmul.bf16.vlgmr.msrb.gmra.mxu3 %v1550_v14  ;;  %1246 = vmatmul.bf16.vlgmr.msrb.gmra.mxu0 %v1554_v15  ;;  %v1697_v14 = vld [vmem:[%s3126_s0 + $0x130] sm:$0xf]  ;;  %v2153_v15 = vld [vmem:[%s3126_s0 + $0x150] sm:$0xf0]  ;;  %v1797_v63 = vld [vmem:[%s3126_s0 + $0x200] sm:$0xf] }
  0x44   :  { %1385 = vmatpush.bf16.msra.mxu3 %v2246_v10  ;;  %1434 = vmatpush.bf16.msra.mxu0 %v2254_v11  ;;  %v1689_v10 = vld [vmem:[%s3126_s0 + $0x128] sm:$0xf]  ;;  %v2152_v11 = vld [vmem:[%s3126_s0 + $0x148] sm:$0xf0] }
  0x46   :  { %1337 = vmatpush.bf16.msra.mxu2 %v2237_v16  ;;  %1288 = vmatpush.bf16.msra.mxu1 %v2229_v17  ;;  %v1686_v16 = vor.u32 %v2147_v8, %v1683_v9  ;;  %v1690_v17 = vor.u32 %v2152_v11, %v1689_v10  ;;  %v1794_v8 = vor.u32 %v2174_v61, %v1791_v62  ;;  %v1605_v61 = vld [vmem:[%s3126_s0 + $0x68] sm:$0xf]  ;;  %v2128_v62 = vld [vmem:[%s3126_s0 + $0x88] sm:$0xf0] }
  0x48   :  { %1386 = vmatpush.bf16.msra.mxu3 %v2245_v18  ;;  %1435 = vmatpush.bf16.msra.mxu0 %v2253_v19  ;;  %v1694_v18 = vor.u32 %v2148_v12, %v1691_v13  ;;  %v1698_v19 = vor.u32 %v2153_v15, %v1697_v14 }
  0x4a   :  { %1338 = vmatpush.bf16.msra.mxu2 %v2236_v20  ;;  %1289 = vmatpush.bf16.msra.mxu1 %v2228_v21  ;;  %v2232_v20 = vld [vmem:[%s3124_s1 + $0x188] sm:$0xff] }
  0x4b   :  { %v2240_v21 = vld [vmem:[%s3124_s1 + $0x1c8] sm:$0xff] }
  0x4c   :  { %1387 = vmatpush.bf16.msra.mxu3 %v2244_v22  ;;  %1436 = vmatpush.bf16.msra.mxu0 %v2252_v23  ;;  %v2224_v22 = vld [vmem:[%s3124_s1 + $0x148] sm:$0xff] }
  0x4d   :  { %v2248_v23 = vld [vmem:[%s3124_s1 + $0x208] sm:$0xff] }
  0x4e   :  { %1339 = vmatpush.bf16.msra.mxu2 %v2235_v36  ;;  %1290 = vmatpush.bf16.msra.mxu1 %v2227_v38  ;;  %v2231_v36 = vld [vmem:[%s3124_s1 + $0x180] sm:$0xff] }
  0x4f   :  { %v2223_v38 = vld [vmem:[%s3124_s1 + $0x140] sm:$0xff] }
  0x50   :  { %1388 = vmatpush.bf16.msra.mxu3 %v2243_v37  ;;  %1437 = vmatpush.bf16.msra.mxu0 %v2251_v39  ;;  %v2239_v37 = vld [vmem:[%s3124_s1 + $0x1c0] sm:$0xff] }
  0x51   :  { %1104 = vmatmul.bf16.gmra.mxu1 %v1578_v32  ;;  %1153 = vmatmul.bf16.gmra.mxu2 %v1582_v33  ;;  %v1722_v32 = vor.u32 %v2156_v24, %v1719_v25  ;;  %v1726_v33 = vor.u32 %v2161_v27, %v1725_v26  ;;  %v2247_v39 = vld [vmem:[%s3124_s1 + $0x200] sm:$0xff]  ;;  %v2118_v24 = vld [vmem:[%s3126_s0 + $0x38] sm:$0xf0] }
  0x52   :  { %1340 = vmatpush.bf16.msra.mxu2 %v2234_v52  ;;  %1291 = vmatpush.bf16.msra.mxu1 %v2226_v54  ;;  %v1770_v52 = vor.u32 %v2171_v47, %v1769_v46  ;;  %v2784_v54 = vld [vmem:[%s3125_s2] ss:$0 sm:$0xff]  ;;  %v2114_v25 = vld [vmem:[%s3126_s0 + $0x1c] sm:$0xf] }
  0x53   :  { %1202 = vmatmul.bf16.gmra.mxu3 %v1586_v34  ;;  %1251 = vmatmul.bf16.gmra.mxu0 %v1590_v35  ;;  %v1730_v34 = vor.u32 %v2157_v28, %v1727_v29  ;;  %v1734_v35 = vor.u32 %v2162_v31, %v1733_v30  ;;  %v1563_v26 = vld [vmem:[%s3126_s0 + $0x3c] sm:$0xf0]  ;;  %v2119_v28 = vld [vmem:[%s3126_s0 + $0x40] sm:$0xf0] }
  0x54   :  { %1389 = vmatpush.bf16.msra.mxu3 %v2242_v53  ;;  %1438 = vmatpush.bf16.msra.mxu0 %v2250_v55  ;;  %v1569_v27 = vld [vmem:[%s3126_s0 + $0x20] sm:$0xf] }
  0x56   :  { %1341 = vmatpush.bf16.msra.mxu2 %v2233_v4  ;;  %1292 = vmatpush.bf16.msra.mxu1 %v2225_v6  ;;  %v2180_v4 = vld [vmem:[%s3126_s0 + $0x228] sm:$0xf0] }
  0x58   :  { %1390 = vmatpush.bf16.msra.mxu3 %v2241_v5  ;;  %1439 = vmatpush.bf16.msra.mxu0 %v2249_v7 }
  0x5a   :  { %1342 = vmatpush.bf16.msra.mxu2 %v2232_v20  ;;  %1293 = vmatpush.bf16.msra.mxu1 %v2224_v22  ;;  %v1555_v22 = vld [vmem:[%s3126_s0 + $0x34] sm:$0xf0] }
  0x5c   :  { %1391 = vmatpush.bf16.msra.mxu3 %v2240_v21  ;;  %1440 = vmatpush.bf16.msra.mxu0 %v2248_v23  ;;  %v2113_v21 = vld [vmem:[%s3126_s0 + $0x14] sm:$0xf]  ;;  %v1561_v23 = vld [vmem:[%s3126_s0 + $0x18] sm:$0xf] }
  0x5e   :  { %1343 = vmatpush.bf16.msra.mxu2 %v2231_v36  ;;  %1294 = vmatpush.bf16.msra.mxu1 %v2223_v38  ;;  %v1570_v38 = vor.u32 %v2119_v28, %v1569_v27  ;;  %v2131_v27 = vld [vmem:[%s3126_s0 + $0xa4] sm:$0xf]  ;;  %v1627_v28 = vld [vmem:[%s3126_s0 + $0xc4] sm:$0xf0] }
  0x60   :  { %1392 = vmatpush.bf16.msra.mxu3 %v2239_v37  ;;  %1441 = vmatpush.bf16.msra.mxu0 %v2247_v39  ;;  %v1566_v37 = vor.u32 %v2114_v25, %v1563_v26 }
  0x61   :  { %1109 = vmatmul.bf16.gmra.mxu1 %v1614_v48  ;;  %1158 = vmatmul.bf16.gmra.mxu2 %v1618_v49  ;;  %v1758_v48 = vor.u32 %v2165_v40, %v1755_v41  ;;  %v1762_v49 = vor.u32 %v2170_v43, %v1761_v42 }
  0x63   :  { %1207 = vmatmul.bf16.gmra.mxu3 %v1622_v50  ;;  %1256 = vmatmul.bf16.gmra.mxu0 %v1626_v51  ;;  %v1766_v51 = vor.u32 %v2166_v44, %v1763_v45 }
  0x71   :  { %1114 = vmatmul.bf16.gmra.mxu1 %v1650_v0  ;;  %1163 = vmatmul.bf16.gmra.mxu2 %v1654_v1  ;;  %v2179_v0 = vld [vmem:[%s3126_s0 + $0x220] sm:$0xf0] }
  0x72   :  { %v2175_v1 = vld [vmem:[%s3126_s0 + $0x204] sm:$0xf]  ;;  %v1798_v9 = vor.u32 %v2179_v0, %v1797_v63 }
  0x73   :  { %1212 = vmatmul.bf16.gmra.mxu3 %v1658_v2  ;;  %1261 = vmatmul.bf16.gmra.mxu0 %v1662_v3  ;;  %v1799_v2 = vld [vmem:[%s3126_s0 + $0x224] sm:$0xf0] }
  0x74   :  { %v1805_v3 = vld [vmem:[%s3126_s0 + $0x208] sm:$0xf]  ;;  %v1802_v12 = vor.u32 %v2175_v1, %v1799_v2 }
  0x75   :  { %v1806_v13 = vor.u32 %v2180_v4, %v1805_v3 }
  0x81   :  { %1119 = vmatmul.bf16.gmra.mxu1 %v1686_v16  ;;  %1168 = vmatmul.bf16.gmra.mxu2 %v1690_v17 }
  0x83   :  { %1217 = vmatmul.bf16.gmra.mxu3 %v1694_v18  ;;  %1266 = vmatmul.bf16.gmra.mxu0 %v1698_v19 }
  0x91   :  { %1124 = vmatmul.bf16.gmra.mxu1 %v1722_v32  ;;  %1173 = vmatmul.bf16.gmra.mxu2 %v1726_v33  ;;  %v1558_v33 = vor.u32 %v2113_v21, %v1555_v22 }
  0x93   :  { %1222 = vmatmul.bf16.gmra.mxu3 %v1730_v34  ;;  %1271 = vmatmul.bf16.gmra.mxu0 %v1734_v35  ;;  %v1562_v34 = vor.u32 %v2118_v24, %v1561_v23 }
  0x9e   :  { %v2779_v50 = vpop.f32.mrf.mxu1 }
  0xa0   :  { %v1051_v53 = vpop.f32.mrf.mxu0 }
  0xa1   :  { %1129 = vmatmul.bf16.gmra.mxu1 %v1758_v48  ;;  %1178 = vmatmul.bf16.gmra.mxu2 %v1762_v49  ;;  %v1052_v30 = vadd.f32 %v2784_v54, %v1051_v53  ;;  %v2122_v49 = vld [vmem:[%s3126_s0 + $0x5c] sm:$0xf]  ;;  %v1597_v53 = vld [vmem:[%s3126_s0 + $0x60] sm:$0xf] }
  0xa3   :  { %1227 = vmatmul.bf16.gmra.mxu3 %v1766_v51  ;;  %1276 = vmatmul.bf16.gmra.mxu0 %v1770_v52  ;;  %v1591_v51 = vld [vmem:[%s3126_s0 + $0x7c] sm:$0xf0] }
  0xa4   :  { %v1071_v55 = vpop.f32.mrf.mxu2  ;;  %v1594_v3 = vor.u32 %v2122_v49, %v1591_v51 }
  0xa5   :  { %v2787_v56 = vadd.f32 %v2784_v54, %v1071_v55  ;;  %v2127_v55 = vld [vmem:[%s3126_s0 + $0x80] sm:$0xf0] }
  0xa6   :  { %v1081_v57 = vpop.f32.mrf.mxu3  ;;  %v2792_v59 = vpop.f32.mrf.mxu1  ;;  %v1598_v4 = vor.u32 %v2127_v55, %v1597_v53 }
  0xa7   :  { %v2790_v58 = vadd.f32 %v2784_v54, %v1081_v57  ;;  %v2123_v57 = vld [vmem:[%s3126_s0 + $0x64] sm:$0xf] }
  0xa8   :  { %v1053_v60 = vpop.f32.mrf.mxu0 }
  0xa9   :  { %v1054_v42 = vadd.f32 %v2784_v54, %v1053_v60  ;;  %v1599_v60 = vld [vmem:[%s3126_s0 + $0x84] sm:$0xf0] }
  0xac   :  { %v1073_v5 = vpop.f32.mrf.mxu2 }
  0xad   :  { %v2819_v6 = vadd.f32 %v2784_v54, %v1073_v5 }
  0xae   :  { %v1083_v7 = vpop.f32.mrf.mxu3  ;;  %v2824_v11 = vpop.f32.mrf.mxu1 }
  0xaf   :  { %v2822_v10 = vadd.f32 %v2784_v54, %v1083_v7  ;;  %v1602_v7 = vor.u32 %v2123_v57, %v1599_v60 }
  0xb0   :  { %v1056_v14 = vpop.f32.mrf.mxu0 }
  0xb1   :  { %1134 = vmatmul.bf16.gmra.mxu1 %v1794_v8  ;;  %1183 = vmatmul.bf16.gmra.mxu2 %v1798_v9  ;;  %v1057_v0 = vadd.f32 %v2784_v54, %v1056_v14  ;;  %v1606_v8 = vor.u32 %v2128_v62, %v1605_v61 }
  0xb3   :  { %1232 = vmatmul.bf16.gmra.mxu3 %v1802_v12  ;;  %1281 = vmatmul.bf16.gmra.mxu0 %v1806_v13 }
  0xb4   :  { %v1076_v15 = vpop.f32.mrf.mxu2 }
  0xb5   :  { %v2827_v16 = vadd.f32 %v2784_v54, %v1076_v15 }
  0xb6   :  { %v1086_v17 = vpop.f32.mrf.mxu3  ;;  %v2832_v19 = vpop.f32.mrf.mxu1 }
  0xb7   :  { %v2830_v18 = vadd.f32 %v2784_v54, %v1086_v17 }
  0xb8   :  { %v1058_v20 = vpop.f32.mrf.mxu0 }
  0xb9   :  { %v1059_v21 = vadd.f32 %v2784_v54, %v1058_v20  ;;  %v1633_v20 = vld [vmem:[%s3126_s0 + $0xa8] sm:$0xf] }
  0xbc   :  { %v1078_v29 = vpop.f32.mrf.mxu2 }
  0xbd   :  { %v2860_v31 = vadd.f32 %v2784_v54, %v1078_v29 }
  0xbe   :  { %v1088_v32 = vpop.f32.mrf.mxu3  ;;  %v1100_v36 = vpop.f32.mrf.mxu1 }
  0xbf   :  { %v2863_v35 = vadd.f32 %v2784_v54, %v1088_v32  ;;  %v1101_v39 = vadd.f32 %v1100_v36, %v1052_v30  ;;  %v2136_v30 = vld [vmem:[%s3126_s0 + $0xc8] sm:$0xf0]  ;;  %v2137_v36 = vld [vmem:[%s3126_s0 + $0xd0] sm:$0xf0] }
  0xc0   :  { %v1247_v40 = vpop.f32.mrf.mxu0  ;;  %v2132_v32 = vld [vmem:[%s3126_s0 + $0xac] sm:$0xf] }
  0xc1   :  { %1295 = vmatmul.bf16.vlgmr.msra.gmra.mxu1 %v1558_v33  ;;  %1344 = vmatmul.bf16.vlgmr.msra.gmra.mxu2 %v1562_v34  ;;  %v1635_v33 = vld [vmem:[%s3126_s0 + $0xcc] sm:$0xf0] }
  0xc2   :  { %v1641_v34 = vld [vmem:[%s3126_s0 + $0xb0] sm:$0xf] }
  0xc3   :  { %1393 = vmatmul.bf16.vlgmr.msra.gmra.mxu3 %v1566_v37  ;;  %1442 = vmatmul.bf16.vlgmr.msra.gmra.mxu0 %v1570_v38  ;;  %v1062_v38 = vadd.f32 %v2784_v54, %v2779_v50  ;;  %v1064_v50 = vadd.f32 %v2784_v54, %v2792_v59  ;;  %v1669_v59 = vld [vmem:[%s3126_s0 + $0xf0] sm:$0xf] }
  0xc4   :  { %v1149_v41 = vpop.f32.mrf.mxu2 }
  0xc5   :  { %v1150_v43 = vadd.f32 %v1149_v41, %v1101_v39  ;;  %v1630_v41 = vor.u32 %v2131_v27, %v1627_v28 }
  0xc6   :  { %v1198_v44 = vpop.f32.mrf.mxu3  ;;  %v1102_v45 = vpop.f32.mrf.mxu1 }
  0xc7   :  { %v1199_v46 = vadd.f32 %v1198_v44, %v1150_v43  ;;  %v1103_v47 = vadd.f32 %v1102_v45, %v1054_v42  ;;  %v1634_v42 = vor.u32 %v2136_v30, %v1633_v20  ;;  %v1638_v44 = vor.u32 %v2132_v32, %v1635_v33 }
  0xc8   :  { %v1249_v48 = vpop.f32.mrf.mxu0  ;;  %v1642_v45 = vor.u32 %v2137_v36, %v1641_v34 }
  0xc9   :  { %v2872_v52 = vadd.f32 %v1247_v40, %v1199_v46 }
  0xcc   :  { %v1151_v63 = vpop.f32.mrf.mxu2 }
  0xcd   :  { %v1152_v1 = vadd.f32 %v1151_v63, %v1103_v47  ;;  %v2140_v63 = vld [vmem:[%s3126_s0 + $0xec] sm:$0xf] }
  0xce   :  { %v1200_v2 = vpop.f32.mrf.mxu3  ;;  %v1105_v5 = vpop.f32.mrf.mxu1 }
  0xcf   :  { %v1201_v9 = vadd.f32 %v1200_v2, %v1152_v1  ;;  %v1106_v12 = vadd.f32 %v1105_v5, %v1057_v0  ;;  %v1663_v0 = vld [vmem:[%s3126_s0 + $0x10c] sm:$0xf0]  ;;  %v2145_v2 = vld [vmem:[%s3126_s0 + $0x110] sm:$0xf0]  ;;  %v1677_v5 = vld [vmem:[%s3126_s0 + $0xf8] sm:$0xf] }
  0xd0   :  { %v1252_v13 = vpop.f32.mrf.mxu0 }
  0xd1   :  { %1300 = vmatmul.bf16.gmra.mxu1 %v1594_v3  ;;  %1349 = vmatmul.bf16.gmra.mxu2 %v1598_v4  ;;  %v2893_v15 = vadd.f32 %v1249_v48, %v1201_v9  ;;  %v2141_v3 = vld [vmem:[%s3126_s0 + $0xf4] sm:$0xf]  ;;  %v1671_v4 = vld [vmem:[%s3126_s0 + $0x114] sm:$0xf0]  ;;  %v1067_v9 = vadd.f32 %v2784_v54, %v2824_v11  ;;  %v1069_v11 = vadd.f32 %v2784_v54, %v2832_v19  ;;  %v2154_v19 = vld [vmem:[%s3126_s0 + $0x158] sm:$0xf0] }
  0xd2   :  { %v1705_v54 = vld [vmem:[%s3126_s0 + $0x138] sm:$0xf] }
  0xd3   :  { %1398 = vmatmul.bf16.gmra.mxu3 %v1602_v7  ;;  %1447 = vmatmul.bf16.gmra.mxu0 %v1606_v8  ;;  %v2146_v7 = vld [vmem:[%s3126_s0 + $0x118] sm:$0xf0] }
  0xd4   :  { %v1154_v17 = vpop.f32.mrf.mxu2 }
  0xd5   :  { %v1155_v14 = vadd.f32 %v1154_v17, %v1106_v12  ;;  %v1666_v17 = vor.u32 %v2140_v63, %v1663_v0 }
  0xd6   :  { %v1203_v22 = vpop.f32.mrf.mxu3  ;;  %v1107_v23 = vpop.f32.mrf.mxu1 }
  0xd7   :  { %v1204_v24 = vadd.f32 %v1203_v22, %v1155_v14  ;;  %v1108_v25 = vadd.f32 %v1107_v23, %v1059_v21  ;;  %v1670_v21 = vor.u32 %v2145_v2, %v1669_v59  ;;  %v1674_v22 = vor.u32 %v2141_v3, %v1671_v4 }
  0xd8   :  { %v1254_v26 = vpop.f32.mrf.mxu0  ;;  %v1678_v23 = vor.u32 %v2146_v7, %v1677_v5  ;;  %v2158_v5 = vld [vmem:[%s3126_s0 + $0x17c] sm:$0xf] }
  0xd9   :  { %v2902_v29 = vadd.f32 %v1252_v13, %v1204_v24 }
  0xdc   :  { %v1156_v37 = vpop.f32.mrf.mxu2 }
  0xdd   :  { %v1157_v39 = vadd.f32 %v1156_v37, %v1108_v25  ;;  %v2149_v37 = vld [vmem:[%s3126_s0 + $0x134] sm:$0xf] }
  0xde   :  { %v1205_v40 = vpop.f32.mrf.mxu3  ;;  %v1110_v43 = vpop.f32.mrf.mxu1 }
  0xdf   :  { %v1206_v46 = vadd.f32 %v1205_v40, %v1157_v39  ;;  %v1111_v47 = vadd.f32 %v1110_v43, %v1062_v38  ;;  %v1699_v38 = vld [vmem:[%s3126_s0 + $0x154] sm:$0xf0]  ;;  %v2150_v40 = vld [vmem:[%s3126_s0 + $0x13c] sm:$0xf]  ;;  %v2155_v43 = vld [vmem:[%s3126_s0 + $0x160] sm:$0xf0] }
  0xe0   :  { %v1257_v48 = vpop.f32.mrf.mxu0 }
  0xe1   :  { %1305 = vmatmul.bf16.gmra.mxu1 %v1630_v41  ;;  %1354 = vmatmul.bf16.gmra.mxu2 %v1634_v42  ;;  %v2924_v49 = vadd.f32 %v1254_v26, %v1206_v46  ;;  %v1707_v41 = vld [vmem:[%s3126_s0 + $0x15c] sm:$0xf0] }
  0xe2   :  { %v1713_v42 = vld [vmem:[%s3126_s0 + $0x140] sm:$0xf] }
  0xe3   :  { %1403 = vmatmul.bf16.gmra.mxu3 %v1638_v44  ;;  %1452 = vmatmul.bf16.gmra.mxu0 %v1642_v45 }
  0xe4   :  { %v1159_v51 = vpop.f32.mrf.mxu2 }
  0xe5   :  { %v1160_v53 = vadd.f32 %v1159_v51, %v1111_v47  ;;  %v1702_v47 = vor.u32 %v2149_v37, %v1699_v38 }
  0xe6   :  { %v1208_v55 = vpop.f32.mrf.mxu3  ;;  %v1112_v57 = vpop.f32.mrf.mxu1 }
  0xe7   :  { %v1209_v60 = vadd.f32 %v1208_v55, %v1160_v53  ;;  %v1113_v61 = vadd.f32 %v1112_v57, %v1064_v50  ;;  %v1710_v50 = vor.u32 %v2150_v40, %v1707_v41  ;;  %v1714_v53 = vor.u32 %v2155_v43, %v1713_v42  ;;  %v2167_v40 = vld [vmem:[%s3126_s0 + $0x1c4] sm:$0xf]  ;;  %v1777_v42 = vld [vmem:[%s3126_s0 + $0x1c8] sm:$0xf]  ;;  %v2172_v43 = vld [vmem:[%s3126_s0 + $0x1e8] sm:$0xf0] }
  0xe8   :  { %v1259_v62 = vpop.f32.mrf.mxu0 }
  0xe9   :  { %v2934_v1 = vadd.f32 %v1257_v48, %v1209_v60  ;;  %v1706_v48 = vor.u32 %v2154_v19, %v1705_v54 }
  0xec   :  { %v1161_v8 = vpop.f32.mrf.mxu2 }
  0xed   :  { %v1162_v12 = vadd.f32 %v1161_v8, %v1113_v61  ;;  %v1741_v8 = vld [vmem:[%s3126_s0 + $0x180] sm:$0xf] }
  0xee   :  { %v1210_v13 = vpop.f32.mrf.mxu3  ;;  %v1115_v14 = vpop.f32.mrf.mxu1 }
  0xef   :  { %v1211_v24 = vadd.f32 %v1210_v13, %v1162_v12  ;;  %v1116_v25 = vadd.f32 %v1115_v14, %v1067_v9  ;;  %v2163_v9 = vld [vmem:[%s3126_s0 + $0x1a0] sm:$0xf0]  ;;  %v1743_v12 = vld [vmem:[%s3126_s0 + $0x1a4] sm:$0xf0] }
  0xf0   :  { %v1262_v26 = vpop.f32.mrf.mxu0  ;;  %v1749_v13 = vld [vmem:[%s3126_s0 + $0x188] sm:$0xf] }
  0xf1   :  { %1310 = vmatmul.bf16.gmra.mxu1 %v1666_v17  ;;  %1359 = vmatmul.bf16.gmra.mxu2 %v1670_v21  ;;  %v2956_v27 = vadd.f32 %v1259_v62, %v1211_v24  ;;  %v2164_v17 = vld [vmem:[%s3126_s0 + $0x1a8] sm:$0xf0]  ;;  %v1742_v24 = vor.u32 %v2163_v9, %v1741_v8 }
  0xf3   :  { %1408 = vmatmul.bf16.gmra.mxu3 %v1674_v22  ;;  %1457 = vmatmul.bf16.gmra.mxu0 %v1678_v23 }
  0xf4   :  { %v1164_v28 = vpop.f32.mrf.mxu2 }
  0xf5   :  { %v1165_v20 = vadd.f32 %v1164_v28, %v1116_v25  ;;  %v1750_v28 = vor.u32 %v2164_v17, %v1749_v13  ;;  %v1813_v13 = vld [vmem:[%s3126_s0 + $0x210] sm:$0xf]  ;;  %v2181_v17 = vld [vmem:[%s3126_s0 + $0x230] sm:$0xf0] }
  0xf6   :  { %v1213_v30 = vpop.f32.mrf.mxu3  ;;  %v1117_v32 = vpop.f32.mrf.mxu1 }
  0xf7   :  { %v1214_v33 = vadd.f32 %v1213_v30, %v1165_v20  ;;  %v1118_v34 = vadd.f32 %v1117_v32, %v1069_v11 }
  0xf8   :  { %v1264_v36 = vpop.f32.mrf.mxu0 }
  0xf9   :  { %v2966_v39 = vadd.f32 %v1262_v26, %v1214_v33 }
  0xfc   :  { %v1166_v44 = vpop.f32.mrf.mxu2 }
  0xfd   :  { %v1167_v45 = vadd.f32 %v1166_v44, %v1118_v34  ;;  %v1779_v44 = vld [vmem:[%s3126_s0 + $0x1ec] sm:$0xf0] }
  0xfe   :  { %v1215_v46 = vpop.f32.mrf.mxu3  ;;  %v1120_v51 = vpop.f32.mrf.mxu1 }
  0xff   :  { %v1216_v55 = vadd.f32 %v1215_v46, %v1167_v45  ;;  %v1121_v57 = vadd.f32 %v1120_v51, %v2787_v56  ;;  %v1735_v56 = vld [vmem:[%s3126_s0 + $0x19c] sm:$0xf0]  ;;  %v1785_v45 = vld [vmem:[%s3126_s0 + $0x1d0] sm:$0xf]  ;;  %v2173_v46 = vld [vmem:[%s3126_s0 + $0x1f0] sm:$0xf0] }
 0x100   :  { %v1267_v60 = vpop.f32.mrf.mxu0  ;;  %v1738_v23 = vor.u32 %v2158_v5, %v1735_v56 }
 0x101   :  { %1315 = vmatmul.bf16.gmra.mxu1 %v1702_v47  ;;  %1364 = vmatmul.bf16.gmra.mxu2 %v1706_v48  ;;  %v2987_v61 = vadd.f32 %v1264_v36, %v1216_v55 }
 0x103   :  { %1413 = vmatmul.bf16.gmra.mxu3 %v1710_v50  ;;  %1462 = vmatmul.bf16.gmra.mxu0 %v1714_v53  ;;  %v1778_v53 = vor.u32 %v2172_v43, %v1777_v42 }
 0x104   :  { %v1169_v62 = vpop.f32.mrf.mxu2 }
 0x105   :  { %v1170_v63 = vadd.f32 %v1169_v62, %v1121_v57 }
 0x106   :  { %v1218_v0 = vpop.f32.mrf.mxu3  ;;  %v1122_v59 = vpop.f32.mrf.mxu1 }
 0x107   :  { %v1219_v2 = vadd.f32 %v1218_v0, %v1170_v63  ;;  %v1123_v3 = vadd.f32 %v1122_v59, %v2819_v6  ;;  %v2159_v6 = vld [vmem:[%s3126_s0 + $0x184] sm:$0xf] }
 0x108   :  { %v1269_v4 = vpop.f32.mrf.mxu0  ;;  %v1746_v26 = vor.u32 %v2159_v6, %v1743_v12  ;;  %v2176_v6 = vld [vmem:[%s3126_s0 + $0x20c] sm:$0xf] }
 0x109   :  { %v2996_v7 = vadd.f32 %v1267_v60, %v1219_v2  ;;  %v1786_v60 = vor.u32 %v2173_v46, %v1785_v45 }
 0x10c   :  { %v1171_v21 = vpop.f32.mrf.mxu2 }
 0x10d   :  { %v1172_v14 = vadd.f32 %v1171_v21, %v1123_v3  ;;  %v1815_v21 = vld [vmem:[%s3126_s0 + $0x234] sm:$0xf0] }
 0x10e   :  { %v1220_v22 = vpop.f32.mrf.mxu3  ;;  %v1125_v25 = vpop.f32.mrf.mxu1 }
 0x10f   :  { %v1221_v11 = vadd.f32 %v1220_v22, %v1172_v14  ;;  %v1126_v20 = vadd.f32 %v1125_v25, %v2827_v16  ;;  %v1771_v16 = vld [vmem:[%s3126_s0 + $0x1e4] sm:$0xf0]  ;;  %v1821_v14 = vld [vmem:[%s3126_s0 + $0x218] sm:$0xf]  ;;  %v2182_v22 = vld [vmem:[%s3126_s0 + $0x238] sm:$0xf0] }
 0x110   :  { %v1272_v30 = vpop.f32.mrf.mxu0  ;;  %v1774_v50 = vor.u32 %v2167_v40, %v1771_v16 }
 0x111   :  { %1320 = vmatmul.bf16.gmra.mxu1 %v1738_v23  ;;  %1369 = vmatmul.bf16.gmra.mxu2 %v1742_v24  ;;  %v3017_v32 = vadd.f32 %v1269_v4, %v1221_v11 }
 0x113   :  { %1418 = vmatmul.bf16.gmra.mxu3 %v1746_v26  ;;  %1467 = vmatmul.bf16.gmra.mxu0 %v1750_v28  ;;  %v1814_v28 = vor.u32 %v2181_v17, %v1813_v13 }
 0x114   :  { %v1174_v33 = vpop.f32.mrf.mxu2 }
 0x115   :  { %v1175_v34 = vadd.f32 %v1174_v33, %v1126_v20 }
 0x116   :  { %v1223_v36 = vpop.f32.mrf.mxu3  ;;  %v1127_v37 = vpop.f32.mrf.mxu1 }
 0x117   :  { %v1224_v38 = vadd.f32 %v1223_v36, %v1175_v34  ;;  %v1128_v54 = vadd.f32 %v1127_v37, %v2860_v31  ;;  %v2168_v31 = vld [vmem:[%s3126_s0 + $0x1cc] sm:$0xf] }
 0x118   :  { %v1274_v19 = vpop.f32.mrf.mxu0  ;;  %v1782_v57 = vor.u32 %v2168_v31, %v1779_v44 }
 0x119   :  { %v3026_v41 = vadd.f32 %v1272_v30, %v1224_v38  ;;  %v1822_v30 = vor.u32 %v2182_v22, %v1821_v14 }
 0x11c   :  { %v1176_v47 = vpop.f32.mrf.mxu2 }
 0x11d   :  { %v1177_v48 = vadd.f32 %v1176_v47, %v1128_v54 }
 0x11e   :  { %v1225_v51 = vpop.f32.mrf.mxu3  ;;  %v1130_v55 = vpop.f32.mrf.mxu1 }
 0x11f   :  { %v1226_v62 = vadd.f32 %v1225_v51, %v1177_v48  ;;  %v1131_v63 = vadd.f32 %v1130_v55, %v2790_v58  ;;  %v1807_v58 = vld [vmem:[%s3126_s0 + $0x22c] sm:$0xf0] }
 0x120   :  { %v1277_v0 = vpop.f32.mrf.mxu0  ;;  %v1810_v26 = vor.u32 %v2176_v6, %v1807_v58 }
 0x121   :  { %1325 = vmatmul.bf16.gmra.mxu1 %v1774_v50  ;;  %1374 = vmatmul.bf16.gmra.mxu2 %v1778_v53  ;;  %v3047_v59 = vadd.f32 %v1274_v19, %v1226_v62 }
 0x123   :  { %1423 = vmatmul.bf16.gmra.mxu3 %v1782_v57  ;;  %1472 = vmatmul.bf16.gmra.mxu0 %v1786_v60 }
 0x124   :  { %v1179_v2 = vpop.f32.mrf.mxu2 }
 0x125   :  { %v1180_v3 = vadd.f32 %v1179_v2, %v1131_v63 }
 0x126   :  { %v1228_v4 = vpop.f32.mrf.mxu3  ;;  %v1132_v5 = vpop.f32.mrf.mxu1 }
 0x127   :  { %v1229_v56 = vadd.f32 %v1228_v4, %v1180_v3  ;;  %v1133_v8 = vadd.f32 %v1132_v5, %v2822_v10  ;;  %v2177_v10 = vld [vmem:[%s3126_s0 + $0x214] sm:$0xf] }
 0x128   :  { %v1279_v9 = vpop.f32.mrf.mxu0  ;;  %v1818_v20 = vor.u32 %v2177_v10, %v1815_v21 }
 0x129   :  { %v3056_v12 = vadd.f32 %v1277_v0, %v1229_v56 }
 0x12c   :  { %v1181_v23 = vpop.f32.mrf.mxu2 }
 0x12d   :  { %v1182_v24 = vadd.f32 %v1181_v23, %v1133_v8 }
 0x12e   :  { %v1230_v25 = vpop.f32.mrf.mxu3  ;;  %v1135_v11 = vpop.f32.mrf.mxu1 }
 0x12f   :  { %v1231_v33 = vadd.f32 %v1230_v25, %v1182_v24  ;;  %v1136_v34 = vadd.f32 %v1135_v11, %v2830_v18 }
 0x130   :  { %v1282_v36 = vpop.f32.mrf.mxu0 }
 0x131   :  { %1330 = vmatmul.bf16.gmra.mxu1 %v1810_v26  ;;  %1379 = vmatmul.bf16.gmra.mxu2 %v1814_v28  ;;  %v3077_v37 = vadd.f32 %v1279_v9, %v1231_v33 }
 0x133   :  { %1428 = vmatmul.bf16.gmra.mxu3 %v1818_v20  ;;  %1477 = vmatmul.bf16.gmra.mxu0 %v1822_v30 }
 0x134   :  { %v1184_v38 = vpop.f32.mrf.mxu2 }
 0x135   :  { %v1185_v54 = vadd.f32 %v1184_v38, %v1136_v34 }
 0x136   :  { %v1233_v19 = vpop.f32.mrf.mxu3  ;;  %v1137_v40 = vpop.f32.mrf.mxu1 }
 0x137   :  { %v1234_v16 = vadd.f32 %v1233_v19, %v1185_v54  ;;  %v1138_v42 = vadd.f32 %v1137_v40, %v2863_v35 }
 0x138   :  { %v1284_v43 = vpop.f32.mrf.mxu0 }
 0x139   :  { %v3080_v31 = vadd.f32 %v1282_v36, %v1234_v16 }
 0x13c   :  { %v1186_v44 = vpop.f32.mrf.mxu2 }
 0x13d   :  { %v1187_v45 = vadd.f32 %v1186_v44, %v1138_v42 }
 0x13e   :  { %v1235_v18 = vpop.f32.mrf.mxu3  ;;  %v1296_v46 = vpop.f32.mrf.mxu1 }
 0x13f   :  { %v1236_v47 = vadd.f32 %v1235_v18, %v1187_v45  ;;  %v1297_v53 = vadd.f32 %v1296_v46, %v2872_v52 }
 0x140   :  { %v1443_v48 = vpop.f32.mrf.mxu0 }
 0x141   :  { %v3082_v51 = vadd.f32 %v1284_v43, %v1236_v47 }
 0x144   :  { %v1345_v50 = vpop.f32.mrf.mxu2 }
 0x145   :  { %v1346_v60 = vadd.f32 %v1345_v50, %v1297_v53 }
 0x146   :  { %v1394_v55 = vpop.f32.mrf.mxu3  ;;  %v1298_v57 = vpop.f32.mrf.mxu1 }
 0x147   :  { %v1395_v63 = vadd.f32 %v1394_v55, %v1346_v60  ;;  %v1299_v35 = vadd.f32 %v1298_v57, %v2893_v15 }
 0x148   :  { %v1445_v62 = vpop.f32.mrf.mxu0 }
 0x149   :  { %v1444_v5 = vadd.f32 %v1443_v48, %v1395_v63 }
 0x14b   :  { %v1483_v6 = vmax.f32 %v1444_v5, 0.0 }
 0x14c   :  { %v1347_v0 = vpop.f32.mrf.mxu2 }
 0x14d   :  { %v1348_v2 = vadd.f32 %v1347_v0, %v1299_v35 }
 0x14e   :  { %v1396_v3 = vpop.f32.mrf.mxu3  ;;  %v1301_v4 = vpop.f32.mrf.mxu1 }
 0x14f   :  { %v1397_v56 = vadd.f32 %v1396_v3, %v1348_v2  ;;  %v1302_v52 = vadd.f32 %v1301_v4, %v2902_v29 }
 0x150   :  { %v1448_v8 = vpop.f32.mrf.mxu0 }
 0x151   :  { %v1446_v9 = vadd.f32 %v1445_v62, %v1397_v56 }
 0x153   :  { %v1484_v58 = vmax.f32 %v1446_v9, 0.0 }
 0x154   :  { %v1350_v13 = vpop.f32.mrf.mxu2 }
 0x155   :  { %v2258_v17 = vpack.c.bf16 %v1484_v58, %v1483_v6  ;;  %v1351_v15 = vadd.f32 %v1350_v13, %v1302_v52 }
 0x156   :  { %v1399_v10 = vpop.f32.mrf.mxu3  ;;  %v1303_v21 = vpop.f32.mrf.mxu1 }
 0x157   :  { %2259 = vst [vmem:[%s3127_s3] sm:$0xff] %v2258_v17   ;;  %v1400_v22 = vadd.f32 %v1399_v10, %v1351_v15  ;;  %v1304_v23 = vadd.f32 %v1303_v21, %v2924_v49 }
 0x158   :  { %v1450_v14 = vpop.f32.mrf.mxu0 }
 0x159   :  { %v1449_v11 = vadd.f32 %v1448_v8, %v1400_v22 }
 0x15b   :  { %v1485_v29 = vmax.f32 %v1449_v11, 0.0 }
 0x15c   :  { %v1352_v24 = vpop.f32.mrf.mxu2 }
 0x15d   :  { %v1353_v25 = vadd.f32 %v1352_v24, %v1304_v23 }
 0x15e   :  { %v1401_v26 = vpop.f32.mrf.mxu3  ;;  %v1306_v28 = vpop.f32.mrf.mxu1 }
 0x15f   :  { %v1402_v20 = vadd.f32 %v1401_v26, %v1353_v25  ;;  %v1307_v54 = vadd.f32 %v1306_v28, %v2934_v1 }
 0x160   :  { %v1453_v30 = vpop.f32.mrf.mxu0 }
 0x161   :  { %v1451_v33 = vadd.f32 %v1450_v14, %v1402_v20 }
 0x163   :  { %v1486_v34 = vmax.f32 %v1451_v33, 0.0 }
 0x164   :  { %v1355_v36 = vpop.f32.mrf.mxu2 }
 0x165   :  { %v2263_v38 = vpack.c.bf16 %v1486_v34, %v1485_v29  ;;  %v1356_v49 = vadd.f32 %v1355_v36, %v1307_v54 }
 0x166   :  { %v1404_v19 = vpop.f32.mrf.mxu3  ;;  %v1308_v40 = vpop.f32.mrf.mxu1 }
 0x167   :  { %2295 = vst [vmem:[%s3127_s3 + $0x8] sm:$0xff] %v2263_v38   ;;  %v1405_v42 = vadd.f32 %v1404_v19, %v1356_v49  ;;  %v1309_v43 = vadd.f32 %v1308_v40, %v2956_v27 }
 0x168   :  { %v1455_v16 = vpop.f32.mrf.mxu0 }
 0x169   :  { %v1454_v47 = vadd.f32 %v1453_v30, %v1405_v42 }
 0x16b   :  { %v1487_v1 = vmax.f32 %v1454_v47, 0.0 }
 0x16c   :  { %v1357_v44 = vpop.f32.mrf.mxu2 }
 0x16d   :  { %v1358_v45 = vadd.f32 %v1357_v44, %v1309_v43 }
 0x16e   :  { %v1406_v18 = vpop.f32.mrf.mxu3  ;;  %v1311_v46 = vpop.f32.mrf.mxu1 }
 0x16f   :  { %v1407_v48 = vadd.f32 %v1406_v18, %v1358_v45  ;;  %v1312_v62 = vadd.f32 %v1311_v46, %v2966_v39 }
 0x170   :  { %v1458_v50 = vpop.f32.mrf.mxu0 }
 0x171   :  { %v1456_v53 = vadd.f32 %v1455_v16, %v1407_v48 }
 0x173   :  { %v1488_v55 = vmax.f32 %v1456_v53, 0.0 }
 0x174   :  { %v1360_v57 = vpop.f32.mrf.mxu2 }
 0x175   :  { %v2268_v60 = vpack.c.bf16 %v1488_v55, %v1487_v1  ;;  %v1361_v27 = vadd.f32 %v1360_v57, %v1312_v62 }
 0x176   :  { %v1409_v63 = vpop.f32.mrf.mxu3  ;;  %v1313_v35 = vpop.f32.mrf.mxu1 }
 0x177   :  { %2296 = vst [vmem:[%s3127_s3 + $0x10] sm:$0xff] %v2268_v60   ;;  %v1410_v2 = vadd.f32 %v1409_v63, %v1361_v27  ;;  %v1314_v3 = vadd.f32 %v1313_v35, %v2987_v61 }
 0x178   :  { %v1460_v0 = vpop.f32.mrf.mxu0 }
 0x179   :  { %v1459_v9 = vadd.f32 %v1458_v50, %v1410_v2 }
 0x17b   :  { %v1489_v39 = vmax.f32 %v1459_v9, 0.0 }
 0x17c   :  { %v1362_v4 = vpop.f32.mrf.mxu2 }
 0x17d   :  { %v1363_v5 = vadd.f32 %v1362_v4, %v1314_v3 }
 0x17e   :  { %v1411_v56 = vpop.f32.mrf.mxu3  ;;  %v1316_v8 = vpop.f32.mrf.mxu1 }
 0x17f   :  { %v1412_v6 = vadd.f32 %v1411_v56, %v1363_v5  ;;  %v1317_v21 = vadd.f32 %v1316_v8, %v2996_v7 }
 0x180   :  { %v1463_v58 = vpop.f32.mrf.mxu0 }
 0x181   :  { %v1461_v13 = vadd.f32 %v1460_v0, %v1412_v6 }
 0x183   :  { %v1490_v17 = vmax.f32 %v1461_v13, 0.0 }
 0x184   :  { %v1365_v52 = vpop.f32.mrf.mxu2 }
 0x185   :  { %v2273_v10 = vpack.c.bf16 %v1490_v17, %v1489_v39  ;;  %v1366_v61 = vadd.f32 %v1365_v52, %v1317_v21 }
 0x186   :  { %v1414_v15 = vpop.f32.mrf.mxu3  ;;  %v1318_v14 = vpop.f32.mrf.mxu1 }
 0x187   :  { %2297 = vst [vmem:[%s3127_s3 + $0x18] sm:$0xff] %v2273_v10   ;;  %v1415_v23 = vadd.f32 %v1414_v15, %v1366_v61  ;;  %v1319_v24 = vadd.f32 %v1318_v14, %v3017_v32 }
 0x188   :  { %v1465_v22 = vpop.f32.mrf.mxu0 }
 0x189   :  { %v1464_v20 = vadd.f32 %v1463_v58, %v1415_v23 }
 0x18b   :  { %v1491_v7 = vmax.f32 %v1464_v20, 0.0 }
 0x18c   :  { %v1367_v25 = vpop.f32.mrf.mxu2 }
 0x18d   :  { %v1368_v26 = vadd.f32 %v1367_v25, %v1319_v24 }
 0x18e   :  { %v1416_v28 = vpop.f32.mrf.mxu3  ;;  %v1321_v11 = vpop.f32.mrf.mxu1 }
 0x18f   :  { %v1417_v30 = vadd.f32 %v1416_v28, %v1368_v26  ;;  %v1322_v54 = vadd.f32 %v1321_v11, %v3026_v41 }
 0x190   :  { %v1468_v33 = vpop.f32.mrf.mxu0 }
 0x191   :  { %v1466_v29 = vadd.f32 %v1465_v22, %v1417_v30 }
 0x193   :  { %v1492_v34 = vmax.f32 %v1466_v29, 0.0 }
 0x194   :  { %v1370_v36 = vpop.f32.mrf.mxu2 }
 0x195   :  { %v2278_v38 = vpack.c.bf16 %v1492_v34, %v1491_v7  ;;  %v1371_v32 = vadd.f32 %v1370_v36, %v1322_v54 }
 0x196   :  { %v1419_v19 = vpop.f32.mrf.mxu3  ;;  %v1323_v40 = vpop.f32.mrf.mxu1 }
 0x197   :  { %2298 = vst [vmem:[%s3127_s3 + $0x20] sm:$0xff] %v2278_v38   ;;  %v1420_v16 = vadd.f32 %v1419_v19, %v1371_v32  ;;  %v1324_v42 = vadd.f32 %v1323_v40, %v3047_v59 }
 0x198   :  { %v1470_v49 = vpop.f32.mrf.mxu0 }
 0x199   :  { %v1469_v46 = vadd.f32 %v1468_v33, %v1420_v16 }
 0x19b   :  { %v1493_v41 = vmax.f32 %v1469_v46, 0.0 }
 0x19c   :  { %v1372_v43 = vpop.f32.mrf.mxu2 }
 0x19d   :  { %v1373_v44 = vadd.f32 %v1372_v43, %v1324_v42 }
 0x19e   :  { %v1421_v45 = vpop.f32.mrf.mxu3  ;;  %v1326_v18 = vpop.f32.mrf.mxu1 }
 0x19f   :  { %v1422_v47 = vadd.f32 %v1421_v45, %v1373_v44  ;;  %v1327_v57 = vadd.f32 %v1326_v18, %v3056_v12 }
 0x1a0   :  { %v1473_v50 = vpop.f32.mrf.mxu0 }
 0x1a1   :  { %v1471_v48 = vadd.f32 %v1470_v49, %v1422_v47 }
 0x1a3   :  { %v1494_v53 = vmax.f32 %v1471_v48, 0.0 }
 0x1a4   :  { %v1375_v1 = vpop.f32.mrf.mxu2 }
 0x1a5   :  { %v2283_v55 = vpack.c.bf16 %v1494_v53, %v1493_v41  ;;  %v1376_v59 = vadd.f32 %v1375_v1, %v1327_v57 }
 0x1a6   :  { %v1424_v60 = vpop.f32.mrf.mxu3  ;;  %v1328_v62 = vpop.f32.mrf.mxu1 }
 0x1a7   :  { %2299 = vst [vmem:[%s3127_s3 + $0x28] sm:$0xff] %v2283_v55   ;;  %v1425_v63 = vadd.f32 %v1424_v60, %v1376_v59  ;;  %v1329_v35 = vadd.f32 %v1328_v62, %v3077_v37 }
 0x1a8   :  { %v1475_v27 = vpop.f32.mrf.mxu0 }
 0x1a9   :  { %v1474_v5 = vadd.f32 %v1473_v50, %v1425_v63 }
 0x1ab   :  { %v1495_v9 = vmax.f32 %v1474_v5, 0.0 }
 0x1ac   :  { %v1377_v0 = vpop.f32.mrf.mxu2 }
 0x1ad   :  { %v1378_v2 = vadd.f32 %v1377_v0, %v1329_v35 }
 0x1ae   :  { %v1426_v3 = vpop.f32.mrf.mxu3  ;;  %v1331_v4 = vpop.f32.mrf.mxu1 }
 0x1af   :  { %v1427_v56 = vadd.f32 %v1426_v3, %v1378_v2  ;;  %v1332_v13 = vadd.f32 %v1331_v4, %v3080_v31 }
 0x1b0   :  { %v1478_v17 = vpop.f32.mrf.mxu0 }
 0x1b1   :  { %v1476_v8 = vadd.f32 %v1475_v27, %v1427_v56 }
 0x1b3   :  { %v1496_v12 = vmax.f32 %v1476_v8, 0.0 }
 0x1b4   :  { %v1380_v6 = vpop.f32.mrf.mxu2 }
 0x1b5   :  { %v2288_v58 = vpack.c.bf16 %v1496_v12, %v1495_v9  ;;  %v1381_v37 = vadd.f32 %v1380_v6, %v1332_v13 }
 0x1b6   :  { %v1429_v39 = vpop.f32.mrf.mxu3  ;;  %v1333_v52 = vpop.f32.mrf.mxu1 }
 0x1b7   :  { %2300 = vst [vmem:[%s3127_s3 + $0x30] sm:$0xff] %v2288_v58   ;;  %v1430_v10 = vadd.f32 %v1429_v39, %v1381_v37  ;;  %v1334_v21 = vadd.f32 %v1333_v52, %v3082_v51 }
 0x1b8   :  { %v1480_v24 = vpop.f32.mrf.mxu0 }
 0x1b9   :  { %v1479_v22 = vadd.f32 %v1478_v17, %v1430_v10 }
 0x1bb   :  { %v1497_v26 = vmax.f32 %v1479_v22, 0.0 }
 0x1bc   :  { %v1382_v15 = vpop.f32.mrf.mxu2 }
 0x1bd   :  { %v1383_v14 = vadd.f32 %v1382_v15, %v1334_v21 }
 0x1be   :  { %v1431_v61 = vpop.f32.mrf.mxu3 }
 0x1bf   :  { %v1432_v23 = vadd.f32 %v1431_v61, %v1383_v14 }
 0x1c1   :  { %v1481_v25 = vadd.f32 %v1480_v24, %v1432_v23 }
 0x1c3   :  { %v1498_v31 = vmax.f32 %v1481_v25, 0.0 }
 0x1c5   :  { %v2293_v28 = vpack.c.bf16 %v1498_v31, %v1497_v26 }
 0x1c7   :  { %2301 = vst [vmem:[%s3127_s3 + $0x38] sm:$0xff] %v2293_v28  }

// kernel: backbone_forward.22
= control target key start
LH: loop header
LB: loop body
LE: loop exit
PB: predicated region body
PF: predicated region fallthrough
CT: control target
= control target key end

     0   :  { %s1716_s1 = inlined_call_operand.vmem [shape: bf16[1152,128], index: 1, kind: input, shape index: {}]   ;;  %s1717_s0 = inlined_call_operand.vmem [shape: bf16[32,1152], index: 0, kind: input, shape index: {}]   ;;  %s1718_s2 = inlined_call_operand.vmem [shape: f32[1,128], index: 2, kind: input, shape index: {}]   ;;  %s1719_s3 = inlined_call_operand.vmem [shape: bf16[32,128], index: 3, kind: output, shape index: {}]  }
   0x1   :  { %v1278_v0 = vld [vmem:[%s1716_s1 + $0x38] sm:$0xff]  ;;  %v1277_v4 = vld [vmem:[%s1716_s1 + $0x30] sm:$0xff]  ;;  %v1276_v8 = vld [vmem:[%s1716_s1 + $0x28] sm:$0xff] }
   0x2   :  { %v1286_v1 = vld [vmem:[%s1716_s1 + $0x78] sm:$0xff]  ;;  %706 = vmatpush.bf16.msra.mxu0 %v1278_v0  ;;  %v1285_v5 = vld [vmem:[%s1716_s1 + $0x70] sm:$0xff]  ;;  %v1284_v9 = vld [vmem:[%s1716_s1 + $0x68] sm:$0xff] }
   0x3   :  { %v1294_v2 = vld [vmem:[%s1716_s1 + $0xb8] sm:$0xff]  ;;  %725 = vmatpush.bf16.msra.mxu1 %v1286_v1  ;;  %v1293_v6 = vld [vmem:[%s1716_s1 + $0xb0] sm:$0xff]  ;;  %v1292_v10 = vld [vmem:[%s1716_s1 + $0xa8] sm:$0xff] }
   0x4   :  { %v1302_v3 = vld [vmem:[%s1716_s1 + $0xf8] sm:$0xff]  ;;  %744 = vmatpush.bf16.msra.mxu2 %v1294_v2  ;;  %v1301_v7 = vld [vmem:[%s1716_s1 + $0xf0] sm:$0xff]  ;;  %v1300_v11 = vld [vmem:[%s1716_s1 + $0xe8] sm:$0xff] }
   0x5   :  { %763 = vmatpush.bf16.msra.mxu3 %v1302_v3  ;;  %v1275_v12 = vld [vmem:[%s1716_s1 + $0x20] sm:$0xff]  ;;  %v1274_v16 = vld [vmem:[%s1716_s1 + $0x18] sm:$0xff]  ;;  %v1273_v20 = vld [vmem:[%s1716_s1 + $0x10] sm:$0xff] }
   0x6   :  { %707 = vmatpush.bf16.msra.mxu0 %v1277_v4  ;;  %v1283_v13 = vld [vmem:[%s1716_s1 + $0x60] sm:$0xff]  ;;  %v1282_v17 = vld [vmem:[%s1716_s1 + $0x58] sm:$0xff]  ;;  %v1281_v21 = vld [vmem:[%s1716_s1 + $0x50] sm:$0xff] }
   0x7   :  { %726 = vmatpush.bf16.msra.mxu1 %v1285_v5  ;;  %v1291_v14 = vld [vmem:[%s1716_s1 + $0xa0] sm:$0xff]  ;;  %v1290_v18 = vld [vmem:[%s1716_s1 + $0x98] sm:$0xff]  ;;  %v1289_v22 = vld [vmem:[%s1716_s1 + $0x90] sm:$0xff] }
   0x8   :  { %745 = vmatpush.bf16.msra.mxu2 %v1293_v6  ;;  %v1299_v15 = vld [vmem:[%s1716_s1 + $0xe0] sm:$0xff]  ;;  %v1298_v19 = vld [vmem:[%s1716_s1 + $0xd8] sm:$0xff]  ;;  %v1297_v23 = vld [vmem:[%s1716_s1 + $0xd0] sm:$0xff] }
   0x9   :  { %764 = vmatpush.bf16.msra.mxu3 %v1301_v7  ;;  %v1272_v24 = vld [vmem:[%s1716_s1 + $0x8] sm:$0xff]  ;;  %v1271_v28 = vld [vmem:[%s1716_s1] sm:$0xff]  ;;  %v905_v39 = vld [vmem:[%s1717_s0 + $0x2c] sm:$0xf0] }
   0xa   :  { %708 = vmatpush.bf16.msra.mxu0 %v1276_v8  ;;  %v1280_v25 = vld [vmem:[%s1716_s1 + $0x48] sm:$0xff]  ;;  %v1279_v29 = vld [vmem:[%s1716_s1 + $0x40] sm:$0xff]  ;;  %v1310_v40 = vld [vmem:[%s1716_s1 + $0x138] sm:$0xff] }
   0xb   :  { %727 = vmatpush.bf16.msra.mxu1 %v1284_v9  ;;  %v1288_v26 = vld [vmem:[%s1716_s1 + $0x88] sm:$0xff]  ;;  %v1287_v30 = vld [vmem:[%s1716_s1 + $0x80] sm:$0xff]  ;;  %v1318_v41 = vld [vmem:[%s1716_s1 + $0x178] sm:$0xff] }
   0xc   :  { %746 = vmatpush.bf16.msra.mxu2 %v1292_v10  ;;  %v1296_v27 = vld [vmem:[%s1716_s1 + $0xc8] sm:$0xff]  ;;  %v1295_v31 = vld [vmem:[%s1716_s1 + $0xc0] sm:$0xff]  ;;  %v1326_v46 = vld [vmem:[%s1716_s1 + $0x1b8] sm:$0xff] }
   0xd   :  { %765 = vmatpush.bf16.msra.mxu3 %v1300_v11  ;;  %v895_v32 = vld [vmem:[%s1717_s0] sm:$0xf]  ;;  %v1257_v33 = vld [vmem:[%s1717_s0 + $0x20] sm:$0xf0]  ;;  %v897_v35 = vld [vmem:[%s1717_s0 + $0x24] sm:$0xf0] }
   0xe   :  { %709 = vmatpush.bf16.msra.mxu0 %v1275_v12  ;;  %v1253_v34 = vld [vmem:[%s1717_s0 + $0x4] sm:$0xf]  ;;  %v903_v36 = vld [vmem:[%s1717_s0 + $0x8] sm:$0xf]  ;;  %v1258_v37 = vld [vmem:[%s1717_s0 + $0x28] sm:$0xf0]  ;;  %v896_v42 = vor.u32 %v1257_v33, %v895_v32 }
   0xf   :  { %728 = vmatpush.bf16.msra.mxu1 %v1283_v13  ;;  %v1254_v38 = vld [vmem:[%s1717_s0 + $0xc] sm:$0xf]  ;;  %v900_v43 = vor.u32 %v1253_v34, %v897_v35  ;;  %v904_v44 = vor.u32 %v1258_v37, %v903_v36  ;;  %v1334_v47 = vld [vmem:[%s1716_s1 + $0x1f8] sm:$0xff]  ;;  %v1309_v48 = vld [vmem:[%s1716_s1 + $0x130] sm:$0xff] }
  0x10   :  { %747 = vmatpush.bf16.msra.mxu2 %v1291_v14  ;;  %v908_v45 = vor.u32 %v1254_v38, %v905_v39  ;;  %v1317_v49 = vld [vmem:[%s1716_s1 + $0x170] sm:$0xff]  ;;  %v1308_v52 = vld [vmem:[%s1716_s1 + $0x128] sm:$0xff]  ;;  %v1307_v56 = vld [vmem:[%s1716_s1 + $0x120] sm:$0xff] }
  0x11   :  { %766 = vmatpush.bf16.msra.mxu3 %v1299_v15  ;;  %v1325_v50 = vld [vmem:[%s1716_s1 + $0x1b0] sm:$0xff]  ;;  %v1316_v53 = vld [vmem:[%s1716_s1 + $0x168] sm:$0xff]  ;;  %v1315_v57 = vld [vmem:[%s1716_s1 + $0x160] sm:$0xff] }
  0x12   :  { %710 = vmatpush.bf16.msra.mxu0 %v1274_v16  ;;  %v1333_v51 = vld [vmem:[%s1716_s1 + $0x1f0] sm:$0xff]  ;;  %v1324_v54 = vld [vmem:[%s1716_s1 + $0x1a8] sm:$0xff]  ;;  %v1323_v58 = vld [vmem:[%s1716_s1 + $0x1a0] sm:$0xff] }
  0x13   :  { %729 = vmatpush.bf16.msra.mxu1 %v1282_v17  ;;  %v1332_v55 = vld [vmem:[%s1716_s1 + $0x1e8] sm:$0xff]  ;;  %v1331_v59 = vld [vmem:[%s1716_s1 + $0x1e0] sm:$0xff]  ;;  %v933_v63 = vld [vmem:[%s1717_s0 + $0x6c] sm:$0xf0] }
  0x14   :  { %748 = vmatpush.bf16.msra.mxu2 %v1290_v18  ;;  %v931_v60 = vld [vmem:[%s1717_s0 + $0x48] sm:$0xf]  ;;  %v1266_v61 = vld [vmem:[%s1717_s0 + $0x68] sm:$0xf0]  ;;  %v939_v0 = vld [vmem:[%s1717_s0 + $0x50] sm:$0xf] }
  0x15   :  { %767 = vmatpush.bf16.msra.mxu3 %v1298_v19  ;;  %v1262_v62 = vld [vmem:[%s1717_s0 + $0x4c] sm:$0xf]  ;;  %v1267_v1 = vld [vmem:[%s1717_s0 + $0x70] sm:$0xf0]  ;;  %v941_v3 = vld [vmem:[%s1717_s0 + $0x74] sm:$0xf0]  ;;  %v932_v6 = vor.u32 %v1266_v61, %v931_v60 }
  0x16   :  { %711 = vmatpush.bf16.msra.mxu0 %v1273_v20  ;;  %v1263_v2 = vld [vmem:[%s1717_s0 + $0x54] sm:$0xf]  ;;  %v1306_v4 = vld [vmem:[%s1716_s1 + $0x118] sm:$0xff]  ;;  %v936_v7 = vor.u32 %v1262_v62, %v933_v63  ;;  %v940_v8 = vor.u32 %v1267_v1, %v939_v0  ;;  %v1304_v16 = vld [vmem:[%s1716_s1 + $0x108] sm:$0xff] }
  0x17   :  { %730 = vmatpush.bf16.msra.mxu1 %v1281_v21  ;;  %v1314_v5 = vld [vmem:[%s1716_s1 + $0x158] sm:$0xff]  ;;  %v944_v9 = vor.u32 %v1263_v2, %v941_v3  ;;  %v1305_v12 = vld [vmem:[%s1716_s1 + $0x110] sm:$0xff]  ;;  %v1312_v17 = vld [vmem:[%s1716_s1 + $0x148] sm:$0xff] }
  0x18   :  { %749 = vmatpush.bf16.msra.mxu2 %v1289_v22  ;;  %v1322_v10 = vld [vmem:[%s1716_s1 + $0x198] sm:$0xff]  ;;  %v1313_v13 = vld [vmem:[%s1716_s1 + $0x150] sm:$0xff]  ;;  %v1320_v18 = vld [vmem:[%s1716_s1 + $0x188] sm:$0xff] }
  0x19   :  { %768 = vmatpush.bf16.msra.mxu3 %v1297_v23  ;;  %v1330_v11 = vld [vmem:[%s1716_s1 + $0x1d8] sm:$0xff]  ;;  %v1321_v14 = vld [vmem:[%s1716_s1 + $0x190] sm:$0xff]  ;;  %v1328_v19 = vld [vmem:[%s1716_s1 + $0x1c8] sm:$0xff] }
  0x1a   :  { %712 = vmatpush.bf16.msra.mxu0 %v1272_v24  ;;  %v1329_v15 = vld [vmem:[%s1716_s1 + $0x1d0] sm:$0xff]  ;;  %v1303_v20 = vld [vmem:[%s1716_s1 + $0x100] sm:$0xff]  ;;  %v1340_v38 = vld [vmem:[%s1716_s1 + $0x228] sm:$0xff] }
  0x1b   :  { %731 = vmatpush.bf16.msra.mxu1 %v1280_v25  ;;  %v1311_v21 = vld [vmem:[%s1716_s1 + $0x140] sm:$0xff]  ;;  %v911_v24 = vld [vmem:[%s1717_s0 + $0x10] sm:$0xf]  ;;  %v1259_v25 = vld [vmem:[%s1717_s0 + $0x30] sm:$0xf0] }
  0x1c   :  { %750 = vmatpush.bf16.msra.mxu2 %v1288_v26  ;;  %v1319_v22 = vld [vmem:[%s1716_s1 + $0x180] sm:$0xff]  ;;  %v1342_v26 = vld [vmem:[%s1716_s1 + $0x238] sm:$0xff]  ;;  %v912_v33 = vor.u32 %v1259_v25, %v911_v24  ;;  %v1341_v37 = vld [vmem:[%s1716_s1 + $0x230] sm:$0xff] }
  0x1d   :  { %769 = vmatpush.bf16.msra.mxu3 %v1296_v27  ;;  %v1327_v23 = vld [vmem:[%s1716_s1 + $0x1c0] sm:$0xff]  ;;  %v1255_v27 = vld [vmem:[%s1717_s0 + $0x14] sm:$0xf] }
  0x1e   :  { %713 = vmatpush.bf16.msra.mxu0 %v1271_v28  ;;  %v913_v28 = vld [vmem:[%s1717_s0 + $0x34] sm:$0xf0]  ;;  %v921_v32 = vld [vmem:[%s1717_s0 + $0x3c] sm:$0xf0] }
  0x1f   :  { %732 = vmatpush.bf16.msra.mxu1 %v1279_v29  ;;  %v919_v29 = vld [vmem:[%s1717_s0 + $0x18] sm:$0xf]  ;;  %v916_v34 = vor.u32 %v1255_v27, %v913_v28  ;;  %v1339_v39 = vld [vmem:[%s1716_s1 + $0x220] sm:$0xff] }
  0x20   :  { %751 = vmatpush.bf16.msra.mxu2 %v1287_v30  ;;  %v1260_v30 = vld [vmem:[%s1717_s0 + $0x38] sm:$0xf0] }
  0x21   :  { %770 = vmatpush.bf16.msra.mxu3 %v1295_v31  ;;  %714 = vmatmul.bf16.vlgmr.msra.gmra.mxu0 %v896_v42  ;;  %v1256_v31 = vld [vmem:[%s1717_s0 + $0x1c] sm:$0xf]  ;;  %v920_v35 = vor.u32 %v1260_v30, %v919_v29 }
  0x22   :  { %782 = vmatpush.bf16.msrb.mxu0 %v1310_v40  ;;  %733 = vmatmul.bf16.vlgmr.msra.gmra.mxu1 %v900_v43  ;;  %v924_v36 = vor.u32 %v1256_v31, %v921_v32  ;;  %v947_v40 = vld [vmem:[%s1717_s0 + $0x58] sm:$0xf]  ;;  %v1264_v42 = vld [vmem:[%s1717_s0 + $0x5c] sm:$0xf]  ;;  %v949_v43 = vld [vmem:[%s1717_s0 + $0x7c] sm:$0xf0] }
  0x23   :  { %801 = vmatpush.bf16.msrb.mxu1 %v1318_v41  ;;  %752 = vmatmul.bf16.vlgmr.msra.gmra.mxu2 %v904_v44  ;;  %v1268_v41 = vld [vmem:[%s1717_s0 + $0x78] sm:$0xf0]  ;;  %v955_v44 = vld [vmem:[%s1717_s0 + $0x60] sm:$0xf] }
  0x24   :  { %771 = vmatmul.bf16.vlgmr.msra.gmra.mxu3 %v908_v45  ;;  %820 = vmatpush.bf16.msrb.mxu2 %v1326_v46  ;;  %v1269_v45 = vld [vmem:[%s1717_s0 + $0x80] sm:$0xf0] }
  0x25   :  { %839 = vmatpush.bf16.msrb.mxu3 %v1334_v47  ;;  %v1265_v46 = vld [vmem:[%s1717_s0 + $0x64] sm:$0xf]  ;;  %v957_v47 = vld [vmem:[%s1717_s0 + $0x84] sm:$0xf0] }
  0x26   :  { %783 = vmatpush.bf16.msrb.mxu0 %v1309_v48  ;;  %v1338_v48 = vld [vmem:[%s1716_s1 + $0x218] sm:$0xff] }
  0x27   :  { %802 = vmatpush.bf16.msrb.mxu1 %v1317_v49  ;;  %v948_v49 = vor.u32 %v1268_v41, %v947_v40 }
  0x28   :  { %821 = vmatpush.bf16.msrb.mxu2 %v1325_v50  ;;  %v952_v50 = vor.u32 %v1264_v42, %v949_v43 }
  0x29   :  { %840 = vmatpush.bf16.msrb.mxu3 %v1333_v51  ;;  %v956_v51 = vor.u32 %v1269_v45, %v955_v44 }
  0x2a   :  { %784 = vmatpush.bf16.msrb.mxu0 %v1308_v52  ;;  %v960_v52 = vor.u32 %v1265_v46, %v957_v47 }
  0x2b   :  { %803 = vmatpush.bf16.msrb.mxu1 %v1316_v53  ;;  %v1337_v53 = vld [vmem:[%s1716_s1 + $0x210] sm:$0xff] }
  0x2c   :  { %822 = vmatpush.bf16.msrb.mxu2 %v1324_v54  ;;  %v1336_v54 = vld [vmem:[%s1716_s1 + $0x208] sm:$0xff] }
  0x2d   :  { %841 = vmatpush.bf16.msrb.mxu3 %v1332_v55  ;;  %v1335_v55 = vld [vmem:[%s1716_s1 + $0x200] sm:$0xff] }
  0x2e   :  { %785 = vmatpush.bf16.msrb.mxu0 %v1307_v56  ;;  %v927_v56 = vld [vmem:[%s1717_s0 + $0x20] sm:$0xf] }
  0x2f   :  { %804 = vmatpush.bf16.msrb.mxu1 %v1315_v57  ;;  %v1261_v57 = vld [vmem:[%s1717_s0 + $0x40] sm:$0xf0] }
  0x30   :  { %823 = vmatpush.bf16.msrb.mxu2 %v1323_v58  ;;  %v963_v58 = vld [vmem:[%s1717_s0 + $0x68] sm:$0xf]  ;;  %v928_v60 = vor.u32 %v1261_v57, %v927_v56 }
  0x31   :  { %842 = vmatpush.bf16.msrb.mxu3 %v1331_v59  ;;  %719 = vmatmul.bf16.gmra.mxu0 %v932_v6  ;;  %v1270_v59 = vld [vmem:[%s1717_s0 + $0x88] sm:$0xf0] }
  0x32   :  { %786 = vmatpush.bf16.msrb.mxu0 %v1306_v4  ;;  %738 = vmatmul.bf16.gmra.mxu1 %v936_v7  ;;  %v964_v61 = vor.u32 %v1270_v59, %v963_v58 }
  0x33   :  { %805 = vmatpush.bf16.msrb.mxu1 %v1314_v5  ;;  %757 = vmatmul.bf16.gmra.mxu2 %v940_v8 }
  0x34   :  { %776 = vmatmul.bf16.gmra.mxu3 %v944_v9  ;;  %824 = vmatpush.bf16.msrb.mxu2 %v1322_v10 }
  0x35   :  { %843 = vmatpush.bf16.msrb.mxu3 %v1330_v11 }
  0x36   :  { %787 = vmatpush.bf16.msrb.mxu0 %v1305_v12 }
  0x37   :  { %806 = vmatpush.bf16.msrb.mxu1 %v1313_v13 }
  0x38   :  { %825 = vmatpush.bf16.msrb.mxu2 %v1321_v14 }
  0x39   :  { %844 = vmatpush.bf16.msrb.mxu3 %v1329_v15 }
  0x3a   :  { %788 = vmatpush.bf16.msrb.mxu0 %v1304_v16 }
  0x3b   :  { %807 = vmatpush.bf16.msrb.mxu1 %v1312_v17 }
  0x3c   :  { %826 = vmatpush.bf16.msrb.mxu2 %v1320_v18 }
  0x3d   :  { %845 = vmatpush.bf16.msrb.mxu3 %v1328_v19 }
  0x3e   :  { %789 = vmatpush.bf16.msrb.mxu0 %v1303_v20  ;;  %v1362_v20 = vld [vmem:[%s1718_s2] ss:$0 sm:$0xff] }
  0x3f   :  { %808 = vmatpush.bf16.msrb.mxu1 %v1311_v21 }
  0x40   :  { %827 = vmatpush.bf16.msrb.mxu2 %v1319_v22 }
  0x41   :  { %846 = vmatpush.bf16.msrb.mxu3 %v1327_v23  ;;  %790 = vmatmul.bf16.vlgmr.msrb.gmra.mxu0 %v912_v33 }
  0x42   :  { %858 = vmatpush.bf16.msra.mxu0 %v1342_v26  ;;  %809 = vmatmul.bf16.vlgmr.msrb.gmra.mxu1 %v916_v34 }
  0x43   :  { %1354 = vmatpush.bf16.msra.mxu1 %v1342_v26  ;;  %828 = vmatmul.bf16.vlgmr.msrb.gmra.mxu2 %v920_v35 }
  0x44   :  { %847 = vmatmul.bf16.vlgmr.msrb.gmra.mxu3 %v924_v36 }
  0x46   :  { %859 = vmatpush.bf16.msra.mxu0 %v1341_v37 }
  0x47   :  { %1355 = vmatpush.bf16.msra.mxu1 %v1341_v37 }
  0x4a   :  { %860 = vmatpush.bf16.msra.mxu0 %v1340_v38 }
  0x4b   :  { %1356 = vmatpush.bf16.msra.mxu1 %v1340_v38 }
  0x4e   :  { %861 = vmatpush.bf16.msra.mxu0 %v1339_v39 }
  0x4f   :  { %1357 = vmatpush.bf16.msra.mxu1 %v1339_v39 }
  0x51   :  { %795 = vmatmul.bf16.gmra.mxu0 %v948_v49 }
  0x52   :  { %862 = vmatpush.bf16.msra.mxu0 %v1338_v48  ;;  %814 = vmatmul.bf16.gmra.mxu1 %v952_v50 }
  0x53   :  { %1358 = vmatpush.bf16.msra.mxu1 %v1338_v48  ;;  %833 = vmatmul.bf16.gmra.mxu2 %v956_v51 }
  0x54   :  { %852 = vmatmul.bf16.gmra.mxu3 %v960_v52 }
  0x56   :  { %863 = vmatpush.bf16.msra.mxu0 %v1337_v53 }
  0x57   :  { %1359 = vmatpush.bf16.msra.mxu1 %v1337_v53 }
  0x5a   :  { %864 = vmatpush.bf16.msra.mxu0 %v1336_v54 }
  0x5b   :  { %1360 = vmatpush.bf16.msra.mxu1 %v1336_v54 }
  0x5e   :  { %865 = vmatpush.bf16.msra.mxu0 %v1335_v55 }
  0x5f   :  { %1361 = vmatpush.bf16.msra.mxu1 %v1335_v55 }
  0x61   :  { %866 = vmatmul.bf16.vlgmr.msra.gmra.mxu0 %v928_v60 }
  0x62   :  { %871 = vmatmul.bf16.vlgmr.msra.gmra.mxu1 %v964_v61 }
  0x9e   :  { %v715_v62 = vpop.f32.mrf.mxu0 }
  0x9f   :  { %v734_v63 = vpop.f32.mrf.mxu1  ;;  %v716_v21 = vadd.f32 %v1362_v20, %v715_v62 }
  0xa1   :  { %v735_v29 = vadd.f32 %v734_v63, %v716_v21 }
  0xa6   :  { %v753_v0 = vpop.f32.mrf.mxu2  ;;  %v717_v2 = vpop.f32.mrf.mxu0 }
  0xa7   :  { %v772_v1 = vpop.f32.mrf.mxu3  ;;  %v736_v3 = vpop.f32.mrf.mxu1  ;;  %v718_v26 = vadd.f32 %v1362_v20, %v717_v2  ;;  %v754_v31 = vadd.f32 %v753_v0, %v735_v29 }
  0xa9   :  { %v737_v32 = vadd.f32 %v736_v3, %v718_v26  ;;  %v773_v40 = vadd.f32 %v772_v1, %v754_v31 }
  0xae   :  { %v755_v4 = vpop.f32.mrf.mxu2  ;;  %v720_v6 = vpop.f32.mrf.mxu0 }
  0xaf   :  { %v774_v5 = vpop.f32.mrf.mxu3  ;;  %v739_v7 = vpop.f32.mrf.mxu1  ;;  %v721_v22 = vadd.f32 %v1362_v20, %v720_v6  ;;  %v756_v35 = vadd.f32 %v755_v4, %v737_v32 }
  0xb1   :  { %v740_v30 = vadd.f32 %v739_v7, %v721_v22  ;;  %v775_v42 = vadd.f32 %v774_v5, %v756_v35 }
  0xb6   :  { %v758_v8 = vpop.f32.mrf.mxu2  ;;  %v722_v10 = vpop.f32.mrf.mxu0 }
  0xb7   :  { %v777_v9 = vpop.f32.mrf.mxu3  ;;  %v741_v11 = vpop.f32.mrf.mxu1  ;;  %v723_v27 = vadd.f32 %v1362_v20, %v722_v10  ;;  %v759_v33 = vadd.f32 %v758_v8, %v740_v30 }
  0xb9   :  { %v742_v34 = vadd.f32 %v741_v11, %v723_v27  ;;  %v778_v41 = vadd.f32 %v777_v9, %v759_v33 }
  0xbe   :  { %v760_v12 = vpop.f32.mrf.mxu2  ;;  %v791_v14 = vpop.f32.mrf.mxu0 }
  0xbf   :  { %v779_v13 = vpop.f32.mrf.mxu3  ;;  %v810_v15 = vpop.f32.mrf.mxu1  ;;  %v761_v36 = vadd.f32 %v760_v12, %v742_v34  ;;  %v792_v44 = vadd.f32 %v791_v14, %v773_v40 }
  0xc1   :  { %v780_v43 = vadd.f32 %v779_v13, %v761_v36  ;;  %v811_v49 = vadd.f32 %v810_v15, %v792_v44 }
  0xc6   :  { %v829_v16 = vpop.f32.mrf.mxu2  ;;  %v793_v18 = vpop.f32.mrf.mxu0 }
  0xc7   :  { %v848_v17 = vpop.f32.mrf.mxu3  ;;  %v812_v19 = vpop.f32.mrf.mxu1  ;;  %v794_v47 = vadd.f32 %v793_v18, %v775_v42  ;;  %v830_v54 = vadd.f32 %v829_v16, %v811_v49 }
  0xc9   :  { %v813_v55 = vadd.f32 %v812_v19, %v794_v47  ;;  %v849_v60 = vadd.f32 %v848_v17, %v830_v54 }
  0xce   :  { %v831_v23 = vpop.f32.mrf.mxu2  ;;  %v796_v24 = vpop.f32.mrf.mxu0 }
  0xcf   :  { %v815_v25 = vpop.f32.mrf.mxu1  ;;  %v850_v28 = vpop.f32.mrf.mxu3  ;;  %v797_v45 = vadd.f32 %v796_v24, %v778_v41  ;;  %v832_v58 = vadd.f32 %v831_v23, %v813_v55 }
  0xd1   :  { %v816_v50 = vadd.f32 %v815_v25, %v797_v45  ;;  %v851_v63 = vadd.f32 %v850_v28, %v832_v58 }
  0xd6   :  { %v834_v37 = vpop.f32.mrf.mxu2  ;;  %v798_v38 = vpop.f32.mrf.mxu0 }
  0xd7   :  { %v817_v39 = vpop.f32.mrf.mxu1  ;;  %v853_v46 = vpop.f32.mrf.mxu3  ;;  %v799_v48 = vadd.f32 %v798_v38, %v780_v43  ;;  %v835_v56 = vadd.f32 %v834_v37, %v816_v50 }
  0xd9   :  { %v818_v57 = vadd.f32 %v817_v39, %v799_v48  ;;  %v854_v61 = vadd.f32 %v853_v46, %v835_v56 }
  0xde   :  { %v836_v51 = vpop.f32.mrf.mxu2  ;;  %v867_v52 = vpop.f32.mrf.mxu0 }
  0xdf   :  { %v872_v53 = vpop.f32.mrf.mxu1  ;;  %v837_v59 = vadd.f32 %v836_v51, %v818_v57  ;;  %v855_v62 = vpop.f32.mrf.mxu3  ;;  %v868_v1 = vadd.f32 %v867_v52, %v849_v60 }
  0xe0   :  { %v873_v2 = vadd.f32 %v872_v53, %v854_v61 }
  0xe1   :  { %v856_v0 = vadd.f32 %v855_v62, %v837_v59  ;;  %v877_v7 = vmax.f32 %v868_v1, 0.0 }
  0xe2   :  { %v879_v8 = vmax.f32 %v873_v2, 0.0 }
  0xe6   :  { %v869_v3 = vpop.f32.mrf.mxu0 }
  0xe7   :  { %v874_v4 = vpop.f32.mrf.mxu1  ;;  %v870_v5 = vadd.f32 %v869_v3, %v851_v63 }
  0xe8   :  { %v875_v6 = vadd.f32 %v874_v4, %v856_v0 }
  0xe9   :  { %v878_v9 = vmax.f32 %v870_v5, 0.0 }
  0xea   :  { %v880_v10 = vmax.f32 %v875_v6, 0.0 }
  0xeb   :  { %v1346_v11 = vpack.c.bf16 %v878_v9, %v877_v7 }
  0xec   :  { %v1351_v12 = vpack.c.bf16 %v880_v10, %v879_v8 }
  0xed   :  { %1347 = vst [vmem:[%s1719_s3] sm:$0xff] %v1346_v11  }
  0xee   :  { %1353 = vst [vmem:[%s1719_s3 + $0x8] sm:$0xff] %v1351_v12  }

// kernel: backbone_forward.28
= control target key start
LH: loop header
LB: loop body
LE: loop exit
PB: predicated region body
PF: predicated region fallthrough
CT: control target
= control target key end

     0   :  { %s354_s1 = inlined_call_operand.vmem [shape: bf16[128,256], index: 1, kind: input, shape index: {}]   ;;  %s355_s0 = inlined_call_operand.vmem [shape: bf16[8,128], index: 0, kind: input, shape index: {}]   ;;  %s356_s2 = inlined_call_operand.vmem [shape: f32[1,256], index: 2, kind: input, shape index: {}]   ;;  %s357_s3 = inlined_call_operand.vmem [shape: bf16[8,256], index: 3, kind: output, shape index: {}]  }
   0x1   :  { %v207_v0 = vld [vmem:[%s354_s1 + $0x70] sm:$0xf]  ;;  %v228_v1 = vld [vmem:[%s354_s1 + $0x74] sm:$0xf0]  ;;  %v227_v2 = vld [vmem:[%s354_s1 + $0x74] sm:$0xf] }
   0x2   :  { %v208_v3 = vor.u32 %v228_v1, %v207_v0  ;;  %v209_v4 = vld [vmem:[%s354_s1 + $0x78] sm:$0xf0]  ;;  %v199_v5 = vld [vmem:[%s354_s1 + $0x60] sm:$0xf]  ;;  %v226_v6 = vld [vmem:[%s354_s1 + $0x64] sm:$0xf0] }
   0x3   :  { %v212_v7 = vor.u32 %v227_v2, %v209_v4  ;;  %v225_v8 = vld [vmem:[%s354_s1 + $0x64] sm:$0xf]  ;;  %v201_v9 = vld [vmem:[%s354_s1 + $0x68] sm:$0xf0]  ;;  %v200_v10 = vor.u32 %v226_v6, %v199_v5  ;;  %v191_v12 = vld [vmem:[%s354_s1 + $0x50] sm:$0xf] }
   0x4   :  { %117 = vmatpush.bf16.msra.mxu0 %v208_v3  ;;  %v204_v11 = vor.u32 %v225_v8, %v201_v9  ;;  %v224_v13 = vld [vmem:[%s354_s1 + $0x54] sm:$0xf0]  ;;  %v223_v14 = vld [vmem:[%s354_s1 + $0x54] sm:$0xf]  ;;  %v193_v15 = vld [vmem:[%s354_s1 + $0x58] sm:$0xf0] }
   0x5   :  { %130 = vmatpush.bf16.msra.mxu1 %v212_v7  ;;  %v192_v16 = vor.u32 %v224_v13, %v191_v12  ;;  %v196_v17 = vor.u32 %v223_v14, %v193_v15  ;;  %v183_v18 = vld [vmem:[%s354_s1 + $0x40] sm:$0xf]  ;;  %v222_v19 = vld [vmem:[%s354_s1 + $0x44] sm:$0xf0]  ;;  %v221_v20 = vld [vmem:[%s354_s1 + $0x44] sm:$0xf] }
   0x6   :  { %v185_v21 = vld [vmem:[%s354_s1 + $0x48] sm:$0xf0]  ;;  %v184_v22 = vor.u32 %v222_v19, %v183_v18  ;;  %v175_v24 = vld [vmem:[%s354_s1 + $0x30] sm:$0xf]  ;;  %v220_v25 = vld [vmem:[%s354_s1 + $0x34] sm:$0xf0] }
   0x7   :  { %v188_v23 = vor.u32 %v221_v20, %v185_v21  ;;  %v219_v26 = vld [vmem:[%s354_s1 + $0x34] sm:$0xf]  ;;  %v177_v27 = vld [vmem:[%s354_s1 + $0x38] sm:$0xf0]  ;;  %v176_v28 = vor.u32 %v220_v25, %v175_v24  ;;  %v167_v30 = vld [vmem:[%s354_s1 + $0x20] sm:$0xf] }
   0x8   :  { %118 = vmatpush.bf16.msra.mxu0 %v200_v10  ;;  %v180_v29 = vor.u32 %v219_v26, %v177_v27  ;;  %v218_v31 = vld [vmem:[%s354_s1 + $0x24] sm:$0xf0]  ;;  %v217_v32 = vld [vmem:[%s354_s1 + $0x24] sm:$0xf]  ;;  %v169_v33 = vld [vmem:[%s354_s1 + $0x28] sm:$0xf0] }
   0x9   :  { %131 = vmatpush.bf16.msra.mxu1 %v204_v11  ;;  %v168_v34 = vor.u32 %v218_v31, %v167_v30  ;;  %v172_v35 = vor.u32 %v217_v32, %v169_v33  ;;  %v159_v36 = vld [vmem:[%s354_s1 + $0x10] sm:$0xf]  ;;  %v216_v37 = vld [vmem:[%s354_s1 + $0x14] sm:$0xf0]  ;;  %v215_v38 = vld [vmem:[%s354_s1 + $0x14] sm:$0xf] }
   0xa   :  { %v161_v39 = vld [vmem:[%s354_s1 + $0x18] sm:$0xf0]  ;;  %v160_v40 = vor.u32 %v216_v37, %v159_v36  ;;  %v151_v42 = vld [vmem:[%s354_s1] sm:$0xf]  ;;  %v214_v43 = vld [vmem:[%s354_s1 + $0x4] sm:$0xf0] }
   0xb   :  { %v164_v41 = vor.u32 %v215_v38, %v161_v39  ;;  %v213_v44 = vld [vmem:[%s354_s1 + $0x4] sm:$0xf]  ;;  %v153_v45 = vld [vmem:[%s354_s1 + $0x8] sm:$0xf0]  ;;  %v152_v46 = vor.u32 %v214_v43, %v151_v42  ;;  %v14_v48 = vld [vmem:[%s355_s0] sm:$0xf] }
   0xc   :  { %119 = vmatpush.bf16.msra.mxu0 %v192_v16  ;;  %v156_v47 = vor.u32 %v213_v44, %v153_v45  ;;  %v31_v49 = vld [vmem:[%s356_s2] sm:$0x3] }
   0xd   :  { %132 = vmatpush.bf16.msra.mxu1 %v196_v17  ;;  %v33_v50 = vperm.slane %v31_v49, 0  ;;  %v34_v51 = vperm.slane %v31_v49, 1 }
  0x10   :  { %120 = vmatpush.bf16.msra.mxu0 %v184_v22 }
  0x11   :  { %133 = vmatpush.bf16.msra.mxu1 %v188_v23 }
  0x14   :  { %121 = vmatpush.bf16.msra.mxu0 %v176_v28 }
  0x15   :  { %134 = vmatpush.bf16.msra.mxu1 %v180_v29 }
  0x18   :  { %122 = vmatpush.bf16.msra.mxu0 %v168_v34 }
  0x19   :  { %135 = vmatpush.bf16.msra.mxu1 %v172_v35 }
  0x1c   :  { %123 = vmatpush.bf16.msra.mxu0 %v160_v40 }
  0x1d   :  { %136 = vmatpush.bf16.msra.mxu1 %v164_v41 }
  0x20   :  { %124 = vmatpush.bf16.msra.mxu0 %v152_v46 }
  0x21   :  { %137 = vmatpush.bf16.msra.mxu1 %v156_v47 }
  0x23   :  { %125 = vmatmul.bf16.vlgmr.msra.gmra.mxu0 %v14_v48 }
  0x24   :  { %138 = vmatmul.bf16.vlgmr.msra.gmra.mxu1 %v14_v48 }
  0xa0   :  { %v126_v52 = vpop.f32.mrf.mxu0 }
  0xa1   :  { %v127_v53 = vadd.f32 %v126_v52, %v33_v50  ;;  %v139_v54 = vpop.f32.mrf.mxu1 }
  0xa2   :  { %v140_v55 = vadd.f32 %v139_v54, %v34_v51 }
  0xa4   :  { %v143_v56 = vpack.c.bf16 %v140_v55, %v127_v53 }
  0xa6   :  { %144 = vst [vmem:[%s357_s3] sm:$0xff] %v143_v56 }
  0xa8   :  { %v128_v57 = vpop.f32.mrf.mxu0 }
  0xa9   :  { %v141_v58 = vpop.f32.mrf.mxu1 }

// kernel: backbone_forward.24
= control target key start
LH: loop header
LB: loop body
LE: loop exit
PB: predicated region body
PF: predicated region fallthrough
CT: control target
= control target key end

     0   :  { %s1751_s1 = inlined_call_operand.vmem [shape: bf16[1152,128], index: 1, kind: input, shape index: {}]   ;;  %s1752_s0 = inlined_call_operand.vmem [shape: bf16[32,1152], index: 0, kind: input, shape index: {}]   ;;  %s1753_s2 = inlined_call_operand.vmem [shape: f32[1,128], index: 2, kind: input, shape index: {}]   ;;  %s1754_s3 = inlined_call_operand.vmem [shape: bf16[32,128], index: 3, kind: input, shape index: {}]   ;;  %s1755_s4 = inlined_call_operand.vmem [shape: bf16[32,128], index: 4, kind: output, shape index: {}]  }
   0x1   :  { %v1293_v0 = vld [vmem:[%s1751_s1 + $0x38] sm:$0xff]  ;;  %v1292_v4 = vld [vmem:[%s1751_s1 + $0x30] sm:$0xff]  ;;  %v1291_v8 = vld [vmem:[%s1751_s1 + $0x28] sm:$0xff] }
   0x2   :  { %v1301_v1 = vld [vmem:[%s1751_s1 + $0x78] sm:$0xff]  ;;  %709 = vmatpush.bf16.msra.mxu0 %v1293_v0  ;;  %v1300_v5 = vld [vmem:[%s1751_s1 + $0x70] sm:$0xff]  ;;  %v1299_v9 = vld [vmem:[%s1751_s1 + $0x68] sm:$0xff] }
   0x3   :  { %v1309_v2 = vld [vmem:[%s1751_s1 + $0xb8] sm:$0xff]  ;;  %728 = vmatpush.bf16.msra.mxu1 %v1301_v1  ;;  %v1308_v6 = vld [vmem:[%s1751_s1 + $0xb0] sm:$0xff]  ;;  %v1307_v10 = vld [vmem:[%s1751_s1 + $0xa8] sm:$0xff] }
   0x4   :  { %v1317_v3 = vld [vmem:[%s1751_s1 + $0xf8] sm:$0xff]  ;;  %747 = vmatpush.bf16.msra.mxu2 %v1309_v2  ;;  %v1316_v7 = vld [vmem:[%s1751_s1 + $0xf0] sm:$0xff]  ;;  %v1315_v11 = vld [vmem:[%s1751_s1 + $0xe8] sm:$0xff] }
   0x5   :  { %766 = vmatpush.bf16.msra.mxu3 %v1317_v3  ;;  %v1290_v12 = vld [vmem:[%s1751_s1 + $0x20] sm:$0xff]  ;;  %v1289_v16 = vld [vmem:[%s1751_s1 + $0x18] sm:$0xff]  ;;  %v1288_v20 = vld [vmem:[%s1751_s1 + $0x10] sm:$0xff] }
   0x6   :  { %710 = vmatpush.bf16.msra.mxu0 %v1292_v4  ;;  %v1298_v13 = vld [vmem:[%s1751_s1 + $0x60] sm:$0xff]  ;;  %v1297_v17 = vld [vmem:[%s1751_s1 + $0x58] sm:$0xff]  ;;  %v1296_v21 = vld [vmem:[%s1751_s1 + $0x50] sm:$0xff] }
   0x7   :  { %729 = vmatpush.bf16.msra.mxu1 %v1300_v5  ;;  %v1306_v14 = vld [vmem:[%s1751_s1 + $0xa0] sm:$0xff]  ;;  %v1305_v18 = vld [vmem:[%s1751_s1 + $0x98] sm:$0xff]  ;;  %v1304_v22 = vld [vmem:[%s1751_s1 + $0x90] sm:$0xff] }
   0x8   :  { %748 = vmatpush.bf16.msra.mxu2 %v1308_v6  ;;  %v1314_v15 = vld [vmem:[%s1751_s1 + $0xe0] sm:$0xff]  ;;  %v1313_v19 = vld [vmem:[%s1751_s1 + $0xd8] sm:$0xff]  ;;  %v1312_v23 = vld [vmem:[%s1751_s1 + $0xd0] sm:$0xff] }
   0x9   :  { %767 = vmatpush.bf16.msra.mxu3 %v1316_v7  ;;  %v1287_v24 = vld [vmem:[%s1751_s1 + $0x8] sm:$0xff]  ;;  %v1286_v28 = vld [vmem:[%s1751_s1] sm:$0xff]  ;;  %v920_v39 = vld [vmem:[%s1752_s0 + $0x2c] sm:$0xf0] }
   0xa   :  { %711 = vmatpush.bf16.msra.mxu0 %v1291_v8  ;;  %v1295_v25 = vld [vmem:[%s1751_s1 + $0x48] sm:$0xff]  ;;  %v1294_v29 = vld [vmem:[%s1751_s1 + $0x40] sm:$0xff]  ;;  %v1325_v40 = vld [vmem:[%s1751_s1 + $0x138] sm:$0xff] }
   0xb   :  { %730 = vmatpush.bf16.msra.mxu1 %v1299_v9  ;;  %v1303_v26 = vld [vmem:[%s1751_s1 + $0x88] sm:$0xff]  ;;  %v1302_v30 = vld [vmem:[%s1751_s1 + $0x80] sm:$0xff]  ;;  %v1333_v41 = vld [vmem:[%s1751_s1 + $0x178] sm:$0xff] }
   0xc   :  { %749 = vmatpush.bf16.msra.mxu2 %v1307_v10  ;;  %v1311_v27 = vld [vmem:[%s1751_s1 + $0xc8] sm:$0xff]  ;;  %v1310_v31 = vld [vmem:[%s1751_s1 + $0xc0] sm:$0xff]  ;;  %v1341_v46 = vld [vmem:[%s1751_s1 + $0x1b8] sm:$0xff] }
   0xd   :  { %768 = vmatpush.bf16.msra.mxu3 %v1315_v11  ;;  %v910_v32 = vld [vmem:[%s1752_s0] sm:$0xf]  ;;  %v1272_v33 = vld [vmem:[%s1752_s0 + $0x20] sm:$0xf0]  ;;  %v912_v35 = vld [vmem:[%s1752_s0 + $0x24] sm:$0xf0] }
   0xe   :  { %712 = vmatpush.bf16.msra.mxu0 %v1290_v12  ;;  %v1268_v34 = vld [vmem:[%s1752_s0 + $0x4] sm:$0xf]  ;;  %v918_v36 = vld [vmem:[%s1752_s0 + $0x8] sm:$0xf]  ;;  %v1273_v37 = vld [vmem:[%s1752_s0 + $0x28] sm:$0xf0]  ;;  %v911_v42 = vor.u32 %v1272_v33, %v910_v32 }
   0xf   :  { %731 = vmatpush.bf16.msra.mxu1 %v1298_v13  ;;  %v1269_v38 = vld [vmem:[%s1752_s0 + $0xc] sm:$0xf]  ;;  %v915_v43 = vor.u32 %v1268_v34, %v912_v35  ;;  %v919_v44 = vor.u32 %v1273_v37, %v918_v36  ;;  %v1349_v47 = vld [vmem:[%s1751_s1 + $0x1f8] sm:$0xff]  ;;  %v1324_v48 = vld [vmem:[%s1751_s1 + $0x130] sm:$0xff] }
  0x10   :  { %750 = vmatpush.bf16.msra.mxu2 %v1306_v14  ;;  %v923_v45 = vor.u32 %v1269_v38, %v920_v39  ;;  %v1332_v49 = vld [vmem:[%s1751_s1 + $0x170] sm:$0xff]  ;;  %v1323_v52 = vld [vmem:[%s1751_s1 + $0x128] sm:$0xff]  ;;  %v1322_v56 = vld [vmem:[%s1751_s1 + $0x120] sm:$0xff] }
  0x11   :  { %769 = vmatpush.bf16.msra.mxu3 %v1314_v15  ;;  %v1340_v50 = vld [vmem:[%s1751_s1 + $0x1b0] sm:$0xff]  ;;  %v1331_v53 = vld [vmem:[%s1751_s1 + $0x168] sm:$0xff]  ;;  %v1330_v57 = vld [vmem:[%s1751_s1 + $0x160] sm:$0xff] }
  0x12   :  { %713 = vmatpush.bf16.msra.mxu0 %v1289_v16  ;;  %v1348_v51 = vld [vmem:[%s1751_s1 + $0x1f0] sm:$0xff]  ;;  %v1339_v54 = vld [vmem:[%s1751_s1 + $0x1a8] sm:$0xff]  ;;  %v1338_v58 = vld [vmem:[%s1751_s1 + $0x1a0] sm:$0xff] }
  0x13   :  { %732 = vmatpush.bf16.msra.mxu1 %v1297_v17  ;;  %v1347_v55 = vld [vmem:[%s1751_s1 + $0x1e8] sm:$0xff]  ;;  %v1346_v59 = vld [vmem:[%s1751_s1 + $0x1e0] sm:$0xff]  ;;  %v948_v63 = vld [vmem:[%s1752_s0 + $0x6c] sm:$0xf0] }
  0x14   :  { %751 = vmatpush.bf16.msra.mxu2 %v1305_v18  ;;  %v946_v60 = vld [vmem:[%s1752_s0 + $0x48] sm:$0xf]  ;;  %v1281_v61 = vld [vmem:[%s1752_s0 + $0x68] sm:$0xf0]  ;;  %v954_v0 = vld [vmem:[%s1752_s0 + $0x50] sm:$0xf] }
  0x15   :  { %770 = vmatpush.bf16.msra.mxu3 %v1313_v19  ;;  %v1277_v62 = vld [vmem:[%s1752_s0 + $0x4c] sm:$0xf]  ;;  %v1282_v1 = vld [vmem:[%s1752_s0 + $0x70] sm:$0xf0]  ;;  %v956_v3 = vld [vmem:[%s1752_s0 + $0x74] sm:$0xf0]  ;;  %v947_v6 = vor.u32 %v1281_v61, %v946_v60 }
  0x16   :  { %714 = vmatpush.bf16.msra.mxu0 %v1288_v20  ;;  %v1278_v2 = vld [vmem:[%s1752_s0 + $0x54] sm:$0xf]  ;;  %v1321_v4 = vld [vmem:[%s1751_s1 + $0x118] sm:$0xff]  ;;  %v951_v7 = vor.u32 %v1277_v62, %v948_v63  ;;  %v955_v8 = vor.u32 %v1282_v1, %v954_v0  ;;  %v1319_v16 = vld [vmem:[%s1751_s1 + $0x108] sm:$0xff] }
  0x17   :  { %733 = vmatpush.bf16.msra.mxu1 %v1296_v21  ;;  %v1329_v5 = vld [vmem:[%s1751_s1 + $0x158] sm:$0xff]  ;;  %v959_v9 = vor.u32 %v1278_v2, %v956_v3  ;;  %v1320_v12 = vld [vmem:[%s1751_s1 + $0x110] sm:$0xff]  ;;  %v1327_v17 = vld [vmem:[%s1751_s1 + $0x148] sm:$0xff] }
  0x18   :  { %752 = vmatpush.bf16.msra.mxu2 %v1304_v22  ;;  %v1337_v10 = vld [vmem:[%s1751_s1 + $0x198] sm:$0xff]  ;;  %v1328_v13 = vld [vmem:[%s1751_s1 + $0x150] sm:$0xff]  ;;  %v1335_v18 = vld [vmem:[%s1751_s1 + $0x188] sm:$0xff] }
  0x19   :  { %771 = vmatpush.bf16.msra.mxu3 %v1312_v23  ;;  %v1345_v11 = vld [vmem:[%s1751_s1 + $0x1d8] sm:$0xff]  ;;  %v1336_v14 = vld [vmem:[%s1751_s1 + $0x190] sm:$0xff]  ;;  %v1343_v19 = vld [vmem:[%s1751_s1 + $0x1c8] sm:$0xff] }
  0x1a   :  { %715 = vmatpush.bf16.msra.mxu0 %v1287_v24  ;;  %v1344_v15 = vld [vmem:[%s1751_s1 + $0x1d0] sm:$0xff]  ;;  %v1318_v20 = vld [vmem:[%s1751_s1 + $0x100] sm:$0xff]  ;;  %v1355_v38 = vld [vmem:[%s1751_s1 + $0x228] sm:$0xff] }
  0x1b   :  { %734 = vmatpush.bf16.msra.mxu1 %v1295_v25  ;;  %v1326_v21 = vld [vmem:[%s1751_s1 + $0x140] sm:$0xff]  ;;  %v926_v24 = vld [vmem:[%s1752_s0 + $0x10] sm:$0xf]  ;;  %v1274_v25 = vld [vmem:[%s1752_s0 + $0x30] sm:$0xf0] }
  0x1c   :  { %753 = vmatpush.bf16.msra.mxu2 %v1303_v26  ;;  %v1334_v22 = vld [vmem:[%s1751_s1 + $0x180] sm:$0xff]  ;;  %v1357_v26 = vld [vmem:[%s1751_s1 + $0x238] sm:$0xff]  ;;  %v927_v33 = vor.u32 %v1274_v25, %v926_v24  ;;  %v1356_v37 = vld [vmem:[%s1751_s1 + $0x230] sm:$0xff] }
  0x1d   :  { %772 = vmatpush.bf16.msra.mxu3 %v1311_v27  ;;  %v1342_v23 = vld [vmem:[%s1751_s1 + $0x1c0] sm:$0xff]  ;;  %v1270_v27 = vld [vmem:[%s1752_s0 + $0x14] sm:$0xf] }
  0x1e   :  { %716 = vmatpush.bf16.msra.mxu0 %v1286_v28  ;;  %v928_v28 = vld [vmem:[%s1752_s0 + $0x34] sm:$0xf0]  ;;  %v936_v32 = vld [vmem:[%s1752_s0 + $0x3c] sm:$0xf0] }
  0x1f   :  { %735 = vmatpush.bf16.msra.mxu1 %v1294_v29  ;;  %v934_v29 = vld [vmem:[%s1752_s0 + $0x18] sm:$0xf]  ;;  %v931_v34 = vor.u32 %v1270_v27, %v928_v28  ;;  %v1354_v39 = vld [vmem:[%s1751_s1 + $0x220] sm:$0xff] }
  0x20   :  { %754 = vmatpush.bf16.msra.mxu2 %v1302_v30  ;;  %v1275_v30 = vld [vmem:[%s1752_s0 + $0x38] sm:$0xf0] }
  0x21   :  { %773 = vmatpush.bf16.msra.mxu3 %v1310_v31  ;;  %717 = vmatmul.bf16.vlgmr.msra.gmra.mxu0 %v911_v42  ;;  %v1271_v31 = vld [vmem:[%s1752_s0 + $0x1c] sm:$0xf]  ;;  %v935_v35 = vor.u32 %v1275_v30, %v934_v29 }
  0x22   :  { %785 = vmatpush.bf16.msrb.mxu0 %v1325_v40  ;;  %736 = vmatmul.bf16.vlgmr.msra.gmra.mxu1 %v915_v43  ;;  %v939_v36 = vor.u32 %v1271_v31, %v936_v32  ;;  %v962_v40 = vld [vmem:[%s1752_s0 + $0x58] sm:$0xf]  ;;  %v1279_v42 = vld [vmem:[%s1752_s0 + $0x5c] sm:$0xf]  ;;  %v964_v43 = vld [vmem:[%s1752_s0 + $0x7c] sm:$0xf0] }
  0x23   :  { %804 = vmatpush.bf16.msrb.mxu1 %v1333_v41  ;;  %755 = vmatmul.bf16.vlgmr.msra.gmra.mxu2 %v919_v44  ;;  %v1283_v41 = vld [vmem:[%s1752_s0 + $0x78] sm:$0xf0]  ;;  %v970_v44 = vld [vmem:[%s1752_s0 + $0x60] sm:$0xf] }
  0x24   :  { %774 = vmatmul.bf16.vlgmr.msra.gmra.mxu3 %v923_v45  ;;  %823 = vmatpush.bf16.msrb.mxu2 %v1341_v46  ;;  %v1284_v45 = vld [vmem:[%s1752_s0 + $0x80] sm:$0xf0] }
  0x25   :  { %842 = vmatpush.bf16.msrb.mxu3 %v1349_v47  ;;  %v1280_v46 = vld [vmem:[%s1752_s0 + $0x64] sm:$0xf]  ;;  %v972_v47 = vld [vmem:[%s1752_s0 + $0x84] sm:$0xf0] }
  0x26   :  { %786 = vmatpush.bf16.msrb.mxu0 %v1324_v48  ;;  %v1353_v48 = vld [vmem:[%s1751_s1 + $0x218] sm:$0xff] }
  0x27   :  { %805 = vmatpush.bf16.msrb.mxu1 %v1332_v49  ;;  %v963_v49 = vor.u32 %v1283_v41, %v962_v40 }
  0x28   :  { %824 = vmatpush.bf16.msrb.mxu2 %v1340_v50  ;;  %v967_v50 = vor.u32 %v1279_v42, %v964_v43 }
  0x29   :  { %843 = vmatpush.bf16.msrb.mxu3 %v1348_v51  ;;  %v971_v51 = vor.u32 %v1284_v45, %v970_v44 }
  0x2a   :  { %787 = vmatpush.bf16.msrb.mxu0 %v1323_v52  ;;  %v975_v52 = vor.u32 %v1280_v46, %v972_v47 }
  0x2b   :  { %806 = vmatpush.bf16.msrb.mxu1 %v1331_v53  ;;  %v1352_v53 = vld [vmem:[%s1751_s1 + $0x210] sm:$0xff] }
  0x2c   :  { %825 = vmatpush.bf16.msrb.mxu2 %v1339_v54  ;;  %v1351_v54 = vld [vmem:[%s1751_s1 + $0x208] sm:$0xff] }
  0x2d   :  { %844 = vmatpush.bf16.msrb.mxu3 %v1347_v55  ;;  %v1350_v55 = vld [vmem:[%s1751_s1 + $0x200] sm:$0xff] }
  0x2e   :  { %788 = vmatpush.bf16.msrb.mxu0 %v1322_v56  ;;  %v942_v56 = vld [vmem:[%s1752_s0 + $0x20] sm:$0xf] }
  0x2f   :  { %807 = vmatpush.bf16.msrb.mxu1 %v1330_v57  ;;  %v1276_v57 = vld [vmem:[%s1752_s0 + $0x40] sm:$0xf0] }
  0x30   :  { %826 = vmatpush.bf16.msrb.mxu2 %v1338_v58  ;;  %v978_v58 = vld [vmem:[%s1752_s0 + $0x68] sm:$0xf]  ;;  %v943_v60 = vor.u32 %v1276_v57, %v942_v56 }
  0x31   :  { %845 = vmatpush.bf16.msrb.mxu3 %v1346_v59  ;;  %722 = vmatmul.bf16.gmra.mxu0 %v947_v6  ;;  %v1285_v59 = vld [vmem:[%s1752_s0 + $0x88] sm:$0xf0] }
  0x32   :  { %789 = vmatpush.bf16.msrb.mxu0 %v1321_v4  ;;  %741 = vmatmul.bf16.gmra.mxu1 %v951_v7  ;;  %v979_v61 = vor.u32 %v1285_v59, %v978_v58  ;;  %v1359_v58 = vld [vmem:[%s1754_s3] sm:$0xff]   ;;  %v1376_v59 = vld [vmem:[%s1754_s3 + $0x8] sm:$0xff]  }
  0x33   :  { %808 = vmatpush.bf16.msrb.mxu1 %v1329_v5  ;;  %760 = vmatmul.bf16.gmra.mxu2 %v955_v8 }
  0x34   :  { %779 = vmatmul.bf16.gmra.mxu3 %v959_v9  ;;  %827 = vmatpush.bf16.msrb.mxu2 %v1337_v10 }
  0x35   :  { %846 = vmatpush.bf16.msrb.mxu3 %v1345_v11 }
  0x36   :  { %790 = vmatpush.bf16.msrb.mxu0 %v1320_v12 }
  0x37   :  { %809 = vmatpush.bf16.msrb.mxu1 %v1328_v13 }
  0x38   :  { %828 = vmatpush.bf16.msrb.mxu2 %v1336_v14 }
  0x39   :  { %847 = vmatpush.bf16.msrb.mxu3 %v1344_v15 }
  0x3a   :  { %791 = vmatpush.bf16.msrb.mxu0 %v1319_v16 }
  0x3b   :  { %810 = vmatpush.bf16.msrb.mxu1 %v1327_v17 }
  0x3c   :  { %829 = vmatpush.bf16.msrb.mxu2 %v1335_v18 }
  0x3d   :  { %848 = vmatpush.bf16.msrb.mxu3 %v1343_v19 }
  0x3e   :  { %792 = vmatpush.bf16.msrb.mxu0 %v1318_v20  ;;  %v1386_v20 = vld [vmem:[%s1753_s2] ss:$0 sm:$0xff] }
  0x3f   :  { %811 = vmatpush.bf16.msrb.mxu1 %v1326_v21 }
  0x40   :  { %830 = vmatpush.bf16.msrb.mxu2 %v1334_v22 }
  0x41   :  { %849 = vmatpush.bf16.msrb.mxu3 %v1342_v23  ;;  %793 = vmatmul.bf16.vlgmr.msrb.gmra.mxu0 %v927_v33 }
  0x42   :  { %861 = vmatpush.bf16.msra.mxu0 %v1357_v26  ;;  %812 = vmatmul.bf16.vlgmr.msrb.gmra.mxu1 %v931_v34 }
  0x43   :  { %1378 = vmatpush.bf16.msra.mxu1 %v1357_v26  ;;  %831 = vmatmul.bf16.vlgmr.msrb.gmra.mxu2 %v935_v35 }
  0x44   :  { %850 = vmatmul.bf16.vlgmr.msrb.gmra.mxu3 %v939_v36 }
  0x46   :  { %862 = vmatpush.bf16.msra.mxu0 %v1356_v37 }
  0x47   :  { %1379 = vmatpush.bf16.msra.mxu1 %v1356_v37 }
  0x4a   :  { %863 = vmatpush.bf16.msra.mxu0 %v1355_v38 }
  0x4b   :  { %1380 = vmatpush.bf16.msra.mxu1 %v1355_v38 }
  0x4e   :  { %864 = vmatpush.bf16.msra.mxu0 %v1354_v39 }
  0x4f   :  { %1381 = vmatpush.bf16.msra.mxu1 %v1354_v39 }
  0x51   :  { %798 = vmatmul.bf16.gmra.mxu0 %v963_v49 }
  0x52   :  { %865 = vmatpush.bf16.msra.mxu0 %v1353_v48  ;;  %817 = vmatmul.bf16.gmra.mxu1 %v967_v50 }
  0x53   :  { %1382 = vmatpush.bf16.msra.mxu1 %v1353_v48  ;;  %836 = vmatmul.bf16.gmra.mxu2 %v971_v51 }
  0x54   :  { %855 = vmatmul.bf16.gmra.mxu3 %v975_v52 }
  0x56   :  { %866 = vmatpush.bf16.msra.mxu0 %v1352_v53 }
  0x57   :  { %1383 = vmatpush.bf16.msra.mxu1 %v1352_v53 }
  0x5a   :  { %867 = vmatpush.bf16.msra.mxu0 %v1351_v54 }
  0x5b   :  { %1384 = vmatpush.bf16.msra.mxu1 %v1351_v54 }
  0x5e   :  { %868 = vmatpush.bf16.msra.mxu0 %v1350_v55 }
  0x5f   :  { %1385 = vmatpush.bf16.msra.mxu1 %v1350_v55 }
  0x61   :  { %869 = vmatmul.bf16.vlgmr.msra.gmra.mxu0 %v943_v60 }
  0x62   :  { %874 = vmatmul.bf16.vlgmr.msra.gmra.mxu1 %v979_v61 }
  0x9e   :  { %v718_v62 = vpop.f32.mrf.mxu0 }
  0x9f   :  { %v737_v63 = vpop.f32.mrf.mxu1  ;;  %v719_v21 = vadd.f32 %v1386_v20, %v718_v62 }
  0xa1   :  { %v738_v26 = vadd.f32 %v737_v63, %v719_v21 }
  0xa6   :  { %v756_v0 = vpop.f32.mrf.mxu2  ;;  %v720_v2 = vpop.f32.mrf.mxu0 }
  0xa7   :  { %v775_v1 = vpop.f32.mrf.mxu3  ;;  %v739_v3 = vpop.f32.mrf.mxu1  ;;  %v721_v27 = vadd.f32 %v1386_v20, %v720_v2  ;;  %v757_v31 = vadd.f32 %v756_v0, %v738_v26 }
  0xa9   :  { %v740_v33 = vadd.f32 %v739_v3, %v721_v27  ;;  %v776_v35 = vadd.f32 %v775_v1, %v757_v31  ;;  %v1360_v1 = vunpack.c.l.bf16 %v1359_v58  ;;  %v1364_v3 = vunpack.c.l.bf16 %v1376_v59 }
  0xae   :  { %v758_v4 = vpop.f32.mrf.mxu2  ;;  %v723_v6 = vpop.f32.mrf.mxu0 }
  0xaf   :  { %v777_v5 = vpop.f32.mrf.mxu3  ;;  %v742_v7 = vpop.f32.mrf.mxu1  ;;  %v724_v22 = vadd.f32 %v1386_v20, %v723_v6  ;;  %v759_v36 = vadd.f32 %v758_v4, %v740_v33 }
  0xb1   :  { %v743_v28 = vadd.f32 %v742_v7, %v724_v22  ;;  %v778_v44 = vadd.f32 %v777_v5, %v759_v36  ;;  %v1361_v7 = vunpack.c.h.bf16 %v1359_v58 }
  0xb6   :  { %v761_v8 = vpop.f32.mrf.mxu2  ;;  %v725_v10 = vpop.f32.mrf.mxu0 }
  0xb7   :  { %v780_v9 = vpop.f32.mrf.mxu3  ;;  %v744_v11 = vpop.f32.mrf.mxu1  ;;  %v726_v29 = vadd.f32 %v1386_v20, %v725_v10  ;;  %v762_v32 = vadd.f32 %v761_v8, %v743_v28  ;;  %v1365_v8 = vunpack.c.h.bf16 %v1376_v59 }
  0xb9   :  { %v745_v34 = vadd.f32 %v744_v11, %v726_v29  ;;  %v781_v37 = vadd.f32 %v780_v9, %v762_v32 }
  0xbe   :  { %v763_v12 = vpop.f32.mrf.mxu2  ;;  %v794_v14 = vpop.f32.mrf.mxu0 }
  0xbf   :  { %v782_v13 = vpop.f32.mrf.mxu3  ;;  %v813_v15 = vpop.f32.mrf.mxu1  ;;  %v764_v38 = vadd.f32 %v763_v12, %v745_v34  ;;  %v795_v42 = vadd.f32 %v794_v14, %v776_v35 }
  0xc1   :  { %v783_v45 = vadd.f32 %v782_v13, %v764_v38  ;;  %v814_v47 = vadd.f32 %v813_v15, %v795_v42 }
  0xc6   :  { %v832_v16 = vpop.f32.mrf.mxu2  ;;  %v796_v18 = vpop.f32.mrf.mxu0 }
  0xc7   :  { %v851_v17 = vpop.f32.mrf.mxu3  ;;  %v815_v19 = vpop.f32.mrf.mxu1  ;;  %v797_v48 = vadd.f32 %v796_v18, %v778_v44  ;;  %v833_v51 = vadd.f32 %v832_v16, %v814_v47 }
  0xc9   :  { %v816_v56 = vadd.f32 %v815_v19, %v797_v48  ;;  %v852_v60 = vadd.f32 %v851_v17, %v833_v51 }
  0xce   :  { %v834_v23 = vpop.f32.mrf.mxu2  ;;  %v799_v24 = vpop.f32.mrf.mxu0 }
  0xcf   :  { %v818_v25 = vpop.f32.mrf.mxu1  ;;  %v853_v30 = vpop.f32.mrf.mxu3  ;;  %v800_v43 = vadd.f32 %v799_v24, %v781_v37  ;;  %v835_v61 = vadd.f32 %v834_v23, %v816_v56 }
  0xd1   :  { %v819_v49 = vadd.f32 %v818_v25, %v800_v43  ;;  %v854_v5 = vadd.f32 %v853_v30, %v835_v61 }
  0xd6   :  { %v837_v39 = vpop.f32.mrf.mxu2  ;;  %v801_v40 = vpop.f32.mrf.mxu0 }
  0xd7   :  { %v820_v41 = vpop.f32.mrf.mxu1  ;;  %v856_v46 = vpop.f32.mrf.mxu3  ;;  %v802_v50 = vadd.f32 %v801_v40, %v783_v45  ;;  %v838_v52 = vadd.f32 %v837_v39, %v819_v49 }
  0xd9   :  { %v821_v57 = vadd.f32 %v820_v41, %v802_v50  ;;  %v857_v62 = vadd.f32 %v856_v46, %v838_v52 }
  0xde   :  { %v839_v53 = vpop.f32.mrf.mxu2  ;;  %v870_v54 = vpop.f32.mrf.mxu0 }
  0xdf   :  { %v875_v55 = vpop.f32.mrf.mxu1  ;;  %v840_v63 = vadd.f32 %v839_v53, %v821_v57  ;;  %v871_v0 = vadd.f32 %v870_v54, %v852_v60  ;;  %v858_v4 = vpop.f32.mrf.mxu3 }
  0xe0   :  { %v876_v2 = vadd.f32 %v875_v55, %v857_v62 }
  0xe1   :  { %v859_v6 = vadd.f32 %v858_v4, %v840_v63  ;;  %v888_v11 = vadd.f32 %v1360_v1, %v871_v0 }
  0xe2   :  { %v890_v12 = vadd.f32 %v1364_v3, %v876_v2 }
  0xe3   :  { %v892_v17 = vmax.f32 %v888_v11, 0.0 }
  0xe4   :  { %v894_v18 = vmax.f32 %v890_v12, 0.0 }
  0xe6   :  { %v872_v9 = vpop.f32.mrf.mxu0 }
  0xe7   :  { %v877_v10 = vpop.f32.mrf.mxu1  ;;  %v873_v13 = vadd.f32 %v872_v9, %v854_v5 }
  0xe8   :  { %v878_v14 = vadd.f32 %v877_v10, %v859_v6 }
  0xe9   :  { %v889_v15 = vadd.f32 %v1361_v7, %v873_v13 }
  0xea   :  { %v891_v16 = vadd.f32 %v1365_v8, %v878_v14 }
  0xeb   :  { %v893_v19 = vmax.f32 %v889_v15, 0.0 }
  0xec   :  { %v895_v20 = vmax.f32 %v891_v16, 0.0 }
  0xed   :  { %v1369_v21 = vpack.c.bf16 %v893_v19, %v892_v17 }
  0xee   :  { %v1374_v22 = vpack.c.bf16 %v895_v20, %v894_v18 }
  0xef   :  { %1370 = vst [vmem:[%s1755_s4] sm:$0xff] %v1369_v21  }
  0xf0   :  { %1377 = vst [vmem:[%s1755_s4 + $0x8] sm:$0xff] %v1374_v22  }

// kernel: backbone_forward.27
= control target key start
LH: loop header
LB: loop body
LE: loop exit
PB: predicated region body
PF: predicated region fallthrough
CT: control target
= control target key end

     0   :  { %s2824_s1 = inlined_call_operand.vmem [shape: bf16[1152,256], index: 1, kind: input, shape index: {}]   ;;  %s2825_s0 = inlined_call_operand.vmem [shape: bf16[8,1152], index: 0, kind: input, shape index: {}]   ;;  %s2826_s2 = inlined_call_operand.vmem [shape: f32[1,256], index: 2, kind: input, shape index: {}]   ;;  %s2827_s3 = inlined_call_operand.vmem [shape: bf16[8,256], index: 3, kind: output, shape index: {}]  }
   0x1   :  { %v1221_v0 = vld [vmem:[%s2824_s1 + $0x70] sm:$0xf]  ;;  %v1754_v1 = vld [vmem:[%s2824_s1 + $0x74] sm:$0xf0]  ;;  %v1213_v9 = vld [vmem:[%s2824_s1 + $0x60] sm:$0xf] }
   0x2   :  { %v1285_v2 = vld [vmem:[%s2824_s1 + $0xf0] sm:$0xf]  ;;  %v1222_v3 = vor.u32 %v1754_v1, %v1221_v0  ;;  %v1770_v4 = vld [vmem:[%s2824_s1 + $0xf4] sm:$0xf0]  ;;  %v1752_v10 = vld [vmem:[%s2824_s1 + $0x64] sm:$0xf0] }
   0x3   :  { %v1349_v5 = vld [vmem:[%s2824_s1 + $0x170] sm:$0xf]  ;;  %v1786_v6 = vld [vmem:[%s2824_s1 + $0x174] sm:$0xf0]  ;;  %v1286_v7 = vor.u32 %v1770_v4, %v1285_v2  ;;  %v1277_v11 = vld [vmem:[%s2824_s1 + $0xe0] sm:$0xf]  ;;  %v1214_v12 = vor.u32 %v1752_v10, %v1213_v9 }
   0x4   :  { %v1350_v8 = vor.u32 %v1786_v6, %v1349_v5  ;;  %921 = vmatpush.bf16.msra.mxu0 %v1222_v3  ;;  %v1768_v13 = vld [vmem:[%s2824_s1 + $0xe4] sm:$0xf0]  ;;  %v1413_v14 = vld [vmem:[%s2824_s1 + $0x1f0] sm:$0xf]  ;;  %v1802_v15 = vld [vmem:[%s2824_s1 + $0x1f4] sm:$0xf0] }
   0x5   :  { %934 = vmatpush.bf16.msra.mxu1 %v1286_v7  ;;  %v1278_v16 = vor.u32 %v1768_v13, %v1277_v11  ;;  %v1414_v17 = vor.u32 %v1802_v15, %v1413_v14  ;;  %v1341_v18 = vld [vmem:[%s2824_s1 + $0x160] sm:$0xf]  ;;  %v1784_v19 = vld [vmem:[%s2824_s1 + $0x164] sm:$0xf0]  ;;  %v1205_v20 = vld [vmem:[%s2824_s1 + $0x50] sm:$0xf] }
   0x6   :  { %947 = vmatpush.bf16.msra.mxu2 %v1350_v8  ;;  %v1342_v21 = vor.u32 %v1784_v19, %v1341_v18  ;;  %v1750_v22 = vld [vmem:[%s2824_s1 + $0x54] sm:$0xf0]  ;;  %v1269_v23 = vld [vmem:[%s2824_s1 + $0xd0] sm:$0xf]  ;;  %v1405_v25 = vld [vmem:[%s2824_s1 + $0x1e0] sm:$0xf] }
   0x7   :  { %v1766_v24 = vld [vmem:[%s2824_s1 + $0xd4] sm:$0xf0]  ;;  %960 = vmatpush.bf16.msra.mxu3 %v1414_v17  ;;  %v1800_v26 = vld [vmem:[%s2824_s1 + $0x1e4] sm:$0xf0]  ;;  %v1333_v27 = vld [vmem:[%s2824_s1 + $0x150] sm:$0xf]  ;;  %v1206_v28 = vor.u32 %v1750_v22, %v1205_v20 }
   0x8   :  { %922 = vmatpush.bf16.msra.mxu0 %v1214_v12  ;;  %v1406_v29 = vor.u32 %v1800_v26, %v1405_v25  ;;  %v1782_v30 = vld [vmem:[%s2824_s1 + $0x154] sm:$0xf0]  ;;  %v1197_v31 = vld [vmem:[%s2824_s1 + $0x40] sm:$0xf]  ;;  %v1748_v32 = vld [vmem:[%s2824_s1 + $0x44] sm:$0xf0]  ;;  %v1270_v33 = vor.u32 %v1766_v24, %v1269_v23 }
   0x9   :  { %935 = vmatpush.bf16.msra.mxu1 %v1278_v16  ;;  %v1334_v34 = vor.u32 %v1782_v30, %v1333_v27  ;;  %v1261_v35 = vld [vmem:[%s2824_s1 + $0xc0] sm:$0xf]  ;;  %v1764_v36 = vld [vmem:[%s2824_s1 + $0xc4] sm:$0xf0]  ;;  %v1397_v37 = vld [vmem:[%s2824_s1 + $0x1d0] sm:$0xf]  ;;  %v1198_v42 = vor.u32 %v1748_v32, %v1197_v31 }
   0xa   :  { %948 = vmatpush.bf16.msra.mxu2 %v1342_v21  ;;  %v1798_v38 = vld [vmem:[%s2824_s1 + $0x1d4] sm:$0xf0]  ;;  %v1325_v39 = vld [vmem:[%s2824_s1 + $0x140] sm:$0xf]  ;;  %v1780_v40 = vld [vmem:[%s2824_s1 + $0x144] sm:$0xf0]  ;;  %v1262_v45 = vor.u32 %v1764_v36, %v1261_v35 }
   0xb   :  { %961 = vmatpush.bf16.msra.mxu3 %v1406_v29  ;;  %v1398_v41 = vor.u32 %v1798_v38, %v1397_v37  ;;  %v1389_v43 = vld [vmem:[%s2824_s1 + $0x1c0] sm:$0xf]  ;;  %v1796_v44 = vld [vmem:[%s2824_s1 + $0x1c4] sm:$0xf0]  ;;  %v1326_v46 = vor.u32 %v1780_v40, %v1325_v39  ;;  %v1189_v47 = vld [vmem:[%s2824_s1 + $0x30] sm:$0xf] }
   0xc   :  { %923 = vmatpush.bf16.msra.mxu0 %v1206_v28  ;;  %v1746_v48 = vld [vmem:[%s2824_s1 + $0x34] sm:$0xf0]  ;;  %v1253_v49 = vld [vmem:[%s2824_s1 + $0xb0] sm:$0xf]  ;;  %v1390_v53 = vor.u32 %v1796_v44, %v1389_v43  ;;  %v1181_v59 = vld [vmem:[%s2824_s1 + $0x20] sm:$0xf] }
   0xd   :  { %936 = vmatpush.bf16.msra.mxu1 %v1270_v33  ;;  %v1762_v50 = vld [vmem:[%s2824_s1 + $0xb4] sm:$0xf0]  ;;  %v1317_v51 = vld [vmem:[%s2824_s1 + $0x130] sm:$0xf]  ;;  %v1190_v54 = vor.u32 %v1746_v48, %v1189_v47  ;;  %v1744_v60 = vld [vmem:[%s2824_s1 + $0x24] sm:$0xf0] }
   0xe   :  { %949 = vmatpush.bf16.msra.mxu2 %v1334_v34  ;;  %v1778_v52 = vld [vmem:[%s2824_s1 + $0x134] sm:$0xf0]  ;;  %v1381_v55 = vld [vmem:[%s2824_s1 + $0x1b0] sm:$0xf]  ;;  %v1254_v57 = vor.u32 %v1762_v50, %v1253_v49  ;;  %v1245_v61 = vld [vmem:[%s2824_s1 + $0xa0] sm:$0xf]  ;;  %v1182_v2 = vor.u32 %v1744_v60, %v1181_v59 }
   0xf   :  { %962 = vmatpush.bf16.msra.mxu3 %v1398_v41  ;;  %v1794_v56 = vld [vmem:[%s2824_s1 + $0x1b4] sm:$0xf0]  ;;  %v1318_v58 = vor.u32 %v1778_v52, %v1317_v51  ;;  %v1760_v62 = vld [vmem:[%s2824_s1 + $0xa4] sm:$0xf0]  ;;  %v1309_v63 = vld [vmem:[%s2824_s1 + $0x120] sm:$0xf] }
  0x10   :  { %924 = vmatpush.bf16.msra.mxu0 %v1198_v42  ;;  %v1776_v0 = vld [vmem:[%s2824_s1 + $0x124] sm:$0xf0]  ;;  %v1382_v1 = vor.u32 %v1794_v56, %v1381_v55  ;;  %v1373_v3 = vld [vmem:[%s2824_s1 + $0x1a0] sm:$0xf]  ;;  %v1246_v5 = vor.u32 %v1760_v62, %v1245_v61  ;;  %v1173_v7 = vld [vmem:[%s2824_s1 + $0x10] sm:$0xf] }
  0x11   :  { %937 = vmatpush.bf16.msra.mxu1 %v1262_v45  ;;  %v1792_v4 = vld [vmem:[%s2824_s1 + $0x1a4] sm:$0xf0]  ;;  %v1310_v6 = vor.u32 %v1776_v0, %v1309_v63  ;;  %v1742_v8 = vld [vmem:[%s2824_s1 + $0x14] sm:$0xf0]  ;;  %v1237_v9 = vld [vmem:[%s2824_s1 + $0x90] sm:$0xf] }
  0x12   :  { %950 = vmatpush.bf16.msra.mxu2 %v1326_v46  ;;  %v1758_v10 = vld [vmem:[%s2824_s1 + $0x94] sm:$0xf0]  ;;  %v1301_v11 = vld [vmem:[%s2824_s1 + $0x110] sm:$0xf]  ;;  %v1374_v13 = vor.u32 %v1792_v4, %v1373_v3  ;;  %v1165_v14 = vld [vmem:[%s2824_s1] sm:$0xf]  ;;  %v1174_v15 = vor.u32 %v1742_v8, %v1173_v7 }
  0x13   :  { %963 = vmatpush.bf16.msra.mxu3 %v1390_v53  ;;  %v1774_v12 = vld [vmem:[%s2824_s1 + $0x114] sm:$0xf0]  ;;  %v1740_v16 = vld [vmem:[%s2824_s1 + $0x4] sm:$0xf0]  ;;  %v1365_v17 = vld [vmem:[%s2824_s1 + $0x190] sm:$0xf]  ;;  %v1238_v19 = vor.u32 %v1758_v10, %v1237_v9 }
  0x14   :  { %925 = vmatpush.bf16.msra.mxu0 %v1190_v54  ;;  %v1790_v18 = vld [vmem:[%s2824_s1 + $0x194] sm:$0xf0]  ;;  %v1302_v20 = vor.u32 %v1774_v12, %v1301_v11  ;;  %v1229_v21 = vld [vmem:[%s2824_s1 + $0x80] sm:$0xf]  ;;  %v1756_v22 = vld [vmem:[%s2824_s1 + $0x84] sm:$0xf0]  ;;  %v1166_v31 = vor.u32 %v1740_v16, %v1165_v14 }
  0x15   :  { %938 = vmatpush.bf16.msra.mxu1 %v1254_v57  ;;  %v1477_v23 = vld [vmem:[%s2824_s1 + $0x270] sm:$0xf]  ;;  %v1818_v24 = vld [vmem:[%s2824_s1 + $0x274] sm:$0xf0]  ;;  %v1366_v27 = vor.u32 %v1790_v18, %v1365_v17  ;;  %v1293_v28 = vld [vmem:[%s2824_s1 + $0x100] sm:$0xf]  ;;  %v1230_v35 = vor.u32 %v1756_v22, %v1229_v21 }
  0x16   :  { %951 = vmatpush.bf16.msra.mxu2 %v1318_v58  ;;  %v1541_v25 = vld [vmem:[%s2824_s1 + $0x2f0] sm:$0xf]  ;;  %v1834_v26 = vld [vmem:[%s2824_s1 + $0x2f4] sm:$0xf0]  ;;  %v1772_v29 = vld [vmem:[%s2824_s1 + $0x104] sm:$0xf0]  ;;  %v1478_v36 = vor.u32 %v1818_v24, %v1477_v23 }
  0x17   :  { %964 = vmatpush.bf16.msra.mxu3 %v1382_v1  ;;  %v1605_v30 = vld [vmem:[%s2824_s1 + $0x370] sm:$0xf]  ;;  %v1850_v32 = vld [vmem:[%s2824_s1 + $0x374] sm:$0xf0]  ;;  %v1357_v33 = vld [vmem:[%s2824_s1 + $0x180] sm:$0xf]  ;;  %v1542_v39 = vor.u32 %v1834_v26, %v1541_v25  ;;  %v1294_v40 = vor.u32 %v1772_v29, %v1293_v28 }
  0x18   :  { %926 = vmatpush.bf16.msra.mxu0 %v1182_v2  ;;  %v1788_v34 = vld [vmem:[%s2824_s1 + $0x184] sm:$0xf0]  ;;  %v1669_v37 = vld [vmem:[%s2824_s1 + $0x3f0] sm:$0xf]  ;;  %v1866_v38 = vld [vmem:[%s2824_s1 + $0x3f4] sm:$0xf0]  ;;  %v1606_v43 = vor.u32 %v1850_v32, %v1605_v30 }
  0x19   :  { %939 = vmatpush.bf16.msra.mxu1 %v1246_v5  ;;  %v1469_v41 = vld [vmem:[%s2824_s1 + $0x260] sm:$0xf]  ;;  %v1816_v42 = vld [vmem:[%s2824_s1 + $0x264] sm:$0xf0]  ;;  %v1358_v44 = vor.u32 %v1788_v34, %v1357_v33  ;;  %v1670_v47 = vor.u32 %v1866_v38, %v1669_v37  ;;  %v1461_v54 = vld [vmem:[%s2824_s1 + $0x250] sm:$0xf] }
  0x1a   :  { %952 = vmatpush.bf16.msra.mxu2 %v1310_v6  ;;  %v1533_v45 = vld [vmem:[%s2824_s1 + $0x2e0] sm:$0xf]  ;;  %v1832_v46 = vld [vmem:[%s2824_s1 + $0x2e4] sm:$0xf0]  ;;  %v1470_v50 = vor.u32 %v1816_v42, %v1469_v41  ;;  %v1814_v55 = vld [vmem:[%s2824_s1 + $0x254] sm:$0xf0] }
  0x1b   :  { %965 = vmatpush.bf16.msra.mxu3 %v1374_v13  ;;  %v1597_v48 = vld [vmem:[%s2824_s1 + $0x360] sm:$0xf]  ;;  %v1848_v49 = vld [vmem:[%s2824_s1 + $0x364] sm:$0xf0]  ;;  %v1534_v53 = vor.u32 %v1832_v46, %v1533_v45  ;;  %v1525_v58 = vld [vmem:[%s2824_s1 + $0x2d0] sm:$0xf]  ;;  %v1462_v4 = vor.u32 %v1814_v55, %v1461_v54 }
  0x1c   :  { %927 = vmatpush.bf16.msra.mxu0 %v1174_v15  ;;  %v1661_v51 = vld [vmem:[%s2824_s1 + $0x3e0] sm:$0xf]  ;;  %v1864_v52 = vld [vmem:[%s2824_s1 + $0x3e4] sm:$0xf0]  ;;  %v1598_v57 = vor.u32 %v1848_v49, %v1597_v48  ;;  %v1830_v59 = vld [vmem:[%s2824_s1 + $0x2d4] sm:$0xf0] }
  0x1d   :  { %940 = vmatpush.bf16.msra.mxu1 %v1238_v19  ;;  %v15_v56 = vld [vmem:[%s2825_s0 + $0x8] sm:$0xff]  ;;  %v14_v61 = vld [vmem:[%s2825_s0] sm:$0xff]  ;;  %v1662_v63 = vor.u32 %v1864_v52, %v1661_v51  ;;  %v1589_v0 = vld [vmem:[%s2824_s1 + $0x350] sm:$0xf]  ;;  %v1526_v9 = vor.u32 %v1830_v59, %v1525_v58 }
  0x1e   :  { %953 = vmatpush.bf16.msra.mxu2 %v1302_v20  ;;  %v176_v60 = vunpack.c.l.b16 %v15_v56  ;;  %v177_v62 = vunpack.c.h.b16 %v15_v56  ;;  %v1846_v1 = vld [vmem:[%s2824_s1 + $0x354] sm:$0xf0]  ;;  %v174_v2 = vunpack.c.l.b16 %v14_v61  ;;  %v175_v3 = vunpack.c.h.b16 %v14_v61  ;;  %v1653_v5 = vld [vmem:[%s2824_s1 + $0x3d0] sm:$0xf]  ;;  %v1453_v10 = vld [vmem:[%s2824_s1 + $0x240] sm:$0xf] }
  0x1f   :  { %966 = vmatpush.bf16.msra.mxu3 %v1366_v27  ;;  %v1862_v6 = vld [vmem:[%s2824_s1 + $0x3d4] sm:$0xf0]  ;;  %v1812_v11 = vld [vmem:[%s2824_s1 + $0x244] sm:$0xf0]  ;;  %v1590_v14 = vor.u32 %v1846_v1, %v1589_v0  ;;  %v1517_v15 = vld [vmem:[%s2824_s1 + $0x2c0] sm:$0xf] }
  0x20   :  { %928 = vmatpush.bf16.msra.mxu0 %v1166_v31  ;;  %v2173_v7 = vpack.c.b16 %v176_v60, %v176_v60  ;;  %v2175_v8 = vpack.c.b16 %v177_v62, %v177_v62  ;;  %v2183_v12 = vpack.c.b16 %v174_v2, %v174_v2  ;;  %v2185_v13 = vpack.c.b16 %v175_v3, %v175_v3  ;;  %v1828_v16 = vld [vmem:[%s2824_s1 + $0x2c4] sm:$0xf0]  ;;  %v1581_v18 = vld [vmem:[%s2824_s1 + $0x340] sm:$0xf]  ;;  %v1445_v24 = vld [vmem:[%s2824_s1 + $0x230] sm:$0xf] }
  0x21   :  { %941 = vmatpush.bf16.msra.mxu1 %v1230_v35  ;;  %v1654_v17 = vor.u32 %v1862_v6, %v1653_v5  ;;  %v1844_v19 = vld [vmem:[%s2824_s1 + $0x344] sm:$0xf0]  ;;  %v1454_v20 = vor.u32 %v1812_v11, %v1453_v10  ;;  %v1645_v21 = vld [vmem:[%s2824_s1 + $0x3c0] sm:$0xf]  ;;  %v1518_v23 = vor.u32 %v1828_v16, %v1517_v15  ;;  %v1810_v25 = vld [vmem:[%s2824_s1 + $0x234] sm:$0xf0] }
  0x22   :  { %954 = vmatpush.bf16.msra.mxu2 %v1294_v40  ;;  %v1860_v22 = vld [vmem:[%s2824_s1 + $0x3c4] sm:$0xf0]  ;;  %v1582_v26 = vor.u32 %v1844_v19, %v1581_v18  ;;  %v1509_v27 = vld [vmem:[%s2824_s1 + $0x2b0] sm:$0xf]  ;;  %v1826_v28 = vld [vmem:[%s2824_s1 + $0x2b4] sm:$0xf0]  ;;  %v1446_v32 = vor.u32 %v1810_v25, %v1445_v24 }
  0x23   :  { %967 = vmatpush.bf16.msra.mxu3 %v1358_v44  ;;  %929 = vmatmul.bf16.vlgmr.msra.gmra.mxu0 %v2183_v12  ;;  %v1646_v29 = vor.u32 %v1860_v22, %v1645_v21  ;;  %v1573_v30 = vld [vmem:[%s2824_s1 + $0x330] sm:$0xf]  ;;  %v1842_v31 = vld [vmem:[%s2824_s1 + $0x334] sm:$0xf0]  ;;  %v1510_v35 = vor.u32 %v1826_v28, %v1509_v27  ;;  %v1808_v37 = vld [vmem:[%s2824_s1 + $0x224] sm:$0xf0] }
  0x24   :  { %973 = vmatpush.bf16.msrb.mxu0 %v1478_v36  ;;  %942 = vmatmul.bf16.vlgmr.msra.gmra.mxu1 %v2185_v13  ;;  %v1637_v33 = vld [vmem:[%s2824_s1 + $0x3b0] sm:$0xf]  ;;  %v1858_v34 = vld [vmem:[%s2824_s1 + $0x3b4] sm:$0xf0]  ;;  %v1437_v36 = vld [vmem:[%s2824_s1 + $0x220] sm:$0xf]  ;;  %v1574_v38 = vor.u32 %v1842_v31, %v1573_v30 }
  0x25   :  { %986 = vmatpush.bf16.msrb.mxu1 %v1542_v39  ;;  %955 = vmatmul.bf16.vlgmr.msra.gmra.mxu2 %v2173_v7  ;;  %v1501_v39 = vld [vmem:[%s2824_s1 + $0x2a0] sm:$0xf]  ;;  %v1824_v40 = vld [vmem:[%s2824_s1 + $0x2a4] sm:$0xf0]  ;;  %v1638_v41 = vor.u32 %v1858_v34, %v1637_v33  ;;  %v1438_v44 = vor.u32 %v1808_v37, %v1437_v36  ;;  %v1429_v48 = vld [vmem:[%s2824_s1 + $0x210] sm:$0xf] }
  0x26   :  { %999 = vmatpush.bf16.msrb.mxu2 %v1606_v43  ;;  %968 = vmatmul.bf16.vlgmr.msra.gmra.mxu3 %v2175_v8  ;;  %v1565_v42 = vld [vmem:[%s2824_s1 + $0x320] sm:$0xf]  ;;  %v1840_v43 = vld [vmem:[%s2824_s1 + $0x324] sm:$0xf0]  ;;  %v1806_v49 = vld [vmem:[%s2824_s1 + $0x214] sm:$0xf0] }
  0x27   :  { %1012 = vmatpush.bf16.msrb.mxu3 %v1670_v47  ;;  %v1629_v45 = vld [vmem:[%s2824_s1 + $0x3a0] sm:$0xf]  ;;  %v1856_v46 = vld [vmem:[%s2824_s1 + $0x3a4] sm:$0xf0]  ;;  %v1502_v47 = vor.u32 %v1824_v40, %v1501_v39  ;;  %v1493_v51 = vld [vmem:[%s2824_s1 + $0x290] sm:$0xf]  ;;  %v1430_v58 = vor.u32 %v1806_v49, %v1429_v48 }
  0x28   :  { %974 = vmatpush.bf16.msrb.mxu0 %v1470_v50  ;;  %v1566_v50 = vor.u32 %v1840_v43, %v1565_v42  ;;  %v1822_v52 = vld [vmem:[%s2824_s1 + $0x294] sm:$0xf0]  ;;  %v1630_v54 = vor.u32 %v1856_v46, %v1629_v45  ;;  %v1421_v56 = vld [vmem:[%s2824_s1 + $0x200] sm:$0xf]  ;;  %v1820_v60 = vld [vmem:[%s2824_s1 + $0x284] sm:$0xf0] }
  0x29   :  { %987 = vmatpush.bf16.msrb.mxu1 %v1534_v53  ;;  %v1557_v53 = vld [vmem:[%s2824_s1 + $0x310] sm:$0xf]  ;;  %v1838_v55 = vld [vmem:[%s2824_s1 + $0x314] sm:$0xf0]  ;;  %v1485_v59 = vld [vmem:[%s2824_s1 + $0x280] sm:$0xf] }
  0x2a   :  { %1000 = vmatpush.bf16.msrb.mxu2 %v1598_v57  ;;  %v1804_v57 = vld [vmem:[%s2824_s1 + $0x204] sm:$0xf0]  ;;  %v1621_v61 = vld [vmem:[%s2824_s1 + $0x390] sm:$0xf]  ;;  %v1854_v62 = vld [vmem:[%s2824_s1 + $0x394] sm:$0xf0]  ;;  %v1558_v3 = vor.u32 %v1838_v55, %v1557_v53 }
  0x2b   :  { %1013 = vmatpush.bf16.msrb.mxu3 %v1662_v63  ;;  %v1494_v63 = vor.u32 %v1822_v52, %v1493_v51  ;;  %v1733_v0 = vld [vmem:[%s2824_s1 + $0x470] sm:$0xf]  ;;  %v1882_v1 = vld [vmem:[%s2824_s1 + $0x474] sm:$0xf0]  ;;  %v1223_v5 = vld [vmem:[%s2824_s1 + $0x78] sm:$0xf0]  ;;  %v1422_v15 = vor.u32 %v1804_v57, %v1421_v56 }
  0x2c   :  { %975 = vmatpush.bf16.msrb.mxu0 %v1462_v4  ;;  %v16_v2 = vld [vmem:[%s2825_s0 + $0x10] sm:$0xff]  ;;  %v17_v6 = vld [vmem:[%s2825_s0 + $0x18] sm:$0xff]  ;;  %v1549_v10 = vld [vmem:[%s2824_s1 + $0x300] sm:$0xf]  ;;  %v1734_v21 = vor.u32 %v1882_v1, %v1733_v0 }
  0x2d   :  { %988 = vmatpush.bf16.msrb.mxu1 %v1526_v9  ;;  %v1753_v4 = vld [vmem:[%s2824_s1 + $0x74] sm:$0xf]  ;;  %v1622_v9 = vor.u32 %v1854_v62, %v1621_v61  ;;  %v1836_v11 = vld [vmem:[%s2824_s1 + $0x304] sm:$0xf0]  ;;  %v1287_v16 = vld [vmem:[%s2824_s1 + $0xf8] sm:$0xf0]  ;;  %v178_v19 = vunpack.c.l.b16 %v16_v2  ;;  %v180_v24 = vunpack.c.l.b16 %v17_v6  ;;  %v179_v34 = vunpack.c.h.b16 %v16_v2 }
  0x2e   :  { %1001 = vmatpush.bf16.msrb.mxu2 %v1590_v14  ;;  %v1769_v14 = vld [vmem:[%s2824_s1 + $0xf4] sm:$0xf]  ;;  %v1852_v18 = vld [vmem:[%s2824_s1 + $0x384] sm:$0xf0]  ;;  %v1226_v25 = vor.u32 %v1753_v4, %v1223_v5  ;;  %v1725_v27 = vld [vmem:[%s2824_s1 + $0x460] sm:$0xf] }
  0x2f   :  { %1014 = vmatpush.bf16.msrb.mxu3 %v1654_v17  ;;  %v1613_v17 = vld [vmem:[%s2824_s1 + $0x380] sm:$0xf]  ;;  %v1785_v22 = vld [vmem:[%s2824_s1 + $0x174] sm:$0xf]  ;;  %v1880_v28 = vld [vmem:[%s2824_s1 + $0x464] sm:$0xf0]  ;;  %v1290_v30 = vor.u32 %v1769_v14, %v1287_v16  ;;  %v2355_v40 = vpack.c.b16 %v180_v24, %v180_v24 }
  0x30   :  { %976 = vmatpush.bf16.msrb.mxu0 %v1454_v20  ;;  %v1486_v20 = vor.u32 %v1820_v60, %v1485_v59  ;;  %v1614_v31 = vor.u32 %v1852_v18, %v1613_v17  ;;  %v1215_v33 = vld [vmem:[%s2824_s1 + $0x68] sm:$0xf0]  ;;  %v1767_v36 = vld [vmem:[%s2824_s1 + $0xe4] sm:$0xf]  ;;  %v1726_v39 = vor.u32 %v1880_v28, %v1725_v27  ;;  %v1717_v45 = vld [vmem:[%s2824_s1 + $0x450] sm:$0xf] }
  0x31   :  { %989 = vmatpush.bf16.msrb.mxu1 %v1518_v23  ;;  %v1351_v23 = vld [vmem:[%s2824_s1 + $0x178] sm:$0xf0]  ;;  %v1279_v37 = vld [vmem:[%s2824_s1 + $0xe8] sm:$0xf0]  ;;  %v1878_v46 = vld [vmem:[%s2824_s1 + $0x454] sm:$0xf0] }
  0x32   :  { %1002 = vmatpush.bf16.msrb.mxu2 %v1582_v26  ;;  %v1550_v26 = vor.u32 %v1836_v11, %v1549_v10  ;;  %v1343_v42 = vld [vmem:[%s2824_s1 + $0x168] sm:$0xf0]  ;;  %v1749_v48 = vld [vmem:[%s2824_s1 + $0x54] sm:$0xf]  ;;  %v1207_v49 = vld [vmem:[%s2824_s1 + $0x58] sm:$0xf0] }
  0x33   :  { %1015 = vmatpush.bf16.msrb.mxu3 %v1646_v29  ;;  %v181_v29 = vunpack.c.h.b16 %v17_v6  ;;  %v1765_v52 = vld [vmem:[%s2824_s1 + $0xd4] sm:$0xf]  ;;  %v1271_v53 = vld [vmem:[%s2824_s1 + $0xd8] sm:$0xf0]  ;;  %v1210_v57 = vor.u32 %v1749_v48, %v1207_v49  ;;  %v1876_v59 = vld [vmem:[%s2824_s1 + $0x444] sm:$0xf0] }
  0x34   :  { %977 = vmatpush.bf16.msrb.mxu0 %v1446_v32  ;;  %v1751_v32 = vld [vmem:[%s2824_s1 + $0x64] sm:$0xf]  ;;  %v1781_v55 = vld [vmem:[%s2824_s1 + $0x154] sm:$0xf]  ;;  %v1335_v56 = vld [vmem:[%s2824_s1 + $0x158] sm:$0xf0]  ;;  %v1274_v60 = vor.u32 %v1765_v52, %v1271_v53 }
  0x35   :  { %990 = vmatpush.bf16.msrb.mxu1 %v1510_v35  ;;  %v1354_v35 = vor.u32 %v1785_v22, %v1351_v23  ;;  %v1218_v43 = vor.u32 %v1751_v32, %v1215_v33  ;;  %v1747_v61 = vld [vmem:[%s2824_s1 + $0x44] sm:$0xf]  ;;  %v1199_v62 = vld [vmem:[%s2824_s1 + $0x48] sm:$0xf0]  ;;  %v1701_v6 = vld [vmem:[%s2824_s1 + $0x430] sm:$0xf] }
  0x36   :  { %1003 = vmatpush.bf16.msrb.mxu2 %v1574_v38  ;;  %v2353_v38 = vpack.c.b16 %v178_v19, %v178_v19  ;;  %v1763_v0 = vld [vmem:[%s2824_s1 + $0xc4] sm:$0xf]  ;;  %v1263_v1 = vld [vmem:[%s2824_s1 + $0xc8] sm:$0xf0]  ;;  %v1202_v5 = vor.u32 %v1747_v61, %v1199_v62  ;;  %v1745_v11 = vld [vmem:[%s2824_s1 + $0x34] sm:$0xf] }
  0x37   :  { %1016 = vmatpush.bf16.msrb.mxu3 %v1638_v41  ;;  %v1783_v41 = vld [vmem:[%s2824_s1 + $0x164] sm:$0xf]  ;;  %v1327_v4 = vld [vmem:[%s2824_s1 + $0x148] sm:$0xf0]  ;;  %v1266_v10 = vor.u32 %v1763_v0, %v1263_v1  ;;  %v1191_v14 = vld [vmem:[%s2824_s1 + $0x38] sm:$0xf0] }
  0x38   :  { %978 = vmatpush.bf16.msrb.mxu0 %v1438_v44  ;;  %v2363_v44 = vpack.c.b16 %v181_v29, %v181_v29  ;;  %v1346_v51 = vor.u32 %v1783_v41, %v1343_v42  ;;  %v1761_v16 = vld [vmem:[%s2824_s1 + $0xb4] sm:$0xf]  ;;  %v1255_v17 = vld [vmem:[%s2824_s1 + $0xb8] sm:$0xf0]  ;;  %v1693_v22 = vld [vmem:[%s2824_s1 + $0x420] sm:$0xf] }
  0x39   :  { %991 = vmatpush.bf16.msrb.mxu1 %v1502_v47  ;;  %v1282_v47 = vor.u32 %v1767_v36, %v1279_v37  ;;  %v1777_v19 = vld [vmem:[%s2824_s1 + $0x134] sm:$0xf]  ;;  %v1872_v23 = vld [vmem:[%s2824_s1 + $0x424] sm:$0xf0]  ;;  %v1258_v24 = vor.u32 %v1761_v16, %v1255_v17  ;;  %v1759_v28 = vld [vmem:[%s2824_s1 + $0xa4] sm:$0xf] }
  0x3a   :  { %1004 = vmatpush.bf16.msrb.mxu2 %v1566_v50  ;;  %v2377_v50 = vpack.c.b16 %v179_v34, %v179_v34  ;;  %v1247_v29 = vld [vmem:[%s2824_s1 + $0xa8] sm:$0xf0]  ;;  %v1685_v34 = vld [vmem:[%s2824_s1 + $0x410] sm:$0xf]  ;;  %v1741_v37 = vld [vmem:[%s2824_s1 + $0x14] sm:$0xf] }
  0x3b   :  { %1017 = vmatpush.bf16.msrb.mxu3 %v1630_v54  ;;  %v1718_v54 = vor.u32 %v1878_v46, %v1717_v45  ;;  %v1311_v32 = vld [vmem:[%s2824_s1 + $0x128] sm:$0xf0]  ;;  %v1250_v36 = vor.u32 %v1759_v28, %v1247_v29  ;;  %v1757_v42 = vld [vmem:[%s2824_s1 + $0x94] sm:$0xf]  ;;  %v1677_v45 = vld [vmem:[%s2824_s1 + $0x400] sm:$0xf] }
  0x3c   :  { %979 = vmatpush.bf16.msrb.mxu0 %v1430_v58  ;;  %v1709_v58 = vld [vmem:[%s2824_s1 + $0x440] sm:$0xf]  ;;  %v1303_v48 = vld [vmem:[%s2824_s1 + $0x118] sm:$0xf0]  ;;  %v1868_v52 = vld [vmem:[%s2824_s1 + $0x404] sm:$0xf0] }
  0x3d   :  { %992 = vmatpush.bf16.msrb.mxu1 %v1494_v63  ;;  %v1338_v63 = vor.u32 %v1781_v55, %v1335_v56  ;;  %v1710_v2 = vor.u32 %v1876_v59, %v1709_v58  ;;  %v18_v49 = vld [vmem:[%s2825_s0 + $0x20] sm:$0xf]  ;;  %v1739_v53 = vld [vmem:[%s2824_s1 + $0x4] sm:$0xf]  ;;  %v1801_v56 = vld [vmem:[%s2824_s1 + $0x1f4] sm:$0xf]  ;;  %v1678_v0 = vor.u32 %v1868_v52, %v1677_v45 }
  0x3e   :  { %1005 = vmatpush.bf16.msrb.mxu2 %v1558_v3  ;;  %v1779_v3 = vld [vmem:[%s2824_s1 + $0x144] sm:$0xf]  ;;  %v1817_v58 = vld [vmem:[%s2824_s1 + $0x274] sm:$0xf]  ;;  %v1231_v62 = vld [vmem:[%s2824_s1 + $0x88] sm:$0xf0] }
  0x3f   :  { %1018 = vmatpush.bf16.msrb.mxu3 %v1622_v9  ;;  %v1874_v9 = vld [vmem:[%s2824_s1 + $0x434] sm:$0xf0]  ;;  %v1755_v61 = vld [vmem:[%s2824_s1 + $0x84] sm:$0xf]  ;;  %v1833_v1 = vld [vmem:[%s2824_s1 + $0x2f4] sm:$0xf] }
  0x40   :  { %980 = vmatpush.bf16.msrb.mxu0 %v1422_v15  ;;  %v1330_v15 = vor.u32 %v1779_v3, %v1327_v4  ;;  %v1702_v18 = vor.u32 %v1874_v9, %v1701_v6  ;;  %v1295_v6 = vld [vmem:[%s2824_s1 + $0x108] sm:$0xf0]  ;;  %v1799_v9 = vld [vmem:[%s2824_s1 + $0x1e4] sm:$0xf]  ;;  %v1607_v16 = vld [vmem:[%s2824_s1 + $0x378] sm:$0xf0] }
  0x41   :  { %993 = vmatpush.bf16.msrb.mxu1 %v1486_v20  ;;  %v1319_v20 = vld [vmem:[%s2824_s1 + $0x138] sm:$0xf0]  ;;  %v1847_v29 = vld [vmem:[%s2824_s1 + $0x364] sm:$0xf]  ;;  %v1793_v52 = vld [vmem:[%s2824_s1 + $0x1b4] sm:$0xf] }
  0x42   :  { %1006 = vmatpush.bf16.msrb.mxu2 %v1550_v26  ;;  %v1183_v26 = vld [vmem:[%s2824_s1 + $0x28] sm:$0xf0]  ;;  %v1322_v27 = vor.u32 %v1777_v19, %v1319_v20  ;;  %v1815_v19 = vld [vmem:[%s2824_s1 + $0x264] sm:$0xf]  ;;  %v1399_v28 = vld [vmem:[%s2824_s1 + $0x1d8] sm:$0xf0] }
  0x43   :  { %1019 = vmatpush.bf16.msrb.mxu3 %v1614_v31  ;;  %981 = vmatmul.bf16.vlgmr.msrb.gmra.mxu0 %v2353_v38  ;;  %v1775_v31 = vld [vmem:[%s2824_s1 + $0x124] sm:$0xf]  ;;  %v1471_v20 = vld [vmem:[%s2824_s1 + $0x268] sm:$0xf0] }
  0x44   :  { %1025 = vmatpush.bf16.msra.mxu0 %v1734_v21  ;;  %994 = vmatmul.bf16.vlgmr.msrb.gmra.mxu1 %v2377_v50  ;;  %v1194_v21 = vor.u32 %v1745_v11, %v1191_v14  ;;  %v1314_v41 = vor.u32 %v1775_v31, %v1311_v32  ;;  %v1234_v11 = vor.u32 %v1755_v61, %v1231_v62  ;;  %v1407_v14 = vld [vmem:[%s2824_s1 + $0x1e8] sm:$0xf0]  ;;  %v1813_v32 = vld [vmem:[%s2824_s1 + $0x254] sm:$0xf] }
  0x45   :  { %1038 = vmatpush.bf16.msra.mxu1 %v1226_v25  ;;  %1007 = vmatmul.bf16.vlgmr.msrb.gmra.mxu2 %v2355_v40  ;;  %v1743_v25 = vld [vmem:[%s2824_s1 + $0x24] sm:$0xf] }
  0x46   :  { %1051 = vmatpush.bf16.msra.mxu2 %v1290_v30  ;;  %1020 = vmatmul.bf16.vlgmr.msrb.gmra.mxu3 %v2363_v44  ;;  %v1694_v30 = vor.u32 %v1872_v23, %v1693_v22  ;;  %v1186_v33 = vor.u32 %v1743_v25, %v1183_v26  ;;  %v1831_v22 = vld [vmem:[%s2824_s1 + $0x2e4] sm:$0xf]  ;;  %v1535_v23 = vld [vmem:[%s2824_s1 + $0x2e8] sm:$0xf0]  ;;  %v1797_v26 = vld [vmem:[%s2824_s1 + $0x1d4] sm:$0xf] }
  0x47   :  { %1064 = vmatpush.bf16.msra.mxu3 %v1354_v35  ;;  %v1870_v35 = vld [vmem:[%s2824_s1 + $0x414] sm:$0xf0]  ;;  %v1538_v31 = vor.u32 %v1831_v22, %v1535_v23  ;;  %v1805_v22 = vld [vmem:[%s2824_s1 + $0x214] sm:$0xf]  ;;  %v1431_v23 = vld [vmem:[%s2824_s1 + $0x218] sm:$0xf0] }
  0x48   :  { %1026 = vmatpush.bf16.msra.mxu0 %v1726_v39  ;;  %v1175_v39 = vld [vmem:[%s2824_s1 + $0x18] sm:$0xf0]  ;;  %v1686_v46 = vor.u32 %v1870_v35, %v1685_v34  ;;  %v1829_v34 = vld [vmem:[%s2824_s1 + $0x2d4] sm:$0xf] }
  0x49   :  { %1039 = vmatpush.bf16.msra.mxu1 %v1218_v43  ;;  %v1239_v43 = vld [vmem:[%s2824_s1 + $0x98] sm:$0xf0] }
  0x4a   :  { %1052 = vmatpush.bf16.msra.mxu2 %v1282_v47  ;;  %v1773_v47 = vld [vmem:[%s2824_s1 + $0x114] sm:$0xf]  ;;  %v1242_v55 = vor.u32 %v1757_v42, %v1239_v43  ;;  %v1527_v35 = vld [vmem:[%s2824_s1 + $0x2d8] sm:$0xf0]  ;;  %v1391_v42 = vld [vmem:[%s2824_s1 + $0x1c8] sm:$0xf0] }
  0x4b   :  { %1065 = vmatpush.bf16.msra.mxu3 %v1346_v51  ;;  %v1178_v51 = vor.u32 %v1741_v37, %v1175_v39  ;;  %v1306_v59 = vor.u32 %v1773_v47, %v1303_v48  ;;  %v1795_v39 = vld [vmem:[%s2824_s1 + $0x1c4] sm:$0xf]  ;;  %v1845_v43 = vld [vmem:[%s2824_s1 + $0x354] sm:$0xf]  ;;  %v1530_v45 = vor.u32 %v1829_v34, %v1527_v35  ;;  %v1455_v47 = vld [vmem:[%s2824_s1 + $0x248] sm:$0xf0] }
  0x4c   :  { %1027 = vmatpush.bf16.msra.mxu0 %v1718_v54  ;;  %v1167_v54 = vld [vmem:[%s2824_s1 + $0x8] sm:$0xf0]  ;;  %v1827_v48 = vld [vmem:[%s2824_s1 + $0x2c4] sm:$0xf]  ;;  %v1559_v34 = vld [vmem:[%s2824_s1 + $0x318] sm:$0xf0] }
  0x4d   :  { %1040 = vmatpush.bf16.msra.mxu1 %v1210_v57  ;;  %v1415_v57 = vld [vmem:[%s2824_s1 + $0x1f8] sm:$0xf0]  ;;  %v1170_v3 = vor.u32 %v1739_v53, %v1167_v54  ;;  %v1843_v54 = vld [vmem:[%s2824_s1 + $0x344] sm:$0xf] }
  0x4e   :  { %1053 = vmatpush.bf16.msra.mxu2 %v1274_v60  ;;  %v1479_v60 = vld [vmem:[%s2824_s1 + $0x278] sm:$0xf0]  ;;  %v1418_v4 = vor.u32 %v1801_v56, %v1415_v57  ;;  %v1809_v57 = vld [vmem:[%s2824_s1 + $0x234] sm:$0xf] }
  0x4f   :  { %1066 = vmatpush.bf16.msra.mxu3 %v1338_v63  ;;  %v182_v63 = vunpack.c.l.b16 %v18_v49  ;;  %v1394_v49 = vor.u32 %v1795_v39, %v1391_v42  ;;  %v1881_v39 = vld [vmem:[%s2824_s1 + $0x474] sm:$0xf]  ;;  %v1819_v42 = vld [vmem:[%s2824_s1 + $0x284] sm:$0xf] }
  0x50   :  { %1028 = vmatpush.bf16.msra.mxu0 %v1710_v2  ;;  %v1543_v2 = vld [vmem:[%s2824_s1 + $0x2f8] sm:$0xf0] }
  0x51   :  { %1041 = vmatpush.bf16.msra.mxu1 %v1202_v5  ;;  %v1771_v5 = vld [vmem:[%s2824_s1 + $0x104] sm:$0xf]  ;;  %v2548_v17 = vpack.c.b16 %v182_v63, %v182_v63 }
  0x52   :  { %1054 = vmatpush.bf16.msra.mxu2 %v1266_v10  ;;  %v1482_v10 = vor.u32 %v1817_v58, %v1479_v60  ;;  %v1447_v58 = vld [vmem:[%s2824_s1 + $0x238] sm:$0xf0]  ;;  %v1791_v63 = vld [vmem:[%s2824_s1 + $0x1a4] sm:$0xf] }
  0x53   :  { %1067 = vmatpush.bf16.msra.mxu3 %v1330_v15  ;;  %v1849_v15 = vld [vmem:[%s2824_s1 + $0x374] sm:$0xf]  ;;  %v1511_v60 = vld [vmem:[%s2824_s1 + $0x2b8] sm:$0xf0] }
  0x54   :  { %1029 = vmatpush.bf16.msra.mxu0 %v1702_v18  ;;  %v1546_v18 = vor.u32 %v1833_v1, %v1543_v2  ;;  %v1610_v25 = vor.u32 %v1849_v15, %v1607_v16  ;;  %v1375_v1 = vld [vmem:[%s2824_s1 + $0x1a8] sm:$0xf0]  ;;  %v1841_v2 = vld [vmem:[%s2824_s1 + $0x334] sm:$0xf] }
  0x55   :  { %1042 = vmatpush.bf16.msra.mxu1 %v1194_v21  ;;  %v1298_v21 = vor.u32 %v1771_v5, %v1295_v6  ;;  %v1807_v5 = vld [vmem:[%s2824_s1 + $0x224] sm:$0xf]  ;;  %v1439_v6 = vld [vmem:[%s2824_s1 + $0x228] sm:$0xf0]  ;;  %v1789_v15 = vld [vmem:[%s2824_s1 + $0x194] sm:$0xf] }
  0x56   :  { %1055 = vmatpush.bf16.msra.mxu2 %v1258_v24  ;;  %v1410_v24 = vor.u32 %v1799_v9, %v1407_v14  ;;  %v1823_v9 = vld [vmem:[%s2824_s1 + $0x2a4] sm:$0xf]  ;;  %v1442_v16 = vor.u32 %v1807_v5, %v1439_v6  ;;  %v1703_v5 = vld [vmem:[%s2824_s1 + $0x438] sm:$0xf0] }
  0x57   :  { %1068 = vmatpush.bf16.msra.mxu3 %v1322_v27  ;;  %v1474_v27 = vor.u32 %v1815_v19, %v1471_v20  ;;  %v1839_v19 = vld [vmem:[%s2824_s1 + $0x324] sm:$0xf]  ;;  %v1567_v20 = vld [vmem:[%s2824_s1 + $0x328] sm:$0xf0] }
  0x58   :  { %1030 = vmatpush.bf16.msra.mxu0 %v1694_v30  ;;  %v1599_v30 = vld [vmem:[%s2824_s1 + $0x368] sm:$0xf0] }
  0x59   :  { %1043 = vmatpush.bf16.msra.mxu1 %v1186_v33  ;;  %v1463_v33 = vld [vmem:[%s2824_s1 + $0x258] sm:$0xf0]  ;;  %v1602_v37 = vor.u32 %v1847_v29, %v1599_v30  ;;  %v1359_v29 = vld [vmem:[%s2824_s1 + $0x188] sm:$0xf0]  ;;  %v1803_v30 = vld [vmem:[%s2824_s1 + $0x204] sm:$0xf] }
  0x5a   :  { %1056 = vmatpush.bf16.msra.mxu2 %v1250_v36  ;;  %v1402_v36 = vor.u32 %v1797_v26, %v1399_v28  ;;  %v1787_v28 = vld [vmem:[%s2824_s1 + $0x184] sm:$0xf] }
  0x5b   :  { %1069 = vmatpush.bf16.msra.mxu3 %v1314_v41  ;;  %v1466_v41 = vor.u32 %v1813_v32, %v1463_v33  ;;  %v1423_v32 = vld [vmem:[%s2824_s1 + $0x208] sm:$0xf0]  ;;  %v1837_v33 = vld [vmem:[%s2824_s1 + $0x314] sm:$0xf] }
  0x5c   :  { %1031 = vmatpush.bf16.msra.mxu0 %v1686_v46  ;;  %v1811_v46 = vld [vmem:[%s2824_s1 + $0x244] sm:$0xf] }
  0x5d   :  { %1044 = vmatpush.bf16.msra.mxu1 %v1178_v51  ;;  %v1458_v53 = vor.u32 %v1811_v46, %v1455_v47  ;;  %v1426_v46 = vor.u32 %v1803_v30, %v1423_v32 }
  0x5e   :  { %1057 = vmatpush.bf16.msra.mxu2 %v1242_v55  ;;  %v1583_v55 = vld [vmem:[%s2824_s1 + $0x348] sm:$0xf0] }
  0x5f   :  { %1070 = vmatpush.bf16.msra.mxu3 %v1306_v59  ;;  %v1825_v59 = vld [vmem:[%s2824_s1 + $0x2b4] sm:$0xf]  ;;  %v1586_v62 = vor.u32 %v1843_v54, %v1583_v55  ;;  %v1727_v54 = vld [vmem:[%s2824_s1 + $0x468] sm:$0xf0] }
  0x60   :  { %1032 = vmatpush.bf16.msra.mxu0 %v1678_v0  ;;  %v1450_v0 = vor.u32 %v1809_v57, %v1447_v58  ;;  %v1861_v58 = vld [vmem:[%s2824_s1 + $0x3d4] sm:$0xf] }
  0x61   :  { %1045 = vmatpush.bf16.msra.mxu1 %v1170_v3  ;;  %v1575_v3 = vld [vmem:[%s2824_s1 + $0x338] sm:$0xf0] }
  0x62   :  { %1058 = vmatpush.bf16.msra.mxu2 %v1234_v11  ;;  %v1378_v11 = vor.u32 %v1791_v63, %v1375_v1  ;;  %v1578_v14 = vor.u32 %v1841_v2, %v1575_v3  ;;  %v1857_v3 = vld [vmem:[%s2824_s1 + $0x3b4] sm:$0xf] }
  0x63   :  { %1033 = vmatmul.bf16.vlgmr.msra.gmra.mxu0 %v2548_v17  ;;  %1071 = vmatpush.bf16.msra.mxu3 %v1298_v21 }
  0x64   :  { %1077 = vmatpush.bf16.msrb.mxu0 %v1418_v4  ;;  %1046 = vmatmul.bf16.vlgmr.msra.gmra.mxu1 %v2183_v12  ;;  %v1591_v12 = vld [vmem:[%s2824_s1 + $0x358] sm:$0xf0]  ;;  %v1514_v4 = vor.u32 %v1825_v59, %v1511_v60  ;;  %v1877_v60 = vld [vmem:[%s2824_s1 + $0x454] sm:$0xf] }
  0x65   :  { %1090 = vmatpush.bf16.msrb.mxu1 %v1482_v10  ;;  %1059 = vmatmul.bf16.vlgmr.msra.gmra.mxu2 %v2185_v13  ;;  %v1519_v13 = vld [vmem:[%s2824_s1 + $0x2c8] sm:$0xf0]  ;;  %v1594_v51 = vor.u32 %v1845_v43, %v1591_v12  ;;  %v1362_v12 = vor.u32 %v1787_v28, %v1359_v29  ;;  %v1655_v59 = vld [vmem:[%s2824_s1 + $0x3d8] sm:$0xf0] }
  0x66   :  { %1103 = vmatpush.bf16.msrb.mxu2 %v1546_v18  ;;  %1072 = vmatmul.bf16.vlgmr.msra.gmra.mxu3 %v2173_v7  ;;  %v1383_v7 = vld [vmem:[%s2824_s1 + $0x1b8] sm:$0xf0]  ;;  %v1522_v56 = vor.u32 %v1827_v48, %v1519_v13  ;;  %v1503_v10 = vld [vmem:[%s2824_s1 + $0x2a8] sm:$0xf0]  ;;  %v1835_v48 = vld [vmem:[%s2824_s1 + $0x304] sm:$0xf] }
  0x67   :  { %1116 = vmatpush.bf16.msrb.mxu3 %v1610_v25  ;;  %v1386_v61 = vor.u32 %v1793_v52, %v1383_v7  ;;  %v1367_v18 = vld [vmem:[%s2824_s1 + $0x198] sm:$0xf0]  ;;  %v1506_v21 = vor.u32 %v1823_v9, %v1503_v10  ;;  %v1487_v43 = vld [vmem:[%s2824_s1 + $0x288] sm:$0xf0]  ;;  %v1863_v52 = vld [vmem:[%s2824_s1 + $0x3e4] sm:$0xf] }
  0x68   :  { %1078 = vmatpush.bf16.msrb.mxu0 %v1410_v24  ;;  %v1821_v24 = vld [vmem:[%s2824_s1 + $0x294] sm:$0xf]  ;;  %v1495_v25 = vld [vmem:[%s2824_s1 + $0x298] sm:$0xf0]  ;;  %v1370_v26 = vor.u32 %v1789_v15, %v1367_v18  ;;  %v1551_v13 = vld [vmem:[%s2824_s1 + $0x308] sm:$0xf0] }
  0x69   :  { %1091 = vmatpush.bf16.msrb.mxu1 %v1474_v27  ;;  %v1570_v27 = vor.u32 %v1839_v19, %v1567_v20  ;;  %v1498_v35 = vor.u32 %v1821_v24, %v1495_v25  ;;  %v1879_v7 = vld [vmem:[%s2824_s1 + $0x464] sm:$0xf]  ;;  %v1554_v55 = vor.u32 %v1835_v48, %v1551_v13  ;;  %v1695_v15 = vld [vmem:[%s2824_s1 + $0x428] sm:$0xf0]  ;;  %v1853_v19 = vld [vmem:[%s2824_s1 + $0x394] sm:$0xf] }
  0x6a   :  { %1104 = vmatpush.bf16.msrb.mxu2 %v1538_v31  ;;  %v1434_v31 = vor.u32 %v1805_v22, %v1431_v23  ;;  %v1730_v57 = vor.u32 %v1879_v7, %v1727_v54  ;;  %v1855_v10 = vld [vmem:[%s2824_s1 + $0x3a4] sm:$0xf]  ;;  %v1623_v20 = vld [vmem:[%s2824_s1 + $0x398] sm:$0xf0]  ;;  %v1679_v28 = vld [vmem:[%s2824_s1 + $0x408] sm:$0xf0] }
  0x6b   :  { %1117 = vmatpush.bf16.msrb.mxu3 %v1602_v37  ;;  %v1671_v37 = vld [vmem:[%s2824_s1 + $0x3f8] sm:$0xf0]  ;;  %v1626_v23 = vor.u32 %v1853_v19, %v1623_v20  ;;  %v1851_v25 = vld [vmem:[%s2824_s1 + $0x384] sm:$0xf] }
  0x6c   :  { %1079 = vmatpush.bf16.msrb.mxu0 %v1402_v36  ;;  %v1865_v36 = vld [vmem:[%s2824_s1 + $0x3f4] sm:$0xf]  ;;  %v1687_v22 = vld [vmem:[%s2824_s1 + $0x418] sm:$0xf0] }
  0x6d   :  { %1092 = vmatpush.bf16.msrb.mxu1 %v1466_v41  ;;  %v1735_v41 = vld [vmem:[%s2824_s1 + $0x478] sm:$0xf0]  ;;  %v1674_v47 = vor.u32 %v1865_v36, %v1671_v37 }
  0x6e   :  { %1105 = vmatpush.bf16.msrb.mxu2 %v1530_v45  ;;  %v1562_v45 = vor.u32 %v1837_v33, %v1559_v34 }
  0x6f   :  { %1118 = vmatpush.bf16.msrb.mxu3 %v1594_v51  ;;  %v1490_v51 = vor.u32 %v1819_v42, %v1487_v43 }
  0x70   :  { %1080 = vmatpush.bf16.msrb.mxu0 %v1394_v49  ;;  %v1738_v49 = vor.u32 %v1881_v39, %v1735_v41 }
  0x71   :  { %1093 = vmatpush.bf16.msrb.mxu1 %v1458_v53  ;;  %v1663_v53 = vld [vmem:[%s2824_s1 + $0x3e8] sm:$0xf0] }
  0x72   :  { %1106 = vmatpush.bf16.msrb.mxu2 %v1522_v56  ;;  %v1666_v56 = vor.u32 %v1863_v52, %v1663_v53 }
  0x73   :  { %1119 = vmatpush.bf16.msrb.mxu3 %v1586_v62  ;;  %v1658_v62 = vor.u32 %v1861_v58, %v1655_v59 }
  0x74   :  { %1081 = vmatpush.bf16.msrb.mxu0 %v1386_v61  ;;  %v1719_v61 = vld [vmem:[%s2824_s1 + $0x458] sm:$0xf0] }
  0x75   :  { %1094 = vmatpush.bf16.msrb.mxu1 %v1450_v0  ;;  %v1722_v63 = vor.u32 %v1877_v60, %v1719_v61  ;;  %v1647_v0 = vld [vmem:[%s2824_s1 + $0x3c8] sm:$0xf0] }
  0x76   :  { %1107 = vmatpush.bf16.msrb.mxu2 %v1514_v4  ;;  %v1873_v4 = vld [vmem:[%s2824_s1 + $0x434] sm:$0xf] }
  0x77   :  { %1120 = vmatpush.bf16.msrb.mxu3 %v1578_v14  ;;  %v1706_v9 = vor.u32 %v1873_v4, %v1703_v5  ;;  %v1871_v14 = vld [vmem:[%s2824_s1 + $0x424] sm:$0xf] }
  0x78   :  { %1082 = vmatpush.bf16.msrb.mxu0 %v1378_v11  ;;  %v1631_v11 = vld [vmem:[%s2824_s1 + $0x3a8] sm:$0xf0]  ;;  %v1698_v18 = vor.u32 %v1871_v14, %v1695_v15 }
  0x79   :  { %1095 = vmatpush.bf16.msrb.mxu1 %v1442_v16  ;;  %v1634_v16 = vor.u32 %v1855_v10, %v1631_v11 }
  0x7a   :  { %1108 = vmatpush.bf16.msrb.mxu2 %v1506_v21  ;;  %v1869_v21 = vld [vmem:[%s2824_s1 + $0x414] sm:$0xf] }
  0x7b   :  { %1121 = vmatpush.bf16.msrb.mxu3 %v1570_v27  ;;  %v1690_v24 = vor.u32 %v1869_v21, %v1687_v22  ;;  %v1867_v27 = vld [vmem:[%s2824_s1 + $0x404] sm:$0xf] }
  0x7c   :  { %1083 = vmatpush.bf16.msrb.mxu0 %v1370_v26  ;;  %v1615_v26 = vld [vmem:[%s2824_s1 + $0x388] sm:$0xf0]  ;;  %v1682_v30 = vor.u32 %v1867_v27, %v1679_v28 }
  0x7d   :  { %1096 = vmatpush.bf16.msrb.mxu1 %v1434_v31  ;;  %v1618_v29 = vor.u32 %v1851_v25, %v1615_v26  ;;  %v163_v31 = vld [vmem:[%s2826_s2] sm:$0x3] }
  0x7e   :  { %1109 = vmatpush.bf16.msrb.mxu2 %v1498_v35  ;;  %v165_v32 = vperm.slane %v163_v31, 0 }
  0x7f   :  { %1122 = vmatpush.bf16.msrb.mxu3 %v1562_v45 }
  0x80   :  { %1084 = vmatpush.bf16.msrb.mxu0 %v1362_v12 }
  0x81   :  { %1097 = vmatpush.bf16.msrb.mxu1 %v1426_v46 }
  0x82   :  { %1110 = vmatpush.bf16.msrb.mxu2 %v1490_v51 }
  0x83   :  { %1085 = vmatmul.bf16.vlgmr.msrb.gmra.mxu0 %v2175_v8  ;;  %1123 = vmatpush.bf16.msrb.mxu3 %v1554_v55  ;;  %v1859_v8 = vld [vmem:[%s2824_s1 + $0x3c4] sm:$0xf] }
  0x84   :  { %1129 = vmatpush.bf16.msra.mxu0 %v1674_v47  ;;  %1098 = vmatmul.bf16.vlgmr.msrb.gmra.mxu1 %v2353_v38  ;;  %v1875_v38 = vld [vmem:[%s2824_s1 + $0x444] sm:$0xf]  ;;  %v1650_v1 = vor.u32 %v1859_v8, %v1647_v0  ;;  %v166_v8 = vperm.slane %v163_v31, 1 }
  0x85   :  { %1142 = vmatpush.bf16.msra.mxu1 %v1738_v49  ;;  %1111 = vmatmul.bf16.vlgmr.msrb.gmra.mxu2 %v2377_v50  ;;  %v1711_v50 = vld [vmem:[%s2824_s1 + $0x448] sm:$0xf0] }
  0x86   :  { %1124 = vmatmul.bf16.vlgmr.msrb.gmra.mxu3 %v2355_v40  ;;  %v1714_v2 = vor.u32 %v1875_v38, %v1711_v50  ;;  %v1639_v40 = vld [vmem:[%s2824_s1 + $0x3b8] sm:$0xf0] }
  0x87   :  { %v1642_v6 = vor.u32 %v1857_v3, %v1639_v40 }
  0x88   :  { %1130 = vmatpush.bf16.msra.mxu0 %v1666_v56 }
  0x89   :  { %1143 = vmatpush.bf16.msra.mxu1 %v1730_v57 }
  0x8c   :  { %1131 = vmatpush.bf16.msra.mxu0 %v1658_v62 }
  0x8d   :  { %1144 = vmatpush.bf16.msra.mxu1 %v1722_v63 }
  0x90   :  { %1132 = vmatpush.bf16.msra.mxu0 %v1650_v1 }
  0x91   :  { %1145 = vmatpush.bf16.msra.mxu1 %v1714_v2 }
  0x94   :  { %1133 = vmatpush.bf16.msra.mxu0 %v1642_v6 }
  0x95   :  { %1146 = vmatpush.bf16.msra.mxu1 %v1706_v9 }
  0x98   :  { %1134 = vmatpush.bf16.msra.mxu0 %v1634_v16 }
  0x99   :  { %1147 = vmatpush.bf16.msra.mxu1 %v1698_v18 }
  0x9c   :  { %1135 = vmatpush.bf16.msra.mxu0 %v1626_v23 }
  0x9d   :  { %1148 = vmatpush.bf16.msra.mxu1 %v1690_v24 }
  0xa0   :  { %1136 = vmatpush.bf16.msra.mxu0 %v1618_v29  ;;  %v930_v34 = vpop.f32.mrf.mxu0 }
  0xa1   :  { %1149 = vmatpush.bf16.msra.mxu1 %v1682_v30  ;;  %v943_v33 = vpop.f32.mrf.mxu1  ;;  %v931_v35 = vadd.f32 %v930_v34, %v165_v32 }
  0xa3   :  { %1137 = vmatmul.bf16.vlgmr.msra.gmra.mxu0 %v2363_v44  ;;  %v944_v36 = vadd.f32 %v943_v33, %v931_v35 }
  0xa4   :  { %1150 = vmatmul.bf16.vlgmr.msra.gmra.mxu1 %v2548_v17 }
  0xa8   :  { %v956_v39 = vpop.f32.mrf.mxu2  ;;  %v932_v12 = vpop.f32.mrf.mxu0 }
  0xa9   :  { %v969_v37 = vpop.f32.mrf.mxu3  ;;  %v957_v41 = vadd.f32 %v956_v39, %v944_v36  ;;  %v945_v43 = vpop.f32.mrf.mxu1 }
  0xab   :  { %v970_v42 = vadd.f32 %v969_v37, %v957_v41 }
  0xb0   :  { %v958_v46 = vpop.f32.mrf.mxu2 }
  0xb1   :  { %v971_v45 = vpop.f32.mrf.mxu3 }
  0xc0   :  { %v982_v44 = vpop.f32.mrf.mxu0 }
  0xc1   :  { %v983_v47 = vadd.f32 %v982_v44, %v970_v42  ;;  %v995_v17 = vpop.f32.mrf.mxu1 }
  0xc3   :  { %v996_v48 = vadd.f32 %v995_v17, %v983_v47 }
  0xc8   :  { %v1008_v13 = vpop.f32.mrf.mxu2  ;;  %v984_v52 = vpop.f32.mrf.mxu0 }
  0xc9   :  { %v1009_v49 = vadd.f32 %v1008_v13, %v996_v48  ;;  %v1021_v51 = vpop.f32.mrf.mxu3  ;;  %v997_v7 = vpop.f32.mrf.mxu1 }
  0xcb   :  { %v1022_v53 = vadd.f32 %v1021_v51, %v1009_v49 }
  0xd0   :  { %v1010_v54 = vpop.f32.mrf.mxu2 }
  0xd1   :  { %v1023_v55 = vpop.f32.mrf.mxu3 }
  0xe0   :  { %v1034_v56 = vpop.f32.mrf.mxu0 }
  0xe1   :  { %v1047_v57 = vpop.f32.mrf.mxu1  ;;  %v1035_v18 = vadd.f32 %v1034_v56, %v1022_v53 }
  0xe2   :  { %v1048_v50 = vadd.f32 %v1047_v57, %v166_v8 }
  0xe3   :  { %v1155_v22 = vmax.f32 %v1035_v18, 0.0 }
  0xe8   :  { %v1036_v58 = vpop.f32.mrf.mxu0  ;;  %v1060_v59 = vpop.f32.mrf.mxu2 }
  0xe9   :  { %v1049_v60 = vpop.f32.mrf.mxu1  ;;  %v1073_v61 = vpop.f32.mrf.mxu3  ;;  %v1061_v1 = vadd.f32 %v1060_v59, %v1048_v50 }
  0xeb   :  { %v1074_v5 = vadd.f32 %v1073_v61, %v1061_v1 }
  0xf0   :  { %v1062_v62 = vpop.f32.mrf.mxu2 }
  0xf1   :  { %v1075_v63 = vpop.f32.mrf.mxu3 }
 0x100   :  { %v1086_v0 = vpop.f32.mrf.mxu0 }
 0x101   :  { %v1099_v38 = vpop.f32.mrf.mxu1  ;;  %v1087_v6 = vadd.f32 %v1086_v0, %v1074_v5 }
 0x103   :  { %v1100_v11 = vadd.f32 %v1099_v38, %v1087_v6 }
 0x108   :  { %v1112_v2 = vpop.f32.mrf.mxu2  ;;  %v1088_v3 = vpop.f32.mrf.mxu0 }
 0x109   :  { %v1101_v40 = vpop.f32.mrf.mxu1  ;;  %v1125_v4 = vpop.f32.mrf.mxu3  ;;  %v1113_v14 = vadd.f32 %v1112_v2, %v1100_v11 }
 0x10b   :  { %v1126_v15 = vadd.f32 %v1125_v4, %v1113_v14 }
 0x110   :  { %v1114_v9 = vpop.f32.mrf.mxu2 }
 0x111   :  { %v1127_v10 = vpop.f32.mrf.mxu3 }
 0x120   :  { %v1138_v16 = vpop.f32.mrf.mxu0 }
 0x121   :  { %v1139_v19 = vadd.f32 %v1138_v16, %v1126_v15  ;;  %v1151_v20 = vpop.f32.mrf.mxu1 }
 0x123   :  { %v1152_v21 = vadd.f32 %v1151_v20, %v1139_v19 }
 0x125   :  { %v1156_v23 = vmax.f32 %v1152_v21, 0.0 }
 0x127   :  { %v1157_v24 = vpack.c.bf16 %v1156_v23, %v1155_v22 }
 0x128   :  { %v1140_v25 = vpop.f32.mrf.mxu0 }
 0x129   :  { %1158 = vst [vmem:[%s2827_s3] sm:$0xff] %v1157_v24  ;;  %v1153_v26 = vpop.f32.mrf.mxu1 }

// kernel: backbone_forward.30
= control target key start
LH: loop header
LB: loop body
LE: loop exit
PB: predicated region body
PF: predicated region fallthrough
CT: control target
= control target key end

     0   :  { %s5602_s1 = inlined_call_operand.vmem [shape: bf16[2304,256], index: 1, kind: input, shape index: {}]   ;;  %s5603_s0 = inlined_call_operand.vmem [shape: bf16[8,2304], index: 0, kind: input, shape index: {}]   ;;  %s5604_s2 = inlined_call_operand.vmem [shape: f32[1,256], index: 2, kind: input, shape index: {}]   ;;  %s5605_s3 = inlined_call_operand.vmem [shape: bf16[8,256], index: 3, kind: output, shape index: {}]  }
   0x1   :  { %v2354_v0 = vld [vmem:[%s5602_s1 + $0x70] sm:$0xf]  ;;  %v3463_v1 = vld [vmem:[%s5602_s1 + $0x74] sm:$0xf0]  ;;  %v2346_v11 = vld [vmem:[%s5602_s1 + $0x60] sm:$0xf] }
   0x2   :  { %v2418_v2 = vld [vmem:[%s5602_s1 + $0xf0] sm:$0xf]  ;;  %v2355_v3 = vor.u32 %v3463_v1, %v2354_v0  ;;  %v3479_v4 = vld [vmem:[%s5602_s1 + $0xf4] sm:$0xf0]  ;;  %v3461_v13 = vld [vmem:[%s5602_s1 + $0x64] sm:$0xf0] }
   0x3   :  { %v2482_v5 = vld [vmem:[%s5602_s1 + $0x170] sm:$0xf]  ;;  %v3495_v6 = vld [vmem:[%s5602_s1 + $0x174] sm:$0xf0]  ;;  %v2419_v7 = vor.u32 %v3479_v4, %v2418_v2  ;;  %v2410_v14 = vld [vmem:[%s5602_s1 + $0xe0] sm:$0xf]  ;;  %v2347_v16 = vor.u32 %v3461_v13, %v2346_v11 }
   0x4   :  { %v2483_v8 = vor.u32 %v3495_v6, %v2482_v5  ;;  %v2546_v9 = vld [vmem:[%s5602_s1 + $0x1f0] sm:$0xf]  ;;  %v3511_v10 = vld [vmem:[%s5602_s1 + $0x1f4] sm:$0xf0]  ;;  %1820 = vmatpush.bf16.msra.mxu0 %v2355_v3  ;;  %v3477_v15 = vld [vmem:[%s5602_s1 + $0xe4] sm:$0xf0] }
   0x5   :  { %v2547_v12 = vor.u32 %v3511_v10, %v2546_v9  ;;  %1833 = vmatpush.bf16.msra.mxu1 %v2419_v7  ;;  %v2411_v17 = vor.u32 %v3477_v15, %v2410_v14  ;;  %v2474_v18 = vld [vmem:[%s5602_s1 + $0x160] sm:$0xf]  ;;  %v3493_v19 = vld [vmem:[%s5602_s1 + $0x164] sm:$0xf0]  ;;  %v2338_v23 = vld [vmem:[%s5602_s1 + $0x50] sm:$0xf] }
   0x6   :  { %1846 = vmatpush.bf16.msra.mxu2 %v2483_v8  ;;  %v2538_v20 = vld [vmem:[%s5602_s1 + $0x1e0] sm:$0xf]  ;;  %v2475_v21 = vor.u32 %v3493_v19, %v2474_v18  ;;  %v3509_v22 = vld [vmem:[%s5602_s1 + $0x1e4] sm:$0xf0]  ;;  %v3459_v24 = vld [vmem:[%s5602_s1 + $0x54] sm:$0xf0] }
   0x7   :  { %1859 = vmatpush.bf16.msra.mxu3 %v2547_v12  ;;  %v2539_v25 = vor.u32 %v3509_v22, %v2538_v20  ;;  %v2402_v26 = vld [vmem:[%s5602_s1 + $0xd0] sm:$0xf]  ;;  %v3475_v27 = vld [vmem:[%s5602_s1 + $0xd4] sm:$0xf0]  ;;  %v2339_v29 = vor.u32 %v3459_v24, %v2338_v23  ;;  %v2330_v35 = vld [vmem:[%s5602_s1 + $0x40] sm:$0xf] }
   0x8   :  { %v2466_v28 = vld [vmem:[%s5602_s1 + $0x150] sm:$0xf]  ;;  %1821 = vmatpush.bf16.msra.mxu0 %v2347_v16  ;;  %v3491_v30 = vld [vmem:[%s5602_s1 + $0x154] sm:$0xf0]  ;;  %v2403_v33 = vor.u32 %v3475_v27, %v2402_v26  ;;  %v3457_v36 = vld [vmem:[%s5602_s1 + $0x44] sm:$0xf0] }
   0x9   :  { %v2530_v31 = vld [vmem:[%s5602_s1 + $0x1d0] sm:$0xf]  ;;  %v3507_v32 = vld [vmem:[%s5602_s1 + $0x1d4] sm:$0xf0]  ;;  %1834 = vmatpush.bf16.msra.mxu1 %v2411_v17  ;;  %v2467_v34 = vor.u32 %v3491_v30, %v2466_v28  ;;  %v2394_v37 = vld [vmem:[%s5602_s1 + $0xc0] sm:$0xf]  ;;  %v2331_v44 = vor.u32 %v3457_v36, %v2330_v35 }
   0xa   :  { %1847 = vmatpush.bf16.msra.mxu2 %v2475_v21  ;;  %v2531_v38 = vor.u32 %v3507_v32, %v2530_v31  ;;  %v3473_v39 = vld [vmem:[%s5602_s1 + $0xc4] sm:$0xf0]  ;;  %v2458_v40 = vld [vmem:[%s5602_s1 + $0x140] sm:$0xf]  ;;  %v2322_v47 = vld [vmem:[%s5602_s1 + $0x30] sm:$0xf] }
   0xb   :  { %1860 = vmatpush.bf16.msra.mxu3 %v2539_v25  ;;  %v3489_v41 = vld [vmem:[%s5602_s1 + $0x144] sm:$0xf0]  ;;  %v2522_v42 = vld [vmem:[%s5602_s1 + $0x1c0] sm:$0xf]  ;;  %v2395_v45 = vor.u32 %v3473_v39, %v2394_v37  ;;  %v3455_v48 = vld [vmem:[%s5602_s1 + $0x34] sm:$0xf0] }
   0xc   :  { %v3505_v43 = vld [vmem:[%s5602_s1 + $0x1c4] sm:$0xf0]  ;;  %1822 = vmatpush.bf16.msra.mxu0 %v2339_v29  ;;  %v2459_v46 = vor.u32 %v3489_v41, %v2458_v40  ;;  %v2386_v49 = vld [vmem:[%s5602_s1 + $0xb0] sm:$0xf]  ;;  %v3471_v51 = vld [vmem:[%s5602_s1 + $0xb4] sm:$0xf0]  ;;  %v2323_v56 = vor.u32 %v3455_v48, %v2322_v47 }
   0xd   :  { %1835 = vmatpush.bf16.msra.mxu1 %v2403_v33  ;;  %v2523_v50 = vor.u32 %v3505_v43, %v2522_v42  ;;  %v2450_v52 = vld [vmem:[%s5602_s1 + $0x130] sm:$0xf]  ;;  %v3487_v53 = vld [vmem:[%s5602_s1 + $0x134] sm:$0xf0]  ;;  %v2387_v57 = vor.u32 %v3471_v51, %v2386_v49  ;;  %v2314_v59 = vld [vmem:[%s5602_s1 + $0x20] sm:$0xf] }
   0xe   :  { %1848 = vmatpush.bf16.msra.mxu2 %v2467_v34  ;;  %v2514_v54 = vld [vmem:[%s5602_s1 + $0x1b0] sm:$0xf]  ;;  %v3503_v55 = vld [vmem:[%s5602_s1 + $0x1b4] sm:$0xf0]  ;;  %v2451_v58 = vor.u32 %v3487_v53, %v2450_v52  ;;  %v3453_v60 = vld [vmem:[%s5602_s1 + $0x24] sm:$0xf0] }
   0xf   :  { %1861 = vmatpush.bf16.msra.mxu3 %v2531_v38  ;;  %v2378_v61 = vld [vmem:[%s5602_s1 + $0xa0] sm:$0xf]  ;;  %v2515_v62 = vor.u32 %v3503_v55, %v2514_v54  ;;  %v3469_v63 = vld [vmem:[%s5602_s1 + $0xa4] sm:$0xf0]  ;;  %v2315_v4 = vor.u32 %v3453_v60, %v2314_v59  ;;  %v2306_v7 = vld [vmem:[%s5602_s1 + $0x10] sm:$0xf] }
  0x10   :  { %1823 = vmatpush.bf16.msra.mxu0 %v2331_v44  ;;  %v2442_v0 = vld [vmem:[%s5602_s1 + $0x120] sm:$0xf]  ;;  %v3485_v1 = vld [vmem:[%s5602_s1 + $0x124] sm:$0xf0]  ;;  %v2379_v5 = vor.u32 %v3469_v63, %v2378_v61  ;;  %v3451_v8 = vld [vmem:[%s5602_s1 + $0x14] sm:$0xf0] }
  0x11   :  { %1836 = vmatpush.bf16.msra.mxu1 %v2395_v45  ;;  %v2506_v2 = vld [vmem:[%s5602_s1 + $0x1a0] sm:$0xf]  ;;  %v3501_v3 = vld [vmem:[%s5602_s1 + $0x1a4] sm:$0xf0]  ;;  %v2443_v6 = vor.u32 %v3485_v1, %v2442_v0  ;;  %v2370_v9 = vld [vmem:[%s5602_s1 + $0x90] sm:$0xf]  ;;  %v2307_v16 = vor.u32 %v3451_v8, %v2306_v7 }
  0x12   :  { %1849 = vmatpush.bf16.msra.mxu2 %v2459_v46  ;;  %v2507_v10 = vor.u32 %v3501_v3, %v2506_v2  ;;  %v3467_v11 = vld [vmem:[%s5602_s1 + $0x94] sm:$0xf0]  ;;  %v2434_v12 = vld [vmem:[%s5602_s1 + $0x110] sm:$0xf]  ;;  %v2298_v17 = vld [vmem:[%s5602_s1] sm:$0xf] }
  0x13   :  { %1862 = vmatpush.bf16.msra.mxu3 %v2523_v50  ;;  %v3483_v13 = vld [vmem:[%s5602_s1 + $0x114] sm:$0xf0]  ;;  %v2498_v14 = vld [vmem:[%s5602_s1 + $0x190] sm:$0xf]  ;;  %v3449_v18 = vld [vmem:[%s5602_s1 + $0x4] sm:$0xf0]  ;;  %v2371_v19 = vor.u32 %v3467_v11, %v2370_v9 }
  0x14   :  { %1824 = vmatpush.bf16.msra.mxu0 %v2323_v56  ;;  %v3499_v15 = vld [vmem:[%s5602_s1 + $0x194] sm:$0xf0]  ;;  %v2435_v20 = vor.u32 %v3483_v13, %v2434_v12  ;;  %v2362_v21 = vld [vmem:[%s5602_s1 + $0x80] sm:$0xf]  ;;  %v3465_v22 = vld [vmem:[%s5602_s1 + $0x84] sm:$0xf0]  ;;  %v2299_v31 = vor.u32 %v3449_v18, %v2298_v17 }
  0x15   :  { %1837 = vmatpush.bf16.msra.mxu1 %v2387_v57  ;;  %v2426_v23 = vld [vmem:[%s5602_s1 + $0x100] sm:$0xf]  ;;  %v2499_v24 = vor.u32 %v3499_v15, %v2498_v14  ;;  %v3481_v25 = vld [vmem:[%s5602_s1 + $0x104] sm:$0xf0]  ;;  %v2610_v28 = vld [vmem:[%s5602_s1 + $0x270] sm:$0xf]  ;;  %v2363_v35 = vor.u32 %v3465_v22, %v2362_v21 }
  0x16   :  { %1850 = vmatpush.bf16.msra.mxu2 %v2451_v58  ;;  %v2490_v26 = vld [vmem:[%s5602_s1 + $0x180] sm:$0xf]  ;;  %v3497_v27 = vld [vmem:[%s5602_s1 + $0x184] sm:$0xf0]  ;;  %v3527_v29 = vld [vmem:[%s5602_s1 + $0x274] sm:$0xf0]  ;;  %v2427_v36 = vor.u32 %v3481_v25, %v2426_v23 }
  0x17   :  { %1863 = vmatpush.bf16.msra.mxu3 %v2515_v62  ;;  %v2674_v30 = vld [vmem:[%s5602_s1 + $0x2f0] sm:$0xf]  ;;  %v3543_v32 = vld [vmem:[%s5602_s1 + $0x2f4] sm:$0xf0]  ;;  %v2491_v39 = vor.u32 %v3497_v27, %v2490_v26  ;;  %v2611_v40 = vor.u32 %v3527_v29, %v2610_v28  ;;  %v2602_v43 = vld [vmem:[%s5602_s1 + $0x260] sm:$0xf] }
  0x18   :  { %1825 = vmatpush.bf16.msra.mxu0 %v2315_v4  ;;  %v2738_v33 = vld [vmem:[%s5602_s1 + $0x370] sm:$0xf]  ;;  %v3559_v34 = vld [vmem:[%s5602_s1 + $0x374] sm:$0xf0]  ;;  %v2675_v41 = vor.u32 %v3543_v32, %v2674_v30  ;;  %v3525_v44 = vld [vmem:[%s5602_s1 + $0x264] sm:$0xf0] }
  0x19   :  { %1838 = vmatpush.bf16.msra.mxu1 %v2379_v5  ;;  %v2802_v37 = vld [vmem:[%s5602_s1 + $0x3f0] sm:$0xf]  ;;  %v3575_v38 = vld [vmem:[%s5602_s1 + $0x3f4] sm:$0xf0]  ;;  %v2739_v42 = vor.u32 %v3559_v34, %v2738_v33  ;;  %v2666_v45 = vld [vmem:[%s5602_s1 + $0x2e0] sm:$0xf]  ;;  %v2603_v52 = vor.u32 %v3525_v44, %v2602_v43 }
  0x1a   :  { %1851 = vmatpush.bf16.msra.mxu2 %v2443_v6  ;;  %v2803_v46 = vor.u32 %v3575_v38, %v2802_v37  ;;  %v3541_v47 = vld [vmem:[%s5602_s1 + $0x2e4] sm:$0xf0]  ;;  %v2730_v48 = vld [vmem:[%s5602_s1 + $0x360] sm:$0xf]  ;;  %v2594_v53 = vld [vmem:[%s5602_s1 + $0x250] sm:$0xf] }
  0x1b   :  { %1864 = vmatpush.bf16.msra.mxu3 %v2507_v10  ;;  %v3557_v49 = vld [vmem:[%s5602_s1 + $0x364] sm:$0xf0]  ;;  %v2794_v50 = vld [vmem:[%s5602_s1 + $0x3e0] sm:$0xf]  ;;  %v2667_v54 = vor.u32 %v3541_v47, %v2666_v45  ;;  %v3523_v56 = vld [vmem:[%s5602_s1 + $0x254] sm:$0xf0] }
  0x1c   :  { %1826 = vmatpush.bf16.msra.mxu0 %v2307_v16  ;;  %v3573_v51 = vld [vmem:[%s5602_s1 + $0x3e4] sm:$0xf0]  ;;  %v2731_v55 = vor.u32 %v3557_v49, %v2730_v48  ;;  %v2658_v57 = vld [vmem:[%s5602_s1 + $0x2d0] sm:$0xf]  ;;  %v3539_v60 = vld [vmem:[%s5602_s1 + $0x2d4] sm:$0xf0]  ;;  %v2595_v3 = vor.u32 %v3523_v56, %v2594_v53 }
  0x1d   :  { %1839 = vmatpush.bf16.msra.mxu1 %v2371_v19  ;;  %v15_v58 = vld [vmem:[%s5603_s0 + $0x8] sm:$0xff]  ;;  %v2795_v59 = vor.u32 %v3573_v51, %v2794_v50  ;;  %v2722_v61 = vld [vmem:[%s5602_s1 + $0x350] sm:$0xf]  ;;  %v3555_v62 = vld [vmem:[%s5602_s1 + $0x354] sm:$0xf0]  ;;  %v2659_v7 = vor.u32 %v3539_v60, %v2658_v57 }
  0x1e   :  { %1852 = vmatpush.bf16.msra.mxu2 %v2435_v20  ;;  %v328_v63 = vunpack.c.l.b16 %v15_v58  ;;  %v329_v0 = vunpack.c.h.b16 %v15_v58  ;;  %v2786_v1 = vld [vmem:[%s5602_s1 + $0x3d0] sm:$0xf]  ;;  %v3571_v2 = vld [vmem:[%s5602_s1 + $0x3d4] sm:$0xf0]  ;;  %v14_v5 = vld [vmem:[%s5603_s0] sm:$0xff]  ;;  %v2723_v8 = vor.u32 %v3555_v62, %v2722_v61 }
  0x1f   :  { %1865 = vmatpush.bf16.msra.mxu3 %v2499_v24  ;;  %v2586_v9 = vld [vmem:[%s5602_s1 + $0x240] sm:$0xf]  ;;  %v3521_v10 = vld [vmem:[%s5602_s1 + $0x244] sm:$0xf0]  ;;  %v326_v12 = vunpack.c.l.b16 %v14_v5  ;;  %v327_v13 = vunpack.c.h.b16 %v14_v5  ;;  %v2787_v14 = vor.u32 %v3571_v2, %v2786_v1  ;;  %v2578_v25 = vld [vmem:[%s5602_s1 + $0x230] sm:$0xf] }
  0x20   :  { %1827 = vmatpush.bf16.msra.mxu0 %v2299_v31  ;;  %v4024_v4 = vpack.c.b16 %v328_v63, %v328_v63  ;;  %v4029_v6 = vpack.c.b16 %v329_v0, %v329_v0  ;;  %v2650_v11 = vld [vmem:[%s5602_s1 + $0x2c0] sm:$0xf]  ;;  %v3537_v15 = vld [vmem:[%s5602_s1 + $0x2c4] sm:$0xf0]  ;;  %v2587_v22 = vor.u32 %v3521_v10, %v2586_v9  ;;  %v3519_v26 = vld [vmem:[%s5602_s1 + $0x234] sm:$0xf0] }
  0x21   :  { %1840 = vmatpush.bf16.msra.mxu1 %v2363_v35  ;;  %v2714_v16 = vld [vmem:[%s5602_s1 + $0x340] sm:$0xf]  ;;  %v3553_v17 = vld [vmem:[%s5602_s1 + $0x344] sm:$0xf0]  ;;  %v4056_v20 = vpack.c.b16 %v326_v12, %v326_v12  ;;  %v4059_v21 = vpack.c.b16 %v327_v13, %v327_v13  ;;  %v2651_v23 = vor.u32 %v3537_v15, %v2650_v11  ;;  %v2642_v27 = vld [vmem:[%s5602_s1 + $0x2b0] sm:$0xf]  ;;  %v2579_v34 = vor.u32 %v3519_v26, %v2578_v25 }
  0x22   :  { %1853 = vmatpush.bf16.msra.mxu2 %v2427_v36  ;;  %v2778_v18 = vld [vmem:[%s5602_s1 + $0x3c0] sm:$0xf]  ;;  %v3569_v19 = vld [vmem:[%s5602_s1 + $0x3c4] sm:$0xf0]  ;;  %v2715_v24 = vor.u32 %v3553_v17, %v2714_v16  ;;  %v3535_v29 = vld [vmem:[%s5602_s1 + $0x2b4] sm:$0xf0] }
  0x23   :  { %1866 = vmatpush.bf16.msra.mxu3 %v2491_v39  ;;  %v2779_v28 = vor.u32 %v3569_v19, %v2778_v18  ;;  %v2706_v30 = vld [vmem:[%s5602_s1 + $0x330] sm:$0xf]  ;;  %v3551_v31 = vld [vmem:[%s5602_s1 + $0x334] sm:$0xf0]  ;;  %1828 = vmatmul.bf16.vlgmr.msra.gmra.mxu0 %v4056_v20  ;;  %v2643_v35 = vor.u32 %v3535_v29, %v2642_v27  ;;  %v2570_v37 = vld [vmem:[%s5602_s1 + $0x220] sm:$0xf] }
  0x24   :  { %1872 = vmatpush.bf16.msrb.mxu0 %v2611_v40  ;;  %v2770_v32 = vld [vmem:[%s5602_s1 + $0x3b0] sm:$0xf]  ;;  %v3567_v33 = vld [vmem:[%s5602_s1 + $0x3b4] sm:$0xf0]  ;;  %1841 = vmatmul.bf16.vlgmr.msra.gmra.mxu1 %v4059_v21  ;;  %v2707_v36 = vor.u32 %v3551_v31, %v2706_v30  ;;  %v3517_v38 = vld [vmem:[%s5602_s1 + $0x224] sm:$0xf0] }
  0x25   :  { %1885 = vmatpush.bf16.msrb.mxu1 %v2675_v41  ;;  %1854 = vmatmul.bf16.vlgmr.msra.gmra.mxu2 %v4024_v4  ;;  %v2634_v39 = vld [vmem:[%s5602_s1 + $0x2a0] sm:$0xf]  ;;  %v2771_v40 = vor.u32 %v3567_v33, %v2770_v32  ;;  %v3533_v41 = vld [vmem:[%s5602_s1 + $0x2a4] sm:$0xf0]  ;;  %v2562_v49 = vld [vmem:[%s5602_s1 + $0x210] sm:$0xf] }
  0x26   :  { %1898 = vmatpush.bf16.msrb.mxu2 %v2739_v42  ;;  %1867 = vmatmul.bf16.vlgmr.msra.gmra.mxu3 %v4029_v6  ;;  %v2698_v42 = vld [vmem:[%s5602_s1 + $0x320] sm:$0xf]  ;;  %v3549_v43 = vld [vmem:[%s5602_s1 + $0x324] sm:$0xf0]  ;;  %v2635_v47 = vor.u32 %v3533_v41, %v2634_v39  ;;  %v3515_v50 = vld [vmem:[%s5602_s1 + $0x214] sm:$0xf0] }
  0x27   :  { %1911 = vmatpush.bf16.msrb.mxu3 %v2803_v46  ;;  %v2762_v44 = vld [vmem:[%s5602_s1 + $0x3a0] sm:$0xf]  ;;  %v3565_v45 = vld [vmem:[%s5602_s1 + $0x3a4] sm:$0xf0]  ;;  %v2571_v46 = vor.u32 %v3517_v38, %v2570_v37  ;;  %v2699_v48 = vor.u32 %v3549_v43, %v2698_v42  ;;  %v2626_v51 = vld [vmem:[%s5602_s1 + $0x290] sm:$0xf] }
  0x28   :  { %1873 = vmatpush.bf16.msrb.mxu0 %v2603_v52  ;;  %v2763_v52 = vor.u32 %v3565_v45, %v2762_v44  ;;  %v3531_v53 = vld [vmem:[%s5602_s1 + $0x294] sm:$0xf0]  ;;  %v2754_v56 = vld [vmem:[%s5602_s1 + $0x390] sm:$0xf]  ;;  %v2554_v58 = vld [vmem:[%s5602_s1 + $0x200] sm:$0xf] }
  0x29   :  { %1886 = vmatpush.bf16.msrb.mxu1 %v2667_v54  ;;  %v2690_v54 = vld [vmem:[%s5602_s1 + $0x310] sm:$0xf]  ;;  %v3563_v57 = vld [vmem:[%s5602_s1 + $0x394] sm:$0xf0]  ;;  %v3513_v60 = vld [vmem:[%s5602_s1 + $0x204] sm:$0xf0]  ;;  %v2627_v63 = vor.u32 %v3531_v53, %v2626_v51 }
  0x2a   :  { %1899 = vmatpush.bf16.msrb.mxu2 %v2731_v55  ;;  %v3547_v55 = vld [vmem:[%s5602_s1 + $0x314] sm:$0xf0]  ;;  %v2618_v61 = vld [vmem:[%s5602_s1 + $0x280] sm:$0xf]  ;;  %v3529_v62 = vld [vmem:[%s5602_s1 + $0x284] sm:$0xf0]  ;;  %v2755_v5 = vor.u32 %v3563_v57, %v2754_v56  ;;  %v2555_v13 = vor.u32 %v3513_v60, %v2554_v58 }
  0x2b   :  { %1912 = vmatpush.bf16.msrb.mxu3 %v2795_v59  ;;  %v2563_v59 = vor.u32 %v3515_v50, %v2562_v49  ;;  %v2691_v0 = vor.u32 %v3547_v55, %v2690_v54  ;;  %v2682_v1 = vld [vmem:[%s5602_s1 + $0x300] sm:$0xf]  ;;  %v3545_v2 = vld [vmem:[%s5602_s1 + $0x304] sm:$0xf0]  ;;  %v16_v9 = vld [vmem:[%s5603_s0 + $0x10] sm:$0xff]  ;;  %v2619_v18 = vor.u32 %v3529_v62, %v2618_v61 }
  0x2c   :  { %1874 = vmatpush.bf16.msrb.mxu0 %v2595_v3  ;;  %v17_v3 = vld [vmem:[%s5603_s0 + $0x18] sm:$0xff]  ;;  %v2866_v10 = vld [vmem:[%s5602_s1 + $0x470] sm:$0xf]  ;;  %v2683_v19 = vor.u32 %v3545_v2, %v2682_v1  ;;  %v2858_v31 = vld [vmem:[%s5602_s1 + $0x460] sm:$0xf] }
  0x2d   :  { %1887 = vmatpush.bf16.msrb.mxu1 %v2659_v7  ;;  %v2746_v7 = vld [vmem:[%s5602_s1 + $0x380] sm:$0xf]  ;;  %v3591_v11 = vld [vmem:[%s5602_s1 + $0x474] sm:$0xf0]  ;;  %v2930_v12 = vld [vmem:[%s5602_s1 + $0x4f0] sm:$0xf]  ;;  %v332_v17 = vunpack.c.l.b16 %v17_v3  ;;  %v333_v25 = vunpack.c.h.b16 %v17_v3 }
  0x2e   :  { %1900 = vmatpush.bf16.msrb.mxu2 %v2723_v8  ;;  %v3561_v8 = vld [vmem:[%s5602_s1 + $0x384] sm:$0xf0]  ;;  %v2994_v15 = vld [vmem:[%s5602_s1 + $0x570] sm:$0xf]  ;;  %v3623_v16 = vld [vmem:[%s5602_s1 + $0x574] sm:$0xf0]  ;;  %v2867_v27 = vor.u32 %v3591_v11, %v2866_v10 }
  0x2f   :  { %1913 = vmatpush.bf16.msrb.mxu3 %v2787_v14  ;;  %v3607_v14 = vld [vmem:[%s5602_s1 + $0x4f4] sm:$0xf0]  ;;  %v2747_v26 = vor.u32 %v3561_v8, %v2746_v7  ;;  %v2995_v30 = vor.u32 %v3623_v16, %v2994_v15  ;;  %v3589_v32 = vld [vmem:[%s5602_s1 + $0x464] sm:$0xf0]  ;;  %v2922_v33 = vld [vmem:[%s5602_s1 + $0x4e0] sm:$0xf]  ;;  %v4207_v38 = vpack.c.b16 %v332_v17, %v332_v17  ;;  %v4217_v42 = vpack.c.b16 %v333_v25, %v333_v25 }
  0x30   :  { %1875 = vmatpush.bf16.msrb.mxu0 %v2587_v22  ;;  %v3058_v22 = vld [vmem:[%s5602_s1 + $0x5f0] sm:$0xf]  ;;  %v2931_v29 = vor.u32 %v3607_v14, %v2930_v12  ;;  %v3621_v37 = vld [vmem:[%s5602_s1 + $0x564] sm:$0xf0]  ;;  %v3050_v39 = vld [vmem:[%s5602_s1 + $0x5e0] sm:$0xf]  ;;  %v2859_v43 = vor.u32 %v3589_v32, %v2858_v31 }
  0x31   :  { %1888 = vmatpush.bf16.msrb.mxu1 %v2651_v23  ;;  %v3639_v23 = vld [vmem:[%s5602_s1 + $0x5f4] sm:$0xf0]  ;;  %v2914_v49 = vld [vmem:[%s5602_s1 + $0x4d0] sm:$0xf]  ;;  %v3585_v60 = vld [vmem:[%s5602_s1 + $0x444] sm:$0xf0] }
  0x32   :  { %1901 = vmatpush.bf16.msrb.mxu2 %v2715_v24  ;;  %v330_v24 = vunpack.c.l.b16 %v16_v9  ;;  %v3603_v51 = vld [vmem:[%s5602_s1 + $0x4d4] sm:$0xf0]  ;;  %v3042_v54 = vld [vmem:[%s5602_s1 + $0x5d0] sm:$0xf]  ;;  %v2906_v61 = vld [vmem:[%s5602_s1 + $0x4c0] sm:$0xf] }
  0x33   :  { %1914 = vmatpush.bf16.msrb.mxu3 %v2779_v28  ;;  %v331_v28 = vunpack.c.h.b16 %v16_v9  ;;  %v3619_v53 = vld [vmem:[%s5602_s1 + $0x554] sm:$0xf0]  ;;  %v2915_v57 = vor.u32 %v3603_v51, %v2914_v49  ;;  %v3617_v1 = vld [vmem:[%s5602_s1 + $0x544] sm:$0xf0]  ;;  %v3034_v2 = vld [vmem:[%s5602_s1 + $0x5c0] sm:$0xf] }
  0x34   :  { %1876 = vmatpush.bf16.msrb.mxu0 %v2579_v34  ;;  %v3059_v34 = vor.u32 %v3639_v23, %v3058_v22  ;;  %v4215_v41 = vpack.c.b16 %v330_v24, %v330_v24  ;;  %v3635_v55 = vld [vmem:[%s5602_s1 + $0x5d4] sm:$0xf0]  ;;  %v3633_v3 = vld [vmem:[%s5602_s1 + $0x5c4] sm:$0xf0]  ;;  %v2834_v9 = vld [vmem:[%s5602_s1 + $0x430] sm:$0xf] }
  0x35   :  { %1889 = vmatpush.bf16.msrb.mxu1 %v2643_v35  ;;  %v3605_v35 = vld [vmem:[%s5602_s1 + $0x4e4] sm:$0xf0]  ;;  %v4219_v44 = vpack.c.b16 %v331_v28, %v331_v28  ;;  %v3043_v62 = vor.u32 %v3635_v55, %v3042_v54  ;;  %v3583_v10 = vld [vmem:[%s5602_s1 + $0x434] sm:$0xf0]  ;;  %v2898_v11 = vld [vmem:[%s5602_s1 + $0x4b0] sm:$0xf]  ;;  %v3035_v12 = vor.u32 %v3633_v3, %v3034_v2 }
  0x36   :  { %1902 = vmatpush.bf16.msrb.mxu2 %v2707_v36  ;;  %v2986_v36 = vld [vmem:[%s5602_s1 + $0x560] sm:$0xf]  ;;  %v2923_v45 = vor.u32 %v3605_v35, %v2922_v33  ;;  %v2962_v14 = vld [vmem:[%s5602_s1 + $0x530] sm:$0xf]  ;;  %v3615_v15 = vld [vmem:[%s5602_s1 + $0x534] sm:$0xf0] }
  0x37   :  { %1915 = vmatpush.bf16.msrb.mxu3 %v2771_v40  ;;  %v3637_v40 = vld [vmem:[%s5602_s1 + $0x5e4] sm:$0xf0]  ;;  %v3026_v16 = vld [vmem:[%s5602_s1 + $0x5b0] sm:$0xf]  ;;  %v3631_v17 = vld [vmem:[%s5602_s1 + $0x5b4] sm:$0xf0]  ;;  %v2963_v22 = vor.u32 %v3615_v15, %v2962_v14 }
  0x38   :  { %1877 = vmatpush.bf16.msrb.mxu0 %v2571_v46  ;;  %v2987_v46 = vor.u32 %v3621_v37, %v2986_v36  ;;  %v3051_v50 = vor.u32 %v3637_v40, %v3050_v39  ;;  %v2826_v23 = vld [vmem:[%s5602_s1 + $0x420] sm:$0xf]  ;;  %v3581_v24 = vld [vmem:[%s5602_s1 + $0x424] sm:$0xf0]  ;;  %v2818_v35 = vld [vmem:[%s5602_s1 + $0x410] sm:$0xf] }
  0x39   :  { %1890 = vmatpush.bf16.msrb.mxu1 %v2635_v47  ;;  %v2850_v47 = vld [vmem:[%s5602_s1 + $0x450] sm:$0xf]  ;;  %v2890_v25 = vld [vmem:[%s5602_s1 + $0x4a0] sm:$0xf]  ;;  %v3629_v31 = vld [vmem:[%s5602_s1 + $0x5a4] sm:$0xf0]  ;;  %v2827_v32 = vor.u32 %v3581_v24, %v2826_v23 }
  0x3a   :  { %1903 = vmatpush.bf16.msrb.mxu2 %v2699_v48  ;;  %v3587_v48 = vld [vmem:[%s5602_s1 + $0x454] sm:$0xf0]  ;;  %v2954_v28 = vld [vmem:[%s5602_s1 + $0x520] sm:$0xf]  ;;  %v2882_v37 = vld [vmem:[%s5602_s1 + $0x490] sm:$0xf] }
  0x3b   :  { %1916 = vmatpush.bf16.msrb.mxu3 %v2763_v52  ;;  %v2978_v52 = vld [vmem:[%s5602_s1 + $0x550] sm:$0xf]  ;;  %v2851_v56 = vor.u32 %v3587_v48, %v2850_v47  ;;  %v3579_v36 = vld [vmem:[%s5602_s1 + $0x414] sm:$0xf0]  ;;  %v2810_v48 = vld [vmem:[%s5602_s1 + $0x400] sm:$0xf] }
  0x3c   :  { %1878 = vmatpush.bf16.msrb.mxu0 %v2563_v59  ;;  %v2979_v58 = vor.u32 %v3619_v53, %v2978_v52  ;;  %v2842_v59 = vld [vmem:[%s5602_s1 + $0x440] sm:$0xf]  ;;  %v3595_v40 = vld [vmem:[%s5602_s1 + $0x494] sm:$0xf0]  ;;  %v2819_v49 = vor.u32 %v3579_v36, %v2818_v35  ;;  %v3593_v52 = vld [vmem:[%s5602_s1 + $0x484] sm:$0xf0] }
  0x3d   :  { %1891 = vmatpush.bf16.msrb.mxu1 %v2627_v63  ;;  %v3601_v63 = vld [vmem:[%s5602_s1 + $0x4c4] sm:$0xf0]  ;;  %v3627_v47 = vld [vmem:[%s5602_s1 + $0x594] sm:$0xf0]  ;;  %v2874_v51 = vld [vmem:[%s5602_s1 + $0x480] sm:$0xf]  ;;  %v2883_v53 = vor.u32 %v3595_v40, %v2882_v37 }
  0x3e   :  { %1904 = vmatpush.bf16.msrb.mxu2 %v2691_v0  ;;  %v2970_v0 = vld [vmem:[%s5602_s1 + $0x540] sm:$0xf]  ;;  %v2907_v7 = vor.u32 %v3601_v63, %v2906_v61  ;;  %v19_v61 = vld [vmem:[%s5603_s0 + $0x28] sm:$0xff]  ;;  %v3655_v63 = vld [vmem:[%s5602_s1 + $0x674] sm:$0xf0] }
  0x3f   :  { %1917 = vmatpush.bf16.msrb.mxu3 %v2755_v5  ;;  %v2843_v5 = vor.u32 %v3585_v60, %v2842_v59  ;;  %v2971_v8 = vor.u32 %v3617_v1, %v2970_v0  ;;  %v2938_v55 = vld [vmem:[%s5602_s1 + $0x500] sm:$0xf]  ;;  %v3625_v60 = vld [vmem:[%s5602_s1 + $0x584] sm:$0xf0]  ;;  %v3186_v0 = vld [vmem:[%s5602_s1 + $0x6f0] sm:$0xf] }
  0x40   :  { %1879 = vmatpush.bf16.msrb.mxu0 %v2555_v13  ;;  %v3599_v13 = vld [vmem:[%s5602_s1 + $0x4b4] sm:$0xf0]  ;;  %v3002_v59 = vld [vmem:[%s5602_s1 + $0x580] sm:$0xf]  ;;  %v3250_v3 = vld [vmem:[%s5602_s1 + $0x770] sm:$0xf] }
  0x41   :  { %1892 = vmatpush.bf16.msrb.mxu1 %v2619_v18  ;;  %v2835_v18 = vor.u32 %v3583_v10, %v2834_v9  ;;  %v3671_v2 = vld [vmem:[%s5602_s1 + $0x6f4] sm:$0xf0]  ;;  %v3314_v10 = vld [vmem:[%s5602_s1 + $0x7f0] sm:$0xf]  ;;  %v3003_v14 = vor.u32 %v3625_v60, %v3002_v59  ;;  %v3178_v23 = vld [vmem:[%s5602_s1 + $0x6e0] sm:$0xf] }
  0x42   :  { %1905 = vmatpush.bf16.msrb.mxu2 %v2683_v19  ;;  %v2899_v19 = vor.u32 %v3599_v13, %v2898_v11  ;;  %v3703_v11 = vld [vmem:[%s5602_s1 + $0x7f4] sm:$0xf0]  ;;  %v3106_v37 = vld [vmem:[%s5602_s1 + $0x650] sm:$0xf]  ;;  %v3681_v59 = vld [vmem:[%s5602_s1 + $0x744] sm:$0xf0] }
  0x43   :  { %1918 = vmatpush.bf16.msrb.mxu3 %v2747_v26  ;;  %1880 = vmatmul.bf16.vlgmr.msrb.gmra.mxu0 %v4215_v41  ;;  %v3027_v26 = vor.u32 %v3631_v17, %v3026_v16  ;;  %v337_v16 = vunpack.c.h.b16 %v19_v61  ;;  %v3187_v17 = vor.u32 %v3671_v2, %v3186_v0  ;;  %v3315_v24 = vor.u32 %v3703_v11, %v3314_v10  ;;  %v3170_v40 = vld [vmem:[%s5602_s1 + $0x6d0] sm:$0xf]  ;;  %v3290_v60 = vld [vmem:[%s5602_s1 + $0x7c0] sm:$0xf]  ;;  %v3647_v2 = vld [vmem:[%s5602_s1 + $0x634] sm:$0xf0] }
  0x44   :  { %1924 = vmatpush.bf16.msra.mxu0 %v2867_v27  ;;  %1893 = vmatmul.bf16.vlgmr.msrb.gmra.mxu1 %v4219_v44  ;;  %v3597_v27 = vld [vmem:[%s5602_s1 + $0x4a4] sm:$0xf0]  ;;  %v3282_v10 = vld [vmem:[%s5602_s1 + $0x7b0] sm:$0xf]  ;;  %v3695_v11 = vld [vmem:[%s5602_s1 + $0x7b4] sm:$0xf0] }
  0x45   :  { %1937 = vmatpush.bf16.msra.mxu1 %v2931_v29  ;;  %1906 = vmatmul.bf16.vlgmr.msrb.gmra.mxu2 %v4207_v38  ;;  %v3613_v29 = vld [vmem:[%s5602_s1 + $0x524] sm:$0xf0]  ;;  %v2891_v33 = vor.u32 %v3597_v27, %v2890_v25  ;;  %v3242_v27 = vld [vmem:[%s5602_s1 + $0x760] sm:$0xf] }
  0x46   :  { %1950 = vmatpush.bf16.msra.mxu2 %v2995_v30  ;;  %1919 = vmatmul.bf16.vlgmr.msrb.gmra.mxu3 %v4217_v42  ;;  %v3018_v30 = vld [vmem:[%s5602_s1 + $0x5a0] sm:$0xf] }
  0x47   :  { %1963 = vmatpush.bf16.msra.mxu3 %v3059_v34  ;;  %v2955_v34 = vor.u32 %v3613_v29, %v2954_v28  ;;  %v3019_v39 = vor.u32 %v3629_v31, %v3018_v30  ;;  %v3685_v28 = vld [vmem:[%s5602_s1 + $0x764] sm:$0xf0]  ;;  %v3306_v31 = vld [vmem:[%s5602_s1 + $0x7e0] sm:$0xf] }
  0x48   :  { %1925 = vmatpush.bf16.msra.mxu0 %v2859_v43  ;;  %v2946_v43 = vld [vmem:[%s5602_s1 + $0x510] sm:$0xf]  ;;  %v3243_v36 = vor.u32 %v3685_v28, %v3242_v27 }
  0x49   :  { %1938 = vmatpush.bf16.msra.mxu1 %v2923_v45  ;;  %v3611_v45 = vld [vmem:[%s5602_s1 + $0x514] sm:$0xf0] }
  0x4a   :  { %1951 = vmatpush.bf16.msra.mxu2 %v2987_v46  ;;  %v3010_v46 = vld [vmem:[%s5602_s1 + $0x590] sm:$0xf]  ;;  %v2947_v54 = vor.u32 %v3611_v45, %v2946_v43  ;;  %v3667_v45 = vld [vmem:[%s5602_s1 + $0x6d4] sm:$0xf0] }
  0x4b   :  { %1964 = vmatpush.bf16.msra.mxu3 %v3051_v50  ;;  %v3577_v50 = vld [vmem:[%s5602_s1 + $0x404] sm:$0xf0] }
  0x4c   :  { %1926 = vmatpush.bf16.msra.mxu0 %v2851_v56  ;;  %v3609_v56 = vld [vmem:[%s5602_s1 + $0x504] sm:$0xf0]  ;;  %v2811_v1 = vor.u32 %v3577_v50, %v2810_v48  ;;  %v3298_v48 = vld [vmem:[%s5602_s1 + $0x7d0] sm:$0xf] }
  0x4d   :  { %1939 = vmatpush.bf16.msra.mxu1 %v2915_v57  ;;  %v18_v57 = vld [vmem:[%s5603_s0 + $0x20] sm:$0xff]  ;;  %v2939_v9 = vor.u32 %v3609_v56, %v2938_v55 }
  0x4e   :  { %1952 = vmatpush.bf16.msra.mxu2 %v2979_v58  ;;  %v3011_v58 = vor.u32 %v3627_v47, %v3010_v46  ;;  %v335_v13 = vunpack.c.h.b16 %v18_v57  ;;  %v3234_v46 = vld [vmem:[%s5602_s1 + $0x750] sm:$0xf]  ;;  %v3683_v47 = vld [vmem:[%s5602_s1 + $0x754] sm:$0xf0]  ;;  %v3162_v55 = vld [vmem:[%s5602_s1 + $0x6c0] sm:$0xf] }
  0x4f   :  { %1965 = vmatpush.bf16.msra.mxu3 %v3043_v62  ;;  %v3122_v62 = vld [vmem:[%s5602_s1 + $0x670] sm:$0xf] }
  0x50   :  { %1927 = vmatpush.bf16.msra.mxu0 %v2843_v5  ;;  %v3687_v5 = vld [vmem:[%s5602_s1 + $0x774] sm:$0xf0]  ;;  %v3123_v15 = vor.u32 %v3655_v63, %v3122_v62  ;;  %v4421_v30 = vpack.c.b16 %v335_v13, %v335_v13 }
  0x51   :  { %1940 = vmatpush.bf16.msra.mxu1 %v2907_v7  ;;  %v334_v7 = vunpack.c.l.b16 %v18_v57  ;;  %v3665_v57 = vld [vmem:[%s5602_s1 + $0x6c4] sm:$0xf0] }
  0x52   :  { %1953 = vmatpush.bf16.msra.mxu2 %v2971_v8  ;;  %v2875_v8 = vor.u32 %v3593_v52, %v2874_v51  ;;  %v3171_v51 = vor.u32 %v3667_v45, %v3170_v40  ;;  %v3235_v52 = vor.u32 %v3683_v47, %v3234_v46  ;;  %v3163_v63 = vor.u32 %v3665_v57, %v3162_v55  ;;  %v3675_v40 = vld [vmem:[%s5602_s1 + $0x714] sm:$0xf0]  ;;  %v3066_v46 = vld [vmem:[%s5602_s1 + $0x600] sm:$0xf]  ;;  %v20_v55 = vld [vmem:[%s5603_s0 + $0x30] sm:$0xff] }
  0x53   :  { %1966 = vmatpush.bf16.msra.mxu3 %v3035_v12  ;;  %v336_v12 = vunpack.c.l.b16 %v19_v61  ;;  %v4408_v25 = vpack.c.b16 %v334_v7, %v334_v7  ;;  %v3697_v61 = vld [vmem:[%s5602_s1 + $0x7c4] sm:$0xf0]  ;;  %v3663_v7 = vld [vmem:[%s5602_s1 + $0x6b4] sm:$0xf0]  ;;  %v3258_v57 = vld [vmem:[%s5602_s1 + $0x780] sm:$0xf] }
  0x54   :  { %1928 = vmatpush.bf16.msra.mxu0 %v2835_v18  ;;  %v3251_v18 = vor.u32 %v3687_v5, %v3250_v3  ;;  %v3154_v3 = vld [vmem:[%s5602_s1 + $0x6b0] sm:$0xf]  ;;  %v3291_v5 = vor.u32 %v3697_v61, %v3290_v60  ;;  %v3691_v45 = vld [vmem:[%s5602_s1 + $0x794] sm:$0xf0] }
  0x55   :  { %1941 = vmatpush.bf16.msra.mxu1 %v2899_v19  ;;  %v3114_v19 = vld [vmem:[%s5602_s1 + $0x660] sm:$0xf]  ;;  %v4419_v29 = vpack.c.b16 %v336_v12, %v336_v12  ;;  %v3155_v13 = vor.u32 %v3663_v7, %v3154_v3  ;;  %v3378_v60 = vld [vmem:[%s5602_s1 + $0x870] sm:$0xf]  ;;  %v3719_v61 = vld [vmem:[%s5602_s1 + $0x874] sm:$0xf0]  ;;  %v338_v3 = vunpack.c.l.b16 %v20_v55 }
  0x56   :  { %1954 = vmatpush.bf16.msra.mxu2 %v2963_v22  ;;  %v3653_v22 = vld [vmem:[%s5602_s1 + $0x664] sm:$0xf0] }
  0x57   :  { %1967 = vmatpush.bf16.msra.mxu3 %v3027_v26  ;;  %v3669_v26 = vld [vmem:[%s5602_s1 + $0x6e4] sm:$0xf0] }
  0x58   :  { %1929 = vmatpush.bf16.msra.mxu0 %v2827_v32  ;;  %v3701_v32 = vld [vmem:[%s5602_s1 + $0x7e4] sm:$0xf0]  ;;  %v3179_v35 = vor.u32 %v3669_v26, %v3178_v23 }
  0x59   :  { %1942 = vmatpush.bf16.msra.mxu1 %v2891_v33  ;;  %v4429_v33 = vpack.c.b16 %v337_v16, %v337_v16  ;;  %v3307_v43 = vor.u32 %v3701_v32, %v3306_v31  ;;  %v3645_v16 = vld [vmem:[%s5602_s1 + $0x624] sm:$0xf0]  ;;  %v3074_v32 = vld [vmem:[%s5602_s1 + $0x610] sm:$0xf] }
  0x5a   :  { %1955 = vmatpush.bf16.msra.mxu2 %v2955_v34  ;;  %v3115_v34 = vor.u32 %v3653_v22, %v3114_v19  ;;  %v3661_v19 = vld [vmem:[%s5602_s1 + $0x6a4] sm:$0xf0]  ;;  %v3210_v22 = vld [vmem:[%s5602_s1 + $0x720] sm:$0xf] }
  0x5b   :  { %1968 = vmatpush.bf16.msra.mxu3 %v3019_v39  ;;  %v3651_v39 = vld [vmem:[%s5602_s1 + $0x654] sm:$0xf0]  ;;  %v3677_v23 = vld [vmem:[%s5602_s1 + $0x724] sm:$0xf0] }
  0x5c   :  { %1930 = vmatpush.bf16.msra.mxu0 %v2819_v49  ;;  %v3699_v49 = vld [vmem:[%s5602_s1 + $0x7d4] sm:$0xf0]  ;;  %v3107_v50 = vor.u32 %v3651_v39, %v3106_v37  ;;  %v3693_v26 = vld [vmem:[%s5602_s1 + $0x7a4] sm:$0xf0]  ;;  %v3211_v31 = vor.u32 %v3677_v23, %v3210_v22  ;;  %v3202_v39 = vld [vmem:[%s5602_s1 + $0x710] sm:$0xf]  ;;  %v4618_v23 = vpack.c.b16 %v338_v3, %v338_v3 }
  0x5d   :  { %1943 = vmatpush.bf16.msra.mxu1 %v2883_v53  ;;  %v3098_v53 = vld [vmem:[%s5602_s1 + $0x640] sm:$0xf]  ;;  %v3299_v56 = vor.u32 %v3699_v49, %v3298_v48  ;;  %v3659_v37 = vld [vmem:[%s5602_s1 + $0x694] sm:$0xf0]  ;;  %v3641_v48 = vld [vmem:[%s5602_s1 + $0x604] sm:$0xf0] }
  0x5e   :  { %1956 = vmatpush.bf16.msra.mxu2 %v2947_v54  ;;  %v3649_v54 = vld [vmem:[%s5602_s1 + $0x644] sm:$0xf0]  ;;  %v3130_v49 = vld [vmem:[%s5602_s1 + $0x680] sm:$0xf]  ;;  %v3346_v3 = vld [vmem:[%s5602_s1 + $0x830] sm:$0xf] }
  0x5f   :  { %1969 = vmatpush.bf16.msra.mxu3 %v3011_v58  ;;  %v3226_v58 = vld [vmem:[%s5602_s1 + $0x740] sm:$0xf]  ;;  %v3099_v62 = vor.u32 %v3649_v54, %v3098_v53  ;;  %v3673_v54 = vld [vmem:[%s5602_s1 + $0x704] sm:$0xf0] }
  0x60   :  { %1931 = vmatpush.bf16.msra.mxu0 %v2811_v1  ;;  %v3227_v0 = vor.u32 %v3681_v59, %v3226_v58  ;;  %v3090_v1 = vld [vmem:[%s5602_s1 + $0x630] sm:$0xf]  ;;  %v3194_v53 = vld [vmem:[%s5602_s1 + $0x700] sm:$0xf]  ;;  %v3689_v58 = vld [vmem:[%s5602_s1 + $0x784] sm:$0xf0] }
  0x61   :  { %1944 = vmatpush.bf16.msra.mxu1 %v2875_v8  ;;  %v3218_v8 = vld [vmem:[%s5602_s1 + $0x730] sm:$0xf]  ;;  %v3091_v12 = vor.u32 %v3647_v2, %v3090_v1  ;;  %v21_v59 = vld [vmem:[%s5603_s0 + $0x38] sm:$0xff]  ;;  %v3462_v1 = vld [vmem:[%s5602_s1 + $0x74] sm:$0xf]  ;;  %v3195_v7 = vor.u32 %v3673_v54, %v3194_v53 }
  0x62   :  { %1957 = vmatpush.bf16.msra.mxu2 %v2939_v9  ;;  %v3679_v9 = vld [vmem:[%s5602_s1 + $0x734] sm:$0xf0]  ;;  %v2356_v2 = vld [vmem:[%s5602_s1 + $0x78] sm:$0xf0] }
  0x63   :  { %1970 = vmatpush.bf16.msra.mxu3 %v3003_v14  ;;  %1932 = vmatmul.bf16.vlgmr.msra.gmra.mxu0 %v4408_v25  ;;  %v3219_v14 = vor.u32 %v3679_v9, %v3218_v8  ;;  %v3478_v8 = vld [vmem:[%s5602_s1 + $0xf4] sm:$0xf]  ;;  %v2420_v9 = vld [vmem:[%s5602_s1 + $0xf8] sm:$0xf0] }
  0x64   :  { %1976 = vmatpush.bf16.msrb.mxu0 %v3123_v15  ;;  %1945 = vmatmul.bf16.vlgmr.msra.gmra.mxu1 %v4421_v30  ;;  %v3082_v15 = vld [vmem:[%s5602_s1 + $0x620] sm:$0xf]  ;;  %v2423_v22 = vor.u32 %v3478_v8, %v2420_v9  ;;  %v3727_v9 = vld [vmem:[%s5602_s1 + $0x8b4] sm:$0xf0] }
  0x65   :  { %1989 = vmatpush.bf16.msrb.mxu1 %v3187_v17  ;;  %1958 = vmatmul.bf16.vlgmr.msra.gmra.mxu2 %v4419_v29  ;;  %v3146_v17 = vld [vmem:[%s5602_s1 + $0x6a0] sm:$0xf]  ;;  %v3083_v27 = vor.u32 %v3645_v16, %v3082_v15  ;;  %v2359_v16 = vor.u32 %v3462_v1, %v2356_v2 }
  0x66   :  { %2002 = vmatpush.bf16.msrb.mxu2 %v3251_v18  ;;  %1971 = vmatmul.bf16.vlgmr.msra.gmra.mxu3 %v4429_v33  ;;  %v3283_v18 = vor.u32 %v3695_v11, %v3282_v10  ;;  %v3147_v28 = vor.u32 %v3661_v19, %v3146_v17  ;;  %v340_v10 = vunpack.c.l.b16 %v21_v59  ;;  %v339_v11 = vunpack.c.h.b16 %v20_v55  ;;  %v3370_v17 = vld [vmem:[%s5602_s1 + $0x860] sm:$0xf] }
  0x67   :  { %2015 = vmatpush.bf16.msrb.mxu3 %v3315_v24  ;;  %v3274_v24 = vld [vmem:[%s5602_s1 + $0x7a0] sm:$0xf] }
  0x68   :  { %1977 = vmatpush.bf16.msrb.mxu0 %v3115_v34  ;;  %v3643_v34 = vld [vmem:[%s5602_s1 + $0x614] sm:$0xf0]  ;;  %v3434_v19 = vld [vmem:[%s5602_s1 + $0x8e0] sm:$0xf] }
  0x69   :  { %1990 = vmatpush.bf16.msrb.mxu1 %v3179_v35  ;;  %v3138_v35 = vld [vmem:[%s5602_s1 + $0x690] sm:$0xf]  ;;  %v3075_v47 = vor.u32 %v3643_v34, %v3074_v32  ;;  %v3476_v32 = vld [vmem:[%s5602_s1 + $0xe4] sm:$0xf]  ;;  %v2412_v34 = vld [vmem:[%s5602_s1 + $0xe8] sm:$0xf0] }
  0x6a   :  { %2003 = vmatpush.bf16.msrb.mxu2 %v3243_v36  ;;  %v3275_v36 = vor.u32 %v3693_v26, %v3274_v24  ;;  %v3733_v24 = vld [vmem:[%s5602_s1 + $0x8e4] sm:$0xf0]  ;;  %v3460_v26 = vld [vmem:[%s5602_s1 + $0x64] sm:$0xf]  ;;  %v3354_v55 = vld [vmem:[%s5602_s1 + $0x840] sm:$0xf] }
  0x6b   :  { %2016 = vmatpush.bf16.msrb.mxu3 %v3307_v43  ;;  %v3266_v43 = vld [vmem:[%s5602_s1 + $0x790] sm:$0xf] }
  0x6c   :  { %1978 = vmatpush.bf16.msrb.mxu0 %v3107_v50  ;;  %v3657_v50 = vld [vmem:[%s5602_s1 + $0x684] sm:$0xf0] }
  0x6d   :  { %1991 = vmatpush.bf16.msrb.mxu1 %v3171_v51  ;;  %v3139_v51 = vor.u32 %v3659_v37, %v3138_v35  ;;  %v3435_v37 = vor.u32 %v3733_v24, %v3434_v19  ;;  %v3402_v19 = vld [vmem:[%s5602_s1 + $0x8a0] sm:$0xf]  ;;  %v3725_v24 = vld [vmem:[%s5602_s1 + $0x8a4] sm:$0xf0] }
  0x6e   :  { %2004 = vmatpush.bf16.msrb.mxu2 %v3235_v52  ;;  %v3203_v52 = vor.u32 %v3675_v40, %v3202_v39  ;;  %v3362_v40 = vld [vmem:[%s5602_s1 + $0x850] sm:$0xf] }
  0x6f   :  { %2017 = vmatpush.bf16.msrb.mxu3 %v3299_v56  ;;  %v3267_v56 = vor.u32 %v3691_v45, %v3266_v43  ;;  %v3715_v43 = vld [vmem:[%s5602_s1 + $0x854] sm:$0xf0]  ;;  %v3426_v45 = vld [vmem:[%s5602_s1 + $0x8d0] sm:$0xf] }
  0x70   :  { %1979 = vmatpush.bf16.msrb.mxu0 %v3099_v62  ;;  %v3442_v62 = vld [vmem:[%s5602_s1 + $0x8f0] sm:$0xf] }
  0x71   :  { %1992 = vmatpush.bf16.msrb.mxu1 %v3163_v63  ;;  %v3067_v63 = vor.u32 %v3641_v48, %v3066_v46  ;;  %v2415_v46 = vor.u32 %v3476_v32, %v2412_v34  ;;  %v3458_v48 = vld [vmem:[%s5602_s1 + $0x54] sm:$0xf]  ;;  %v3468_v32 = vld [vmem:[%s5602_s1 + $0xa4] sm:$0xf]  ;;  %v2380_v34 = vld [vmem:[%s5602_s1 + $0xa8] sm:$0xf0] }
  0x72   :  { %2005 = vmatpush.bf16.msrb.mxu2 %v3227_v0  ;;  %v3735_v0 = vld [vmem:[%s5602_s1 + $0x8f4] sm:$0xf0] }
  0x73   :  { %2018 = vmatpush.bf16.msrb.mxu3 %v3291_v5  ;;  %v3131_v5 = vor.u32 %v3657_v50, %v3130_v49  ;;  %v3443_v15 = vor.u32 %v3735_v0, %v3442_v62  ;;  %v2340_v49 = vld [vmem:[%s5602_s1 + $0x58] sm:$0xf0]  ;;  %v3474_v50 = vld [vmem:[%s5602_s1 + $0xd4] sm:$0xf]  ;;  %v3472_v62 = vld [vmem:[%s5602_s1 + $0xc4] sm:$0xf] }
  0x74   :  { %1980 = vmatpush.bf16.msrb.mxu0 %v3091_v12  ;;  %v3259_v12 = vor.u32 %v3689_v58, %v3258_v57  ;;  %v2343_v54 = vor.u32 %v3458_v48, %v2340_v49  ;;  %v3418_v57 = vld [vmem:[%s5602_s1 + $0x8c0] sm:$0xf]  ;;  %v3450_v48 = vld [vmem:[%s5602_s1 + $0x14] sm:$0xf]  ;;  %v2308_v49 = vld [vmem:[%s5602_s1 + $0x18] sm:$0xf0] }
  0x75   :  { %1993 = vmatpush.bf16.msrb.mxu1 %v3155_v13  ;;  %v3379_v13 = vor.u32 %v3719_v61, %v3378_v60  ;;  %v3456_v60 = vld [vmem:[%s5602_s1 + $0x44] sm:$0xf]  ;;  %v2332_v61 = vld [vmem:[%s5602_s1 + $0x48] sm:$0xf0] }
  0x76   :  { %2006 = vmatpush.bf16.msrb.mxu2 %v3219_v14  ;;  %v341_v14 = vunpack.c.h.b16 %v21_v59  ;;  %v3729_v59 = vld [vmem:[%s5602_s1 + $0x8c4] sm:$0xf0]  ;;  %v2335_v2 = vor.u32 %v3456_v60, %v2332_v61  ;;  %v22_v60 = vld [vmem:[%s5603_s0 + $0x40] sm:$0xff] }
  0x77   :  { %2019 = vmatpush.bf16.msrb.mxu3 %v3283_v18  ;;  %v3717_v18 = vld [vmem:[%s5602_s1 + $0x864] sm:$0xf0]  ;;  %v3419_v1 = vor.u32 %v3729_v59, %v3418_v57  ;;  %v2311_v57 = vor.u32 %v3450_v48, %v2308_v49  ;;  %v3448_v59 = vld [vmem:[%s5602_s1 + $0x4] sm:$0xf]  ;;  %v3490_v48 = vld [vmem:[%s5602_s1 + $0x154] sm:$0xf] }
  0x78   :  { %1981 = vmatpush.bf16.msrb.mxu0 %v3083_v27  ;;  %v2348_v27 = vld [vmem:[%s5602_s1 + $0x68] sm:$0xf0]  ;;  %v4639_v35 = vpack.c.b16 %v341_v14, %v341_v14  ;;  %v2468_v49 = vld [vmem:[%s5602_s1 + $0x158] sm:$0xf0] }
  0x79   :  { %1994 = vmatpush.bf16.msrb.mxu1 %v3147_v28  ;;  %v4629_v28 = vpack.c.b16 %v340_v10, %v340_v10  ;;  %v2351_v39 = vor.u32 %v3460_v26, %v2348_v27  ;;  %v3454_v10 = vld [vmem:[%s5602_s1 + $0x34] sm:$0xf]  ;;  %v3452_v26 = vld [vmem:[%s5602_s1 + $0x24] sm:$0xf]  ;;  %v2316_v27 = vld [vmem:[%s5602_s1 + $0x28] sm:$0xf0] }
  0x7a   :  { %2007 = vmatpush.bf16.msrb.mxu2 %v3211_v31  ;;  %v4631_v31 = vpack.c.b16 %v339_v11, %v339_v11  ;;  %v2324_v11 = vld [vmem:[%s5602_s1 + $0x38] sm:$0xf0] }
  0x7b   :  { %2020 = vmatpush.bf16.msrb.mxu3 %v3275_v36  ;;  %v3371_v36 = vor.u32 %v3717_v18, %v3370_v17  ;;  %v3338_v17 = vld [vmem:[%s5602_s1 + $0x820] sm:$0xf]  ;;  %v3709_v18 = vld [vmem:[%s5602_s1 + $0x824] sm:$0xf0] }
  0x7c   :  { %1982 = vmatpush.bf16.msrb.mxu0 %v3075_v47  ;;  %v3731_v47 = vld [vmem:[%s5602_s1 + $0x8d4] sm:$0xf0] }
  0x7d   :  { %1995 = vmatpush.bf16.msrb.mxu1 %v3139_v51  ;;  %v2404_v51 = vld [vmem:[%s5602_s1 + $0xd8] sm:$0xf0]  ;;  %v3427_v53 = vor.u32 %v3731_v47, %v3426_v45  ;;  %v3394_v45 = vld [vmem:[%s5602_s1 + $0x890] sm:$0xf]  ;;  %v3723_v47 = vld [vmem:[%s5602_s1 + $0x894] sm:$0xf0] }
  0x7e   :  { %2008 = vmatpush.bf16.msrb.mxu2 %v3203_v52  ;;  %v3363_v52 = vor.u32 %v3715_v43, %v3362_v40  ;;  %v2407_v58 = vor.u32 %v3474_v50, %v2404_v51  ;;  %v3330_v40 = vld [vmem:[%s5602_s1 + $0x810] sm:$0xf]  ;;  %v3707_v43 = vld [vmem:[%s5602_s1 + $0x814] sm:$0xf0]  ;;  %v3466_v50 = vld [vmem:[%s5602_s1 + $0x94] sm:$0xf] }
  0x7f   :  { %2021 = vmatpush.bf16.msrb.mxu3 %v3267_v56  ;;  %v3713_v56 = vld [vmem:[%s5602_s1 + $0x844] sm:$0xf0]  ;;  %v2372_v51 = vld [vmem:[%s5602_s1 + $0x98] sm:$0xf0] }
  0x80   :  { %1983 = vmatpush.bf16.msrb.mxu0 %v3067_v63  ;;  %v2396_v63 = vld [vmem:[%s5602_s1 + $0xc8] sm:$0xf0]  ;;  %v3355_v0 = vor.u32 %v3713_v56, %v3354_v55  ;;  %v3386_v55 = vld [vmem:[%s5602_s1 + $0x880] sm:$0xf]  ;;  %v3395_v56 = vor.u32 %v3723_v47, %v3394_v45  ;;  %v2375_v61 = vor.u32 %v3466_v50, %v2372_v51  ;;  %v3506_v50 = vld [vmem:[%s5602_s1 + $0x1d4] sm:$0xf] }
  0x81   :  { %1996 = vmatpush.bf16.msrb.mxu1 %v3131_v5  ;;  %v3711_v5 = vld [vmem:[%s5602_s1 + $0x834] sm:$0xf0]  ;;  %v2399_v8 = vor.u32 %v3472_v62, %v2396_v63  ;;  %v2300_v62 = vld [vmem:[%s5602_s1 + $0x8] sm:$0xf0]  ;;  %v3464_v63 = vld [vmem:[%s5602_s1 + $0x84] sm:$0xf] }
  0x82   :  { %2009 = vmatpush.bf16.msrb.mxu2 %v3195_v7  ;;  %v3410_v7 = vld [vmem:[%s5602_s1 + $0x8b0] sm:$0xf]  ;;  %v3347_v14 = vor.u32 %v3711_v5, %v3346_v3  ;;  %v3510_v3 = vld [vmem:[%s5602_s1 + $0x1f4] sm:$0xf] }
  0x83   :  { %2022 = vmatpush.bf16.msrb.mxu3 %v3259_v12  ;;  %1984 = vmatmul.bf16.vlgmr.msrb.gmra.mxu0 %v4618_v23  ;;  %v3470_v12 = vld [vmem:[%s5602_s1 + $0xb4] sm:$0xf] }
  0x84   :  { %2028 = vmatpush.bf16.msra.mxu0 %v3379_v13  ;;  %1997 = vmatmul.bf16.vlgmr.msrb.gmra.mxu1 %v4631_v31  ;;  %v2388_v13 = vld [vmem:[%s5602_s1 + $0xb8] sm:$0xf0] }
  0x85   :  { %2041 = vmatpush.bf16.msra.mxu1 %v3443_v15  ;;  %2010 = vmatmul.bf16.vlgmr.msrb.gmra.mxu2 %v4629_v28  ;;  %v3411_v15 = vor.u32 %v3727_v9, %v3410_v7  ;;  %v2548_v7 = vld [vmem:[%s5602_s1 + $0x1f8] sm:$0xf0] }
  0x86   :  { %2054 = vmatpush.bf16.msra.mxu2 %v2359_v16  ;;  %2023 = vmatmul.bf16.vlgmr.msrb.gmra.mxu3 %v4639_v35  ;;  %v2327_v16 = vor.u32 %v3454_v10, %v2324_v11  ;;  %v2612_v9 = vld [vmem:[%s5602_s1 + $0x278] sm:$0xf0]  ;;  %v342_v10 = vunpack.c.l.b16 %v22_v60 }
  0x87   :  { %2067 = vmatpush.bf16.msra.mxu3 %v2423_v22  ;;  %v2391_v22 = vor.u32 %v3470_v12, %v2388_v13  ;;  %v2303_v12 = vor.u32 %v3448_v59, %v2300_v62  ;;  %v3542_v13 = vld [vmem:[%s5602_s1 + $0x2f4] sm:$0xf] }
  0x88   :  { %2029 = vmatpush.bf16.msra.mxu0 %v3371_v36  ;;  %v3339_v36 = vor.u32 %v3709_v18, %v3338_v17  ;;  %v2551_v18 = vor.u32 %v3510_v3, %v2548_v7 }
  0x89   :  { %2042 = vmatpush.bf16.msra.mxu1 %v3435_v37  ;;  %v3403_v37 = vor.u32 %v3725_v24, %v3402_v19  ;;  %v2476_v24 = vld [vmem:[%s5602_s1 + $0x168] sm:$0xf0] }
  0x8a   :  { %2055 = vmatpush.bf16.msra.mxu2 %v2351_v39  ;;  %v2319_v39 = vor.u32 %v3452_v26, %v2316_v27  ;;  %v3508_v26 = vld [vmem:[%s5602_s1 + $0x1e4] sm:$0xf] }
  0x8b   :  { %2068 = vmatpush.bf16.msra.mxu3 %v2415_v46  ;;  %v2383_v46 = vor.u32 %v3468_v32, %v2380_v34  ;;  %v4825_v32 = vpack.c.b16 %v342_v10, %v342_v10  ;;  %v2540_v34 = vld [vmem:[%s5602_s1 + $0x1e8] sm:$0xf0]  ;;  %v3502_v10 = vld [vmem:[%s5602_s1 + $0x1b4] sm:$0xf] }
  0x8c   :  { %2030 = vmatpush.bf16.msra.mxu0 %v3363_v52  ;;  %v3331_v52 = vor.u32 %v3707_v43, %v3330_v40  ;;  %v3540_v40 = vld [vmem:[%s5602_s1 + $0x2e4] sm:$0xf]  ;;  %v2668_v43 = vld [vmem:[%s5602_s1 + $0x2e8] sm:$0xf0] }
  0x8d   :  { %2043 = vmatpush.bf16.msra.mxu1 %v3427_v53  ;;  %v3322_v53 = vld [vmem:[%s5602_s1 + $0x800] sm:$0xf]  ;;  %v2671_v51 = vor.u32 %v3540_v40, %v2668_v43  ;;  %v3516_v40 = vld [vmem:[%s5602_s1 + $0x224] sm:$0xf]  ;;  %v2572_v43 = vld [vmem:[%s5602_s1 + $0x228] sm:$0xf0] }
  0x8e   :  { %2056 = vmatpush.bf16.msra.mxu2 %v2343_v54  ;;  %v3705_v54 = vld [vmem:[%s5602_s1 + $0x804] sm:$0xf0] }
  0x8f   :  { %2069 = vmatpush.bf16.msra.mxu3 %v2407_v58  ;;  %v3721_v58 = vld [vmem:[%s5602_s1 + $0x884] sm:$0xf0]  ;;  %v3323_v5 = vor.u32 %v3705_v54, %v3322_v53  ;;  %v3522_v53 = vld [vmem:[%s5602_s1 + $0x254] sm:$0xf]  ;;  %v2596_v54 = vld [vmem:[%s5602_s1 + $0x258] sm:$0xf0] }
  0x90   :  { %2031 = vmatpush.bf16.msra.mxu0 %v3355_v0  ;;  %v2364_v0 = vld [vmem:[%s5602_s1 + $0x88] sm:$0xf0]  ;;  %v3387_v11 = vor.u32 %v3721_v58, %v3386_v55  ;;  %v3538_v55 = vld [vmem:[%s5602_s1 + $0x2d4] sm:$0xf]  ;;  %v2599_v59 = vor.u32 %v3522_v53, %v2596_v54  ;;  %v2436_v54 = vld [vmem:[%s5602_s1 + $0x118] sm:$0xf0] }
  0x91   :  { %2044 = vmatpush.bf16.msra.mxu1 %v3419_v1  ;;  %v3494_v1 = vld [vmem:[%s5602_s1 + $0x174] sm:$0xf] }
  0x92   :  { %2057 = vmatpush.bf16.msra.mxu2 %v2335_v2  ;;  %v2484_v2 = vld [vmem:[%s5602_s1 + $0x178] sm:$0xf0]  ;;  %v3482_v53 = vld [vmem:[%s5602_s1 + $0x114] sm:$0xf] }
  0x93   :  { %2070 = vmatpush.bf16.msra.mxu3 %v2399_v8  ;;  %v3526_v8 = vld [vmem:[%s5602_s1 + $0x274] sm:$0xf]  ;;  %v2487_v17 = vor.u32 %v3494_v1, %v2484_v2  ;;  %v3536_v1 = vld [vmem:[%s5602_s1 + $0x2c4] sm:$0xf]  ;;  %v2652_v2 = vld [vmem:[%s5602_s1 + $0x2c8] sm:$0xf0] }
  0x94   :  { %2032 = vmatpush.bf16.msra.mxu0 %v3347_v14  ;;  %v2676_v14 = vld [vmem:[%s5602_s1 + $0x2f8] sm:$0xf0]  ;;  %v2615_v19 = vor.u32 %v3526_v8, %v2612_v9 }
  0x95   :  { %2045 = vmatpush.bf16.msra.mxu1 %v3411_v15  ;;  %v343_v15 = vunpack.c.h.b16 %v22_v60  ;;  %v2679_v27 = vor.u32 %v3542_v13, %v2676_v14  ;;  %v3488_v60 = vld [vmem:[%s5602_s1 + $0x144] sm:$0xf]  ;;  %v2452_v9 = vld [vmem:[%s5602_s1 + $0x138] sm:$0xf0]  ;;  %v3518_v14 = vld [vmem:[%s5602_s1 + $0x234] sm:$0xf] }
  0x96   :  { %2058 = vmatpush.bf16.msra.mxu2 %v2327_v16  ;;  %v2367_v16 = vor.u32 %v3464_v63, %v2364_v0  ;;  %v3520_v63 = vld [vmem:[%s5602_s1 + $0x244] sm:$0xf]  ;;  %v2588_v0 = vld [vmem:[%s5602_s1 + $0x248] sm:$0xf0]  ;;  %v2516_v13 = vld [vmem:[%s5602_s1 + $0x1b8] sm:$0xf0] }
  0x97   :  { %2071 = vmatpush.bf16.msra.mxu3 %v2391_v22  ;;  %v3492_v22 = vld [vmem:[%s5602_s1 + $0x164] sm:$0xf]  ;;  %v2591_v8 = vor.u32 %v3520_v63, %v2588_v0  ;;  %v2439_v63 = vor.u32 %v3482_v53, %v2436_v54  ;;  %v2796_v54 = vld [vmem:[%s5602_s1 + $0x3e8] sm:$0xf0] }
  0x98   :  { %2033 = vmatpush.bf16.msra.mxu0 %v3339_v36  ;;  %v3524_v36 = vld [vmem:[%s5602_s1 + $0x264] sm:$0xf]  ;;  %v2479_v45 = vor.u32 %v3492_v22, %v2476_v24  ;;  %v2519_v22 = vor.u32 %v3502_v10, %v2516_v13  ;;  %v2620_v13 = vld [vmem:[%s5602_s1 + $0x288] sm:$0xf0] }
  0x99   :  { %2046 = vmatpush.bf16.msra.mxu1 %v3403_v37  ;;  %v2604_v37 = vld [vmem:[%s5602_s1 + $0x268] sm:$0xf0]  ;;  %v3480_v0 = vld [vmem:[%s5602_s1 + $0x104] sm:$0xf] }
  0x9a   :  { %2059 = vmatpush.bf16.msra.mxu2 %v2319_v39  ;;  %v4836_v39 = vpack.c.b16 %v343_v15, %v343_v15  ;;  %v2607_v47 = vor.u32 %v3524_v36, %v2604_v37  ;;  %v2580_v15 = vld [vmem:[%s5602_s1 + $0x238] sm:$0xf0]  ;;  %v2508_v37 = vld [vmem:[%s5602_s1 + $0x1a8] sm:$0xf0] }
  0x9b   :  { %2072 = vmatpush.bf16.msra.mxu3 %v2383_v46  ;;  %v2543_v46 = vor.u32 %v3508_v26, %v2540_v34  ;;  %v2583_v24 = vor.u32 %v3518_v14, %v2580_v15  ;;  %v3484_v26 = vld [vmem:[%s5602_s1 + $0x124] sm:$0xf]  ;;  %v3558_v15 = vld [vmem:[%s5602_s1 + $0x374] sm:$0xf] }
  0x9c   :  { %2034 = vmatpush.bf16.msra.mxu0 %v3331_v52  ;;  %v2532_v52 = vld [vmem:[%s5602_s1 + $0x1d8] sm:$0xf0]  ;;  %v3500_v34 = vld [vmem:[%s5602_s1 + $0x1a4] sm:$0xf] }
  0x9d   :  { %2047 = vmatpush.bf16.msra.mxu1 %v3395_v56  ;;  %v2660_v56 = vld [vmem:[%s5602_s1 + $0x2d8] sm:$0xf0]  ;;  %v2535_v58 = vor.u32 %v3506_v50, %v2532_v52  ;;  %v2575_v52 = vor.u32 %v3516_v40, %v2572_v43 }
  0x9e   :  { %2060 = vmatpush.bf16.msra.mxu2 %v2311_v57  ;;  %v2471_v57 = vor.u32 %v3490_v48, %v2468_v49  ;;  %v2663_v62 = vor.u32 %v3538_v55, %v2660_v56  ;;  %v3498_v55 = vld [vmem:[%s5602_s1 + $0x194] sm:$0xf]  ;;  %v2932_v40 = vld [vmem:[%s5602_s1 + $0x4f8] sm:$0xf0] }
  0x9f   :  { %2073 = vmatpush.bf16.msra.mxu3 %v2375_v61  ;;  %v2460_v61 = vld [vmem:[%s5602_s1 + $0x148] sm:$0xf0] }
  0xa0   :  { %2035 = vmatpush.bf16.msra.mxu0 %v3323_v5  ;;  %v2463_v3 = vor.u32 %v3488_v60, %v2460_v61  ;;  %v3486_v5 = vld [vmem:[%s5602_s1 + $0x134] sm:$0xf]  ;;  %v2564_v60 = vld [vmem:[%s5602_s1 + $0x218] sm:$0xf0] }
  0xa1   :  { %2048 = vmatpush.bf16.msra.mxu1 %v3387_v11  ;;  %v311_v11 = vld [vmem:[%s5604_s2] sm:$0x3]  ;;  %v1842_v50 = vpop.f32.mrf.mxu1 }
  0xa2   :  { %2061 = vmatpush.bf16.msra.mxu2 %v2303_v12  ;;  %v2655_v12 = vor.u32 %v3536_v1, %v2652_v2  ;;  %v2428_v1 = vld [vmem:[%s5602_s1 + $0x108] sm:$0xf0] }
  0xa3   :  { %2074 = vmatpush.bf16.msra.mxu3 %v2367_v16  ;;  %2036 = vmatmul.bf16.vlgmr.msra.gmra.mxu0 %v4825_v32  ;;  %v3534_v16 = vld [vmem:[%s5602_s1 + $0x2b4] sm:$0xf] }
  0xa4   :  { %2080 = vmatpush.bf16.msrb.mxu0 %v2487_v17  ;;  %2049 = vmatmul.bf16.vlgmr.msra.gmra.mxu1 %v4836_v39  ;;  %v2644_v17 = vld [vmem:[%s5602_s1 + $0x2b8] sm:$0xf0] }
  0xa5   :  { %2093 = vmatpush.bf16.msrb.mxu1 %v2551_v18  ;;  %2062 = vmatmul.bf16.vlgmr.msra.gmra.mxu2 %v4056_v20  ;;  %v3504_v20 = vld [vmem:[%s5602_s1 + $0x1c4] sm:$0xf]  ;;  %v2455_v18 = vor.u32 %v3486_v5, %v2452_v9  ;;  %v2647_v36 = vor.u32 %v3534_v16, %v2644_v17  ;;  %v2740_v16 = vld [vmem:[%s5602_s1 + $0x378] sm:$0xf0]  ;;  %v3574_v17 = vld [vmem:[%s5602_s1 + $0x3f4] sm:$0xf] }
  0xa6   :  { %2106 = vmatpush.bf16.msrb.mxu2 %v2615_v19  ;;  %2075 = vmatmul.bf16.vlgmr.msra.gmra.mxu3 %v4059_v21  ;;  %v2524_v21 = vld [vmem:[%s5602_s1 + $0x1c8] sm:$0xf0]  ;;  %v313_v19 = vperm.slane %v311_v11, 0  ;;  %v3512_v9 = vld [vmem:[%s5602_s1 + $0x204] sm:$0xf] }
  0xa7   :  { %2119 = vmatpush.bf16.msrb.mxu3 %v2679_v27  ;;  %v2527_v7 = vor.u32 %v3504_v20, %v2524_v21  ;;  %v2444_v27 = vld [vmem:[%s5602_s1 + $0x128] sm:$0xf0]  ;;  %v2628_v21 = vld [vmem:[%s5602_s1 + $0x298] sm:$0xf0] }
  0xa8   :  { %2081 = vmatpush.bf16.msrb.mxu0 %v2479_v45  ;;  %v3532_v45 = vld [vmem:[%s5602_s1 + $0x2a4] sm:$0xf]  ;;  %v2447_v48 = vor.u32 %v3484_v26, %v2444_v27  ;;  %v1855_v56 = vpop.f32.mrf.mxu2  ;;  %v2556_v11 = vld [vmem:[%s5602_s1 + $0x208] sm:$0xf0]  ;;  %v2868_v26 = vld [vmem:[%s5602_s1 + $0x478] sm:$0xf0] }
  0xa9   :  { %2094 = vmatpush.bf16.msrb.mxu1 %v2543_v46  ;;  %v2636_v46 = vld [vmem:[%s5602_s1 + $0x2a8] sm:$0xf0]  ;;  %v1868_v20 = vpop.f32.mrf.mxu3  ;;  %v1844_v27 = vpop.f32.mrf.mxu1 }
  0xaa   :  { %2107 = vmatpush.bf16.msrb.mxu2 %v2607_v47  ;;  %v1829_v47 = vpop.f32.mrf.mxu0 }
  0xab   :  { %2120 = vmatpush.bf16.msrb.mxu3 %v2671_v51  ;;  %v1830_v49 = vadd.f32 %v1829_v47, %v313_v19  ;;  %v2511_v51 = vor.u32 %v3500_v34, %v2508_v37  ;;  %v2431_v19 = vor.u32 %v3480_v0, %v2428_v1  ;;  %v3606_v37 = vld [vmem:[%s5602_s1 + $0x4f4] sm:$0xf]  ;;  %v2788_v0 = vld [vmem:[%s5602_s1 + $0x3d8] sm:$0xf0] }
  0xac   :  { %2082 = vmatpush.bf16.msrb.mxu0 %v2471_v57  ;;  %v2639_v57 = vor.u32 %v3532_v45, %v2636_v46  ;;  %v2743_v46 = vor.u32 %v3558_v15, %v2740_v16  ;;  %v2935_v53 = vor.u32 %v3606_v37, %v2932_v40  ;;  %v3586_v1 = vld [vmem:[%s5602_s1 + $0x454] sm:$0xf]  ;;  %v2908_v15 = vld [vmem:[%s5602_s1 + $0x4c8] sm:$0xf0]  ;;  %v2772_v37 = vld [vmem:[%s5602_s1 + $0x3b8] sm:$0xf0] }
  0xad   :  { %2095 = vmatpush.bf16.msrb.mxu1 %v2535_v58  ;;  %v2500_v58 = vld [vmem:[%s5602_s1 + $0x198] sm:$0xf0]  ;;  %v1843_v61 = vadd.f32 %v1842_v50, %v1830_v49  ;;  %v3556_v50 = vld [vmem:[%s5602_s1 + $0x364] sm:$0xf]  ;;  %v3582_v40 = vld [vmem:[%s5602_s1 + $0x434] sm:$0xf] }
  0xae   :  { %2108 = vmatpush.bf16.msrb.mxu2 %v2599_v59  ;;  %v3514_v59 = vld [vmem:[%s5602_s1 + $0x214] sm:$0xf] }
  0xaf   :  { %2121 = vmatpush.bf16.msrb.mxu3 %v2663_v62  ;;  %v3530_v62 = vld [vmem:[%s5602_s1 + $0x294] sm:$0xf]  ;;  %v1856_v2 = vadd.f32 %v1855_v56, %v1843_v61  ;;  %v2567_v5 = vor.u32 %v3514_v59, %v2564_v60  ;;  %v2860_v56 = vld [vmem:[%s5602_s1 + $0x468] sm:$0xf0] }
  0xb0   :  { %2083 = vmatpush.bf16.msrb.mxu0 %v2463_v3  ;;  %v2503_v3 = vor.u32 %v3498_v55, %v2500_v58  ;;  %v2631_v10 = vor.u32 %v3530_v62, %v2628_v21  ;;  %v1857_v43 = vpop.f32.mrf.mxu2  ;;  %v3588_v55 = vld [vmem:[%s5602_s1 + $0x464] sm:$0xf]  ;;  %v2924_v58 = vld [vmem:[%s5602_s1 + $0x4e8] sm:$0xf0]  ;;  %v2724_v62 = vld [vmem:[%s5602_s1 + $0x358] sm:$0xf0] }
  0xb1   :  { %2096 = vmatpush.bf16.msrb.mxu1 %v2527_v7  ;;  %v3496_v7 = vld [vmem:[%s5602_s1 + $0x184] sm:$0xf]  ;;  %v4995_v14 = vadd.f32 %v1868_v20, %v1856_v2  ;;  %v1870_v47 = vpop.f32.mrf.mxu3  ;;  %v2863_v61 = vor.u32 %v3588_v55, %v2860_v56  ;;  %v3554_v20 = vld [vmem:[%s5602_s1 + $0x354] sm:$0xf]  ;;  %v2852_v2 = vld [vmem:[%s5602_s1 + $0x458] sm:$0xf0] }
  0xb2   :  { %2109 = vmatpush.bf16.msrb.mxu2 %v2591_v8  ;;  %v2492_v8 = vld [vmem:[%s5602_s1 + $0x188] sm:$0xf0]  ;;  %v3570_v21 = vld [vmem:[%s5602_s1 + $0x3d4] sm:$0xf]  ;;  %v2836_v43 = vld [vmem:[%s5602_s1 + $0x438] sm:$0xf0] }
  0xb3   :  { %2122 = vmatpush.bf16.msrb.mxu3 %v2655_v12  ;;  %v3528_v12 = vld [vmem:[%s5602_s1 + $0x284] sm:$0xf]  ;;  %v2495_v34 = vor.u32 %v3496_v7, %v2492_v8  ;;  %v2791_v7 = vor.u32 %v3570_v21, %v2788_v0  ;;  %v2855_v8 = vor.u32 %v3586_v1, %v2852_v2  ;;  %v2764_v55 = vld [vmem:[%s5602_s1 + $0x3a8] sm:$0xf0]  ;;  %v3546_v1 = vld [vmem:[%s5602_s1 + $0x314] sm:$0xf] }
  0xb4   :  { %2084 = vmatpush.bf16.msrb.mxu0 %v2455_v18  ;;  %v1831_v18 = vpop.f32.mrf.mxu0  ;;  %v2623_v45 = vor.u32 %v3528_v12, %v2620_v13  ;;  %v2844_v12 = vld [vmem:[%s5602_s1 + $0x448] sm:$0xf0]  ;;  %v3600_v13 = vld [vmem:[%s5602_s1 + $0x4c4] sm:$0xf]  ;;  %v2692_v2 = vld [vmem:[%s5602_s1 + $0x318] sm:$0xf0] }
  0xb5   :  { %2097 = vmatpush.bf16.msrb.mxu1 %v2519_v22  ;;  %v2804_v22 = vld [vmem:[%s5602_s1 + $0x3f8] sm:$0xf0]  ;;  %v3580_v56 = vld [vmem:[%s5602_s1 + $0x424] sm:$0xf] }
  0xb6   :  { %2110 = vmatpush.bf16.msrb.mxu2 %v2583_v24  ;;  %v3590_v24 = vld [vmem:[%s5602_s1 + $0x474] sm:$0xf] }
  0xb7   :  { %2123 = vmatpush.bf16.msrb.mxu3 %v2647_v36  ;;  %v2559_v36 = vor.u32 %v3512_v9, %v2556_v11  ;;  %v2871_v49 = vor.u32 %v3590_v24, %v2868_v26  ;;  %v3552_v9 = vld [vmem:[%s5602_s1 + $0x344] sm:$0xf]  ;;  %v2708_v24 = vld [vmem:[%s5602_s1 + $0x338] sm:$0xf0]  ;;  %v3566_v26 = vld [vmem:[%s5602_s1 + $0x3b4] sm:$0xf] }
  0xb8   :  { %2085 = vmatpush.bf16.msrb.mxu0 %v2447_v48  ;;  %v2807_v48 = vor.u32 %v3574_v17, %v2804_v22  ;;  %v3584_v11 = vld [vmem:[%s5602_s1 + $0x444] sm:$0xf]  ;;  %v3550_v22 = vld [vmem:[%s5602_s1 + $0x334] sm:$0xf] }
  0xb9   :  { %2098 = vmatpush.bf16.msrb.mxu1 %v2511_v51  ;;  %v2732_v51 = vld [vmem:[%s5602_s1 + $0x368] sm:$0xf0]  ;;  %v2711_v47 = vor.u32 %v3550_v22, %v2708_v24  ;;  %v3592_v24 = vld [vmem:[%s5602_s1 + $0x484] sm:$0xf] }
  0xba   :  { %2111 = vmatpush.bf16.msrb.mxu2 %v2575_v52  ;;  %v3572_v52 = vld [vmem:[%s5602_s1 + $0x3e4] sm:$0xf]  ;;  %v2735_v59 = vor.u32 %v3556_v50, %v2732_v51  ;;  %v2700_v51 = vld [vmem:[%s5602_s1 + $0x328] sm:$0xf0] }
  0xbb   :  { %2124 = vmatpush.bf16.msrb.mxu3 %v2639_v57  ;;  %v3604_v57 = vld [vmem:[%s5602_s1 + $0x4e4] sm:$0xf]  ;;  %v2799_v60 = vor.u32 %v3572_v52, %v2796_v54  ;;  %v2812_v22 = vld [vmem:[%s5602_s1 + $0x408] sm:$0xf0] }
  0xbc   :  { %2086 = vmatpush.bf16.msrb.mxu0 %v2439_v63  ;;  %v2927_v63 = vor.u32 %v3604_v57, %v2924_v58  ;;  %v3548_v50 = vld [vmem:[%s5602_s1 + $0x324] sm:$0xf]  ;;  %v2828_v57 = vld [vmem:[%s5602_s1 + $0x428] sm:$0xf0] }
  0xbd   :  { %2099 = vmatpush.bf16.msrb.mxu1 %v2503_v3  ;;  %v3602_v3 = vld [vmem:[%s5602_s1 + $0x4d4] sm:$0xf]  ;;  %v3564_v52 = vld [vmem:[%s5602_s1 + $0x3a4] sm:$0xf]  ;;  %v2831_v0 = vor.u32 %v3580_v56, %v2828_v57 }
  0xbe   :  { %2112 = vmatpush.bf16.msrb.mxu2 %v2567_v5  ;;  %v2727_v5 = vor.u32 %v3554_v20, %v2724_v62  ;;  %v2703_v20 = vor.u32 %v3548_v50, %v2700_v51  ;;  %v3636_v56 = vld [vmem:[%s5602_s1 + $0x5e4] sm:$0xf] }
  0xbf   :  { %2125 = vmatpush.bf16.msrb.mxu3 %v2631_v10  ;;  %v2716_v10 = vld [vmem:[%s5602_s1 + $0x348] sm:$0xf0] }
  0xc0   :  { %2087 = vmatpush.bf16.msrb.mxu0 %v2431_v19  ;;  %v2719_v16 = vor.u32 %v3552_v9, %v2716_v10  ;;  %v1881_v17 = vpop.f32.mrf.mxu0  ;;  %v2847_v19 = vor.u32 %v3584_v11, %v2844_v12  ;;  %v2820_v9 = vld [vmem:[%s5602_s1 + $0x418] sm:$0xf0]  ;;  %v3594_v10 = vld [vmem:[%s5602_s1 + $0x494] sm:$0xf]  ;;  %v2684_v11 = vld [vmem:[%s5602_s1 + $0x308] sm:$0xf0] }
  0xc1   :  { %2100 = vmatpush.bf16.msrb.mxu1 %v2495_v34  ;;  %v1882_v27 = vadd.f32 %v1881_v17, %v4995_v14  ;;  %v1894_v34 = vpop.f32.mrf.mxu1  ;;  %v2900_v14 = vld [vmem:[%s5602_s1 + $0x4b8] sm:$0xf0]  ;;  %v3576_v17 = vld [vmem:[%s5602_s1 + $0x404] sm:$0xf] }
  0xc2   :  { %2113 = vmatpush.bf16.msrb.mxu2 %v2559_v36  ;;  %v2911_v36 = vor.u32 %v3600_v13, %v2908_v15  ;;  %v3560_v15 = vld [vmem:[%s5602_s1 + $0x384] sm:$0xf] }
  0xc3   :  { %2126 = vmatpush.bf16.msrb.mxu3 %v2623_v45  ;;  %2088 = vmatmul.bf16.vlgmr.msrb.gmra.mxu0 %v4024_v4  ;;  %v3568_v4 = vld [vmem:[%s5602_s1 + $0x3c4] sm:$0xf]  ;;  %v3598_v45 = vld [vmem:[%s5602_s1 + $0x4b4] sm:$0xf] }
  0xc4   :  { %2132 = vmatpush.bf16.msra.mxu0 %v2743_v46  ;;  %2101 = vmatmul.bf16.vlgmr.msrb.gmra.mxu1 %v4029_v6  ;;  %v2780_v6 = vld [vmem:[%s5602_s1 + $0x3c8] sm:$0xf0]  ;;  %v1895_v46 = vadd.f32 %v1894_v34, %v1882_v27  ;;  %v2903_v54 = vor.u32 %v3598_v45, %v2900_v14  ;;  %v3622_v34 = vld [vmem:[%s5602_s1 + $0x574] sm:$0xf]  ;;  %v3124_v14 = vld [vmem:[%s5602_s1 + $0x678] sm:$0xf0] }
  0xc5   :  { %2145 = vmatpush.bf16.msra.mxu1 %v2807_v48  ;;  %2114 = vmatmul.bf16.vlgmr.msrb.gmra.mxu2 %v4215_v41  ;;  %v2916_v41 = vld [vmem:[%s5602_s1 + $0x4d8] sm:$0xf0]  ;;  %v2783_v18 = vor.u32 %v3568_v4, %v2780_v6  ;;  %v2775_v48 = vor.u32 %v3566_v26, %v2772_v37  ;;  %v3544_v6 = vld [vmem:[%s5602_s1 + $0x304] sm:$0xf]  ;;  %v2876_v26 = vld [vmem:[%s5602_s1 + $0x488] sm:$0xf0] }
  0xc6   :  { %2158 = vmatpush.bf16.msra.mxu2 %v2871_v49  ;;  %2127 = vmatmul.bf16.vlgmr.msrb.gmra.mxu3 %v4219_v44  ;;  %v2919_v44 = vor.u32 %v3602_v3, %v2916_v41  ;;  %v2839_v49 = vor.u32 %v3582_v40, %v2836_v43  ;;  %v3562_v3 = vld [vmem:[%s5602_s1 + $0x394] sm:$0xf]  ;;  %v2884_v4 = vld [vmem:[%s5602_s1 + $0x498] sm:$0xf0]  ;;  %v2687_v40 = vor.u32 %v3544_v6, %v2684_v11  ;;  %v3632_v6 = vld [vmem:[%s5602_s1 + $0x5c4] sm:$0xf] }
  0xc7   :  { %2171 = vmatpush.bf16.msra.mxu3 %v2935_v53  ;;  %v3638_v37 = vld [vmem:[%s5602_s1 + $0x5f4] sm:$0xf]  ;;  %v3060_v43 = vld [vmem:[%s5602_s1 + $0x5f8] sm:$0xf0]  ;;  %v2879_v50 = vor.u32 %v3592_v24, %v2876_v26  ;;  %v3036_v11 = vld [vmem:[%s5602_s1 + $0x5c8] sm:$0xf0] }
  0xc8   :  { %2133 = vmatpush.bf16.msra.mxu0 %v2735_v59  ;;  %v1907_v53 = vpop.f32.mrf.mxu2  ;;  %v1883_v21 = vpop.f32.mrf.mxu0  ;;  %v3654_v45 = vld [vmem:[%s5602_s1 + $0x674] sm:$0xf]  ;;  %v3039_v24 = vor.u32 %v3632_v6, %v3036_v11  ;;  %v3624_v11 = vld [vmem:[%s5602_s1 + $0x584] sm:$0xf] }
  0xc9   :  { %2146 = vmatpush.bf16.msra.mxu1 %v2799_v60  ;;  %v1908_v58 = vadd.f32 %v1907_v53, %v1895_v46  ;;  %v1920_v59 = vpop.f32.mrf.mxu3  ;;  %v3596_v60 = vld [vmem:[%s5602_s1 + $0x4a4] sm:$0xf]  ;;  %v1896_v41 = vpop.f32.mrf.mxu1  ;;  %v3127_v53 = vor.u32 %v3654_v45, %v3124_v14  ;;  %v3092_v45 = vld [vmem:[%s5602_s1 + $0x638] sm:$0xf0]  ;;  %v3662_v14 = vld [vmem:[%s5602_s1 + $0x6b4] sm:$0xf] }
  0xca   :  { %2159 = vmatpush.bf16.msra.mxu2 %v2863_v61  ;;  %v2892_v61 = vld [vmem:[%s5602_s1 + $0x4a8] sm:$0xf0] }
  0xcb   :  { %2172 = vmatpush.bf16.msra.mxu3 %v2927_v63  ;;  %v5146_v62 = vadd.f32 %v1920_v59, %v1908_v58  ;;  %v2767_v63 = vor.u32 %v3564_v52, %v2764_v55  ;;  %v3063_v52 = vor.u32 %v3638_v37, %v3060_v43  ;;  %v2988_v55 = vld [vmem:[%s5602_s1 + $0x568] sm:$0xf0]  ;;  %v3652_v59 = vld [vmem:[%s5602_s1 + $0x664] sm:$0xf]  ;;  %v3646_v43 = vld [vmem:[%s5602_s1 + $0x634] sm:$0xf] }
  0xcc   :  { %2134 = vmatpush.bf16.msra.mxu0 %v2727_v5  ;;  %v2895_v5 = vor.u32 %v3596_v60, %v2892_v61  ;;  %v3052_v58 = vld [vmem:[%s5602_s1 + $0x5e8] sm:$0xf0]  ;;  %v3668_v61 = vld [vmem:[%s5602_s1 + $0x6e4] sm:$0xf] }
  0xcd   :  { %2147 = vmatpush.bf16.msra.mxu1 %v2791_v7  ;;  %v2756_v7 = vld [vmem:[%s5602_s1 + $0x398] sm:$0xf0]  ;;  %v3116_v60 = vld [vmem:[%s5602_s1 + $0x668] sm:$0xf0] }
  0xce   :  { %2160 = vmatpush.bf16.msra.mxu2 %v2855_v8  ;;  %v3578_v8 = vld [vmem:[%s5602_s1 + $0x414] sm:$0xf]  ;;  %v2759_v12 = vor.u32 %v3562_v3, %v2756_v7 }
  0xcf   :  { %2173 = vmatpush.bf16.msra.mxu3 %v2919_v44  ;;  %v2695_v44 = vor.u32 %v3546_v1, %v2692_v2  ;;  %v2823_v13 = vor.u32 %v3578_v8, %v2820_v9  ;;  %v3618_v1 = vld [vmem:[%s5602_s1 + $0x554] sm:$0xf]  ;;  %v2980_v2 = vld [vmem:[%s5602_s1 + $0x558] sm:$0xf0] }
  0xd0   :  { %2135 = vmatpush.bf16.msra.mxu0 %v2719_v16  ;;  %v2748_v16 = vld [vmem:[%s5602_s1 + $0x388] sm:$0xf0]  ;;  %v3634_v3 = vld [vmem:[%s5602_s1 + $0x5d4] sm:$0xf]  ;;  %v3108_v8 = vld [vmem:[%s5602_s1 + $0x658] sm:$0xf0] }
  0xd1   :  { %2148 = vmatpush.bf16.msra.mxu1 %v2783_v18  ;;  %v1909_v18 = vpop.f32.mrf.mxu2  ;;  %v1922_v27 = vpop.f32.mrf.mxu3  ;;  %v2751_v46 = vor.u32 %v3560_v15, %v2748_v16  ;;  %v3650_v7 = vld [vmem:[%s5602_s1 + $0x654] sm:$0xf]  ;;  %v3172_v9 = vld [vmem:[%s5602_s1 + $0x6d8] sm:$0xf0]  ;;  %v3664_v16 = vld [vmem:[%s5602_s1 + $0x6c4] sm:$0xf] }
  0xd2   :  { %2161 = vmatpush.bf16.msra.mxu2 %v2847_v19  ;;  %v2887_v19 = vor.u32 %v3594_v10, %v2884_v4  ;;  %v2983_v10 = vor.u32 %v3618_v1, %v2980_v2  ;;  %v3614_v27 = vld [vmem:[%s5602_s1 + $0x534] sm:$0xf] }
  0xd3   :  { %2174 = vmatpush.bf16.msra.mxu3 %v2911_v36  ;;  %v2996_v36 = vld [vmem:[%s5602_s1 + $0x578] sm:$0xf0] }
  0xd4   :  { %2136 = vmatpush.bf16.msra.mxu0 %v2711_v47  ;;  %v2815_v47 = vor.u32 %v3576_v17, %v2812_v22  ;;  %v2999_v51 = vor.u32 %v3622_v34, %v2996_v36  ;;  %v3164_v17 = vld [vmem:[%s5602_s1 + $0x6c8] sm:$0xf0]  ;;  %v2964_v34 = vld [vmem:[%s5602_s1 + $0x538] sm:$0xf0]  ;;  %v3630_v36 = vld [vmem:[%s5602_s1 + $0x5b4] sm:$0xf] }
  0xd5   :  { %2149 = vmatpush.bf16.msra.mxu1 %v2775_v48  ;;  %v3670_v48 = vld [vmem:[%s5602_s1 + $0x6f4] sm:$0xf] }
  0xd6   :  { %2162 = vmatpush.bf16.msra.mxu2 %v2839_v49  ;;  %v3188_v49 = vld [vmem:[%s5602_s1 + $0x6f8] sm:$0xf0] }
  0xd7   :  { %2175 = vmatpush.bf16.msra.mxu3 %v2903_v54  ;;  %v3620_v54 = vld [vmem:[%s5602_s1 + $0x564] sm:$0xf]  ;;  %v3191_v57 = vor.u32 %v3670_v48, %v3188_v49  ;;  %v3095_v49 = vor.u32 %v3646_v43, %v3092_v45  ;;  %v3734_v45 = vld [vmem:[%s5602_s1 + $0x8f4] sm:$0xf] }
  0xd8   :  { %2137 = vmatpush.bf16.msra.mxu0 %v2703_v20  ;;  %v3180_v20 = vld [vmem:[%s5602_s1 + $0x6e8] sm:$0xf0]  ;;  %v2991_v21 = vor.u32 %v3620_v54, %v2988_v55 }
  0xd9   :  { %2150 = vmatpush.bf16.msra.mxu1 %v2767_v63  ;;  %v3055_v63 = vor.u32 %v3636_v56, %v3052_v58  ;;  %v3183_v41 = vor.u32 %v3668_v61, %v3180_v20  ;;  %v3020_v55 = vld [vmem:[%s5602_s1 + $0x5a8] sm:$0xf0]  ;;  %v3644_v56 = vld [vmem:[%s5602_s1 + $0x624] sm:$0xf] }
  0xda   :  { %2163 = vmatpush.bf16.msra.mxu2 %v2831_v0  ;;  %v3119_v0 = vor.u32 %v3652_v59, %v3116_v60  ;;  %v3660_v60 = vld [vmem:[%s5602_s1 + $0x6a4] sm:$0xf]  ;;  %v3148_v61 = vld [vmem:[%s5602_s1 + $0x6a8] sm:$0xf0] }
  0xdb   :  { %2176 = vmatpush.bf16.msra.mxu3 %v2895_v5  ;;  %v3044_v5 = vld [vmem:[%s5602_s1 + $0x5d8] sm:$0xf0] }
  0xdc   :  { %2138 = vmatpush.bf16.msra.mxu0 %v2695_v44  ;;  %v3047_v4 = vor.u32 %v3634_v3, %v3044_v5  ;;  %v3111_v44 = vor.u32 %v3650_v7, %v3108_v8  ;;  %v3610_v3 = vld [vmem:[%s5602_s1 + $0x514] sm:$0xf]  ;;  %v3151_v7 = vor.u32 %v3660_v60, %v3148_v61  ;;  %v3012_v8 = vld [vmem:[%s5602_s1 + $0x598] sm:$0xf0] }
  0xdd   :  { %2151 = vmatpush.bf16.msra.mxu1 %v2759_v12  ;;  %v3648_v12 = vld [vmem:[%s5602_s1 + $0x644] sm:$0xf]  ;;  %v3626_v5 = vld [vmem:[%s5602_s1 + $0x594] sm:$0xf] }
  0xde   :  { %2164 = vmatpush.bf16.msra.mxu2 %v2823_v13  ;;  %v3100_v13 = vld [vmem:[%s5602_s1 + $0x648] sm:$0xf0]  ;;  %v3015_v6 = vor.u32 %v3626_v5, %v3012_v8  ;;  %v3428_v5 = vld [vmem:[%s5602_s1 + $0x8d8] sm:$0xf0] }
  0xdf   :  { %2177 = vmatpush.bf16.msra.mxu3 %v2887_v19  ;;  %v3103_v26 = vor.u32 %v3648_v12, %v3100_v13  ;;  %v3004_v12 = vld [vmem:[%s5602_s1 + $0x588] sm:$0xf0]  ;;  %v3640_v13 = vld [vmem:[%s5602_s1 + $0x604] sm:$0xf] }
  0xe0   :  { %2139 = vmatpush.bf16.msra.mxu0 %v2687_v40  ;;  %v1933_v15 = vpop.f32.mrf.mxu0  ;;  %v3028_v40 = vld [vmem:[%s5602_s1 + $0x5b8] sm:$0xf0] }
  0xe1   :  { %2152 = vmatpush.bf16.msra.mxu1 %v2751_v46  ;;  %v1934_v18 = vadd.f32 %v1933_v15, %v5146_v62  ;;  %v1946_v22 = vpop.f32.mrf.mxu1  ;;  %v3167_v62 = vor.u32 %v3664_v16, %v3164_v17  ;;  %v3156_v46 = vld [vmem:[%s5602_s1 + $0x6b8] sm:$0xf0]  ;;  %v3031_v48 = vor.u32 %v3630_v36, %v3028_v40  ;;  %v3068_v16 = vld [vmem:[%s5602_s1 + $0x608] sm:$0xf0]  ;;  %v3656_v17 = vld [vmem:[%s5602_s1 + $0x684] sm:$0xf]  ;;  %v3007_v40 = vor.u32 %v3624_v11, %v3004_v12 }
  0xe2   :  { %2165 = vmatpush.bf16.msra.mxu2 %v2815_v47  ;;  %v2967_v47 = vor.u32 %v3614_v27, %v2964_v34  ;;  %v3316_v36 = vld [vmem:[%s5602_s1 + $0x7f8] sm:$0xf0]  ;;  %v3071_v43 = vor.u32 %v3640_v13, %v3068_v16  ;;  %v3678_v16 = vld [vmem:[%s5602_s1 + $0x734] sm:$0xf] }
  0xe3   :  { %2178 = vmatpush.bf16.msra.mxu3 %v2879_v50  ;;  %2140 = vmatmul.bf16.vlgmr.msra.gmra.mxu0 %v4207_v38  ;;  %v3666_v38 = vld [vmem:[%s5602_s1 + $0x6d4] sm:$0xf]  ;;  %v1947_v37 = vadd.f32 %v1946_v22, %v1934_v18  ;;  %v3612_v50 = vld [vmem:[%s5602_s1 + $0x524] sm:$0xf]  ;;  %v3132_v18 = vld [vmem:[%s5602_s1 + $0x688] sm:$0xf0] }
  0xe4   :  { %2184 = vmatpush.bf16.msrb.mxu0 %v2999_v51  ;;  %2153 = vmatmul.bf16.vlgmr.msra.gmra.mxu1 %v4217_v42  ;;  %v3616_v42 = vld [vmem:[%s5602_s1 + $0x544] sm:$0xf]  ;;  %v2956_v51 = vld [vmem:[%s5602_s1 + $0x528] sm:$0xf0]  ;;  %v3686_v22 = vld [vmem:[%s5602_s1 + $0x774] sm:$0xf] }
  0xe5   :  { %2197 = vmatpush.bf16.msrb.mxu1 %v3063_v52  ;;  %2166 = vmatmul.bf16.vlgmr.msra.gmra.mxu2 %v4408_v25  ;;  %v2972_v25 = vld [vmem:[%s5602_s1 + $0x548] sm:$0xf0]  ;;  %v3628_v52 = vld [vmem:[%s5602_s1 + $0x5a4] sm:$0xf] }
  0xe6   :  { %2210 = vmatpush.bf16.msrb.mxu2 %v3127_v53  ;;  %2179 = vmatmul.bf16.vlgmr.msra.gmra.mxu3 %v4421_v30  ;;  %v3175_v30 = vor.u32 %v3666_v38, %v3172_v9  ;;  %v2975_v19 = vor.u32 %v3616_v42, %v2972_v25  ;;  %v3159_v53 = vor.u32 %v3662_v14, %v3156_v46  ;;  %v3642_v38 = vld [vmem:[%s5602_s1 + $0x614] sm:$0xf]  ;;  %v3076_v9 = vld [vmem:[%s5602_s1 + $0x618] sm:$0xf0]  ;;  %v3608_v42 = vld [vmem:[%s5602_s1 + $0x504] sm:$0xf] }
  0xe7   :  { %2223 = vmatpush.bf16.msrb.mxu3 %v3191_v57  ;;  %v3084_v57 = vld [vmem:[%s5602_s1 + $0x628] sm:$0xf0]  ;;  %v3023_v1 = vor.u32 %v3628_v52, %v3020_v55  ;;  %v3444_v14 = vld [vmem:[%s5602_s1 + $0x8f8] sm:$0xf0]  ;;  %v3135_v46 = vor.u32 %v3656_v17, %v3132_v18  ;;  %v3700_v52 = vld [vmem:[%s5602_s1 + $0x7e4] sm:$0xf] }
  0xe8   :  { %2185 = vmatpush.bf16.msrb.mxu0 %v2991_v21  ;;  %v1959_v54 = vpop.f32.mrf.mxu2  ;;  %v1935_v20 = vpop.f32.mrf.mxu0  ;;  %v2959_v21 = vor.u32 %v3612_v50, %v2956_v51  ;;  %v3087_v2 = vor.u32 %v3644_v56, %v3084_v57  ;;  %v2940_v25 = vld [vmem:[%s5602_s1 + $0x508] sm:$0xf0]  ;;  %v3684_v50 = vld [vmem:[%s5602_s1 + $0x764] sm:$0xf]  ;;  %v3220_v17 = vld [vmem:[%s5602_s1 + $0x738] sm:$0xf0] }
  0xe9   :  { %2198 = vmatpush.bf16.msrb.mxu1 %v3055_v63  ;;  %v1960_v58 = vadd.f32 %v1959_v54, %v1947_v37  ;;  %v1972_v59 = vpop.f32.mrf.mxu3  ;;  %v1948_v63 = vpop.f32.mrf.mxu1  ;;  %v2943_v34 = vor.u32 %v3608_v42, %v2940_v25  ;;  %v3380_v37 = vld [vmem:[%s5602_s1 + $0x878] sm:$0xf0]  ;;  %v3244_v51 = vld [vmem:[%s5602_s1 + $0x768] sm:$0xf0]  ;;  %v3716_v55 = vld [vmem:[%s5602_s1 + $0x864] sm:$0xf] }
  0xea   :  { %2211 = vmatpush.bf16.msrb.mxu2 %v3119_v0  ;;  %v3308_v54 = vld [vmem:[%s5602_s1 + $0x7e8] sm:$0xf0]  ;;  %v3732_v57 = vld [vmem:[%s5602_s1 + $0x8e4] sm:$0xf]  ;;  %v3682_v20 = vld [vmem:[%s5602_s1 + $0x754] sm:$0xf] }
  0xeb   :  { %2224 = vmatpush.bf16.msrb.mxu3 %v3183_v41  ;;  %v5345_v0 = vadd.f32 %v1972_v59, %v1960_v58  ;;  %v2948_v41 = vld [vmem:[%s5602_s1 + $0x518] sm:$0xf0]  ;;  %v3372_v56 = vld [vmem:[%s5602_s1 + $0x868] sm:$0xf0]  ;;  %v3247_v59 = vor.u32 %v3684_v50, %v3244_v51  ;;  %v3311_v60 = vor.u32 %v3700_v52, %v3308_v54  ;;  %v3698_v63 = vld [vmem:[%s5602_s1 + $0x7d4] sm:$0xf] }
  0xec   :  { %2186 = vmatpush.bf16.msrb.mxu0 %v2983_v10  ;;  %v3658_v10 = vld [vmem:[%s5602_s1 + $0x694] sm:$0xf]  ;;  %v3436_v58 = vld [vmem:[%s5602_s1 + $0x8e8] sm:$0xf0]  ;;  %v3375_v61 = vor.u32 %v3716_v55, %v3372_v56  ;;  %v3728_v25 = vld [vmem:[%s5602_s1 + $0x8c4] sm:$0xf] }
  0xed   :  { %2199 = vmatpush.bf16.msrb.mxu1 %v3047_v4  ;;  %v3140_v4 = vld [vmem:[%s5602_s1 + $0x698] sm:$0xf0]  ;;  %v3694_v18 = vld [vmem:[%s5602_s1 + $0x7b4] sm:$0xf]  ;;  %v3724_v52 = vld [vmem:[%s5602_s1 + $0x8a4] sm:$0xf] }
  0xee   :  { %2212 = vmatpush.bf16.msrb.mxu2 %v3111_v44  ;;  %v2951_v44 = vor.u32 %v3610_v3, %v2948_v41  ;;  %v3143_v15 = vor.u32 %v3658_v10, %v3140_v4  ;;  %v3714_v3 = vld [vmem:[%s5602_s1 + $0x854] sm:$0xf]  ;;  %v3364_v41 = vld [vmem:[%s5602_s1 + $0x858] sm:$0xf0]  ;;  %v3292_v10 = vld [vmem:[%s5602_s1 + $0x7c8] sm:$0xf0] }
  0xef   :  { %2225 = vmatpush.bf16.msrb.mxu3 %v3175_v30  ;;  %v3079_v30 = vor.u32 %v3642_v38, %v3076_v9  ;;  %v3367_v38 = vor.u32 %v3714_v3, %v3364_v41  ;;  %v3696_v9 = vld [vmem:[%s5602_s1 + $0x7c4] sm:$0xf]  ;;  %v3722_v3 = vld [vmem:[%s5602_s1 + $0x894] sm:$0xf]  ;;  %v3396_v41 = vld [vmem:[%s5602_s1 + $0x898] sm:$0xf0] }
  0xf0   :  { %2187 = vmatpush.bf16.msrb.mxu0 %v2975_v19  ;;  %v1961_v19 = vpop.f32.mrf.mxu2  ;;  %v3712_v4 = vld [vmem:[%s5602_s1 + $0x844] sm:$0xf]  ;;  %v3295_v13 = vor.u32 %v3696_v9, %v3292_v10  ;;  %v3260_v9 = vld [vmem:[%s5602_s1 + $0x788] sm:$0xf0] }
  0xf1   :  { %2200 = vmatpush.bf16.msrb.mxu1 %v3039_v24  ;;  %v3252_v24 = vld [vmem:[%s5602_s1 + $0x778] sm:$0xf0]  ;;  %v1974_v27 = vpop.f32.mrf.mxu3  ;;  %v3324_v10 = vld [vmem:[%s5602_s1 + $0x808] sm:$0xf0] }
  0xf2   :  { %2213 = vmatpush.bf16.msrb.mxu2 %v3103_v26  ;;  %v3702_v26 = vld [vmem:[%s5602_s1 + $0x7f4] sm:$0xf] }
  0xf3   :  { %2226 = vmatpush.bf16.msrb.mxu3 %v3167_v62  ;;  %v3718_v62 = vld [vmem:[%s5602_s1 + $0x874] sm:$0xf] }
  0xf4   :  { %2188 = vmatpush.bf16.msrb.mxu0 %v2967_v47  ;;  %v3255_v47 = vor.u32 %v3686_v22, %v3252_v24  ;;  %v3284_v22 = vld [vmem:[%s5602_s1 + $0x7b8] sm:$0xf0]  ;;  %v3710_v24 = vld [vmem:[%s5602_s1 + $0x834] sm:$0xf] }
  0xf5   :  { %2201 = vmatpush.bf16.msrb.mxu1 %v3031_v48  ;;  %v3319_v48 = vor.u32 %v3702_v26, %v3316_v36  ;;  %v3348_v26 = vld [vmem:[%s5602_s1 + $0x838] sm:$0xf0]  ;;  %v3726_v27 = vld [vmem:[%s5602_s1 + $0x8b4] sm:$0xf]  ;;  %v3223_v36 = vor.u32 %v3678_v16, %v3220_v17 }
  0xf6   :  { %2214 = vmatpush.bf16.msrb.mxu2 %v3095_v49  ;;  %v3383_v49 = vor.u32 %v3718_v62, %v3380_v37  ;;  %v3287_v62 = vor.u32 %v3694_v18, %v3284_v22  ;;  %v3351_v37 = vor.u32 %v3710_v24, %v3348_v26  ;;  %v3736_v18 = vld [vmem:[%s5604_s2] sm:$0x3] }
  0xf7   :  { %2227 = vmatpush.bf16.msrb.mxu3 %v3159_v53  ;;  %v3447_v53 = vor.u32 %v3734_v45, %v3444_v14  ;;  %v3692_v45 = vld [vmem:[%s5602_s1 + $0x7a4] sm:$0xf] }
  0xf8   :  { %2189 = vmatpush.bf16.msrb.mxu0 %v2959_v21  ;;  %v3236_v21 = vld [vmem:[%s5602_s1 + $0x758] sm:$0xf0] }
  0xf9   :  { %2202 = vmatpush.bf16.msrb.mxu1 %v3023_v1  ;;  %v3439_v1 = vor.u32 %v3732_v57, %v3436_v58 }
  0xfa   :  { %2215 = vmatpush.bf16.msrb.mxu2 %v3087_v2  ;;  %v3300_v2 = vld [vmem:[%s5602_s1 + $0x7d8] sm:$0xf0] }
  0xfb   :  { %2228 = vmatpush.bf16.msrb.mxu3 %v3151_v7  ;;  %v3239_v7 = vor.u32 %v3682_v20, %v3236_v21  ;;  %v3303_v8 = vor.u32 %v3698_v63, %v3300_v2  ;;  %v3690_v20 = vld [vmem:[%s5602_s1 + $0x794] sm:$0xf]  ;;  %v3268_v63 = vld [vmem:[%s5602_s1 + $0x798] sm:$0xf0] }
  0xfc   :  { %2190 = vmatpush.bf16.msrb.mxu0 %v2951_v44  ;;  %v3356_v44 = vld [vmem:[%s5602_s1 + $0x848] sm:$0xf0]  ;;  %v3332_v2 = vld [vmem:[%s5602_s1 + $0x818] sm:$0xf0] }
  0xfd   :  { %2203 = vmatpush.bf16.msrb.mxu1 %v3015_v6  ;;  %v3420_v6 = vld [vmem:[%s5602_s1 + $0x8c8] sm:$0xf0] }
  0xfe   :  { %2216 = vmatpush.bf16.msrb.mxu2 %v3079_v30 }
  0xff   :  { %2229 = vmatpush.bf16.msrb.mxu3 %v3143_v15  ;;  %v3359_v15 = vor.u32 %v3712_v4, %v3356_v44  ;;  %v3720_v44 = vld [vmem:[%s5602_s1 + $0x884] sm:$0xf] }
 0x100   :  { %2191 = vmatpush.bf16.msrb.mxu0 %v2943_v34  ;;  %v1985_v42 = vpop.f32.mrf.mxu0  ;;  %v3412_v34 = vld [vmem:[%s5602_s1 + $0x8b8] sm:$0xf0] }
 0x101   :  { %2204 = vmatpush.bf16.msrb.mxu1 %v3007_v40  ;;  %v1986_v30 = vadd.f32 %v1985_v42, %v5345_v0  ;;  %v1998_v12 = vpop.f32.mrf.mxu1  ;;  %v3423_v0 = vor.u32 %v3728_v25, %v3420_v6  ;;  %v3676_v40 = vld [vmem:[%s5602_s1 + $0x724] sm:$0xf]  ;;  %v3415_v14 = vor.u32 %v3726_v27, %v3412_v34  ;;  %v3388_v42 = vld [vmem:[%s5602_s1 + $0x888] sm:$0xf0] }
 0x102   :  { %2217 = vmatpush.bf16.msrb.mxu2 %v3071_v43  ;;  %v3212_v43 = vld [vmem:[%s5602_s1 + $0x728] sm:$0xf0] }
 0x103   :  { %2230 = vmatpush.bf16.msrb.mxu3 %v3135_v46  ;;  %2192 = vmatmul.bf16.vlgmr.msrb.gmra.mxu0 %v4419_v29  ;;  %v3730_v29 = vld [vmem:[%s5602_s1 + $0x8d4] sm:$0xf]  ;;  %v1999_v19 = vadd.f32 %v1998_v12, %v1986_v30  ;;  %v3215_v55 = vor.u32 %v3676_v40, %v3212_v43  ;;  %v3391_v12 = vor.u32 %v3720_v44, %v3388_v42 }
 0x104   :  { %2236 = vmatpush.bf16.msra.mxu0 %v3255_v47  ;;  %2205 = vmatmul.bf16.vlgmr.msrb.gmra.mxu1 %v4429_v33  ;;  %v3680_v33 = vld [vmem:[%s5602_s1 + $0x744] sm:$0xf]  ;;  %v3276_v47 = vld [vmem:[%s5602_s1 + $0x7a8] sm:$0xf0] }
 0x105   :  { %2249 = vmatpush.bf16.msra.mxu1 %v3319_v48  ;;  %2218 = vmatmul.bf16.vlgmr.msrb.gmra.mxu2 %v4618_v23  ;;  %v3228_v23 = vld [vmem:[%s5602_s1 + $0x748] sm:$0xf0]  ;;  %v3708_v48 = vld [vmem:[%s5602_s1 + $0x824] sm:$0xf]  ;;  %v3279_v58 = vor.u32 %v3692_v45, %v3276_v47 }
 0x106   :  { %2262 = vmatpush.bf16.msra.mxu2 %v3383_v49  ;;  %2231 = vmatmul.bf16.vlgmr.msrb.gmra.mxu3 %v4631_v31  ;;  %v3431_v31 = vor.u32 %v3730_v29, %v3428_v5  ;;  %v3231_v11 = vor.u32 %v3680_v33, %v3228_v23  ;;  %v3340_v49 = vld [vmem:[%s5602_s1 + $0x828] sm:$0xf0]  ;;  %v3271_v5 = vor.u32 %v3690_v20, %v3268_v63  ;;  %v3688_v33 = vld [vmem:[%s5602_s1 + $0x784] sm:$0xf] }
 0x107   :  { %2275 = vmatpush.bf16.msra.mxu3 %v3447_v53  ;;  %v3404_v53 = vld [vmem:[%s5602_s1 + $0x8a8] sm:$0xf0]  ;;  %v3399_v23 = vor.u32 %v3722_v3, %v3396_v41  ;;  %v3263_v30 = vor.u32 %v3688_v33, %v3260_v9 }
 0x108   :  { %2237 = vmatpush.bf16.msra.mxu0 %v3247_v59  ;;  %v2011_v46 = vpop.f32.mrf.mxu2  ;;  %v1987_v54 = vpop.f32.mrf.mxu0  ;;  %v3343_v59 = vor.u32 %v3708_v48, %v3340_v49  ;;  %v3407_v21 = vor.u32 %v3724_v52, %v3404_v53 }
 0x109   :  { %2250 = vmatpush.bf16.msra.mxu1 %v3311_v60  ;;  %v2012_v50 = vadd.f32 %v2011_v46, %v1999_v19  ;;  %v2024_v51 = vpop.f32.mrf.mxu3  ;;  %v2000_v56 = vpop.f32.mrf.mxu1  ;;  %v3674_v60 = vld [vmem:[%s5602_s1 + $0x714] sm:$0xf] }
 0x10a   :  { %2263 = vmatpush.bf16.msra.mxu2 %v3375_v61  ;;  %v3204_v61 = vld [vmem:[%s5602_s1 + $0x718] sm:$0xf0] }
 0x10b   :  { %2276 = vmatpush.bf16.msra.mxu3 %v3439_v1  ;;  %v2025_v57 = vadd.f32 %v2024_v51, %v2012_v50  ;;  %v3706_v1 = vld [vmem:[%s5602_s1 + $0x814] sm:$0xf]  ;;  %v3207_v29 = vor.u32 %v3674_v60, %v3204_v61 }
 0x10c   :  { %2238 = vmatpush.bf16.msra.mxu0 %v3239_v7  ;;  %v3335_v7 = vor.u32 %v3706_v1, %v3332_v2 }
 0x10d   :  { %2251 = vmatpush.bf16.msra.mxu1 %v3303_v8  ;;  %v3672_v8 = vld [vmem:[%s5602_s1 + $0x704] sm:$0xf] }
 0x10e   :  { %2264 = vmatpush.bf16.msra.mxu2 %v3367_v38  ;;  %v3196_v38 = vld [vmem:[%s5602_s1 + $0x708] sm:$0xf0] }
 0x10f   :  { %2277 = vmatpush.bf16.msra.mxu3 %v3431_v31  ;;  %v3704_v31 = vld [vmem:[%s5602_s1 + $0x804] sm:$0xf]  ;;  %v3199_v6 = vor.u32 %v3672_v8, %v3196_v38 }
 0x110   :  { %2239 = vmatpush.bf16.msra.mxu0 %v3231_v11  ;;  %v2013_v4 = vpop.f32.mrf.mxu2  ;;  %v3327_v11 = vor.u32 %v3704_v31, %v3324_v10 }
 0x111   :  { %2252 = vmatpush.bf16.msra.mxu1 %v3295_v13  ;;  %v2026_v25 = vpop.f32.mrf.mxu3 }
 0x112   :  { %2265 = vmatpush.bf16.msra.mxu2 %v3359_v15 }
 0x113   :  { %2278 = vmatpush.bf16.msra.mxu3 %v3423_v0  ;;  %v314_v0 = vperm.slane %v3736_v18, 1 }
 0x114   :  { %2240 = vmatpush.bf16.msra.mxu0 %v3223_v36 }
 0x115   :  { %2253 = vmatpush.bf16.msra.mxu1 %v3287_v62 }
 0x116   :  { %2266 = vmatpush.bf16.msra.mxu2 %v3351_v37 }
 0x117   :  { %2279 = vmatpush.bf16.msra.mxu3 %v3415_v14 }
 0x118   :  { %2241 = vmatpush.bf16.msra.mxu0 %v3215_v55 }
 0x119   :  { %2254 = vmatpush.bf16.msra.mxu1 %v3279_v58 }
 0x11a   :  { %2267 = vmatpush.bf16.msra.mxu2 %v3343_v59 }
 0x11b   :  { %2280 = vmatpush.bf16.msra.mxu3 %v3407_v21 }
 0x11c   :  { %2242 = vmatpush.bf16.msra.mxu0 %v3207_v29 }
 0x11d   :  { %2255 = vmatpush.bf16.msra.mxu1 %v3271_v5 }
 0x11e   :  { %2268 = vmatpush.bf16.msra.mxu2 %v3335_v7 }
 0x11f   :  { %2281 = vmatpush.bf16.msra.mxu3 %v3399_v23 }
 0x120   :  { %2243 = vmatpush.bf16.msra.mxu0 %v3199_v6  ;;  %v2037_v13 = vpop.f32.mrf.mxu0 }
 0x121   :  { %2256 = vmatpush.bf16.msra.mxu1 %v3263_v30  ;;  %v2038_v15 = vadd.f32 %v2037_v13, %v2025_v57  ;;  %v2050_v16 = vpop.f32.mrf.mxu1 }
 0x122   :  { %2269 = vmatpush.bf16.msra.mxu2 %v3327_v11 }
 0x123   :  { %2282 = vmatpush.bf16.msra.mxu3 %v3391_v12  ;;  %2244 = vmatmul.bf16.vlgmr.msra.gmra.mxu0 %v4629_v28  ;;  %v2051_v17 = vadd.f32 %v2050_v16, %v2038_v15 }
 0x124   :  { %2257 = vmatmul.bf16.vlgmr.msra.gmra.mxu1 %v4639_v35 }
 0x125   :  { %2270 = vmatmul.bf16.vlgmr.msra.gmra.mxu2 %v4825_v32  ;;  %v2288_v6 = vmax.f32 %v2051_v17, 0.0 }
 0x126   :  { %2283 = vmatmul.bf16.vlgmr.msra.gmra.mxu3 %v4836_v39 }
 0x128   :  { %v2063_v19 = vpop.f32.mrf.mxu2  ;;  %v2039_v26 = vpop.f32.mrf.mxu0 }
 0x129   :  { %v2064_v22 = vadd.f32 %v2063_v19, %v314_v0  ;;  %v2076_v24 = vpop.f32.mrf.mxu3  ;;  %v2052_v28 = vpop.f32.mrf.mxu1 }
 0x12b   :  { %v2077_v27 = vadd.f32 %v2076_v24, %v2064_v22 }
 0x130   :  { %v2065_v35 = vpop.f32.mrf.mxu2 }
 0x131   :  { %v2078_v34 = vpop.f32.mrf.mxu3 }
 0x140   :  { %v2089_v32 = vpop.f32.mrf.mxu0 }
 0x141   :  { %v2090_v36 = vadd.f32 %v2089_v32, %v2077_v27  ;;  %v2102_v39 = vpop.f32.mrf.mxu1 }
 0x143   :  { %v2103_v62 = vadd.f32 %v2102_v39, %v2090_v36 }
 0x148   :  { %v2115_v37 = vpop.f32.mrf.mxu2  ;;  %v2091_v14 = vpop.f32.mrf.mxu0 }
 0x149   :  { %v2116_v40 = vadd.f32 %v2115_v37, %v2103_v62  ;;  %v2128_v43 = vpop.f32.mrf.mxu3  ;;  %v2104_v46 = vpop.f32.mrf.mxu1 }
 0x14b   :  { %v2129_v45 = vadd.f32 %v2128_v43, %v2116_v40 }
 0x150   :  { %v2117_v47 = vpop.f32.mrf.mxu2 }
 0x151   :  { %v2130_v48 = vpop.f32.mrf.mxu3 }
 0x160   :  { %v2141_v49 = vpop.f32.mrf.mxu0 }
 0x161   :  { %v2154_v50 = vpop.f32.mrf.mxu1  ;;  %v2142_v59 = vadd.f32 %v2141_v49, %v2129_v45 }
 0x163   :  { %v2155_v63 = vadd.f32 %v2154_v50, %v2142_v59 }
 0x168   :  { %v2167_v51 = vpop.f32.mrf.mxu2  ;;  %v2143_v53 = vpop.f32.mrf.mxu0 }
 0x169   :  { %v2180_v52 = vpop.f32.mrf.mxu3  ;;  %v2156_v54 = vpop.f32.mrf.mxu1  ;;  %v2168_v1 = vadd.f32 %v2167_v51, %v2155_v63 }
 0x16b   :  { %v2181_v41 = vadd.f32 %v2180_v52, %v2168_v1 }
 0x170   :  { %v2169_v55 = vpop.f32.mrf.mxu2 }
 0x171   :  { %v2182_v56 = vpop.f32.mrf.mxu3 }
 0x180   :  { %v2193_v57 = vpop.f32.mrf.mxu0 }
 0x181   :  { %v2206_v58 = vpop.f32.mrf.mxu1  ;;  %v2194_v29 = vadd.f32 %v2193_v57, %v2181_v41 }
 0x183   :  { %v2207_v5 = vadd.f32 %v2206_v58, %v2194_v29 }
 0x188   :  { %v2219_v60 = vpop.f32.mrf.mxu2  ;;  %v2195_v20 = vpop.f32.mrf.mxu0 }
 0x189   :  { %v2232_v61 = vpop.f32.mrf.mxu3  ;;  %v2208_v21 = vpop.f32.mrf.mxu1  ;;  %v2220_v7 = vadd.f32 %v2219_v60, %v2207_v5 }
 0x18b   :  { %v2233_v8 = vadd.f32 %v2232_v61, %v2220_v7 }
 0x190   :  { %v2221_v2 = vpop.f32.mrf.mxu2 }
 0x191   :  { %v2234_v3 = vpop.f32.mrf.mxu3 }
 0x1a0   :  { %v2245_v38 = vpop.f32.mrf.mxu0 }
 0x1a1   :  { %v2258_v33 = vpop.f32.mrf.mxu1  ;;  %v2246_v23 = vadd.f32 %v2245_v38, %v2233_v8 }
 0x1a3   :  { %v2259_v9 = vadd.f32 %v2258_v33, %v2246_v23 }
 0x1a8   :  { %v2271_v31 = vpop.f32.mrf.mxu2  ;;  %v2247_v44 = vpop.f32.mrf.mxu0 }
 0x1a9   :  { %v2272_v10 = vadd.f32 %v2271_v31, %v2259_v9  ;;  %v2284_v4 = vpop.f32.mrf.mxu3  ;;  %v2260_v42 = vpop.f32.mrf.mxu1 }
 0x1ab   :  { %v2285_v25 = vadd.f32 %v2284_v4, %v2272_v10 }
 0x1ad   :  { %v2289_v30 = vmax.f32 %v2285_v25, 0.0 }
 0x1af   :  { %v2290_v11 = vpack.c.bf16 %v2289_v30, %v2288_v6 }
 0x1b0   :  { %v2273_v12 = vpop.f32.mrf.mxu2 }
 0x1b1   :  { %2291 = vst [vmem:[%s5605_s3] sm:$0xff] %v2290_v11  ;;  %v2286_v13 = vpop.f32.mrf.mxu3 }

// kernel: backbone_forward.29
= control target key start
LH: loop header
LB: loop body
LE: loop exit
PB: predicated region body
PF: predicated region fallthrough
CT: control target
= control target key end

     0   :  { %s5618_s1 = inlined_call_operand.vmem [shape: bf16[2304,256], index: 1, kind: input, shape index: {}]   ;;  %s5619_s0 = inlined_call_operand.vmem [shape: bf16[8,2304], index: 0, kind: input, shape index: {}]   ;;  %s5620_s2 = inlined_call_operand.vmem [shape: f32[1,256], index: 2, kind: input, shape index: {}]   ;;  %s5621_s3 = inlined_call_operand.vmem [shape: bf16[8,256], index: 3, kind: input, shape index: {}]   ;;  %s5622_s4 = inlined_call_operand.vmem [shape: bf16[8,256], index: 4, kind: output, shape index: {}]  }
   0x1   :  { %v2362_v0 = vld [vmem:[%s5618_s1 + $0x70] sm:$0xf]  ;;  %v3471_v1 = vld [vmem:[%s5618_s1 + $0x74] sm:$0xf0]  ;;  %v2354_v11 = vld [vmem:[%s5618_s1 + $0x60] sm:$0xf] }
   0x2   :  { %v2426_v2 = vld [vmem:[%s5618_s1 + $0xf0] sm:$0xf]  ;;  %v2363_v3 = vor.u32 %v3471_v1, %v2362_v0  ;;  %v3487_v4 = vld [vmem:[%s5618_s1 + $0xf4] sm:$0xf0]  ;;  %v3469_v13 = vld [vmem:[%s5618_s1 + $0x64] sm:$0xf0] }
   0x3   :  { %v2490_v5 = vld [vmem:[%s5618_s1 + $0x170] sm:$0xf]  ;;  %v3503_v6 = vld [vmem:[%s5618_s1 + $0x174] sm:$0xf0]  ;;  %v2427_v7 = vor.u32 %v3487_v4, %v2426_v2  ;;  %v2418_v14 = vld [vmem:[%s5618_s1 + $0xe0] sm:$0xf]  ;;  %v2355_v16 = vor.u32 %v3469_v13, %v2354_v11 }
   0x4   :  { %v2491_v8 = vor.u32 %v3503_v6, %v2490_v5  ;;  %v2554_v9 = vld [vmem:[%s5618_s1 + $0x1f0] sm:$0xf]  ;;  %v3519_v10 = vld [vmem:[%s5618_s1 + $0x1f4] sm:$0xf0]  ;;  %1823 = vmatpush.bf16.msra.mxu0 %v2363_v3  ;;  %v3485_v15 = vld [vmem:[%s5618_s1 + $0xe4] sm:$0xf0] }
   0x5   :  { %v2555_v12 = vor.u32 %v3519_v10, %v2554_v9  ;;  %1836 = vmatpush.bf16.msra.mxu1 %v2427_v7  ;;  %v2419_v17 = vor.u32 %v3485_v15, %v2418_v14  ;;  %v2482_v18 = vld [vmem:[%s5618_s1 + $0x160] sm:$0xf]  ;;  %v3501_v19 = vld [vmem:[%s5618_s1 + $0x164] sm:$0xf0]  ;;  %v2346_v23 = vld [vmem:[%s5618_s1 + $0x50] sm:$0xf] }
   0x6   :  { %1849 = vmatpush.bf16.msra.mxu2 %v2491_v8  ;;  %v2546_v20 = vld [vmem:[%s5618_s1 + $0x1e0] sm:$0xf]  ;;  %v2483_v21 = vor.u32 %v3501_v19, %v2482_v18  ;;  %v3517_v22 = vld [vmem:[%s5618_s1 + $0x1e4] sm:$0xf0]  ;;  %v3467_v24 = vld [vmem:[%s5618_s1 + $0x54] sm:$0xf0] }
   0x7   :  { %1862 = vmatpush.bf16.msra.mxu3 %v2555_v12  ;;  %v2547_v25 = vor.u32 %v3517_v22, %v2546_v20  ;;  %v2410_v26 = vld [vmem:[%s5618_s1 + $0xd0] sm:$0xf]  ;;  %v3483_v27 = vld [vmem:[%s5618_s1 + $0xd4] sm:$0xf0]  ;;  %v2347_v29 = vor.u32 %v3467_v24, %v2346_v23  ;;  %v2338_v35 = vld [vmem:[%s5618_s1 + $0x40] sm:$0xf] }
   0x8   :  { %v2474_v28 = vld [vmem:[%s5618_s1 + $0x150] sm:$0xf]  ;;  %1824 = vmatpush.bf16.msra.mxu0 %v2355_v16  ;;  %v3499_v30 = vld [vmem:[%s5618_s1 + $0x154] sm:$0xf0]  ;;  %v2411_v33 = vor.u32 %v3483_v27, %v2410_v26  ;;  %v3465_v36 = vld [vmem:[%s5618_s1 + $0x44] sm:$0xf0] }
   0x9   :  { %v2538_v31 = vld [vmem:[%s5618_s1 + $0x1d0] sm:$0xf]  ;;  %v3515_v32 = vld [vmem:[%s5618_s1 + $0x1d4] sm:$0xf0]  ;;  %1837 = vmatpush.bf16.msra.mxu1 %v2419_v17  ;;  %v2475_v34 = vor.u32 %v3499_v30, %v2474_v28  ;;  %v2402_v37 = vld [vmem:[%s5618_s1 + $0xc0] sm:$0xf]  ;;  %v2339_v44 = vor.u32 %v3465_v36, %v2338_v35 }
   0xa   :  { %1850 = vmatpush.bf16.msra.mxu2 %v2483_v21  ;;  %v2539_v38 = vor.u32 %v3515_v32, %v2538_v31  ;;  %v3481_v39 = vld [vmem:[%s5618_s1 + $0xc4] sm:$0xf0]  ;;  %v2466_v40 = vld [vmem:[%s5618_s1 + $0x140] sm:$0xf]  ;;  %v2330_v47 = vld [vmem:[%s5618_s1 + $0x30] sm:$0xf] }
   0xb   :  { %1863 = vmatpush.bf16.msra.mxu3 %v2547_v25  ;;  %v3497_v41 = vld [vmem:[%s5618_s1 + $0x144] sm:$0xf0]  ;;  %v2530_v42 = vld [vmem:[%s5618_s1 + $0x1c0] sm:$0xf]  ;;  %v2403_v45 = vor.u32 %v3481_v39, %v2402_v37  ;;  %v3463_v48 = vld [vmem:[%s5618_s1 + $0x34] sm:$0xf0] }
   0xc   :  { %v3513_v43 = vld [vmem:[%s5618_s1 + $0x1c4] sm:$0xf0]  ;;  %1825 = vmatpush.bf16.msra.mxu0 %v2347_v29  ;;  %v2467_v46 = vor.u32 %v3497_v41, %v2466_v40  ;;  %v2394_v49 = vld [vmem:[%s5618_s1 + $0xb0] sm:$0xf]  ;;  %v3479_v51 = vld [vmem:[%s5618_s1 + $0xb4] sm:$0xf0]  ;;  %v2331_v56 = vor.u32 %v3463_v48, %v2330_v47 }
   0xd   :  { %1838 = vmatpush.bf16.msra.mxu1 %v2411_v33  ;;  %v2531_v50 = vor.u32 %v3513_v43, %v2530_v42  ;;  %v2458_v52 = vld [vmem:[%s5618_s1 + $0x130] sm:$0xf]  ;;  %v3495_v53 = vld [vmem:[%s5618_s1 + $0x134] sm:$0xf0]  ;;  %v2395_v57 = vor.u32 %v3479_v51, %v2394_v49  ;;  %v2322_v59 = vld [vmem:[%s5618_s1 + $0x20] sm:$0xf] }
   0xe   :  { %1851 = vmatpush.bf16.msra.mxu2 %v2475_v34  ;;  %v2522_v54 = vld [vmem:[%s5618_s1 + $0x1b0] sm:$0xf]  ;;  %v3511_v55 = vld [vmem:[%s5618_s1 + $0x1b4] sm:$0xf0]  ;;  %v2459_v58 = vor.u32 %v3495_v53, %v2458_v52  ;;  %v3461_v60 = vld [vmem:[%s5618_s1 + $0x24] sm:$0xf0] }
   0xf   :  { %1864 = vmatpush.bf16.msra.mxu3 %v2539_v38  ;;  %v2386_v61 = vld [vmem:[%s5618_s1 + $0xa0] sm:$0xf]  ;;  %v2523_v62 = vor.u32 %v3511_v55, %v2522_v54  ;;  %v3477_v63 = vld [vmem:[%s5618_s1 + $0xa4] sm:$0xf0]  ;;  %v2323_v4 = vor.u32 %v3461_v60, %v2322_v59  ;;  %v2314_v7 = vld [vmem:[%s5618_s1 + $0x10] sm:$0xf] }
  0x10   :  { %1826 = vmatpush.bf16.msra.mxu0 %v2339_v44  ;;  %v2450_v0 = vld [vmem:[%s5618_s1 + $0x120] sm:$0xf]  ;;  %v3493_v1 = vld [vmem:[%s5618_s1 + $0x124] sm:$0xf0]  ;;  %v2387_v5 = vor.u32 %v3477_v63, %v2386_v61  ;;  %v3459_v8 = vld [vmem:[%s5618_s1 + $0x14] sm:$0xf0] }
  0x11   :  { %1839 = vmatpush.bf16.msra.mxu1 %v2403_v45  ;;  %v2514_v2 = vld [vmem:[%s5618_s1 + $0x1a0] sm:$0xf]  ;;  %v3509_v3 = vld [vmem:[%s5618_s1 + $0x1a4] sm:$0xf0]  ;;  %v2451_v6 = vor.u32 %v3493_v1, %v2450_v0  ;;  %v2378_v9 = vld [vmem:[%s5618_s1 + $0x90] sm:$0xf]  ;;  %v2315_v16 = vor.u32 %v3459_v8, %v2314_v7 }
  0x12   :  { %1852 = vmatpush.bf16.msra.mxu2 %v2467_v46  ;;  %v2515_v10 = vor.u32 %v3509_v3, %v2514_v2  ;;  %v3475_v11 = vld [vmem:[%s5618_s1 + $0x94] sm:$0xf0]  ;;  %v2442_v12 = vld [vmem:[%s5618_s1 + $0x110] sm:$0xf]  ;;  %v2306_v17 = vld [vmem:[%s5618_s1] sm:$0xf] }
  0x13   :  { %1865 = vmatpush.bf16.msra.mxu3 %v2531_v50  ;;  %v3491_v13 = vld [vmem:[%s5618_s1 + $0x114] sm:$0xf0]  ;;  %v2506_v14 = vld [vmem:[%s5618_s1 + $0x190] sm:$0xf]  ;;  %v3457_v18 = vld [vmem:[%s5618_s1 + $0x4] sm:$0xf0]  ;;  %v2379_v19 = vor.u32 %v3475_v11, %v2378_v9 }
  0x14   :  { %1827 = vmatpush.bf16.msra.mxu0 %v2331_v56  ;;  %v3507_v15 = vld [vmem:[%s5618_s1 + $0x194] sm:$0xf0]  ;;  %v2443_v20 = vor.u32 %v3491_v13, %v2442_v12  ;;  %v2370_v21 = vld [vmem:[%s5618_s1 + $0x80] sm:$0xf]  ;;  %v3473_v22 = vld [vmem:[%s5618_s1 + $0x84] sm:$0xf0]  ;;  %v2307_v31 = vor.u32 %v3457_v18, %v2306_v17 }
  0x15   :  { %1840 = vmatpush.bf16.msra.mxu1 %v2395_v57  ;;  %v2434_v23 = vld [vmem:[%s5618_s1 + $0x100] sm:$0xf]  ;;  %v2507_v24 = vor.u32 %v3507_v15, %v2506_v14  ;;  %v3489_v25 = vld [vmem:[%s5618_s1 + $0x104] sm:$0xf0]  ;;  %v2618_v28 = vld [vmem:[%s5618_s1 + $0x270] sm:$0xf]  ;;  %v2371_v35 = vor.u32 %v3473_v22, %v2370_v21 }
  0x16   :  { %1853 = vmatpush.bf16.msra.mxu2 %v2459_v58  ;;  %v2498_v26 = vld [vmem:[%s5618_s1 + $0x180] sm:$0xf]  ;;  %v3505_v27 = vld [vmem:[%s5618_s1 + $0x184] sm:$0xf0]  ;;  %v3535_v29 = vld [vmem:[%s5618_s1 + $0x274] sm:$0xf0]  ;;  %v2435_v36 = vor.u32 %v3489_v25, %v2434_v23 }
  0x17   :  { %1866 = vmatpush.bf16.msra.mxu3 %v2523_v62  ;;  %v2682_v30 = vld [vmem:[%s5618_s1 + $0x2f0] sm:$0xf]  ;;  %v3551_v32 = vld [vmem:[%s5618_s1 + $0x2f4] sm:$0xf0]  ;;  %v2499_v39 = vor.u32 %v3505_v27, %v2498_v26  ;;  %v2619_v40 = vor.u32 %v3535_v29, %v2618_v28  ;;  %v2610_v43 = vld [vmem:[%s5618_s1 + $0x260] sm:$0xf] }
  0x18   :  { %1828 = vmatpush.bf16.msra.mxu0 %v2323_v4  ;;  %v2746_v33 = vld [vmem:[%s5618_s1 + $0x370] sm:$0xf]  ;;  %v3567_v34 = vld [vmem:[%s5618_s1 + $0x374] sm:$0xf0]  ;;  %v2683_v41 = vor.u32 %v3551_v32, %v2682_v30  ;;  %v3533_v44 = vld [vmem:[%s5618_s1 + $0x264] sm:$0xf0] }
  0x19   :  { %1841 = vmatpush.bf16.msra.mxu1 %v2387_v5  ;;  %v2810_v37 = vld [vmem:[%s5618_s1 + $0x3f0] sm:$0xf]  ;;  %v3583_v38 = vld [vmem:[%s5618_s1 + $0x3f4] sm:$0xf0]  ;;  %v2747_v42 = vor.u32 %v3567_v34, %v2746_v33  ;;  %v2674_v45 = vld [vmem:[%s5618_s1 + $0x2e0] sm:$0xf]  ;;  %v2611_v52 = vor.u32 %v3533_v44, %v2610_v43 }
  0x1a   :  { %1854 = vmatpush.bf16.msra.mxu2 %v2451_v6  ;;  %v2811_v46 = vor.u32 %v3583_v38, %v2810_v37  ;;  %v3549_v47 = vld [vmem:[%s5618_s1 + $0x2e4] sm:$0xf0]  ;;  %v2738_v48 = vld [vmem:[%s5618_s1 + $0x360] sm:$0xf]  ;;  %v2602_v53 = vld [vmem:[%s5618_s1 + $0x250] sm:$0xf] }
  0x1b   :  { %1867 = vmatpush.bf16.msra.mxu3 %v2515_v10  ;;  %v3565_v49 = vld [vmem:[%s5618_s1 + $0x364] sm:$0xf0]  ;;  %v2802_v50 = vld [vmem:[%s5618_s1 + $0x3e0] sm:$0xf]  ;;  %v2675_v54 = vor.u32 %v3549_v47, %v2674_v45  ;;  %v3531_v56 = vld [vmem:[%s5618_s1 + $0x254] sm:$0xf0] }
  0x1c   :  { %1829 = vmatpush.bf16.msra.mxu0 %v2315_v16  ;;  %v3581_v51 = vld [vmem:[%s5618_s1 + $0x3e4] sm:$0xf0]  ;;  %v2739_v55 = vor.u32 %v3565_v49, %v2738_v48  ;;  %v2666_v57 = vld [vmem:[%s5618_s1 + $0x2d0] sm:$0xf]  ;;  %v3547_v58 = vld [vmem:[%s5618_s1 + $0x2d4] sm:$0xf0]  ;;  %v2603_v0 = vor.u32 %v3531_v56, %v2602_v53 }
  0x1d   :  { %1842 = vmatpush.bf16.msra.mxu1 %v2379_v19  ;;  %v2803_v59 = vor.u32 %v3581_v51, %v2802_v50  ;;  %v2730_v60 = vld [vmem:[%s5618_s1 + $0x350] sm:$0xf]  ;;  %v3563_v61 = vld [vmem:[%s5618_s1 + $0x354] sm:$0xf0]  ;;  %v2667_v1 = vor.u32 %v3547_v58, %v2666_v57  ;;  %v18_v2 = vld [vmem:[%s5619_s0 + $0x8] sm:$0xff] }
  0x1e   :  { %1855 = vmatpush.bf16.msra.mxu2 %v2443_v20  ;;  %v2794_v62 = vld [vmem:[%s5618_s1 + $0x3d0] sm:$0xf]  ;;  %v3579_v63 = vld [vmem:[%s5618_s1 + $0x3d4] sm:$0xf0]  ;;  %v17_v3 = vld [vmem:[%s5619_s0] sm:$0xff]  ;;  %v2731_v4 = vor.u32 %v3563_v61, %v2730_v60  ;;  %v331_v8 = vunpack.c.l.b16 %v18_v2  ;;  %v332_v10 = vunpack.c.h.b16 %v18_v2 }
  0x1f   :  { %1868 = vmatpush.bf16.msra.mxu3 %v2507_v24  ;;  %v2594_v5 = vld [vmem:[%s5618_s1 + $0x240] sm:$0xf]  ;;  %v3529_v6 = vld [vmem:[%s5618_s1 + $0x244] sm:$0xf0]  ;;  %v329_v9 = vunpack.c.l.b16 %v17_v3  ;;  %v2795_v11 = vor.u32 %v3579_v63, %v2794_v62  ;;  %v330_v15 = vunpack.c.h.b16 %v17_v3  ;;  %v2586_v25 = vld [vmem:[%s5618_s1 + $0x230] sm:$0xf] }
  0x20   :  { %1830 = vmatpush.bf16.msra.mxu0 %v2307_v31  ;;  %v2658_v7 = vld [vmem:[%s5618_s1 + $0x2c0] sm:$0xf]  ;;  %v3545_v12 = vld [vmem:[%s5618_s1 + $0x2c4] sm:$0xf0]  ;;  %v4064_v18 = vpack.c.b16 %v331_v8, %v331_v8  ;;  %v4068_v20 = vpack.c.b16 %v332_v10, %v332_v10  ;;  %v2595_v21 = vor.u32 %v3529_v6, %v2594_v5  ;;  %v3527_v26 = vld [vmem:[%s5618_s1 + $0x234] sm:$0xf0] }
  0x21   :  { %1843 = vmatpush.bf16.msra.mxu1 %v2371_v35  ;;  %v2722_v13 = vld [vmem:[%s5618_s1 + $0x340] sm:$0xf]  ;;  %v3561_v14 = vld [vmem:[%s5618_s1 + $0x344] sm:$0xf0]  ;;  %v4066_v19 = vpack.c.b16 %v329_v9, %v329_v9  ;;  %v4070_v22 = vpack.c.b16 %v330_v15, %v330_v15  ;;  %v2659_v23 = vor.u32 %v3545_v12, %v2658_v7  ;;  %v2650_v27 = vld [vmem:[%s5618_s1 + $0x2b0] sm:$0xf]  ;;  %v2587_v34 = vor.u32 %v3527_v26, %v2586_v25 }
  0x22   :  { %1856 = vmatpush.bf16.msra.mxu2 %v2435_v36  ;;  %v2786_v16 = vld [vmem:[%s5618_s1 + $0x3c0] sm:$0xf]  ;;  %v3577_v17 = vld [vmem:[%s5618_s1 + $0x3c4] sm:$0xf0]  ;;  %v2723_v24 = vor.u32 %v3561_v14, %v2722_v13  ;;  %v3543_v29 = vld [vmem:[%s5618_s1 + $0x2b4] sm:$0xf0] }
  0x23   :  { %1869 = vmatpush.bf16.msra.mxu3 %v2499_v39  ;;  %v2787_v28 = vor.u32 %v3577_v17, %v2786_v16  ;;  %v2714_v30 = vld [vmem:[%s5618_s1 + $0x330] sm:$0xf]  ;;  %v3559_v31 = vld [vmem:[%s5618_s1 + $0x334] sm:$0xf0]  ;;  %1831 = vmatmul.bf16.vlgmr.msra.gmra.mxu0 %v4066_v19  ;;  %v2651_v35 = vor.u32 %v3543_v29, %v2650_v27  ;;  %v2578_v37 = vld [vmem:[%s5618_s1 + $0x220] sm:$0xf] }
  0x24   :  { %1875 = vmatpush.bf16.msrb.mxu0 %v2619_v40  ;;  %v2778_v32 = vld [vmem:[%s5618_s1 + $0x3b0] sm:$0xf]  ;;  %v3575_v33 = vld [vmem:[%s5618_s1 + $0x3b4] sm:$0xf0]  ;;  %1844 = vmatmul.bf16.vlgmr.msra.gmra.mxu1 %v4070_v22  ;;  %v2715_v36 = vor.u32 %v3559_v31, %v2714_v30  ;;  %v3525_v38 = vld [vmem:[%s5618_s1 + $0x224] sm:$0xf0] }
  0x25   :  { %1888 = vmatpush.bf16.msrb.mxu1 %v2683_v41  ;;  %1857 = vmatmul.bf16.vlgmr.msra.gmra.mxu2 %v4064_v18  ;;  %v2642_v39 = vld [vmem:[%s5618_s1 + $0x2a0] sm:$0xf]  ;;  %v2779_v40 = vor.u32 %v3575_v33, %v2778_v32  ;;  %v3541_v41 = vld [vmem:[%s5618_s1 + $0x2a4] sm:$0xf0]  ;;  %v2570_v49 = vld [vmem:[%s5618_s1 + $0x210] sm:$0xf] }
  0x26   :  { %1901 = vmatpush.bf16.msrb.mxu2 %v2747_v42  ;;  %1870 = vmatmul.bf16.vlgmr.msra.gmra.mxu3 %v4068_v20  ;;  %v2706_v42 = vld [vmem:[%s5618_s1 + $0x320] sm:$0xf]  ;;  %v3557_v43 = vld [vmem:[%s5618_s1 + $0x324] sm:$0xf0]  ;;  %v2643_v47 = vor.u32 %v3541_v41, %v2642_v39  ;;  %v3523_v50 = vld [vmem:[%s5618_s1 + $0x214] sm:$0xf0] }
  0x27   :  { %1914 = vmatpush.bf16.msrb.mxu3 %v2811_v46  ;;  %v2770_v44 = vld [vmem:[%s5618_s1 + $0x3a0] sm:$0xf]  ;;  %v3573_v45 = vld [vmem:[%s5618_s1 + $0x3a4] sm:$0xf0]  ;;  %v2579_v46 = vor.u32 %v3525_v38, %v2578_v37  ;;  %v2707_v48 = vor.u32 %v3557_v43, %v2706_v42  ;;  %v2634_v51 = vld [vmem:[%s5618_s1 + $0x290] sm:$0xf] }
  0x28   :  { %1876 = vmatpush.bf16.msrb.mxu0 %v2611_v52  ;;  %v2771_v52 = vor.u32 %v3573_v45, %v2770_v44  ;;  %v3539_v53 = vld [vmem:[%s5618_s1 + $0x294] sm:$0xf0]  ;;  %v2762_v56 = vld [vmem:[%s5618_s1 + $0x390] sm:$0xf]  ;;  %v2562_v58 = vld [vmem:[%s5618_s1 + $0x200] sm:$0xf] }
  0x29   :  { %1889 = vmatpush.bf16.msrb.mxu1 %v2675_v54  ;;  %v2698_v54 = vld [vmem:[%s5618_s1 + $0x310] sm:$0xf]  ;;  %v3571_v57 = vld [vmem:[%s5618_s1 + $0x394] sm:$0xf0]  ;;  %v3521_v60 = vld [vmem:[%s5618_s1 + $0x204] sm:$0xf0]  ;;  %v2635_v63 = vor.u32 %v3539_v53, %v2634_v51 }
  0x2a   :  { %1902 = vmatpush.bf16.msrb.mxu2 %v2739_v55  ;;  %v3555_v55 = vld [vmem:[%s5618_s1 + $0x314] sm:$0xf0]  ;;  %v2626_v61 = vld [vmem:[%s5618_s1 + $0x280] sm:$0xf]  ;;  %v3537_v62 = vld [vmem:[%s5618_s1 + $0x284] sm:$0xf0] }
  0x2b   :  { %1915 = vmatpush.bf16.msrb.mxu3 %v2803_v59  ;;  %v2571_v59 = vor.u32 %v3523_v50, %v2570_v49  ;;  %v3553_v2 = vld [vmem:[%s5618_s1 + $0x304] sm:$0xf0]  ;;  %v20_v3 = vld [vmem:[%s5619_s0 + $0x18] sm:$0xff]  ;;  %v2754_v5 = vld [vmem:[%s5618_s1 + $0x380] sm:$0xf]  ;;  %v2627_v16 = vor.u32 %v3537_v62, %v2626_v61 }
  0x2c   :  { %1877 = vmatpush.bf16.msrb.mxu0 %v2603_v0  ;;  %v2699_v0 = vor.u32 %v3555_v55, %v2698_v54  ;;  %v3569_v6 = vld [vmem:[%s5618_s1 + $0x384] sm:$0xf0]  ;;  %v19_v7 = vld [vmem:[%s5619_s0 + $0x10] sm:$0xff]  ;;  %v3599_v9 = vld [vmem:[%s5618_s1 + $0x474] sm:$0xf0]  ;;  %v335_v15 = vunpack.c.l.b16 %v20_v3  ;;  %v336_v25 = vunpack.c.h.b16 %v20_v3 }
  0x2d   :  { %1890 = vmatpush.bf16.msrb.mxu1 %v2667_v1  ;;  %v2690_v1 = vld [vmem:[%s5618_s1 + $0x300] sm:$0xf]  ;;  %v2874_v8 = vld [vmem:[%s5618_s1 + $0x470] sm:$0xf]  ;;  %v3615_v12 = vld [vmem:[%s5618_s1 + $0x4f4] sm:$0xf0]  ;;  %v2755_v26 = vor.u32 %v3569_v6, %v2754_v5 }
  0x2e   :  { %1903 = vmatpush.bf16.msrb.mxu2 %v2731_v4  ;;  %v2763_v4 = vor.u32 %v3571_v57, %v2762_v56  ;;  %v2938_v10 = vld [vmem:[%s5618_s1 + $0x4f0] sm:$0xf]  ;;  %v3631_v14 = vld [vmem:[%s5618_s1 + $0x574] sm:$0xf0]  ;;  %v2691_v17 = vor.u32 %v3553_v2, %v2690_v1  ;;  %v2875_v27 = vor.u32 %v3599_v9, %v2874_v8  ;;  %v2866_v31 = vld [vmem:[%s5618_s1 + $0x460] sm:$0xf]  ;;  %v4220_v38 = vpack.c.b16 %v335_v15, %v335_v15 }
  0x2f   :  { %1916 = vmatpush.bf16.msrb.mxu3 %v2795_v11  ;;  %v2563_v11 = vor.u32 %v3521_v60, %v2562_v58  ;;  %v3002_v13 = vld [vmem:[%s5618_s1 + $0x570] sm:$0xf]  ;;  %v2939_v29 = vor.u32 %v3615_v12, %v2938_v10  ;;  %v3597_v32 = vld [vmem:[%s5618_s1 + $0x464] sm:$0xf0]  ;;  %v2930_v33 = vld [vmem:[%s5618_s1 + $0x4e0] sm:$0xf]  ;;  %v4230_v42 = vpack.c.b16 %v336_v25, %v336_v25 }
  0x30   :  { %1878 = vmatpush.bf16.msrb.mxu0 %v2595_v21  ;;  %v3066_v21 = vld [vmem:[%s5618_s1 + $0x5f0] sm:$0xf]  ;;  %v3003_v30 = vor.u32 %v3631_v14, %v3002_v13  ;;  %v3629_v37 = vld [vmem:[%s5618_s1 + $0x564] sm:$0xf0]  ;;  %v3058_v39 = vld [vmem:[%s5618_s1 + $0x5e0] sm:$0xf]  ;;  %v2867_v43 = vor.u32 %v3597_v32, %v2866_v31 }
  0x31   :  { %1891 = vmatpush.bf16.msrb.mxu1 %v2659_v23  ;;  %v3647_v23 = vld [vmem:[%s5618_s1 + $0x5f4] sm:$0xf0]  ;;  %v2922_v49 = vld [vmem:[%s5618_s1 + $0x4d0] sm:$0xf]  ;;  %v3593_v60 = vld [vmem:[%s5618_s1 + $0x444] sm:$0xf0] }
  0x32   :  { %1904 = vmatpush.bf16.msrb.mxu2 %v2723_v24  ;;  %v333_v24 = vunpack.c.l.b16 %v19_v7  ;;  %v3611_v51 = vld [vmem:[%s5618_s1 + $0x4d4] sm:$0xf0]  ;;  %v3050_v54 = vld [vmem:[%s5618_s1 + $0x5d0] sm:$0xf]  ;;  %v2914_v61 = vld [vmem:[%s5618_s1 + $0x4c0] sm:$0xf] }
  0x33   :  { %1917 = vmatpush.bf16.msrb.mxu3 %v2787_v28  ;;  %v334_v28 = vunpack.c.h.b16 %v19_v7  ;;  %v3627_v53 = vld [vmem:[%s5618_s1 + $0x554] sm:$0xf0]  ;;  %v2923_v57 = vor.u32 %v3611_v51, %v2922_v49  ;;  %v3625_v1 = vld [vmem:[%s5618_s1 + $0x544] sm:$0xf0]  ;;  %v3042_v2 = vld [vmem:[%s5618_s1 + $0x5c0] sm:$0xf] }
  0x34   :  { %1879 = vmatpush.bf16.msrb.mxu0 %v2587_v34  ;;  %v3067_v34 = vor.u32 %v3647_v23, %v3066_v21  ;;  %v4228_v41 = vpack.c.b16 %v333_v24, %v333_v24  ;;  %v3643_v55 = vld [vmem:[%s5618_s1 + $0x5d4] sm:$0xf0]  ;;  %v3641_v3 = vld [vmem:[%s5618_s1 + $0x5c4] sm:$0xf0]  ;;  %v2842_v7 = vld [vmem:[%s5618_s1 + $0x430] sm:$0xf] }
  0x35   :  { %1892 = vmatpush.bf16.msrb.mxu1 %v2651_v35  ;;  %v3613_v35 = vld [vmem:[%s5618_s1 + $0x4e4] sm:$0xf0]  ;;  %v4232_v44 = vpack.c.b16 %v334_v28, %v334_v28  ;;  %v3051_v62 = vor.u32 %v3643_v55, %v3050_v54  ;;  %v3591_v8 = vld [vmem:[%s5618_s1 + $0x434] sm:$0xf0]  ;;  %v2906_v9 = vld [vmem:[%s5618_s1 + $0x4b0] sm:$0xf]  ;;  %v3043_v10 = vor.u32 %v3641_v3, %v3042_v2 }
  0x36   :  { %1905 = vmatpush.bf16.msrb.mxu2 %v2715_v36  ;;  %v2994_v36 = vld [vmem:[%s5618_s1 + $0x560] sm:$0xf]  ;;  %v2931_v45 = vor.u32 %v3613_v35, %v2930_v33  ;;  %v2970_v12 = vld [vmem:[%s5618_s1 + $0x530] sm:$0xf]  ;;  %v3623_v13 = vld [vmem:[%s5618_s1 + $0x534] sm:$0xf0] }
  0x37   :  { %1918 = vmatpush.bf16.msrb.mxu3 %v2779_v40  ;;  %v3645_v40 = vld [vmem:[%s5618_s1 + $0x5e4] sm:$0xf0]  ;;  %v3034_v14 = vld [vmem:[%s5618_s1 + $0x5b0] sm:$0xf]  ;;  %v3639_v15 = vld [vmem:[%s5618_s1 + $0x5b4] sm:$0xf0]  ;;  %v2971_v21 = vor.u32 %v3623_v13, %v2970_v12 }
  0x38   :  { %1880 = vmatpush.bf16.msrb.mxu0 %v2579_v46  ;;  %v2995_v46 = vor.u32 %v3629_v37, %v2994_v36  ;;  %v3059_v50 = vor.u32 %v3645_v40, %v3058_v39  ;;  %v2834_v23 = vld [vmem:[%s5618_s1 + $0x420] sm:$0xf]  ;;  %v3589_v24 = vld [vmem:[%s5618_s1 + $0x424] sm:$0xf0]  ;;  %v2826_v35 = vld [vmem:[%s5618_s1 + $0x410] sm:$0xf] }
  0x39   :  { %1893 = vmatpush.bf16.msrb.mxu1 %v2643_v47  ;;  %v2858_v47 = vld [vmem:[%s5618_s1 + $0x450] sm:$0xf]  ;;  %v2898_v25 = vld [vmem:[%s5618_s1 + $0x4a0] sm:$0xf]  ;;  %v3637_v31 = vld [vmem:[%s5618_s1 + $0x5a4] sm:$0xf0]  ;;  %v2835_v32 = vor.u32 %v3589_v24, %v2834_v23 }
  0x3a   :  { %1906 = vmatpush.bf16.msrb.mxu2 %v2707_v48  ;;  %v3595_v48 = vld [vmem:[%s5618_s1 + $0x454] sm:$0xf0]  ;;  %v2962_v28 = vld [vmem:[%s5618_s1 + $0x520] sm:$0xf]  ;;  %v2890_v37 = vld [vmem:[%s5618_s1 + $0x490] sm:$0xf] }
  0x3b   :  { %1919 = vmatpush.bf16.msrb.mxu3 %v2771_v52  ;;  %v2986_v52 = vld [vmem:[%s5618_s1 + $0x550] sm:$0xf]  ;;  %v2859_v56 = vor.u32 %v3595_v48, %v2858_v47  ;;  %v3587_v36 = vld [vmem:[%s5618_s1 + $0x414] sm:$0xf0]  ;;  %v2818_v48 = vld [vmem:[%s5618_s1 + $0x400] sm:$0xf] }
  0x3c   :  { %1881 = vmatpush.bf16.msrb.mxu0 %v2571_v59  ;;  %v2987_v58 = vor.u32 %v3627_v53, %v2986_v52  ;;  %v2850_v59 = vld [vmem:[%s5618_s1 + $0x440] sm:$0xf]  ;;  %v3603_v40 = vld [vmem:[%s5618_s1 + $0x494] sm:$0xf0]  ;;  %v2827_v49 = vor.u32 %v3587_v36, %v2826_v35  ;;  %v3601_v52 = vld [vmem:[%s5618_s1 + $0x484] sm:$0xf0] }
  0x3d   :  { %1894 = vmatpush.bf16.msrb.mxu1 %v2635_v63  ;;  %v3609_v63 = vld [vmem:[%s5618_s1 + $0x4c4] sm:$0xf0]  ;;  %v3635_v47 = vld [vmem:[%s5618_s1 + $0x594] sm:$0xf0]  ;;  %v2882_v51 = vld [vmem:[%s5618_s1 + $0x480] sm:$0xf]  ;;  %v2891_v53 = vor.u32 %v3603_v40, %v2890_v37 }
  0x3e   :  { %1907 = vmatpush.bf16.msrb.mxu2 %v2699_v0  ;;  %v2978_v0 = vld [vmem:[%s5618_s1 + $0x540] sm:$0xf]  ;;  %v2915_v5 = vor.u32 %v3609_v63, %v2914_v61  ;;  %v22_v61 = vld [vmem:[%s5619_s0 + $0x28] sm:$0xff]  ;;  %v3663_v63 = vld [vmem:[%s5618_s1 + $0x674] sm:$0xf0] }
  0x3f   :  { %1920 = vmatpush.bf16.msrb.mxu3 %v2763_v4  ;;  %v2851_v4 = vor.u32 %v3593_v60, %v2850_v59  ;;  %v2979_v6 = vor.u32 %v3625_v1, %v2978_v0  ;;  %v2946_v55 = vld [vmem:[%s5618_s1 + $0x500] sm:$0xf]  ;;  %v3633_v60 = vld [vmem:[%s5618_s1 + $0x584] sm:$0xf0]  ;;  %v3194_v0 = vld [vmem:[%s5618_s1 + $0x6f0] sm:$0xf] }
  0x40   :  { %1882 = vmatpush.bf16.msrb.mxu0 %v2563_v11  ;;  %v3607_v11 = vld [vmem:[%s5618_s1 + $0x4b4] sm:$0xf0]  ;;  %v3010_v59 = vld [vmem:[%s5618_s1 + $0x580] sm:$0xf]  ;;  %v3258_v3 = vld [vmem:[%s5618_s1 + $0x770] sm:$0xf] }
  0x41   :  { %1895 = vmatpush.bf16.msrb.mxu1 %v2627_v16  ;;  %v2843_v16 = vor.u32 %v3591_v8, %v2842_v7  ;;  %v3679_v2 = vld [vmem:[%s5618_s1 + $0x6f4] sm:$0xf0]  ;;  %v3322_v8 = vld [vmem:[%s5618_s1 + $0x7f0] sm:$0xf]  ;;  %v3011_v12 = vor.u32 %v3633_v60, %v3010_v59  ;;  %v3186_v23 = vld [vmem:[%s5618_s1 + $0x6e0] sm:$0xf] }
  0x42   :  { %1908 = vmatpush.bf16.msrb.mxu2 %v2691_v17  ;;  %v2907_v17 = vor.u32 %v3607_v11, %v2906_v9  ;;  %v3711_v9 = vld [vmem:[%s5618_s1 + $0x7f4] sm:$0xf0]  ;;  %v3114_v37 = vld [vmem:[%s5618_s1 + $0x650] sm:$0xf]  ;;  %v3689_v59 = vld [vmem:[%s5618_s1 + $0x744] sm:$0xf0] }
  0x43   :  { %1921 = vmatpush.bf16.msrb.mxu3 %v2755_v26  ;;  %1883 = vmatmul.bf16.vlgmr.msrb.gmra.mxu0 %v4228_v41  ;;  %v3035_v26 = vor.u32 %v3639_v15, %v3034_v14  ;;  %v340_v14 = vunpack.c.h.b16 %v22_v61  ;;  %v3195_v15 = vor.u32 %v3679_v2, %v3194_v0  ;;  %v3323_v24 = vor.u32 %v3711_v9, %v3322_v8  ;;  %v3178_v40 = vld [vmem:[%s5618_s1 + $0x6d0] sm:$0xf]  ;;  %v3298_v60 = vld [vmem:[%s5618_s1 + $0x7c0] sm:$0xf]  ;;  %v3655_v2 = vld [vmem:[%s5618_s1 + $0x634] sm:$0xf0] }
  0x44   :  { %1927 = vmatpush.bf16.msra.mxu0 %v2875_v27  ;;  %1896 = vmatmul.bf16.vlgmr.msrb.gmra.mxu1 %v4232_v44  ;;  %v3605_v27 = vld [vmem:[%s5618_s1 + $0x4a4] sm:$0xf0]  ;;  %v3290_v8 = vld [vmem:[%s5618_s1 + $0x7b0] sm:$0xf]  ;;  %v3703_v9 = vld [vmem:[%s5618_s1 + $0x7b4] sm:$0xf0] }
  0x45   :  { %1940 = vmatpush.bf16.msra.mxu1 %v2939_v29  ;;  %1909 = vmatmul.bf16.vlgmr.msrb.gmra.mxu2 %v4220_v38  ;;  %v3621_v29 = vld [vmem:[%s5618_s1 + $0x524] sm:$0xf0]  ;;  %v2899_v33 = vor.u32 %v3605_v27, %v2898_v25  ;;  %v3250_v27 = vld [vmem:[%s5618_s1 + $0x760] sm:$0xf] }
  0x46   :  { %1953 = vmatpush.bf16.msra.mxu2 %v3003_v30  ;;  %1922 = vmatmul.bf16.vlgmr.msrb.gmra.mxu3 %v4230_v42  ;;  %v3026_v30 = vld [vmem:[%s5618_s1 + $0x5a0] sm:$0xf] }
  0x47   :  { %1966 = vmatpush.bf16.msra.mxu3 %v3067_v34  ;;  %v2963_v34 = vor.u32 %v3621_v29, %v2962_v28  ;;  %v3027_v39 = vor.u32 %v3637_v31, %v3026_v30  ;;  %v3693_v28 = vld [vmem:[%s5618_s1 + $0x764] sm:$0xf0]  ;;  %v3314_v31 = vld [vmem:[%s5618_s1 + $0x7e0] sm:$0xf] }
  0x48   :  { %1928 = vmatpush.bf16.msra.mxu0 %v2867_v43  ;;  %v2954_v43 = vld [vmem:[%s5618_s1 + $0x510] sm:$0xf]  ;;  %v3251_v36 = vor.u32 %v3693_v28, %v3250_v27 }
  0x49   :  { %1941 = vmatpush.bf16.msra.mxu1 %v2931_v45  ;;  %v3619_v45 = vld [vmem:[%s5618_s1 + $0x514] sm:$0xf0] }
  0x4a   :  { %1954 = vmatpush.bf16.msra.mxu2 %v2995_v46  ;;  %v3018_v46 = vld [vmem:[%s5618_s1 + $0x590] sm:$0xf]  ;;  %v2955_v54 = vor.u32 %v3619_v45, %v2954_v43  ;;  %v3675_v45 = vld [vmem:[%s5618_s1 + $0x6d4] sm:$0xf0] }
  0x4b   :  { %1967 = vmatpush.bf16.msra.mxu3 %v3059_v50  ;;  %v3585_v50 = vld [vmem:[%s5618_s1 + $0x404] sm:$0xf0] }
  0x4c   :  { %1929 = vmatpush.bf16.msra.mxu0 %v2859_v56  ;;  %v3617_v56 = vld [vmem:[%s5618_s1 + $0x504] sm:$0xf0]  ;;  %v2819_v1 = vor.u32 %v3585_v50, %v2818_v48  ;;  %v3306_v48 = vld [vmem:[%s5618_s1 + $0x7d0] sm:$0xf] }
  0x4d   :  { %1942 = vmatpush.bf16.msra.mxu1 %v2923_v57  ;;  %v21_v57 = vld [vmem:[%s5619_s0 + $0x20] sm:$0xff]  ;;  %v2947_v7 = vor.u32 %v3617_v56, %v2946_v55 }
  0x4e   :  { %1955 = vmatpush.bf16.msra.mxu2 %v2987_v58  ;;  %v3019_v58 = vor.u32 %v3635_v47, %v3018_v46  ;;  %v338_v11 = vunpack.c.h.b16 %v21_v57  ;;  %v3242_v46 = vld [vmem:[%s5618_s1 + $0x750] sm:$0xf]  ;;  %v3691_v47 = vld [vmem:[%s5618_s1 + $0x754] sm:$0xf0]  ;;  %v3170_v55 = vld [vmem:[%s5618_s1 + $0x6c0] sm:$0xf] }
  0x4f   :  { %1968 = vmatpush.bf16.msra.mxu3 %v3051_v62  ;;  %v3130_v62 = vld [vmem:[%s5618_s1 + $0x670] sm:$0xf] }
  0x50   :  { %1930 = vmatpush.bf16.msra.mxu0 %v2851_v4  ;;  %v3695_v4 = vld [vmem:[%s5618_s1 + $0x774] sm:$0xf0]  ;;  %v3131_v13 = vor.u32 %v3663_v63, %v3130_v62  ;;  %v4434_v30 = vpack.c.b16 %v338_v11, %v338_v11 }
  0x51   :  { %1943 = vmatpush.bf16.msra.mxu1 %v2915_v5  ;;  %v337_v5 = vunpack.c.l.b16 %v21_v57  ;;  %v3673_v57 = vld [vmem:[%s5618_s1 + $0x6c4] sm:$0xf0] }
  0x52   :  { %1956 = vmatpush.bf16.msra.mxu2 %v2979_v6  ;;  %v2883_v6 = vor.u32 %v3601_v52, %v2882_v51  ;;  %v3179_v51 = vor.u32 %v3675_v45, %v3178_v40  ;;  %v3243_v52 = vor.u32 %v3691_v47, %v3242_v46  ;;  %v3171_v63 = vor.u32 %v3673_v57, %v3170_v55  ;;  %v3683_v40 = vld [vmem:[%s5618_s1 + $0x714] sm:$0xf0]  ;;  %v3074_v46 = vld [vmem:[%s5618_s1 + $0x600] sm:$0xf]  ;;  %v23_v55 = vld [vmem:[%s5619_s0 + $0x30] sm:$0xff] }
  0x53   :  { %1969 = vmatpush.bf16.msra.mxu3 %v3043_v10  ;;  %v339_v10 = vunpack.c.l.b16 %v22_v61  ;;  %v4421_v25 = vpack.c.b16 %v337_v5, %v337_v5  ;;  %v3705_v61 = vld [vmem:[%s5618_s1 + $0x7c4] sm:$0xf0]  ;;  %v3671_v5 = vld [vmem:[%s5618_s1 + $0x6b4] sm:$0xf0]  ;;  %v3266_v57 = vld [vmem:[%s5618_s1 + $0x780] sm:$0xf] }
  0x54   :  { %1931 = vmatpush.bf16.msra.mxu0 %v2843_v16  ;;  %v3259_v16 = vor.u32 %v3695_v4, %v3258_v3  ;;  %v3162_v3 = vld [vmem:[%s5618_s1 + $0x6b0] sm:$0xf]  ;;  %v3299_v4 = vor.u32 %v3705_v61, %v3298_v60  ;;  %v3699_v45 = vld [vmem:[%s5618_s1 + $0x794] sm:$0xf0] }
  0x55   :  { %1944 = vmatpush.bf16.msra.mxu1 %v2907_v17  ;;  %v3122_v17 = vld [vmem:[%s5618_s1 + $0x660] sm:$0xf]  ;;  %v4432_v29 = vpack.c.b16 %v339_v10, %v339_v10  ;;  %v3163_v11 = vor.u32 %v3671_v5, %v3162_v3  ;;  %v3386_v60 = vld [vmem:[%s5618_s1 + $0x870] sm:$0xf]  ;;  %v3727_v61 = vld [vmem:[%s5618_s1 + $0x874] sm:$0xf0]  ;;  %v341_v3 = vunpack.c.l.b16 %v23_v55 }
  0x56   :  { %1957 = vmatpush.bf16.msra.mxu2 %v2971_v21  ;;  %v3661_v21 = vld [vmem:[%s5618_s1 + $0x664] sm:$0xf0] }
  0x57   :  { %1970 = vmatpush.bf16.msra.mxu3 %v3035_v26  ;;  %v3677_v26 = vld [vmem:[%s5618_s1 + $0x6e4] sm:$0xf0] }
  0x58   :  { %1932 = vmatpush.bf16.msra.mxu0 %v2835_v32  ;;  %v3709_v32 = vld [vmem:[%s5618_s1 + $0x7e4] sm:$0xf0]  ;;  %v3187_v35 = vor.u32 %v3677_v26, %v3186_v23 }
  0x59   :  { %1945 = vmatpush.bf16.msra.mxu1 %v2899_v33  ;;  %v4442_v33 = vpack.c.b16 %v340_v14, %v340_v14  ;;  %v3315_v43 = vor.u32 %v3709_v32, %v3314_v31  ;;  %v3653_v14 = vld [vmem:[%s5618_s1 + $0x624] sm:$0xf0]  ;;  %v3082_v32 = vld [vmem:[%s5618_s1 + $0x610] sm:$0xf] }
  0x5a   :  { %1958 = vmatpush.bf16.msra.mxu2 %v2963_v34  ;;  %v3123_v34 = vor.u32 %v3661_v21, %v3122_v17  ;;  %v3669_v17 = vld [vmem:[%s5618_s1 + $0x6a4] sm:$0xf0]  ;;  %v3218_v21 = vld [vmem:[%s5618_s1 + $0x720] sm:$0xf] }
  0x5b   :  { %1971 = vmatpush.bf16.msra.mxu3 %v3027_v39  ;;  %v3659_v39 = vld [vmem:[%s5618_s1 + $0x654] sm:$0xf0]  ;;  %v3685_v23 = vld [vmem:[%s5618_s1 + $0x724] sm:$0xf0] }
  0x5c   :  { %1933 = vmatpush.bf16.msra.mxu0 %v2827_v49  ;;  %v3707_v49 = vld [vmem:[%s5618_s1 + $0x7d4] sm:$0xf0]  ;;  %v3115_v50 = vor.u32 %v3659_v39, %v3114_v37  ;;  %v3701_v26 = vld [vmem:[%s5618_s1 + $0x7a4] sm:$0xf0]  ;;  %v3219_v31 = vor.u32 %v3685_v23, %v3218_v21  ;;  %v3210_v39 = vld [vmem:[%s5618_s1 + $0x710] sm:$0xf]  ;;  %v4631_v23 = vpack.c.b16 %v341_v3, %v341_v3 }
  0x5d   :  { %1946 = vmatpush.bf16.msra.mxu1 %v2891_v53  ;;  %v3106_v53 = vld [vmem:[%s5618_s1 + $0x640] sm:$0xf]  ;;  %v3307_v56 = vor.u32 %v3707_v49, %v3306_v48  ;;  %v3667_v37 = vld [vmem:[%s5618_s1 + $0x694] sm:$0xf0]  ;;  %v3649_v48 = vld [vmem:[%s5618_s1 + $0x604] sm:$0xf0] }
  0x5e   :  { %1959 = vmatpush.bf16.msra.mxu2 %v2955_v54  ;;  %v3657_v54 = vld [vmem:[%s5618_s1 + $0x644] sm:$0xf0]  ;;  %v3138_v49 = vld [vmem:[%s5618_s1 + $0x680] sm:$0xf]  ;;  %v3354_v3 = vld [vmem:[%s5618_s1 + $0x830] sm:$0xf] }
  0x5f   :  { %1972 = vmatpush.bf16.msra.mxu3 %v3019_v58  ;;  %v3234_v58 = vld [vmem:[%s5618_s1 + $0x740] sm:$0xf]  ;;  %v3107_v62 = vor.u32 %v3657_v54, %v3106_v53  ;;  %v3681_v54 = vld [vmem:[%s5618_s1 + $0x704] sm:$0xf0] }
  0x60   :  { %1934 = vmatpush.bf16.msra.mxu0 %v2819_v1  ;;  %v3235_v0 = vor.u32 %v3689_v59, %v3234_v58  ;;  %v3098_v1 = vld [vmem:[%s5618_s1 + $0x630] sm:$0xf]  ;;  %v3202_v53 = vld [vmem:[%s5618_s1 + $0x700] sm:$0xf]  ;;  %v3697_v58 = vld [vmem:[%s5618_s1 + $0x784] sm:$0xf0] }
  0x61   :  { %1947 = vmatpush.bf16.msra.mxu1 %v2883_v6  ;;  %v3226_v6 = vld [vmem:[%s5618_s1 + $0x730] sm:$0xf]  ;;  %v3099_v10 = vor.u32 %v3655_v2, %v3098_v1  ;;  %v24_v59 = vld [vmem:[%s5619_s0 + $0x38] sm:$0xff]  ;;  %v3470_v1 = vld [vmem:[%s5618_s1 + $0x74] sm:$0xf]  ;;  %v3203_v5 = vor.u32 %v3681_v54, %v3202_v53 }
  0x62   :  { %1960 = vmatpush.bf16.msra.mxu2 %v2947_v7  ;;  %v3687_v7 = vld [vmem:[%s5618_s1 + $0x734] sm:$0xf0]  ;;  %v2364_v2 = vld [vmem:[%s5618_s1 + $0x78] sm:$0xf0] }
  0x63   :  { %1973 = vmatpush.bf16.msra.mxu3 %v3011_v12  ;;  %1935 = vmatmul.bf16.vlgmr.msra.gmra.mxu0 %v4421_v25  ;;  %v3227_v12 = vor.u32 %v3687_v7, %v3226_v6  ;;  %v3486_v6 = vld [vmem:[%s5618_s1 + $0xf4] sm:$0xf]  ;;  %v2428_v7 = vld [vmem:[%s5618_s1 + $0xf8] sm:$0xf0] }
  0x64   :  { %1979 = vmatpush.bf16.msrb.mxu0 %v3131_v13  ;;  %1948 = vmatmul.bf16.vlgmr.msra.gmra.mxu1 %v4434_v30  ;;  %v3090_v13 = vld [vmem:[%s5618_s1 + $0x620] sm:$0xf]  ;;  %v2431_v21 = vor.u32 %v3486_v6, %v2428_v7  ;;  %v3735_v7 = vld [vmem:[%s5618_s1 + $0x8b4] sm:$0xf0] }
  0x65   :  { %1992 = vmatpush.bf16.msrb.mxu1 %v3195_v15  ;;  %1961 = vmatmul.bf16.vlgmr.msra.gmra.mxu2 %v4432_v29  ;;  %v3154_v15 = vld [vmem:[%s5618_s1 + $0x6a0] sm:$0xf]  ;;  %v3091_v27 = vor.u32 %v3653_v14, %v3090_v13  ;;  %v2367_v14 = vor.u32 %v3470_v1, %v2364_v2 }
  0x66   :  { %2005 = vmatpush.bf16.msrb.mxu2 %v3259_v16  ;;  %1974 = vmatmul.bf16.vlgmr.msra.gmra.mxu3 %v4442_v33  ;;  %v3291_v16 = vor.u32 %v3703_v9, %v3290_v8  ;;  %v3155_v28 = vor.u32 %v3669_v17, %v3154_v15  ;;  %v343_v8 = vunpack.c.l.b16 %v24_v59  ;;  %v342_v9 = vunpack.c.h.b16 %v23_v55  ;;  %v3378_v15 = vld [vmem:[%s5618_s1 + $0x860] sm:$0xf] }
  0x67   :  { %2018 = vmatpush.bf16.msrb.mxu3 %v3323_v24  ;;  %v3282_v24 = vld [vmem:[%s5618_s1 + $0x7a0] sm:$0xf] }
  0x68   :  { %1980 = vmatpush.bf16.msrb.mxu0 %v3123_v34  ;;  %v3651_v34 = vld [vmem:[%s5618_s1 + $0x614] sm:$0xf0]  ;;  %v3442_v17 = vld [vmem:[%s5618_s1 + $0x8e0] sm:$0xf] }
  0x69   :  { %1993 = vmatpush.bf16.msrb.mxu1 %v3187_v35  ;;  %v3146_v35 = vld [vmem:[%s5618_s1 + $0x690] sm:$0xf]  ;;  %v3083_v47 = vor.u32 %v3651_v34, %v3082_v32  ;;  %v3484_v32 = vld [vmem:[%s5618_s1 + $0xe4] sm:$0xf]  ;;  %v2420_v34 = vld [vmem:[%s5618_s1 + $0xe8] sm:$0xf0] }
  0x6a   :  { %2006 = vmatpush.bf16.msrb.mxu2 %v3251_v36  ;;  %v3283_v36 = vor.u32 %v3701_v26, %v3282_v24  ;;  %v3741_v24 = vld [vmem:[%s5618_s1 + $0x8e4] sm:$0xf0]  ;;  %v3468_v26 = vld [vmem:[%s5618_s1 + $0x64] sm:$0xf]  ;;  %v3362_v55 = vld [vmem:[%s5618_s1 + $0x840] sm:$0xf] }
  0x6b   :  { %2019 = vmatpush.bf16.msrb.mxu3 %v3315_v43  ;;  %v3274_v43 = vld [vmem:[%s5618_s1 + $0x790] sm:$0xf] }
  0x6c   :  { %1981 = vmatpush.bf16.msrb.mxu0 %v3115_v50  ;;  %v3665_v50 = vld [vmem:[%s5618_s1 + $0x684] sm:$0xf0] }
  0x6d   :  { %1994 = vmatpush.bf16.msrb.mxu1 %v3179_v51  ;;  %v3147_v51 = vor.u32 %v3667_v37, %v3146_v35  ;;  %v3443_v37 = vor.u32 %v3741_v24, %v3442_v17  ;;  %v3410_v17 = vld [vmem:[%s5618_s1 + $0x8a0] sm:$0xf]  ;;  %v3733_v24 = vld [vmem:[%s5618_s1 + $0x8a4] sm:$0xf0] }
  0x6e   :  { %2007 = vmatpush.bf16.msrb.mxu2 %v3243_v52  ;;  %v3211_v52 = vor.u32 %v3683_v40, %v3210_v39  ;;  %v3370_v40 = vld [vmem:[%s5618_s1 + $0x850] sm:$0xf] }
  0x6f   :  { %2020 = vmatpush.bf16.msrb.mxu3 %v3307_v56  ;;  %v3275_v56 = vor.u32 %v3699_v45, %v3274_v43  ;;  %v3723_v43 = vld [vmem:[%s5618_s1 + $0x854] sm:$0xf0]  ;;  %v3434_v45 = vld [vmem:[%s5618_s1 + $0x8d0] sm:$0xf] }
  0x70   :  { %1982 = vmatpush.bf16.msrb.mxu0 %v3107_v62  ;;  %v3450_v62 = vld [vmem:[%s5618_s1 + $0x8f0] sm:$0xf] }
  0x71   :  { %1995 = vmatpush.bf16.msrb.mxu1 %v3171_v63  ;;  %v3075_v63 = vor.u32 %v3649_v48, %v3074_v46  ;;  %v2423_v46 = vor.u32 %v3484_v32, %v2420_v34  ;;  %v3466_v48 = vld [vmem:[%s5618_s1 + $0x54] sm:$0xf]  ;;  %v3476_v32 = vld [vmem:[%s5618_s1 + $0xa4] sm:$0xf]  ;;  %v2388_v34 = vld [vmem:[%s5618_s1 + $0xa8] sm:$0xf0] }
  0x72   :  { %2008 = vmatpush.bf16.msrb.mxu2 %v3235_v0  ;;  %v3743_v0 = vld [vmem:[%s5618_s1 + $0x8f4] sm:$0xf0] }
  0x73   :  { %2021 = vmatpush.bf16.msrb.mxu3 %v3299_v4  ;;  %v3139_v4 = vor.u32 %v3665_v50, %v3138_v49  ;;  %v3451_v13 = vor.u32 %v3743_v0, %v3450_v62  ;;  %v2348_v49 = vld [vmem:[%s5618_s1 + $0x58] sm:$0xf0]  ;;  %v3482_v50 = vld [vmem:[%s5618_s1 + $0xd4] sm:$0xf]  ;;  %v3480_v62 = vld [vmem:[%s5618_s1 + $0xc4] sm:$0xf] }
  0x74   :  { %1983 = vmatpush.bf16.msrb.mxu0 %v3099_v10  ;;  %v3267_v10 = vor.u32 %v3697_v58, %v3266_v57  ;;  %v2351_v54 = vor.u32 %v3466_v48, %v2348_v49  ;;  %v3426_v57 = vld [vmem:[%s5618_s1 + $0x8c0] sm:$0xf]  ;;  %v3458_v48 = vld [vmem:[%s5618_s1 + $0x14] sm:$0xf]  ;;  %v2316_v49 = vld [vmem:[%s5618_s1 + $0x18] sm:$0xf0] }
  0x75   :  { %1996 = vmatpush.bf16.msrb.mxu1 %v3163_v11  ;;  %v3387_v11 = vor.u32 %v3727_v61, %v3386_v60  ;;  %v3464_v60 = vld [vmem:[%s5618_s1 + $0x44] sm:$0xf]  ;;  %v2340_v61 = vld [vmem:[%s5618_s1 + $0x48] sm:$0xf0] }
  0x76   :  { %2009 = vmatpush.bf16.msrb.mxu2 %v3227_v12  ;;  %v344_v12 = vunpack.c.h.b16 %v24_v59  ;;  %v3737_v59 = vld [vmem:[%s5618_s1 + $0x8c4] sm:$0xf0]  ;;  %v2343_v2 = vor.u32 %v3464_v60, %v2340_v61  ;;  %v25_v60 = vld [vmem:[%s5619_s0 + $0x40] sm:$0xff] }
  0x77   :  { %2022 = vmatpush.bf16.msrb.mxu3 %v3291_v16  ;;  %v3725_v16 = vld [vmem:[%s5618_s1 + $0x864] sm:$0xf0]  ;;  %v3427_v1 = vor.u32 %v3737_v59, %v3426_v57  ;;  %v2319_v57 = vor.u32 %v3458_v48, %v2316_v49  ;;  %v3456_v59 = vld [vmem:[%s5618_s1 + $0x4] sm:$0xf]  ;;  %v3498_v48 = vld [vmem:[%s5618_s1 + $0x154] sm:$0xf] }
  0x78   :  { %1984 = vmatpush.bf16.msrb.mxu0 %v3091_v27  ;;  %v2356_v27 = vld [vmem:[%s5618_s1 + $0x68] sm:$0xf0]  ;;  %v4652_v35 = vpack.c.b16 %v344_v12, %v344_v12  ;;  %v2476_v49 = vld [vmem:[%s5618_s1 + $0x158] sm:$0xf0] }
  0x79   :  { %1997 = vmatpush.bf16.msrb.mxu1 %v3155_v28  ;;  %v4642_v28 = vpack.c.b16 %v343_v8, %v343_v8  ;;  %v2359_v39 = vor.u32 %v3468_v26, %v2356_v27  ;;  %v3462_v8 = vld [vmem:[%s5618_s1 + $0x34] sm:$0xf]  ;;  %v3460_v26 = vld [vmem:[%s5618_s1 + $0x24] sm:$0xf]  ;;  %v2324_v27 = vld [vmem:[%s5618_s1 + $0x28] sm:$0xf0] }
  0x7a   :  { %2010 = vmatpush.bf16.msrb.mxu2 %v3219_v31  ;;  %v4644_v31 = vpack.c.b16 %v342_v9, %v342_v9  ;;  %v2332_v9 = vld [vmem:[%s5618_s1 + $0x38] sm:$0xf0] }
  0x7b   :  { %2023 = vmatpush.bf16.msrb.mxu3 %v3283_v36  ;;  %v3379_v36 = vor.u32 %v3725_v16, %v3378_v15  ;;  %v3346_v15 = vld [vmem:[%s5618_s1 + $0x820] sm:$0xf]  ;;  %v3717_v16 = vld [vmem:[%s5618_s1 + $0x824] sm:$0xf0] }
  0x7c   :  { %1985 = vmatpush.bf16.msrb.mxu0 %v3083_v47  ;;  %v3739_v47 = vld [vmem:[%s5618_s1 + $0x8d4] sm:$0xf0] }
  0x7d   :  { %1998 = vmatpush.bf16.msrb.mxu1 %v3147_v51  ;;  %v2412_v51 = vld [vmem:[%s5618_s1 + $0xd8] sm:$0xf0]  ;;  %v3435_v53 = vor.u32 %v3739_v47, %v3434_v45  ;;  %v3402_v45 = vld [vmem:[%s5618_s1 + $0x890] sm:$0xf]  ;;  %v3731_v47 = vld [vmem:[%s5618_s1 + $0x894] sm:$0xf0] }
  0x7e   :  { %2011 = vmatpush.bf16.msrb.mxu2 %v3211_v52  ;;  %v3371_v52 = vor.u32 %v3723_v43, %v3370_v40  ;;  %v2415_v58 = vor.u32 %v3482_v50, %v2412_v51  ;;  %v3338_v40 = vld [vmem:[%s5618_s1 + $0x810] sm:$0xf]  ;;  %v3715_v43 = vld [vmem:[%s5618_s1 + $0x814] sm:$0xf0]  ;;  %v3474_v50 = vld [vmem:[%s5618_s1 + $0x94] sm:$0xf] }
  0x7f   :  { %2024 = vmatpush.bf16.msrb.mxu3 %v3275_v56  ;;  %v3721_v56 = vld [vmem:[%s5618_s1 + $0x844] sm:$0xf0]  ;;  %v2380_v51 = vld [vmem:[%s5618_s1 + $0x98] sm:$0xf0] }
  0x80   :  { %1986 = vmatpush.bf16.msrb.mxu0 %v3075_v63  ;;  %v2404_v63 = vld [vmem:[%s5618_s1 + $0xc8] sm:$0xf0]  ;;  %v3363_v0 = vor.u32 %v3721_v56, %v3362_v55  ;;  %v3394_v55 = vld [vmem:[%s5618_s1 + $0x880] sm:$0xf]  ;;  %v3403_v56 = vor.u32 %v3731_v47, %v3402_v45  ;;  %v2383_v61 = vor.u32 %v3474_v50, %v2380_v51  ;;  %v3514_v50 = vld [vmem:[%s5618_s1 + $0x1d4] sm:$0xf] }
  0x81   :  { %1999 = vmatpush.bf16.msrb.mxu1 %v3139_v4  ;;  %v3719_v4 = vld [vmem:[%s5618_s1 + $0x834] sm:$0xf0]  ;;  %v2407_v6 = vor.u32 %v3480_v62, %v2404_v63  ;;  %v2308_v62 = vld [vmem:[%s5618_s1 + $0x8] sm:$0xf0]  ;;  %v3472_v63 = vld [vmem:[%s5618_s1 + $0x84] sm:$0xf] }
  0x82   :  { %2012 = vmatpush.bf16.msrb.mxu2 %v3203_v5  ;;  %v3418_v5 = vld [vmem:[%s5618_s1 + $0x8b0] sm:$0xf]  ;;  %v3355_v12 = vor.u32 %v3719_v4, %v3354_v3  ;;  %v3518_v3 = vld [vmem:[%s5618_s1 + $0x1f4] sm:$0xf] }
  0x83   :  { %2025 = vmatpush.bf16.msrb.mxu3 %v3267_v10  ;;  %1987 = vmatmul.bf16.vlgmr.msrb.gmra.mxu0 %v4631_v23  ;;  %v3478_v10 = vld [vmem:[%s5618_s1 + $0xb4] sm:$0xf] }
  0x84   :  { %2031 = vmatpush.bf16.msra.mxu0 %v3387_v11  ;;  %2000 = vmatmul.bf16.vlgmr.msrb.gmra.mxu1 %v4644_v31  ;;  %v2396_v11 = vld [vmem:[%s5618_s1 + $0xb8] sm:$0xf0] }
  0x85   :  { %2044 = vmatpush.bf16.msra.mxu1 %v3451_v13  ;;  %2013 = vmatmul.bf16.vlgmr.msrb.gmra.mxu2 %v4642_v28  ;;  %v3419_v13 = vor.u32 %v3735_v7, %v3418_v5  ;;  %v2556_v5 = vld [vmem:[%s5618_s1 + $0x1f8] sm:$0xf0] }
  0x86   :  { %2057 = vmatpush.bf16.msra.mxu2 %v2367_v14  ;;  %2026 = vmatmul.bf16.vlgmr.msrb.gmra.mxu3 %v4652_v35  ;;  %v2335_v14 = vor.u32 %v3462_v8, %v2332_v9  ;;  %v2620_v7 = vld [vmem:[%s5618_s1 + $0x278] sm:$0xf0]  ;;  %v345_v8 = vunpack.c.l.b16 %v25_v60 }
  0x87   :  { %2070 = vmatpush.bf16.msra.mxu3 %v2431_v21  ;;  %v2399_v21 = vor.u32 %v3478_v10, %v2396_v11  ;;  %v2311_v10 = vor.u32 %v3456_v59, %v2308_v62  ;;  %v3550_v11 = vld [vmem:[%s5618_s1 + $0x2f4] sm:$0xf] }
  0x88   :  { %2032 = vmatpush.bf16.msra.mxu0 %v3379_v36  ;;  %v3347_v36 = vor.u32 %v3717_v16, %v3346_v15  ;;  %v2559_v16 = vor.u32 %v3518_v3, %v2556_v5 }
  0x89   :  { %2045 = vmatpush.bf16.msra.mxu1 %v3443_v37  ;;  %v3411_v37 = vor.u32 %v3733_v24, %v3410_v17  ;;  %v2484_v24 = vld [vmem:[%s5618_s1 + $0x168] sm:$0xf0] }
  0x8a   :  { %2058 = vmatpush.bf16.msra.mxu2 %v2359_v39  ;;  %v2327_v39 = vor.u32 %v3460_v26, %v2324_v27  ;;  %v3516_v26 = vld [vmem:[%s5618_s1 + $0x1e4] sm:$0xf] }
  0x8b   :  { %2071 = vmatpush.bf16.msra.mxu3 %v2423_v46  ;;  %v2391_v46 = vor.u32 %v3476_v32, %v2388_v34  ;;  %v4838_v32 = vpack.c.b16 %v345_v8, %v345_v8  ;;  %v2548_v34 = vld [vmem:[%s5618_s1 + $0x1e8] sm:$0xf0]  ;;  %v3510_v8 = vld [vmem:[%s5618_s1 + $0x1b4] sm:$0xf] }
  0x8c   :  { %2033 = vmatpush.bf16.msra.mxu0 %v3371_v52  ;;  %v3339_v52 = vor.u32 %v3715_v43, %v3338_v40  ;;  %v3548_v40 = vld [vmem:[%s5618_s1 + $0x2e4] sm:$0xf]  ;;  %v2676_v43 = vld [vmem:[%s5618_s1 + $0x2e8] sm:$0xf0] }
  0x8d   :  { %2046 = vmatpush.bf16.msra.mxu1 %v3435_v53  ;;  %v3330_v53 = vld [vmem:[%s5618_s1 + $0x800] sm:$0xf]  ;;  %v2679_v51 = vor.u32 %v3548_v40, %v2676_v43  ;;  %v3524_v40 = vld [vmem:[%s5618_s1 + $0x224] sm:$0xf]  ;;  %v2580_v43 = vld [vmem:[%s5618_s1 + $0x228] sm:$0xf0] }
  0x8e   :  { %2059 = vmatpush.bf16.msra.mxu2 %v2351_v54  ;;  %v3713_v54 = vld [vmem:[%s5618_s1 + $0x804] sm:$0xf0] }
  0x8f   :  { %2072 = vmatpush.bf16.msra.mxu3 %v2415_v58  ;;  %v3729_v58 = vld [vmem:[%s5618_s1 + $0x884] sm:$0xf0]  ;;  %v3331_v4 = vor.u32 %v3713_v54, %v3330_v53  ;;  %v3530_v53 = vld [vmem:[%s5618_s1 + $0x254] sm:$0xf]  ;;  %v2604_v54 = vld [vmem:[%s5618_s1 + $0x258] sm:$0xf0] }
  0x90   :  { %2034 = vmatpush.bf16.msra.mxu0 %v3363_v0  ;;  %v2372_v0 = vld [vmem:[%s5618_s1 + $0x88] sm:$0xf0]  ;;  %v3395_v9 = vor.u32 %v3729_v58, %v3394_v55  ;;  %v3546_v55 = vld [vmem:[%s5618_s1 + $0x2d4] sm:$0xf]  ;;  %v2607_v59 = vor.u32 %v3530_v53, %v2604_v54 }
  0x91   :  { %2047 = vmatpush.bf16.msra.mxu1 %v3427_v1  ;;  %v3502_v1 = vld [vmem:[%s5618_s1 + $0x174] sm:$0xf] }
  0x92   :  { %2060 = vmatpush.bf16.msra.mxu2 %v2343_v2  ;;  %v2492_v2 = vld [vmem:[%s5618_s1 + $0x178] sm:$0xf0]  ;;  %v3506_v53 = vld [vmem:[%s5618_s1 + $0x194] sm:$0xf] }
  0x93   :  { %2073 = vmatpush.bf16.msra.mxu3 %v2407_v6  ;;  %v3534_v6 = vld [vmem:[%s5618_s1 + $0x274] sm:$0xf]  ;;  %v2495_v15 = vor.u32 %v3502_v1, %v2492_v2  ;;  %v3544_v1 = vld [vmem:[%s5618_s1 + $0x2c4] sm:$0xf]  ;;  %v2660_v2 = vld [vmem:[%s5618_s1 + $0x2c8] sm:$0xf0] }
  0x94   :  { %2035 = vmatpush.bf16.msra.mxu0 %v3355_v12  ;;  %v2684_v12 = vld [vmem:[%s5618_s1 + $0x2f8] sm:$0xf0]  ;;  %v2623_v17 = vor.u32 %v3534_v6, %v2620_v7 }
  0x95   :  { %2048 = vmatpush.bf16.msra.mxu1 %v3419_v13  ;;  %v346_v13 = vunpack.c.h.b16 %v25_v60  ;;  %v2687_v27 = vor.u32 %v3550_v11, %v2684_v12  ;;  %v3496_v60 = vld [vmem:[%s5618_s1 + $0x144] sm:$0xf]  ;;  %v2460_v7 = vld [vmem:[%s5618_s1 + $0x138] sm:$0xf0]  ;;  %v3526_v11 = vld [vmem:[%s5618_s1 + $0x234] sm:$0xf] }
  0x96   :  { %2061 = vmatpush.bf16.msra.mxu2 %v2335_v14  ;;  %v2375_v14 = vor.u32 %v3472_v63, %v2372_v0  ;;  %v3528_v63 = vld [vmem:[%s5618_s1 + $0x244] sm:$0xf]  ;;  %v2596_v0 = vld [vmem:[%s5618_s1 + $0x248] sm:$0xf0]  ;;  %v2588_v12 = vld [vmem:[%s5618_s1 + $0x238] sm:$0xf0] }
  0x97   :  { %2074 = vmatpush.bf16.msra.mxu3 %v2399_v21  ;;  %v3500_v21 = vld [vmem:[%s5618_s1 + $0x164] sm:$0xf]  ;;  %v2599_v6 = vor.u32 %v3528_v63, %v2596_v0  ;;  %v2436_v63 = vld [vmem:[%s5618_s1 + $0x108] sm:$0xf0] }
  0x98   :  { %2036 = vmatpush.bf16.msra.mxu0 %v3347_v36  ;;  %v3532_v36 = vld [vmem:[%s5618_s1 + $0x264] sm:$0xf]  ;;  %v2487_v45 = vor.u32 %v3500_v21, %v2484_v24  ;;  %v2591_v24 = vor.u32 %v3526_v11, %v2588_v12  ;;  %v3566_v12 = vld [vmem:[%s5618_s1 + $0x374] sm:$0xf] }
  0x99   :  { %2049 = vmatpush.bf16.msra.mxu1 %v3411_v37  ;;  %v2612_v37 = vld [vmem:[%s5618_s1 + $0x268] sm:$0xf0] }
  0x9a   :  { %2062 = vmatpush.bf16.msra.mxu2 %v2327_v39  ;;  %v4849_v39 = vpack.c.b16 %v346_v13, %v346_v13  ;;  %v2615_v47 = vor.u32 %v3532_v36, %v2612_v37  ;;  %v314_v13 = vld [vmem:[%s5620_s2] sm:$0x3]  ;;  %v2516_v37 = vld [vmem:[%s5618_s1 + $0x1a8] sm:$0xf0] }
  0x9b   :  { %2075 = vmatpush.bf16.msra.mxu3 %v2391_v46  ;;  %v2551_v46 = vor.u32 %v3516_v26, %v2548_v34  ;;  %v2452_v26 = vld [vmem:[%s5618_s1 + $0x128] sm:$0xf0]  ;;  %v316_v34 = vperm.slane %v314_v13, 0  ;;  %v2748_v13 = vld [vmem:[%s5618_s1 + $0x378] sm:$0xf0] }
  0x9c   :  { %2037 = vmatpush.bf16.msra.mxu0 %v3339_v52  ;;  %v2540_v52 = vld [vmem:[%s5618_s1 + $0x1d8] sm:$0xf0] }
  0x9d   :  { %2050 = vmatpush.bf16.msra.mxu1 %v3403_v56  ;;  %v2668_v56 = vld [vmem:[%s5618_s1 + $0x2d8] sm:$0xf0]  ;;  %v2543_v58 = vor.u32 %v3514_v50, %v2540_v52  ;;  %v2583_v50 = vor.u32 %v3524_v40, %v2580_v43 }
  0x9e   :  { %2063 = vmatpush.bf16.msra.mxu2 %v2319_v57  ;;  %v2479_v57 = vor.u32 %v3498_v48, %v2476_v49  ;;  %v2671_v62 = vor.u32 %v3546_v55, %v2668_v56  ;;  %v2444_v52 = vld [vmem:[%s5618_s1 + $0x118] sm:$0xf0] }
  0x9f   :  { %2076 = vmatpush.bf16.msra.mxu3 %v2383_v61  ;;  %v2468_v61 = vld [vmem:[%s5618_s1 + $0x148] sm:$0xf0] }
  0xa0   :  { %2038 = vmatpush.bf16.msra.mxu0 %v3331_v4  ;;  %v2471_v3 = vor.u32 %v3496_v60, %v2468_v61  ;;  %v3494_v4 = vld [vmem:[%s5618_s1 + $0x134] sm:$0xf]  ;;  %v1832_v48 = vpop.f32.mrf.mxu0  ;;  %v2636_v61 = vld [vmem:[%s5618_s1 + $0x298] sm:$0xf0] }
  0xa1   :  { %2051 = vmatpush.bf16.msra.mxu1 %v3395_v9  ;;  %v2524_v9 = vld [vmem:[%s5618_s1 + $0x1b8] sm:$0xf0]  ;;  %v1833_v54 = vadd.f32 %v1832_v48, %v316_v34  ;;  %v1845_v55 = vpop.f32.mrf.mxu1  ;;  %v3538_v60 = vld [vmem:[%s5618_s1 + $0x294] sm:$0xf]  ;;  %v3564_v48 = vld [vmem:[%s5618_s1 + $0x364] sm:$0xf] }
  0xa2   :  { %2064 = vmatpush.bf16.msra.mxu2 %v2311_v10  ;;  %v2663_v10 = vor.u32 %v3544_v1, %v2660_v2  ;;  %v2527_v21 = vor.u32 %v3510_v8, %v2524_v9  ;;  %v3504_v2 = vld [vmem:[%s5618_s1 + $0x184] sm:$0xf]  ;;  %v2628_v9 = vld [vmem:[%s5618_s1 + $0x288] sm:$0xf0] }
  0xa3   :  { %2077 = vmatpush.bf16.msra.mxu3 %v2375_v14  ;;  %2039 = vmatmul.bf16.vlgmr.msra.gmra.mxu0 %v4838_v32  ;;  %v3542_v14 = vld [vmem:[%s5618_s1 + $0x2b4] sm:$0xf]  ;;  %v3536_v8 = vld [vmem:[%s5618_s1 + $0x284] sm:$0xf] }
  0xa4   :  { %2083 = vmatpush.bf16.msrb.mxu0 %v2495_v15  ;;  %2052 = vmatmul.bf16.vlgmr.msra.gmra.mxu1 %v4849_v39  ;;  %v2652_v15 = vld [vmem:[%s5618_s1 + $0x2b8] sm:$0xf0]  ;;  %v2631_v43 = vor.u32 %v3536_v8, %v2628_v9  ;;  %v2724_v8 = vld [vmem:[%s5618_s1 + $0x348] sm:$0xf0]  ;;  %v3592_v9 = vld [vmem:[%s5618_s1 + $0x444] sm:$0xf] }
  0xa5   :  { %2096 = vmatpush.bf16.msrb.mxu1 %v2559_v16  ;;  %2065 = vmatmul.bf16.vlgmr.msra.gmra.mxu2 %v4066_v19  ;;  %v3512_v19 = vld [vmem:[%s5618_s1 + $0x1c4] sm:$0xf]  ;;  %v2463_v16 = vor.u32 %v3494_v4, %v2460_v7  ;;  %v2655_v36 = vor.u32 %v3542_v14, %v2652_v15  ;;  %v2564_v7 = vld [vmem:[%s5618_s1 + $0x208] sm:$0xf0]  ;;  %v3582_v14 = vld [vmem:[%s5618_s1 + $0x3f4] sm:$0xf] }
  0xa6   :  { %2109 = vmatpush.bf16.msrb.mxu2 %v2623_v17  ;;  %2078 = vmatmul.bf16.vlgmr.msra.gmra.mxu3 %v4070_v22  ;;  %v2532_v22 = vld [vmem:[%s5618_s1 + $0x1c8] sm:$0xf0]  ;;  %v3492_v17 = vld [vmem:[%s5618_s1 + $0x124] sm:$0xf] }
  0xa7   :  { %2122 = vmatpush.bf16.msrb.mxu3 %v2687_v27  ;;  %v2535_v5 = vor.u32 %v3512_v19, %v2532_v22  ;;  %v3508_v27 = vld [vmem:[%s5618_s1 + $0x1a4] sm:$0xf]  ;;  %v1846_v19 = vadd.f32 %v1845_v55, %v1833_v54  ;;  %v2868_v54 = vld [vmem:[%s5618_s1 + $0x468] sm:$0xf0] }
  0xa8   :  { %2084 = vmatpush.bf16.msrb.mxu0 %v2487_v45  ;;  %v3540_v45 = vld [vmem:[%s5618_s1 + $0x2a4] sm:$0xf]  ;;  %v2519_v49 = vor.u32 %v3508_v27, %v2516_v37  ;;  %v2940_v37 = vld [vmem:[%s5618_s1 + $0x4f8] sm:$0xf0] }
  0xa9   :  { %2097 = vmatpush.bf16.msrb.mxu1 %v2551_v46  ;;  %v2644_v46 = vld [vmem:[%s5618_s1 + $0x2a8] sm:$0xf0]  ;;  %v3488_v22 = vld [vmem:[%s5618_s1 + $0x104] sm:$0xf]  ;;  %v1871_v11 = vpop.f32.mrf.mxu3  ;;  %v1847_v40 = vpop.f32.mrf.mxu1 }
  0xaa   :  { %2110 = vmatpush.bf16.msrb.mxu2 %v2615_v47  ;;  %v2455_v47 = vor.u32 %v3492_v17, %v2452_v26  ;;  %v2647_v56 = vor.u32 %v3540_v45, %v2644_v46  ;;  %v3520_v4 = vld [vmem:[%s5618_s1 + $0x204] sm:$0xf]  ;;  %v2439_v15 = vor.u32 %v3488_v22, %v2436_v63  ;;  %v3598_v17 = vld [vmem:[%s5618_s1 + $0x474] sm:$0xf]  ;;  %v1834_v26 = vpop.f32.mrf.mxu0  ;;  %v2751_v45 = vor.u32 %v3566_v12, %v2748_v13  ;;  %v2916_v12 = vld [vmem:[%s5618_s1 + $0x4c8] sm:$0xf0] }
  0xab   :  { %2123 = vmatpush.bf16.msrb.mxu3 %v2679_v51  ;;  %v3490_v51 = vld [vmem:[%s5618_s1 + $0x114] sm:$0xf]  ;;  %v2567_v34 = vor.u32 %v3520_v4, %v2564_v7  ;;  %v3612_v55 = vld [vmem:[%s5618_s1 + $0x4e4] sm:$0xf] }
  0xac   :  { %2085 = vmatpush.bf16.msrb.mxu0 %v2479_v57  ;;  %v2508_v57 = vld [vmem:[%s5618_s1 + $0x198] sm:$0xf0]  ;;  %v3578_v22 = vld [vmem:[%s5618_s1 + $0x3d4] sm:$0xf]  ;;  %v3560_v7 = vld [vmem:[%s5618_s1 + $0x344] sm:$0xf] }
  0xad   :  { %2098 = vmatpush.bf16.msrb.mxu1 %v2543_v58  ;;  %v3522_v58 = vld [vmem:[%s5618_s1 + $0x214] sm:$0xf]  ;;  %v2511_v0 = vor.u32 %v3506_v53, %v2508_v57  ;;  %v3596_v53 = vld [vmem:[%s5618_s1 + $0x464] sm:$0xf]  ;;  %v2727_v13 = vor.u32 %v3560_v7, %v2724_v8  ;;  %v2828_v7 = vld [vmem:[%s5618_s1 + $0x418] sm:$0xf0] }
  0xae   :  { %2111 = vmatpush.bf16.msrb.mxu2 %v2607_v59  ;;  %v2572_v59 = vld [vmem:[%s5618_s1 + $0x218] sm:$0xf0]  ;;  %v3574_v26 = vld [vmem:[%s5618_s1 + $0x3b4] sm:$0xf] }
  0xaf   :  { %2124 = vmatpush.bf16.msrb.mxu3 %v2671_v62  ;;  %v2447_v62 = vor.u32 %v3490_v51, %v2444_v52  ;;  %v2575_v1 = vor.u32 %v3522_v58, %v2572_v59  ;;  %v2804_v52 = vld [vmem:[%s5618_s1 + $0x3e8] sm:$0xf0]  ;;  %v3590_v40 = vld [vmem:[%s5618_s1 + $0x434] sm:$0xf] }
  0xb0   :  { %2086 = vmatpush.bf16.msrb.mxu0 %v2471_v3  ;;  %v2500_v3 = vld [vmem:[%s5618_s1 + $0x188] sm:$0xf0]  ;;  %v3602_v8 = vld [vmem:[%s5618_s1 + $0x494] sm:$0xf] }
  0xb1   :  { %2099 = vmatpush.bf16.msrb.mxu1 %v2535_v5  ;;  %v1858_v5 = vpop.f32.mrf.mxu2  ;;  %v2503_v27 = vor.u32 %v3504_v2, %v2500_v3  ;;  %v1873_v59 = vpop.f32.mrf.mxu3  ;;  %v2860_v2 = vld [vmem:[%s5618_s1 + $0x458] sm:$0xf0]  ;;  %v3610_v3 = vld [vmem:[%s5618_s1 + $0x4d4] sm:$0xf] }
  0xb2   :  { %2112 = vmatpush.bf16.msrb.mxu2 %v2599_v6  ;;  %v2639_v6 = vor.u32 %v3538_v60, %v2636_v61  ;;  %v2871_v61 = vor.u32 %v3596_v53, %v2868_v54 }
  0xb3   :  { %2125 = vmatpush.bf16.msrb.mxu3 %v2663_v10  ;;  %v1859_v10 = vadd.f32 %v1858_v5, %v1846_v19  ;;  %v3562_v19 = vld [vmem:[%s5618_s1 + $0x354] sm:$0xf] }
  0xb4   :  { %2087 = vmatpush.bf16.msrb.mxu0 %v2463_v16  ;;  %v2812_v16 = vld [vmem:[%s5618_s1 + $0x3f8] sm:$0xf0] }
  0xb5   :  { %2100 = vmatpush.bf16.msrb.mxu1 %v2527_v21  ;;  %v2876_v21 = vld [vmem:[%s5618_s1 + $0x478] sm:$0xf0]  ;;  %v2815_v46 = vor.u32 %v3582_v14, %v2812_v16 }
  0xb6   :  { %2113 = vmatpush.bf16.msrb.mxu2 %v2591_v24  ;;  %v5026_v24 = vadd.f32 %v1871_v11, %v1859_v10  ;;  %v2852_v10 = vld [vmem:[%s5618_s1 + $0x448] sm:$0xf0]  ;;  %v3608_v11 = vld [vmem:[%s5618_s1 + $0x4c4] sm:$0xf] }
  0xb7   :  { %2126 = vmatpush.bf16.msrb.mxu3 %v2655_v36  ;;  %v3614_v36 = vld [vmem:[%s5618_s1 + $0x4f4] sm:$0xf]  ;;  %v2855_v16 = vor.u32 %v3592_v9, %v2852_v10  ;;  %v2692_v9 = vld [vmem:[%s5618_s1 + $0x308] sm:$0xf0] }
  0xb8   :  { %2088 = vmatpush.bf16.msrb.mxu0 %v2455_v47  ;;  %v2879_v47 = vor.u32 %v3598_v17, %v2876_v21  ;;  %v2943_v51 = vor.u32 %v3614_v36, %v2940_v37  ;;  %v3558_v17 = vld [vmem:[%s5618_s1 + $0x334] sm:$0xf]  ;;  %v2716_v21 = vld [vmem:[%s5618_s1 + $0x338] sm:$0xf0]  ;;  %v2919_v36 = vor.u32 %v3608_v11, %v2916_v12  ;;  %v3568_v12 = vld [vmem:[%s5618_s1 + $0x384] sm:$0xf] }
  0xb9   :  { %2101 = vmatpush.bf16.msrb.mxu1 %v2519_v49  ;;  %v2740_v49 = vld [vmem:[%s5618_s1 + $0x368] sm:$0xf0]  ;;  %v1860_v57 = vpop.f32.mrf.mxu2  ;;  %v2780_v37 = vld [vmem:[%s5618_s1 + $0x3b8] sm:$0xf0] }
  0xba   :  { %2114 = vmatpush.bf16.msrb.mxu2 %v2583_v50  ;;  %v3580_v50 = vld [vmem:[%s5618_s1 + $0x3e4] sm:$0xf]  ;;  %v2743_v58 = vor.u32 %v3564_v48, %v2740_v49  ;;  %v2783_v48 = vor.u32 %v3574_v26, %v2780_v37  ;;  %v2836_v57 = vld [vmem:[%s5618_s1 + $0x428] sm:$0xf0]  ;;  %v3646_v37 = vld [vmem:[%s5618_s1 + $0x5f4] sm:$0xf] }
  0xbb   :  { %2127 = vmatpush.bf16.msrb.mxu3 %v2647_v56  ;;  %v2932_v56 = vld [vmem:[%s5618_s1 + $0x4e8] sm:$0xf0]  ;;  %v2807_v60 = vor.u32 %v3580_v50, %v2804_v52  ;;  %v3556_v50 = vld [vmem:[%s5618_s1 + $0x324] sm:$0xf] }
  0xbc   :  { %2089 = vmatpush.bf16.msrb.mxu0 %v2447_v62  ;;  %v2732_v62 = vld [vmem:[%s5618_s1 + $0x358] sm:$0xf0]  ;;  %v2935_v63 = vor.u32 %v3612_v55, %v2932_v56  ;;  %v3572_v52 = vld [vmem:[%s5618_s1 + $0x3a4] sm:$0xf]  ;;  %v2772_v55 = vld [vmem:[%s5618_s1 + $0x3a8] sm:$0xf0] }
  0xbd   :  { %2102 = vmatpush.bf16.msrb.mxu1 %v2511_v0  ;;  %v2796_v0 = vld [vmem:[%s5618_s1 + $0x3d8] sm:$0xf0]  ;;  %v2735_v4 = vor.u32 %v3562_v19, %v2732_v62  ;;  %v3588_v56 = vld [vmem:[%s5618_s1 + $0x424] sm:$0xf]  ;;  %v2884_v26 = vld [vmem:[%s5618_s1 + $0x488] sm:$0xf0] }
  0xbe   :  { %2115 = vmatpush.bf16.msrb.mxu2 %v2575_v1  ;;  %v3594_v1 = vld [vmem:[%s5618_s1 + $0x454] sm:$0xf]  ;;  %v2799_v5 = vor.u32 %v3578_v22, %v2796_v0  ;;  %v2839_v0 = vor.u32 %v3588_v56, %v2836_v57  ;;  %v3644_v56 = vld [vmem:[%s5618_s1 + $0x5e4] sm:$0xf] }
  0xbf   :  { %2128 = vmatpush.bf16.msrb.mxu3 %v2639_v6  ;;  %v2863_v6 = vor.u32 %v3594_v1, %v2860_v2  ;;  %v3554_v1 = vld [vmem:[%s5618_s1 + $0x314] sm:$0xf]  ;;  %v2700_v2 = vld [vmem:[%s5618_s1 + $0x318] sm:$0xf0] }
  0xc0   :  { %2090 = vmatpush.bf16.msrb.mxu0 %v2439_v15  ;;  %v1884_v14 = vpop.f32.mrf.mxu0 }
  0xc1   :  { %2103 = vmatpush.bf16.msrb.mxu1 %v2503_v27  ;;  %v1885_v27 = vadd.f32 %v1884_v14, %v5026_v24  ;;  %v2908_v24 = vld [vmem:[%s5618_s1 + $0x4b8] sm:$0xf0]  ;;  %v3584_v14 = vld [vmem:[%s5618_s1 + $0x404] sm:$0xf] }
  0xc2   :  { %2116 = vmatpush.bf16.msrb.mxu2 %v2567_v34  ;;  %v1897_v34 = vpop.f32.mrf.mxu1 }
  0xc3   :  { %2129 = vmatpush.bf16.msrb.mxu3 %v2631_v43  ;;  %2091 = vmatmul.bf16.vlgmr.msrb.gmra.mxu0 %v4064_v18  ;;  %v3576_v18 = vld [vmem:[%s5618_s1 + $0x3c4] sm:$0xf]  ;;  %v2844_v43 = vld [vmem:[%s5618_s1 + $0x438] sm:$0xf0] }
  0xc4   :  { %2135 = vmatpush.bf16.msra.mxu0 %v2751_v45  ;;  %2104 = vmatmul.bf16.vlgmr.msrb.gmra.mxu1 %v4068_v20  ;;  %v2788_v20 = vld [vmem:[%s5618_s1 + $0x3c8] sm:$0xf0]  ;;  %v3606_v45 = vld [vmem:[%s5618_s1 + $0x4b4] sm:$0xf]  ;;  %v2847_v49 = vor.u32 %v3590_v40, %v2844_v43  ;;  %v3068_v43 = vld [vmem:[%s5618_s1 + $0x5f8] sm:$0xf0] }
  0xc5   :  { %2148 = vmatpush.bf16.msra.mxu1 %v2815_v46  ;;  %2117 = vmatmul.bf16.vlgmr.msrb.gmra.mxu2 %v4228_v41  ;;  %v2924_v41 = vld [vmem:[%s5618_s1 + $0x4d8] sm:$0xf0]  ;;  %v2791_v15 = vor.u32 %v3576_v18, %v2788_v20  ;;  %v1898_v46 = vadd.f32 %v1897_v34, %v1885_v27  ;;  %v2911_v54 = vor.u32 %v3606_v45, %v2908_v24  ;;  %v3552_v20 = vld [vmem:[%s5618_s1 + $0x304] sm:$0xf]  ;;  %v3630_v34 = vld [vmem:[%s5618_s1 + $0x574] sm:$0xf] }
  0xc6   :  { %2161 = vmatpush.bf16.msra.mxu2 %v2879_v47  ;;  %2130 = vmatmul.bf16.vlgmr.msrb.gmra.mxu3 %v4232_v44  ;;  %v2927_v44 = vor.u32 %v3610_v3, %v2924_v41  ;;  %v2719_v47 = vor.u32 %v3558_v17, %v2716_v21  ;;  %v3570_v3 = vld [vmem:[%s5618_s1 + $0x394] sm:$0xf]  ;;  %v2892_v18 = vld [vmem:[%s5618_s1 + $0x498] sm:$0xf0]  ;;  %v2820_v17 = vld [vmem:[%s5618_s1 + $0x408] sm:$0xf0]  ;;  %v2695_v40 = vor.u32 %v3552_v20, %v2692_v9 }
  0xc7   :  { %2174 = vmatpush.bf16.msra.mxu3 %v2943_v51  ;;  %v2708_v51 = vld [vmem:[%s5618_s1 + $0x328] sm:$0xf0]  ;;  %v3600_v21 = vld [vmem:[%s5618_s1 + $0x484] sm:$0xf]  ;;  %v3662_v45 = vld [vmem:[%s5618_s1 + $0x674] sm:$0xf] }
  0xc8   :  { %2136 = vmatpush.bf16.msra.mxu0 %v2743_v58  ;;  %v1910_v53 = vpop.f32.mrf.mxu2  ;;  %v2711_v19 = vor.u32 %v3556_v50, %v2708_v51  ;;  %v1886_v22 = vpop.f32.mrf.mxu0  ;;  %v3132_v24 = vld [vmem:[%s5618_s1 + $0x678] sm:$0xf0]  ;;  %v2887_v50 = vor.u32 %v3600_v21, %v2884_v26  ;;  %v3640_v20 = vld [vmem:[%s5618_s1 + $0x5c4] sm:$0xf]  ;;  %v3044_v9 = vld [vmem:[%s5618_s1 + $0x5c8] sm:$0xf0] }
  0xc9   :  { %2149 = vmatpush.bf16.msra.mxu1 %v2807_v60  ;;  %v1911_v58 = vadd.f32 %v1910_v53, %v1898_v46  ;;  %v1923_v59 = vpop.f32.mrf.mxu3  ;;  %v3604_v60 = vld [vmem:[%s5618_s1 + $0x4a4] sm:$0xf]  ;;  %v3135_v53 = vor.u32 %v3662_v45, %v3132_v24  ;;  %v3047_v21 = vor.u32 %v3640_v20, %v3044_v9  ;;  %v3100_v45 = vld [vmem:[%s5618_s1 + $0x638] sm:$0xf0]  ;;  %v3670_v24 = vld [vmem:[%s5618_s1 + $0x6b4] sm:$0xf] }
  0xca   :  { %2162 = vmatpush.bf16.msra.mxu2 %v2871_v61  ;;  %v2900_v61 = vld [vmem:[%s5618_s1 + $0x4a8] sm:$0xf0]  ;;  %v1899_v41 = vpop.f32.mrf.mxu1  ;;  %v3632_v9 = vld [vmem:[%s5618_s1 + $0x584] sm:$0xf] }
  0xcb   :  { %2175 = vmatpush.bf16.msra.mxu3 %v2935_v63  ;;  %v5159_v62 = vadd.f32 %v1923_v59, %v1911_v58  ;;  %v2775_v63 = vor.u32 %v3572_v52, %v2772_v55  ;;  %v3071_v52 = vor.u32 %v3646_v37, %v3068_v43  ;;  %v2996_v55 = vld [vmem:[%s5618_s1 + $0x568] sm:$0xf0]  ;;  %v3660_v59 = vld [vmem:[%s5618_s1 + $0x664] sm:$0xf]  ;;  %v3654_v43 = vld [vmem:[%s5618_s1 + $0x634] sm:$0xf] }
  0xcc   :  { %2137 = vmatpush.bf16.msra.mxu0 %v2735_v4  ;;  %v2903_v4 = vor.u32 %v3604_v60, %v2900_v61  ;;  %v3060_v58 = vld [vmem:[%s5618_s1 + $0x5e8] sm:$0xf0]  ;;  %v3676_v61 = vld [vmem:[%s5618_s1 + $0x6e4] sm:$0xf] }
  0xcd   :  { %2150 = vmatpush.bf16.msra.mxu1 %v2799_v5  ;;  %v2764_v5 = vld [vmem:[%s5618_s1 + $0x398] sm:$0xf0]  ;;  %v3124_v60 = vld [vmem:[%s5618_s1 + $0x668] sm:$0xf0] }
  0xce   :  { %2163 = vmatpush.bf16.msra.mxu2 %v2863_v6  ;;  %v3586_v6 = vld [vmem:[%s5618_s1 + $0x414] sm:$0xf]  ;;  %v2767_v10 = vor.u32 %v3570_v3, %v2764_v5 }
  0xcf   :  { %2176 = vmatpush.bf16.msra.mxu3 %v2927_v44  ;;  %v2703_v44 = vor.u32 %v3554_v1, %v2700_v2  ;;  %v2831_v11 = vor.u32 %v3586_v6, %v2828_v7  ;;  %v3626_v1 = vld [vmem:[%s5618_s1 + $0x554] sm:$0xf]  ;;  %v2988_v2 = vld [vmem:[%s5618_s1 + $0x558] sm:$0xf0] }
  0xd0   :  { %2138 = vmatpush.bf16.msra.mxu0 %v2727_v13  ;;  %v2756_v13 = vld [vmem:[%s5618_s1 + $0x388] sm:$0xf0]  ;;  %v3642_v3 = vld [vmem:[%s5618_s1 + $0x5d4] sm:$0xf]  ;;  %v3116_v6 = vld [vmem:[%s5618_s1 + $0x658] sm:$0xf0] }
  0xd1   :  { %2151 = vmatpush.bf16.msra.mxu1 %v2791_v15  ;;  %v1912_v15 = vpop.f32.mrf.mxu2  ;;  %v1925_v27 = vpop.f32.mrf.mxu3  ;;  %v2759_v46 = vor.u32 %v3568_v12, %v2756_v13  ;;  %v3658_v5 = vld [vmem:[%s5618_s1 + $0x654] sm:$0xf]  ;;  %v3180_v7 = vld [vmem:[%s5618_s1 + $0x6d8] sm:$0xf0]  ;;  %v3672_v13 = vld [vmem:[%s5618_s1 + $0x6c4] sm:$0xf] }
  0xd2   :  { %2164 = vmatpush.bf16.msra.mxu2 %v2855_v16  ;;  %v2895_v16 = vor.u32 %v3602_v8, %v2892_v18  ;;  %v2991_v8 = vor.u32 %v3626_v1, %v2988_v2  ;;  %v3622_v27 = vld [vmem:[%s5618_s1 + $0x534] sm:$0xf] }
  0xd3   :  { %2177 = vmatpush.bf16.msra.mxu3 %v2919_v36  ;;  %v3004_v36 = vld [vmem:[%s5618_s1 + $0x578] sm:$0xf0] }
  0xd4   :  { %2139 = vmatpush.bf16.msra.mxu0 %v2719_v47  ;;  %v2823_v47 = vor.u32 %v3584_v14, %v2820_v17  ;;  %v3007_v51 = vor.u32 %v3630_v34, %v3004_v36  ;;  %v3172_v14 = vld [vmem:[%s5618_s1 + $0x6c8] sm:$0xf0]  ;;  %v2972_v34 = vld [vmem:[%s5618_s1 + $0x538] sm:$0xf0]  ;;  %v3638_v36 = vld [vmem:[%s5618_s1 + $0x5b4] sm:$0xf] }
  0xd5   :  { %2152 = vmatpush.bf16.msra.mxu1 %v2783_v48  ;;  %v3678_v48 = vld [vmem:[%s5618_s1 + $0x6f4] sm:$0xf] }
  0xd6   :  { %2165 = vmatpush.bf16.msra.mxu2 %v2847_v49  ;;  %v3196_v49 = vld [vmem:[%s5618_s1 + $0x6f8] sm:$0xf0] }
  0xd7   :  { %2178 = vmatpush.bf16.msra.mxu3 %v2911_v54  ;;  %v3628_v54 = vld [vmem:[%s5618_s1 + $0x564] sm:$0xf]  ;;  %v3199_v57 = vor.u32 %v3678_v48, %v3196_v49  ;;  %v3103_v49 = vor.u32 %v3654_v43, %v3100_v45  ;;  %v3742_v45 = vld [vmem:[%s5618_s1 + $0x8f4] sm:$0xf] }
  0xd8   :  { %2140 = vmatpush.bf16.msra.mxu0 %v2711_v19  ;;  %v3188_v19 = vld [vmem:[%s5618_s1 + $0x6e8] sm:$0xf0]  ;;  %v2999_v22 = vor.u32 %v3628_v54, %v2996_v55 }
  0xd9   :  { %2153 = vmatpush.bf16.msra.mxu1 %v2775_v63  ;;  %v3063_v63 = vor.u32 %v3644_v56, %v3060_v58  ;;  %v3191_v41 = vor.u32 %v3676_v61, %v3188_v19  ;;  %v3028_v55 = vld [vmem:[%s5618_s1 + $0x5a8] sm:$0xf0]  ;;  %v3652_v56 = vld [vmem:[%s5618_s1 + $0x624] sm:$0xf] }
  0xda   :  { %2166 = vmatpush.bf16.msra.mxu2 %v2839_v0  ;;  %v3127_v0 = vor.u32 %v3660_v59, %v3124_v60  ;;  %v3668_v60 = vld [vmem:[%s5618_s1 + $0x6a4] sm:$0xf]  ;;  %v3156_v61 = vld [vmem:[%s5618_s1 + $0x6a8] sm:$0xf0] }
  0xdb   :  { %2179 = vmatpush.bf16.msra.mxu3 %v2903_v4  ;;  %v3052_v4 = vld [vmem:[%s5618_s1 + $0x5d8] sm:$0xf0] }
  0xdc   :  { %2141 = vmatpush.bf16.msra.mxu0 %v2703_v44  ;;  %v3055_v18 = vor.u32 %v3642_v3, %v3052_v4  ;;  %v3119_v44 = vor.u32 %v3658_v5, %v3116_v6  ;;  %v3618_v3 = vld [vmem:[%s5618_s1 + $0x514] sm:$0xf]  ;;  %v3159_v5 = vor.u32 %v3668_v60, %v3156_v61  ;;  %v3020_v6 = vld [vmem:[%s5618_s1 + $0x598] sm:$0xf0] }
  0xdd   :  { %2154 = vmatpush.bf16.msra.mxu1 %v2767_v10  ;;  %v3656_v10 = vld [vmem:[%s5618_s1 + $0x644] sm:$0xf]  ;;  %v3634_v4 = vld [vmem:[%s5618_s1 + $0x594] sm:$0xf] }
  0xde   :  { %2167 = vmatpush.bf16.msra.mxu2 %v2831_v11  ;;  %v3108_v11 = vld [vmem:[%s5618_s1 + $0x648] sm:$0xf0]  ;;  %v3023_v20 = vor.u32 %v3634_v4, %v3020_v6  ;;  %v3436_v4 = vld [vmem:[%s5618_s1 + $0x8d8] sm:$0xf0] }
  0xdf   :  { %2180 = vmatpush.bf16.msra.mxu3 %v2895_v16  ;;  %v3111_v26 = vor.u32 %v3656_v10, %v3108_v11  ;;  %v3012_v10 = vld [vmem:[%s5618_s1 + $0x588] sm:$0xf0]  ;;  %v3648_v11 = vld [vmem:[%s5618_s1 + $0x604] sm:$0xf] }
  0xe0   :  { %2142 = vmatpush.bf16.msra.mxu0 %v2695_v40  ;;  %v1936_v12 = vpop.f32.mrf.mxu0  ;;  %v3036_v40 = vld [vmem:[%s5618_s1 + $0x5b8] sm:$0xf0] }
  0xe1   :  { %2155 = vmatpush.bf16.msra.mxu1 %v2759_v46  ;;  %v1937_v15 = vadd.f32 %v1936_v12, %v5159_v62  ;;  %v1949_v17 = vpop.f32.mrf.mxu1  ;;  %v3175_v62 = vor.u32 %v3672_v13, %v3172_v14  ;;  %v3164_v46 = vld [vmem:[%s5618_s1 + $0x6b8] sm:$0xf0]  ;;  %v3039_v48 = vor.u32 %v3638_v36, %v3036_v40  ;;  %v3076_v13 = vld [vmem:[%s5618_s1 + $0x608] sm:$0xf0]  ;;  %v3664_v14 = vld [vmem:[%s5618_s1 + $0x684] sm:$0xf]  ;;  %v3015_v40 = vor.u32 %v3632_v9, %v3012_v10 }
  0xe2   :  { %2168 = vmatpush.bf16.msra.mxu2 %v2823_v47  ;;  %v2975_v47 = vor.u32 %v3622_v27, %v2972_v34  ;;  %v3324_v36 = vld [vmem:[%s5618_s1 + $0x7f8] sm:$0xf0]  ;;  %v3079_v43 = vor.u32 %v3648_v11, %v3076_v13  ;;  %v3686_v13 = vld [vmem:[%s5618_s1 + $0x734] sm:$0xf] }
  0xe3   :  { %2181 = vmatpush.bf16.msra.mxu3 %v2887_v50  ;;  %2143 = vmatmul.bf16.vlgmr.msra.gmra.mxu0 %v4220_v38  ;;  %v3674_v38 = vld [vmem:[%s5618_s1 + $0x6d4] sm:$0xf]  ;;  %v1950_v37 = vadd.f32 %v1949_v17, %v1937_v15  ;;  %v3620_v50 = vld [vmem:[%s5618_s1 + $0x524] sm:$0xf]  ;;  %v3140_v15 = vld [vmem:[%s5618_s1 + $0x688] sm:$0xf0] }
  0xe4   :  { %2187 = vmatpush.bf16.msrb.mxu0 %v3007_v51  ;;  %2156 = vmatmul.bf16.vlgmr.msra.gmra.mxu1 %v4230_v42  ;;  %v3624_v42 = vld [vmem:[%s5618_s1 + $0x544] sm:$0xf]  ;;  %v2964_v51 = vld [vmem:[%s5618_s1 + $0x528] sm:$0xf0]  ;;  %v3694_v17 = vld [vmem:[%s5618_s1 + $0x774] sm:$0xf] }
  0xe5   :  { %2200 = vmatpush.bf16.msrb.mxu1 %v3071_v52  ;;  %2169 = vmatmul.bf16.vlgmr.msra.gmra.mxu2 %v4421_v25  ;;  %v2980_v25 = vld [vmem:[%s5618_s1 + $0x548] sm:$0xf0]  ;;  %v3636_v52 = vld [vmem:[%s5618_s1 + $0x5a4] sm:$0xf] }
  0xe6   :  { %2213 = vmatpush.bf16.msrb.mxu2 %v3135_v53  ;;  %2182 = vmatmul.bf16.vlgmr.msra.gmra.mxu3 %v4434_v30  ;;  %v3183_v30 = vor.u32 %v3674_v38, %v3180_v7  ;;  %v2983_v16 = vor.u32 %v3624_v42, %v2980_v25  ;;  %v3167_v53 = vor.u32 %v3670_v24, %v3164_v46  ;;  %v3650_v38 = vld [vmem:[%s5618_s1 + $0x614] sm:$0xf]  ;;  %v3084_v7 = vld [vmem:[%s5618_s1 + $0x618] sm:$0xf0]  ;;  %v3616_v42 = vld [vmem:[%s5618_s1 + $0x504] sm:$0xf] }
  0xe7   :  { %2226 = vmatpush.bf16.msrb.mxu3 %v3199_v57  ;;  %v3092_v57 = vld [vmem:[%s5618_s1 + $0x628] sm:$0xf0]  ;;  %v3031_v1 = vor.u32 %v3636_v52, %v3028_v55  ;;  %v3452_v24 = vld [vmem:[%s5618_s1 + $0x8f8] sm:$0xf0]  ;;  %v3143_v46 = vor.u32 %v3664_v14, %v3140_v15  ;;  %v3708_v52 = vld [vmem:[%s5618_s1 + $0x7e4] sm:$0xf] }
  0xe8   :  { %2188 = vmatpush.bf16.msrb.mxu0 %v2999_v22  ;;  %v1962_v54 = vpop.f32.mrf.mxu2  ;;  %v1938_v19 = vpop.f32.mrf.mxu0  ;;  %v2967_v22 = vor.u32 %v3620_v50, %v2964_v51  ;;  %v3095_v2 = vor.u32 %v3652_v56, %v3092_v57  ;;  %v2948_v25 = vld [vmem:[%s5618_s1 + $0x508] sm:$0xf0]  ;;  %v3692_v50 = vld [vmem:[%s5618_s1 + $0x764] sm:$0xf]  ;;  %v3228_v14 = vld [vmem:[%s5618_s1 + $0x738] sm:$0xf0] }
  0xe9   :  { %2201 = vmatpush.bf16.msrb.mxu1 %v3063_v63  ;;  %v1963_v58 = vadd.f32 %v1962_v54, %v1950_v37  ;;  %v1975_v59 = vpop.f32.mrf.mxu3  ;;  %v1951_v63 = vpop.f32.mrf.mxu1  ;;  %v2951_v34 = vor.u32 %v3616_v42, %v2948_v25  ;;  %v3388_v37 = vld [vmem:[%s5618_s1 + $0x878] sm:$0xf0]  ;;  %v3252_v51 = vld [vmem:[%s5618_s1 + $0x768] sm:$0xf0]  ;;  %v3724_v55 = vld [vmem:[%s5618_s1 + $0x864] sm:$0xf] }
  0xea   :  { %2214 = vmatpush.bf16.msrb.mxu2 %v3127_v0  ;;  %v3316_v54 = vld [vmem:[%s5618_s1 + $0x7e8] sm:$0xf0]  ;;  %v3740_v57 = vld [vmem:[%s5618_s1 + $0x8e4] sm:$0xf]  ;;  %v3690_v19 = vld [vmem:[%s5618_s1 + $0x754] sm:$0xf] }
  0xeb   :  { %2227 = vmatpush.bf16.msrb.mxu3 %v3191_v41  ;;  %v5358_v0 = vadd.f32 %v1975_v59, %v1963_v58  ;;  %v2956_v41 = vld [vmem:[%s5618_s1 + $0x518] sm:$0xf0]  ;;  %v3380_v56 = vld [vmem:[%s5618_s1 + $0x868] sm:$0xf0]  ;;  %v3255_v59 = vor.u32 %v3692_v50, %v3252_v51  ;;  %v3319_v60 = vor.u32 %v3708_v52, %v3316_v54  ;;  %v3706_v63 = vld [vmem:[%s5618_s1 + $0x7d4] sm:$0xf] }
  0xec   :  { %2189 = vmatpush.bf16.msrb.mxu0 %v2991_v8  ;;  %v3666_v8 = vld [vmem:[%s5618_s1 + $0x694] sm:$0xf]  ;;  %v3444_v58 = vld [vmem:[%s5618_s1 + $0x8e8] sm:$0xf0]  ;;  %v3383_v61 = vor.u32 %v3724_v55, %v3380_v56  ;;  %v3736_v25 = vld [vmem:[%s5618_s1 + $0x8c4] sm:$0xf] }
  0xed   :  { %2202 = vmatpush.bf16.msrb.mxu1 %v3055_v18  ;;  %v3148_v18 = vld [vmem:[%s5618_s1 + $0x698] sm:$0xf0]  ;;  %v3702_v15 = vld [vmem:[%s5618_s1 + $0x7b4] sm:$0xf]  ;;  %v3732_v52 = vld [vmem:[%s5618_s1 + $0x8a4] sm:$0xf] }
  0xee   :  { %2215 = vmatpush.bf16.msrb.mxu2 %v3119_v44  ;;  %v2959_v44 = vor.u32 %v3618_v3, %v2956_v41  ;;  %v3151_v12 = vor.u32 %v3666_v8, %v3148_v18  ;;  %v3722_v3 = vld [vmem:[%s5618_s1 + $0x854] sm:$0xf]  ;;  %v3372_v41 = vld [vmem:[%s5618_s1 + $0x858] sm:$0xf0]  ;;  %v3300_v8 = vld [vmem:[%s5618_s1 + $0x7c8] sm:$0xf0] }
  0xef   :  { %2228 = vmatpush.bf16.msrb.mxu3 %v3183_v30  ;;  %v3087_v30 = vor.u32 %v3650_v38, %v3084_v7  ;;  %v3375_v38 = vor.u32 %v3722_v3, %v3372_v41  ;;  %v3704_v7 = vld [vmem:[%s5618_s1 + $0x7c4] sm:$0xf]  ;;  %v3730_v3 = vld [vmem:[%s5618_s1 + $0x894] sm:$0xf]  ;;  %v3404_v41 = vld [vmem:[%s5618_s1 + $0x898] sm:$0xf0] }
  0xf0   :  { %2190 = vmatpush.bf16.msrb.mxu0 %v2983_v16  ;;  %v1964_v16 = vpop.f32.mrf.mxu2  ;;  %v3720_v18 = vld [vmem:[%s5618_s1 + $0x844] sm:$0xf]  ;;  %v3303_v11 = vor.u32 %v3704_v7, %v3300_v8  ;;  %v3268_v7 = vld [vmem:[%s5618_s1 + $0x788] sm:$0xf0] }
  0xf1   :  { %2203 = vmatpush.bf16.msrb.mxu1 %v3047_v21  ;;  %v3260_v21 = vld [vmem:[%s5618_s1 + $0x778] sm:$0xf0]  ;;  %v1977_v27 = vpop.f32.mrf.mxu3  ;;  %v3332_v8 = vld [vmem:[%s5618_s1 + $0x808] sm:$0xf0] }
  0xf2   :  { %2216 = vmatpush.bf16.msrb.mxu2 %v3111_v26  ;;  %v3710_v26 = vld [vmem:[%s5618_s1 + $0x7f4] sm:$0xf] }
  0xf3   :  { %2229 = vmatpush.bf16.msrb.mxu3 %v3175_v62  ;;  %v3726_v62 = vld [vmem:[%s5618_s1 + $0x874] sm:$0xf] }
  0xf4   :  { %2191 = vmatpush.bf16.msrb.mxu0 %v2975_v47  ;;  %v3263_v47 = vor.u32 %v3694_v17, %v3260_v21  ;;  %v3292_v17 = vld [vmem:[%s5618_s1 + $0x7b8] sm:$0xf0]  ;;  %v3718_v21 = vld [vmem:[%s5618_s1 + $0x834] sm:$0xf] }
  0xf5   :  { %2204 = vmatpush.bf16.msrb.mxu1 %v3039_v48  ;;  %v3327_v48 = vor.u32 %v3710_v26, %v3324_v36  ;;  %v3356_v26 = vld [vmem:[%s5618_s1 + $0x838] sm:$0xf0]  ;;  %v3734_v27 = vld [vmem:[%s5618_s1 + $0x8b4] sm:$0xf]  ;;  %v3231_v36 = vor.u32 %v3686_v13, %v3228_v14 }
  0xf6   :  { %2217 = vmatpush.bf16.msrb.mxu2 %v3103_v49  ;;  %v3391_v49 = vor.u32 %v3726_v62, %v3388_v37  ;;  %v3295_v62 = vor.u32 %v3702_v15, %v3292_v17  ;;  %v3359_v37 = vor.u32 %v3718_v21, %v3356_v26  ;;  %v3744_v15 = vld [vmem:[%s5620_s2] sm:$0x3] }
  0xf7   :  { %2230 = vmatpush.bf16.msrb.mxu3 %v3167_v53  ;;  %v3455_v53 = vor.u32 %v3742_v45, %v3452_v24  ;;  %v3700_v45 = vld [vmem:[%s5618_s1 + $0x7a4] sm:$0xf] }
  0xf8   :  { %2192 = vmatpush.bf16.msrb.mxu0 %v2967_v22  ;;  %v3244_v22 = vld [vmem:[%s5618_s1 + $0x758] sm:$0xf0] }
  0xf9   :  { %2205 = vmatpush.bf16.msrb.mxu1 %v3031_v1  ;;  %v3447_v1 = vor.u32 %v3740_v57, %v3444_v58 }
  0xfa   :  { %2218 = vmatpush.bf16.msrb.mxu2 %v3095_v2  ;;  %v3308_v2 = vld [vmem:[%s5618_s1 + $0x7d8] sm:$0xf0] }
  0xfb   :  { %2231 = vmatpush.bf16.msrb.mxu3 %v3159_v5  ;;  %v3247_v5 = vor.u32 %v3690_v19, %v3244_v22  ;;  %v3311_v6 = vor.u32 %v3706_v63, %v3308_v2  ;;  %v3698_v19 = vld [vmem:[%s5618_s1 + $0x794] sm:$0xf]  ;;  %v3276_v63 = vld [vmem:[%s5618_s1 + $0x798] sm:$0xf0] }
  0xfc   :  { %2193 = vmatpush.bf16.msrb.mxu0 %v2959_v44  ;;  %v3364_v44 = vld [vmem:[%s5618_s1 + $0x848] sm:$0xf0]  ;;  %v3340_v2 = vld [vmem:[%s5618_s1 + $0x818] sm:$0xf0] }
  0xfd   :  { %2206 = vmatpush.bf16.msrb.mxu1 %v3023_v20  ;;  %v3428_v20 = vld [vmem:[%s5618_s1 + $0x8c8] sm:$0xf0] }
  0xfe   :  { %2219 = vmatpush.bf16.msrb.mxu2 %v3087_v30 }
  0xff   :  { %2232 = vmatpush.bf16.msrb.mxu3 %v3151_v12  ;;  %v3367_v12 = vor.u32 %v3720_v18, %v3364_v44  ;;  %v3728_v44 = vld [vmem:[%s5618_s1 + $0x884] sm:$0xf] }
 0x100   :  { %2194 = vmatpush.bf16.msrb.mxu0 %v2951_v34  ;;  %v1988_v42 = vpop.f32.mrf.mxu0  ;;  %v3420_v34 = vld [vmem:[%s5618_s1 + $0x8b8] sm:$0xf0] }
 0x101   :  { %2207 = vmatpush.bf16.msrb.mxu1 %v3015_v40  ;;  %v1989_v30 = vadd.f32 %v1988_v42, %v5358_v0  ;;  %v2001_v10 = vpop.f32.mrf.mxu1  ;;  %v3431_v0 = vor.u32 %v3736_v25, %v3428_v20  ;;  %v3684_v40 = vld [vmem:[%s5618_s1 + $0x724] sm:$0xf]  ;;  %v3423_v24 = vor.u32 %v3734_v27, %v3420_v34  ;;  %v3396_v42 = vld [vmem:[%s5618_s1 + $0x888] sm:$0xf0] }
 0x102   :  { %2220 = vmatpush.bf16.msrb.mxu2 %v3079_v43  ;;  %v3220_v43 = vld [vmem:[%s5618_s1 + $0x728] sm:$0xf0] }
 0x103   :  { %2233 = vmatpush.bf16.msrb.mxu3 %v3143_v46  ;;  %2195 = vmatmul.bf16.vlgmr.msrb.gmra.mxu0 %v4432_v29  ;;  %v3738_v29 = vld [vmem:[%s5618_s1 + $0x8d4] sm:$0xf]  ;;  %v2002_v16 = vadd.f32 %v2001_v10, %v1989_v30  ;;  %v3223_v55 = vor.u32 %v3684_v40, %v3220_v43  ;;  %v3399_v10 = vor.u32 %v3728_v44, %v3396_v42 }
 0x104   :  { %2239 = vmatpush.bf16.msra.mxu0 %v3263_v47  ;;  %2208 = vmatmul.bf16.vlgmr.msrb.gmra.mxu1 %v4442_v33  ;;  %v3688_v33 = vld [vmem:[%s5618_s1 + $0x744] sm:$0xf]  ;;  %v3284_v47 = vld [vmem:[%s5618_s1 + $0x7a8] sm:$0xf0] }
 0x105   :  { %2252 = vmatpush.bf16.msra.mxu1 %v3327_v48  ;;  %2221 = vmatmul.bf16.vlgmr.msrb.gmra.mxu2 %v4631_v23  ;;  %v3236_v23 = vld [vmem:[%s5618_s1 + $0x748] sm:$0xf0]  ;;  %v3716_v48 = vld [vmem:[%s5618_s1 + $0x824] sm:$0xf]  ;;  %v3287_v58 = vor.u32 %v3700_v45, %v3284_v47 }
 0x106   :  { %2265 = vmatpush.bf16.msra.mxu2 %v3391_v49  ;;  %2234 = vmatmul.bf16.vlgmr.msrb.gmra.mxu3 %v4644_v31  ;;  %v3439_v31 = vor.u32 %v3738_v29, %v3436_v4  ;;  %v3239_v9 = vor.u32 %v3688_v33, %v3236_v23  ;;  %v3348_v49 = vld [vmem:[%s5618_s1 + $0x828] sm:$0xf0]  ;;  %v3279_v4 = vor.u32 %v3698_v19, %v3276_v63  ;;  %v3696_v33 = vld [vmem:[%s5618_s1 + $0x784] sm:$0xf] }
 0x107   :  { %2278 = vmatpush.bf16.msra.mxu3 %v3455_v53  ;;  %v3412_v53 = vld [vmem:[%s5618_s1 + $0x8a8] sm:$0xf0]  ;;  %v3407_v23 = vor.u32 %v3730_v3, %v3404_v41  ;;  %v3271_v30 = vor.u32 %v3696_v33, %v3268_v7  ;;  %v2291_v7 = vld [vmem:[%s5621_s3] sm:$0xff] }
 0x108   :  { %2240 = vmatpush.bf16.msra.mxu0 %v3255_v59  ;;  %v2014_v46 = vpop.f32.mrf.mxu2  ;;  %v1990_v54 = vpop.f32.mrf.mxu0  ;;  %v3351_v59 = vor.u32 %v3716_v48, %v3348_v49  ;;  %v3415_v22 = vor.u32 %v3732_v52, %v3412_v53 }
 0x109   :  { %2253 = vmatpush.bf16.msra.mxu1 %v3319_v60  ;;  %v2015_v50 = vadd.f32 %v2014_v46, %v2002_v16  ;;  %v2027_v51 = vpop.f32.mrf.mxu3  ;;  %v2003_v56 = vpop.f32.mrf.mxu1  ;;  %v3682_v60 = vld [vmem:[%s5618_s1 + $0x714] sm:$0xf] }
 0x10a   :  { %2266 = vmatpush.bf16.msra.mxu2 %v3383_v61  ;;  %v3212_v61 = vld [vmem:[%s5618_s1 + $0x718] sm:$0xf0] }
 0x10b   :  { %2279 = vmatpush.bf16.msra.mxu3 %v3447_v1  ;;  %v2028_v57 = vadd.f32 %v2027_v51, %v2015_v50  ;;  %v3714_v1 = vld [vmem:[%s5618_s1 + $0x814] sm:$0xf]  ;;  %v3215_v29 = vor.u32 %v3682_v60, %v3212_v61 }
 0x10c   :  { %2241 = vmatpush.bf16.msra.mxu0 %v3247_v5  ;;  %v3343_v5 = vor.u32 %v3714_v1, %v3340_v2 }
 0x10d   :  { %2254 = vmatpush.bf16.msra.mxu1 %v3311_v6  ;;  %v3680_v6 = vld [vmem:[%s5618_s1 + $0x704] sm:$0xf] }
 0x10e   :  { %2267 = vmatpush.bf16.msra.mxu2 %v3375_v38  ;;  %v3204_v38 = vld [vmem:[%s5618_s1 + $0x708] sm:$0xf0] }
 0x10f   :  { %2280 = vmatpush.bf16.msra.mxu3 %v3439_v31  ;;  %v3712_v31 = vld [vmem:[%s5618_s1 + $0x804] sm:$0xf]  ;;  %v3207_v20 = vor.u32 %v3680_v6, %v3204_v38 }
 0x110   :  { %2242 = vmatpush.bf16.msra.mxu0 %v3239_v9  ;;  %v2016_v18 = vpop.f32.mrf.mxu2  ;;  %v3335_v9 = vor.u32 %v3712_v31, %v3332_v8  ;;  %v2292_v31 = vunpack.c.l.bf16 %v2291_v7 }
 0x111   :  { %2255 = vmatpush.bf16.msra.mxu1 %v3303_v11  ;;  %v2029_v25 = vpop.f32.mrf.mxu3 }
 0x112   :  { %2268 = vmatpush.bf16.msra.mxu2 %v3367_v12  ;;  %v2293_v25 = vunpack.c.h.bf16 %v2291_v7 }
 0x113   :  { %2281 = vmatpush.bf16.msra.mxu3 %v3431_v0  ;;  %v317_v0 = vperm.slane %v3744_v15, 1 }
 0x114   :  { %2243 = vmatpush.bf16.msra.mxu0 %v3231_v36 }
 0x115   :  { %2256 = vmatpush.bf16.msra.mxu1 %v3295_v62 }
 0x116   :  { %2269 = vmatpush.bf16.msra.mxu2 %v3359_v37 }
 0x117   :  { %2282 = vmatpush.bf16.msra.mxu3 %v3423_v24 }
 0x118   :  { %2244 = vmatpush.bf16.msra.mxu0 %v3223_v55 }
 0x119   :  { %2257 = vmatpush.bf16.msra.mxu1 %v3287_v58 }
 0x11a   :  { %2270 = vmatpush.bf16.msra.mxu2 %v3351_v59 }
 0x11b   :  { %2283 = vmatpush.bf16.msra.mxu3 %v3415_v22 }
 0x11c   :  { %2245 = vmatpush.bf16.msra.mxu0 %v3215_v29 }
 0x11d   :  { %2258 = vmatpush.bf16.msra.mxu1 %v3279_v4 }
 0x11e   :  { %2271 = vmatpush.bf16.msra.mxu2 %v3343_v5 }
 0x11f   :  { %2284 = vmatpush.bf16.msra.mxu3 %v3407_v23 }
 0x120   :  { %2246 = vmatpush.bf16.msra.mxu0 %v3207_v20  ;;  %v2040_v11 = vpop.f32.mrf.mxu0 }
 0x121   :  { %2259 = vmatpush.bf16.msra.mxu1 %v3271_v30  ;;  %v2041_v12 = vadd.f32 %v2040_v11, %v2028_v57  ;;  %v2053_v13 = vpop.f32.mrf.mxu1 }
 0x122   :  { %2272 = vmatpush.bf16.msra.mxu2 %v3335_v9 }
 0x123   :  { %2285 = vmatpush.bf16.msra.mxu3 %v3399_v10  ;;  %2247 = vmatmul.bf16.vlgmr.msra.gmra.mxu0 %v4642_v28  ;;  %v2054_v14 = vadd.f32 %v2053_v13, %v2041_v12 }
 0x124   :  { %2260 = vmatmul.bf16.vlgmr.msra.gmra.mxu1 %v4652_v35 }
 0x125   :  { %2273 = vmatmul.bf16.vlgmr.msra.gmra.mxu2 %v4838_v32  ;;  %v2294_v9 = vadd.f32 %v2292_v31, %v2054_v14 }
 0x126   :  { %2286 = vmatmul.bf16.vlgmr.msra.gmra.mxu3 %v4849_v39 }
 0x127   :  { %v2296_v12 = vmax.f32 %v2294_v9, 0.0 }
 0x128   :  { %v2066_v16 = vpop.f32.mrf.mxu2  ;;  %v2042_v26 = vpop.f32.mrf.mxu0 }
 0x129   :  { %v2067_v17 = vadd.f32 %v2066_v16, %v317_v0  ;;  %v2079_v21 = vpop.f32.mrf.mxu3  ;;  %v2055_v28 = vpop.f32.mrf.mxu1 }
 0x12b   :  { %v2080_v27 = vadd.f32 %v2079_v21, %v2067_v17 }
 0x130   :  { %v2068_v35 = vpop.f32.mrf.mxu2 }
 0x131   :  { %v2081_v34 = vpop.f32.mrf.mxu3 }
 0x140   :  { %v2092_v32 = vpop.f32.mrf.mxu0 }
 0x141   :  { %v2093_v36 = vadd.f32 %v2092_v32, %v2080_v27  ;;  %v2105_v39 = vpop.f32.mrf.mxu1 }
 0x143   :  { %v2106_v62 = vadd.f32 %v2105_v39, %v2093_v36 }
 0x148   :  { %v2118_v37 = vpop.f32.mrf.mxu2  ;;  %v2094_v24 = vpop.f32.mrf.mxu0 }
 0x149   :  { %v2119_v40 = vadd.f32 %v2118_v37, %v2106_v62  ;;  %v2131_v43 = vpop.f32.mrf.mxu3  ;;  %v2107_v46 = vpop.f32.mrf.mxu1 }
 0x14b   :  { %v2132_v45 = vadd.f32 %v2131_v43, %v2119_v40 }
 0x150   :  { %v2120_v47 = vpop.f32.mrf.mxu2 }
 0x151   :  { %v2133_v48 = vpop.f32.mrf.mxu3 }
 0x160   :  { %v2144_v49 = vpop.f32.mrf.mxu0 }
 0x161   :  { %v2157_v50 = vpop.f32.mrf.mxu1  ;;  %v2145_v59 = vadd.f32 %v2144_v49, %v2132_v45 }
 0x163   :  { %v2158_v63 = vadd.f32 %v2157_v50, %v2145_v59 }
 0x168   :  { %v2170_v51 = vpop.f32.mrf.mxu2  ;;  %v2146_v53 = vpop.f32.mrf.mxu0 }
 0x169   :  { %v2183_v52 = vpop.f32.mrf.mxu3  ;;  %v2159_v54 = vpop.f32.mrf.mxu1  ;;  %v2171_v1 = vadd.f32 %v2170_v51, %v2158_v63 }
 0x16b   :  { %v2184_v41 = vadd.f32 %v2183_v52, %v2171_v1 }
 0x170   :  { %v2172_v55 = vpop.f32.mrf.mxu2 }
 0x171   :  { %v2185_v56 = vpop.f32.mrf.mxu3 }
 0x180   :  { %v2196_v57 = vpop.f32.mrf.mxu0 }
 0x181   :  { %v2209_v58 = vpop.f32.mrf.mxu1  ;;  %v2197_v29 = vadd.f32 %v2196_v57, %v2184_v41 }
 0x183   :  { %v2210_v4 = vadd.f32 %v2209_v58, %v2197_v29 }
 0x188   :  { %v2222_v60 = vpop.f32.mrf.mxu2  ;;  %v2198_v19 = vpop.f32.mrf.mxu0 }
 0x189   :  { %v2235_v61 = vpop.f32.mrf.mxu3  ;;  %v2211_v22 = vpop.f32.mrf.mxu1  ;;  %v2223_v5 = vadd.f32 %v2222_v60, %v2210_v4 }
 0x18b   :  { %v2236_v6 = vadd.f32 %v2235_v61, %v2223_v5 }
 0x190   :  { %v2224_v2 = vpop.f32.mrf.mxu2 }
 0x191   :  { %v2237_v3 = vpop.f32.mrf.mxu3 }
 0x1a0   :  { %v2248_v38 = vpop.f32.mrf.mxu0 }
 0x1a1   :  { %v2261_v33 = vpop.f32.mrf.mxu1  ;;  %v2249_v23 = vadd.f32 %v2248_v38, %v2236_v6 }
 0x1a3   :  { %v2262_v8 = vadd.f32 %v2261_v33, %v2249_v23 }
 0x1a8   :  { %v2274_v18 = vpop.f32.mrf.mxu2  ;;  %v2250_v20 = vpop.f32.mrf.mxu0 }
 0x1a9   :  { %v2275_v44 = vadd.f32 %v2274_v18, %v2262_v8  ;;  %v2287_v42 = vpop.f32.mrf.mxu3  ;;  %v2263_v30 = vpop.f32.mrf.mxu1 }
 0x1ab   :  { %v2288_v10 = vadd.f32 %v2287_v42, %v2275_v44 }
 0x1ad   :  { %v2295_v11 = vadd.f32 %v2293_v25, %v2288_v10 }
 0x1af   :  { %v2297_v13 = vmax.f32 %v2295_v11, 0.0 }
 0x1b0   :  { %v2276_v15 = vpop.f32.mrf.mxu2 }
 0x1b1   :  { %v2298_v0 = vpack.c.bf16 %v2297_v13, %v2296_v12  ;;  %v2289_v16 = vpop.f32.mrf.mxu3 }
 0x1b3   :  { %2299 = vst [vmem:[%s5622_s4] sm:$0xff] %v2298_v0 }

</bundles_post_ra>
